<compile_context>
chip_gen: v6e
topology: v6e:2x2x1
jax: 0.10.0
libtpu: 0.0.40
codegen_flags: <defaults>
</compile_context>

<pallas_src>
import functools
import math

import jax
import jax.numpy as jnp
from jax.experimental import pallas as pl
from jax.experimental.pallas import tpu as pltpu

# ----------------------- configuration (small, deterministic) ---------------
SIZE = 32          # conformer model dim (multiple of HEADS)
BLOCKS = 2         # conf_blocks_num
CONV_K = 3         # conv_kernel_size (odd -> 'same' depthwise padding)
IN_CH = 1          # in_channels (forward does unsqueeze(1))
KSZ = 16           # encoder/decoder kernel_size
STRIDE = 8         # encoder/decoder stride
HEADS = 4          # num_heads
EXP = 4            # expansion_factor
LN_EPS = 1e-5

assert KSZ == 2 * STRIDE, "framing / overlap-add reshape trick assumes kernel_size == 2*stride"
assert SIZE % HEADS == 0


# ----------------------------- fused model kernel ----------------------------
def _model_kernel(B, L, *refs):
    (frames_ref, enc_w_ref, enc_b_ref,
     ln_g_ref, ln_b_ref,
     ff1_w1_ref, ff1_b1_ref, ff1_w2_ref, ff1_b2_ref,
     wq_ref, wk_ref, wv_ref, bq_ref, bk_ref, bv_ref, wo_ref, bo_ref,
     pw1a_w_ref, pw1a_b_ref, pw1g_w_ref, pw1g_b_ref,
     dw_w_ref, bn_s_ref, bn_sh_ref, pw2_w_ref, pw2_b_ref,
     ff2_w1_ref, ff2_b1_ref, ff2_w2_ref, ff2_b2_ref,
     rep_w_ref, proj_w_ref, proj_b_ref, dec_w_ref,
     out_ref) = refs

    BL = B * L
    D = SIZE
    dh = D // HEADS
    scale = 1.0 / math.sqrt(dh)
    f32 = jnp.float32
    bf16 = jnp.bfloat16

    def mm(x, w, b=None):
        # bf16 MXU operands, f32 accumulation; elementwise math stays f32.
        y = jnp.dot(x.astype(bf16), w.astype(bf16), preferred_element_type=f32)
        return y if b is None else y + b

    def layer_norm(x, g, b):
        mu = jnp.mean(x, axis=-1, keepdims=True)
        xc = x - mu
        var = jnp.mean(xc * xc, axis=-1, keepdims=True)
        return xc * jax.lax.rsqrt(var + LN_EPS) * g + b

    def silu(v):
        return v * jax.nn.sigmoid(v)

    # ---- constants hoisted out of the block loop (built once) ----
    # block-diagonal "same sample" attention mask (batch folded into rows);
    # built with static per-sample ranges (no int div/mod in-kernel).
    r_i = jax.lax.broadcasted_iota(jnp.int32, (BL, BL), 0)
    c_i = jax.lax.broadcasted_iota(jnp.int32, (BL, BL), 1)
    same = None
    for b in range(B):
        rb = (r_i >= b * L) & (r_i < (b + 1) * L)
        cb = (c_i >= b * L) & (c_i < (b + 1) * L)
        blk_mask = rb & cb
        same = blk_mask if same is None else (same | blk_mask)
    neg_big = jnp.float32(-1e30)

    # per-offset validity masks for the 'same'-padded depthwise conv
    row1 = jax.lax.broadcasted_iota(jnp.int32, (BL, 1), 0)
    pad = (CONV_K - 1) // 2

    def offset_mask(d):
        m = None
        for b in range(B):
            lo = b * L + max(0, -d)
            hi = b * L + (L - 1) - max(0, d)
            in_rng = (row1 >= lo) & (row1 <= hi)
            m = in_rng if m is None else (m | in_rng)
        return m

    conv_masks = [None if kk == pad else offset_mask(kk - pad) for kk in range(CONV_K)]

    # ---- Encoder: Conv1d(1, SIZE, KSZ, STRIDE) + ReLU on pre-framed input ----
    encoded = jnp.maximum(mm(frames_ref[...], enc_w_ref[...], enc_b_ref[...]), 0.0)  # (BL, D)
    h = encoded                                                   # residual stream

    # ---- Conformer blocks: all weights stay resident in VMEM ----
    for blk in range(BLOCKS):
        lg = ln_g_ref[blk]                                        # (5, D)
        lb = ln_b_ref[blk]

        # Feed-forward module #1 (Macaron half-step).  Dropout == identity.
        t = layer_norm(h, lg[0:1], lb[0:1])
        t = silu(mm(t, ff1_w1_ref[blk], ff1_b1_ref[blk]))
        h = h + 0.5 * mm(t, ff1_w2_ref[blk], ff1_b2_ref[blk])

        # Multi-head self-attention: per-head q/k/v weight matrices (no lane
        # slicing), whole batch at once with the block-diagonal score mask,
        # single output projection after a lane concat of the heads.
        # TODO(synk): canonical Conformer uses relative positional MHSA; plain
        # scaled-dot-product MHSA is used since the sub-module source is absent.
        # TODO(synk): before scaling L, switch to flash-style KV tiling (the
        # full (BL, BL) f32 score matrix would not fit v7x VMEM at audio lengths).
        t = layer_norm(h, lg[1:2], lb[1:2])
        heads_out = []
        for hh in range(HEADS):
            idx = blk * HEADS + hh
            q = mm(t, wq_ref[idx], bq_ref[idx])                   # (BL, dh)
            k = mm(t, wk_ref[idx], bk_ref[idx])
            v = mm(t, wv_ref[idx], bv_ref[idx])
            s = jax.lax.dot_general(q.astype(bf16), k.astype(bf16),
                                    (((1,), (1,)), ((), ())),
                                    preferred_element_type=f32) * scale
            s = jnp.where(same, s, neg_big)
            s = s - jnp.max(s, axis=-1, keepdims=True)
            p = jnp.exp(s)
            p = p * pl.reciprocal(jnp.sum(p, axis=-1, keepdims=True), approx=True)
            heads_out.append(mm(p, v))                            # (BL, dh)
        ctx = jnp.concatenate(heads_out, axis=-1)                 # (BL, D)
        h = h + mm(ctx, wo_ref[blk], bo_ref[blk])

        # Conv module: 2 pointwise halves -> GLU -> depthwise('same') -> BN ->
        # SiLU -> pointwise.  Depthwise conv = shifted rows + boundary masks.
        t = layer_norm(h, lg[2:3], lb[2:3])
        a = mm(t, pw1a_w_ref[blk], pw1a_b_ref[blk])               # content half
        gate = mm(t, pw1g_w_ref[blk], pw1g_b_ref[blk])            # gate half
        glu = a * jax.nn.sigmoid(gate)                            # (BL, D)
        dw = dw_w_ref[blk]                                        # (CONV_K, D)
        acc = None
        for kk in range(CONV_K):
            d = kk - pad
            if d == 0:
                contrib = glu * dw[kk:kk + 1, :]
            else:
                if d < 0:
                    shifted = jnp.concatenate(
                        [jnp.zeros((-d, D), f32), glu[:BL + d, :]], axis=0)
                else:
                    shifted = jnp.concatenate(
                        [glu[d:, :], jnp.zeros((d, D), f32)], axis=0)
                contrib = jnp.where(conv_masks[kk], shifted, 0.0) * dw[kk:kk + 1, :]
            acc = contrib if acc is None else acc + contrib
        # TODO(synk): BatchNorm folded assuming untrained running stats (mean=0, var=1).
        y = silu(acc * bn_s_ref[blk] + bn_sh_ref[blk])
        h = h + mm(y, pw2_w_ref[blk], pw2_b_ref[blk])

        # Feed-forward module #2 (half-step) + final LayerNorm.
        t = layer_norm(h, lg[3:4], lb[3:4])
        t = silu(mm(t, ff2_w1_ref[blk], ff2_b1_ref[blk]))
        h = h + 0.5 * mm(t, ff2_w2_ref[blk], ff2_b2_ref[blk])
        h = layer_norm(h, lg[4:5], lb[4:5])

    # ---- mask head + mask application + block-diagonal decoder matmul ----
    # torch chain: conformed -> reshape [L, SIZE, 2] -> sigmoid;
    #   masked[l, 2f+s] = encoded[l, f] * sigmoid(conformed[l, 2f+s]); the
    #   permute/reshape then routes masked channels by c // SIZE to the two
    #   decoder copies.  rep_w is the constant 0/1 interleave matrix, dec_w_ref
    #   the block-diagonal decoder weight -> two matmuls + one sigmoid multiply.
    conf = mm(h, proj_w_ref[...], proj_b_ref[...])                # (BL, 2D)
    rep = mm(encoded, rep_w_ref[...])                             # rep[:, c] = encoded[:, c//2]
    masked = rep * jax.nn.sigmoid(conf)
    out_ref[...] = mm(masked, dec_w_ref[...]).astype(out_ref.dtype)  # (BL, 2*KSZ)


def _full_spec(arr):
    nd = arr.ndim
    return pl.BlockSpec(arr.shape, lambda i: (0,) * nd)


# ----------------------------- parameters ------------------------------------
def init_params(key):
    keys = iter(jax.random.split(key, 32))

    def nrm(shape, s=0.05):
        return (s * jax.random.normal(next(keys), shape)).astype(jnp.float32)

    def zeros(shape):
        return jnp.zeros(shape, jnp.float32)

    bn_eps = 1e-5
    params = {
        "enc_w": nrm((IN_CH * KSZ, SIZE)),
        "enc_b": zeros((1, SIZE)),
        "ln_g": jnp.ones((BLOCKS, 5, SIZE), jnp.float32),   # ff1 / att / conv / ff2 / final
        "ln_b": zeros((BLOCKS, 5, SIZE)),
        "ff1_w1": nrm((BLOCKS, SIZE, EXP * SIZE)), "ff1_b1": zeros((BLOCKS, 1, EXP * SIZE)),
        "ff1_w2": nrm((BLOCKS, EXP * SIZE, SIZE)), "ff1_b2": zeros((BLOCKS, 1, SIZE)),
        "qkv_w": nrm((BLOCKS, SIZE, 3 * SIZE)), "qkv_b": zeros((BLOCKS, 1, 3 * SIZE)),
        "wo": nrm((BLOCKS, SIZE, SIZE)), "bo": zeros((BLOCKS, 1, SIZE)),
        "pw1_w": nrm((BLOCKS, SIZE, 2 * SIZE)), "pw1_b": zeros((BLOCKS, 1, 2 * SIZE)),
        "dw_w": nrm((BLOCKS, CONV_K, SIZE)),
        "bn_scale": jnp.ones((BLOCKS, 1, SIZE), jnp.float32) / jnp.sqrt(1.0 + bn_eps),
        "bn_shift": zeros((BLOCKS, 1, SIZE)),
        "pw2_w": nrm((BLOCKS, SIZE, SIZE)), "pw2_b": zeros((BLOCKS, 1, SIZE)),
        "ff2_w1": nrm((BLOCKS, SIZE, EXP * SIZE)), "ff2_b1": zeros((BLOCKS, 1, EXP * SIZE)),
        "ff2_w2": nrm((BLOCKS, EXP * SIZE, SIZE)), "ff2_b2": zeros((BLOCKS, 1, SIZE)),
        "proj_w": nrm((SIZE, 2 * SIZE)),   # mask head -> [.., size, 2] after torch reshape
        "proj_b": zeros((1, 2 * SIZE)),
        "dec_w": nrm((SIZE, IN_CH * KSZ)),  # ConvTranspose1d weight, bias=False
    }
    return params


def pack_params(params):
    """One-time weight relayout / bf16 cast, done once OUTSIDE the jitted forward."""
    bf16 = jnp.bfloat16
    dh = SIZE // HEADS

    qkv_w = params["qkv_w"]                      # (BLOCKS, SIZE, 3*SIZE)
    qkv_b = params["qkv_b"]                      # (BLOCKS, 1, 3*SIZE)
    q_w, k_w, v_w = (qkv_w[:, :, 0:SIZE], qkv_w[:, :, SIZE:2 * SIZE], qkv_w[:, :, 2 * SIZE:])
    q_b, k_b, v_b = (qkv_b[:, :, 0:SIZE], qkv_b[:, :, SIZE:2 * SIZE], qkv_b[:, :, 2 * SIZE:])

    def per_head_w(w):   # (BLOCKS, SIZE, SIZE) -> (BLOCKS*HEADS, SIZE, dh), bf16
        w = w.reshape(BLOCKS, SIZE, HEADS, dh)
        w = jnp.transpose(w, (0, 2, 1, 3)).reshape(BLOCKS * HEADS, SIZE, dh)
        return w.astype(bf16)

    def per_head_b(b):   # (BLOCKS, 1, SIZE) -> (BLOCKS*HEADS, 1, dh), f32
        return b.reshape(BLOCKS, HEADS, dh).reshape(BLOCKS * HEADS, 1, dh).astype(jnp.float32)

    pw1_w, pw1_b = params["pw1_w"], params["pw1_b"]

    # Constant matrices folding the torch mask reshape/permute chain into matmuls.
    rep_w = jnp.kron(jnp.eye(SIZE, dtype=jnp.float32),
                     jnp.ones((1, 2), jnp.float32))                        # (SIZE, 2*SIZE)
    dec_w2 = jnp.kron(jnp.eye(2, dtype=jnp.float32), params["dec_w"])      # (2*SIZE, 2*KSZ)

    return dict(
        enc_w=params["enc_w"].astype(bf16), enc_b=params["enc_b"],
        ln_g=params["ln_g"], ln_b=params["ln_b"],
        ff1_w1=params["ff1_w1"].astype(bf16), ff1_b1=params["ff1_b1"],
        ff1_w2=params["ff1_w2"].astype(bf16), ff1_b2=params["ff1_b2"],
        wq=per_head_w(q_w), wk=per_head_w(k_w), wv=per_head_w(v_w),
        bq=per_head_b(q_b), bk=per_head_b(k_b), bv=per_head_b(v_b),
        wo=params["wo"].astype(bf16), bo=params["bo"],
        pw1a_w=pw1_w[:, :, :SIZE].astype(bf16), pw1a_b=pw1_b[:, :, :SIZE],
        pw1g_w=pw1_w[:, :, SIZE:].astype(bf16), pw1g_b=pw1_b[:, :, SIZE:],
        dw_w=params["dw_w"], bn_s=params["bn_scale"], bn_sh=params["bn_shift"],
        pw2_w=params["pw2_w"].astype(bf16), pw2_b=params["pw2_b"],
        ff2_w1=params["ff2_w1"].astype(bf16), ff2_b1=params["ff2_b1"],
        ff2_w2=params["ff2_w2"].astype(bf16), ff2_b2=params["ff2_b2"],
        rep_w=rep_w.astype(bf16), proj_w=params["proj_w"].astype(bf16),
        proj_b=params["proj_b"], dec_w2=dec_w2.astype(bf16),
    )


# ----------------------------- forward ---------------------------------------
def conformer_bss_forward(packed, x):
    B, T = x.shape
    L = (T - KSZ) // STRIDE + 1
    BL = B * L

    # Encoder framing via two contiguous reshapes (KSZ == 2*STRIDE) -- no gather.
    f0 = x[:, :L * STRIDE].reshape(B, L, STRIDE)
    f1 = x[:, STRIDE:STRIDE + L * STRIDE].reshape(B, L, STRIDE)
    frames = jnp.concatenate([f0, f1], axis=-1).astype(jnp.float32).reshape(BL, KSZ)

    inputs = (frames,
              packed["enc_w"], packed["enc_b"],
              packed["ln_g"], packed["ln_b"],
              packed["ff1_w1"], packed["ff1_b1"], packed["ff1_w2"], packed["ff1_b2"],
              packed["wq"], packed["wk"], packed["wv"],
              packed["bq"], packed["bk"], packed["bv"],
              packed["wo"], packed["bo"],
              packed["pw1a_w"], packed["pw1a_b"], packed["pw1g_w"], packed["pw1g_b"],
              packed["dw_w"], packed["bn_s"], packed["bn_sh"],
              packed["pw2_w"], packed["pw2_b"],
              packed["ff2_w1"], packed["ff2_b1"], packed["ff2_w2"], packed["ff2_b2"],
              packed["rep_w"], packed["proj_w"], packed["proj_b"], packed["dec_w2"])

    kernel = functools.partial(_model_kernel, B, L)
    dec = pl.pallas_call(
        kernel,
        out_shape=jax.ShapeDtypeStruct((BL, 2 * KSZ), jnp.float32),
        grid=(1,),
        in_specs=[_full_spec(a) for a in inputs],
        out_specs=pl.BlockSpec((BL, 2 * KSZ), lambda i: (0, 0)),
        compiler_params=pltpu.CompilerParams(dimension_semantics=("arbitrary",)),
    )(*inputs)                                                             # (BL, 2*KSZ)

    # Decoder overlap-add: KSZ == 2*STRIDE -> two shifted contiguous adds (no scatter).
    dec = dec.reshape(B, L, 2, KSZ).transpose(0, 2, 1, 3)                  # (B, 2, L, KSZ)
    p0 = dec[..., :STRIDE].reshape(B, 2, L * STRIDE)
    p1 = dec[..., STRIDE:].reshape(B, 2, L * STRIDE)
    out = (jnp.pad(p0, ((0, 0), (0, 0), (0, STRIDE)))
           + jnp.pad(p1, ((0, 0), (0, 0), (STRIDE, 0))))                   # (B, 2, T_out)
    return out


# ------------------- pure-JAX reference (mirrors torch chain) ----------------
def _reference_forward(params, x):
    B, T = x.shape
    L = (T - KSZ) // STRIDE + 1
    idx = jnp.arange(L)[:, None] * STRIDE + jnp.arange(KSZ)[None, :]
    frames = x[:, idx]                                                     # (B, L, KSZ)
    enc = jax.nn.relu(frames @ params["enc_w"] + params["enc_b"])          # (B, L, S)

    def ln(v, g, b):
        mu = v.mean(-1, keepdims=True)
        vc = v - mu
        return vc * jax.lax.rsqrt((vc * vc).mean(-1, keepdims=True) + LN_EPS) * g + b

    silu = lambda v: v * jax.nn.sigmoid(v)
    dh = SIZE // HEADS
    h = enc
    for i in range(BLOCKS):
        lg, lb = params["ln_g"][i], params["ln_b"][i]
        t = ln(h, lg[0], lb[0])
        t = silu(t @ params["ff1_w1"][i] + params["ff1_b1"][i])
        h = h + 0.5 * (t @ params["ff1_w2"][i] + params["ff1_b2"][i])

        t = ln(h, lg[1], lb[1])
        qkv = t @ params["qkv_w"][i] + params["qkv_b"][i]
        q, k, v = jnp.split(qkv, 3, axis=-1)
        heads = lambda z: z.reshape(B, L, HEADS, dh).transpose(0, 2, 1, 3)
        s = jnp.einsum("bhld,bhmd->bhlm", heads(q), heads(k)) / math.sqrt(dh)
        p = jax.nn.softmax(s, axis=-1)
        ctx = jnp.einsum("bhlm,bhmd->bhld", p, heads(v)).transpose(0, 2, 1, 3).reshape(B, L, SIZE)
        h = h + (ctx @ params["wo"][i] + params["bo"][i])

        t = ln(h, lg[2], lb[2])
        t = t @ params["pw1_w"][i] + params["pw1_b"][i]
        glu = t[..., :SIZE] * jax.nn.sigmoid(t[..., SIZE:])
        pad = (CONV_K - 1) // 2
        gp = jnp.pad(glu, ((0, 0), (pad, pad), (0, 0)))
        acc = sum(gp[:, kk:kk + L, :] * params["dw_w"][i][kk] for kk in range(CONV_K))
        y = silu(acc * params["bn_scale"][i] + params["bn_shift"][i])
        h = h + (y @ params["pw2_w"][i] + params["pw2_b"][i])

        t = ln(h, lg[3], lb[3])
        t = silu(t @ params["ff2_w1"][i] + params["ff2_b1"][i])
        h = h + 0.5 * (t @ params["ff2_w2"][i] + params["ff2_b2"][i])
        h = ln(h, lg[4], lb[4])

    conf = h @ params["proj_w"] + params["proj_b"]                         # (B, L, 2S)
    mask = jax.nn.sigmoid(conf.reshape(B, L, SIZE, 2))
    xm = (enc[..., None] * mask).reshape(B, L, 2 * SIZE)
    xm = jnp.transpose(xm, (0, 2, 1))
    xm = xm.reshape(B, 2, SIZE, L).reshape(B * 2, SIZE, L)
    z = jnp.transpose(xm, (0, 2, 1)) @ params["dec_w"]                     # (B*2, L, KSZ)
    T_out = (L - 1) * STRIDE + KSZ
    out = jnp.zeros((B * 2, T_out), jnp.float32)
    pos = jnp.arange(L) * STRIDE
    for kk in range(KSZ):
        out = out.at[:, pos + kk].add(z[:, :, kk])
    return out.reshape(B, 2, T_out)


# ----------------------------- main ------------------------------------------
if __name__ == "__main__":
    key = jax.random.PRNGKey(0)
    pkey, xkey = jax.random.split(key)
    params = init_params(pkey)
    packed = pack_params(params)         # one-time relayout / bf16 cast, outside jit

    B, T = 2, 128
    x = jax.random.normal(xkey, (B, T), dtype=jnp.float32)

    fwd = jax.jit(conformer_bss_forward)
    out = fwd(packed, x)
    jax.block_until_ready(out)

    L = (T - KSZ) // STRIDE + 1
    T_out = (L - 1) * STRIDE + KSZ
    assert out.shape == (B, 2, T_out), out.shape
    assert bool(jnp.all(jnp.isfinite(out)))

    ref = jax.jit(_reference_forward)(params, x)
    err = float(jnp.max(jnp.abs(out - ref)) / (jnp.max(jnp.abs(ref)) + 1e-8))
    assert err < 2e-2, f"kernel vs pure-JAX reference relative error {err}"

    print("KERNEL_OK")
</pallas_src>

<mosaic_0001>
module attributes {stable_mosaic.version = 11 : i64} {
  func.func @_model_kernel(%arg0: i32, %arg1: memref<30x16xf32, #tpu.memory_space<vmem>>, %arg2: memref<16x32xbf16, #tpu.memory_space<vmem>>, %arg3: memref<1x32xf32, #tpu.memory_space<vmem>>, %arg4: memref<2x5x32xf32, #tpu.memory_space<vmem>>, %arg5: memref<2x5x32xf32, #tpu.memory_space<vmem>>, %arg6: memref<2x32x128xbf16, #tpu.memory_space<vmem>>, %arg7: memref<2x1x128xf32, #tpu.memory_space<vmem>>, %arg8: memref<2x128x32xbf16, #tpu.memory_space<vmem>>, %arg9: memref<2x1x32xf32, #tpu.memory_space<vmem>>, %arg10: memref<8x32x8xbf16, #tpu.memory_space<vmem>>, %arg11: memref<8x32x8xbf16, #tpu.memory_space<vmem>>, %arg12: memref<8x32x8xbf16, #tpu.memory_space<vmem>>, %arg13: memref<8x1x8xf32, #tpu.memory_space<vmem>>, %arg14: memref<8x1x8xf32, #tpu.memory_space<vmem>>, %arg15: memref<8x1x8xf32, #tpu.memory_space<vmem>>, %arg16: memref<2x32x32xbf16, #tpu.memory_space<vmem>>, %arg17: memref<2x1x32xf32, #tpu.memory_space<vmem>>, %arg18: memref<2x32x32xbf16, #tpu.memory_space<vmem>>, %arg19: memref<2x1x32xf32, #tpu.memory_space<vmem>>, %arg20: memref<2x32x32xbf16, #tpu.memory_space<vmem>>, %arg21: memref<2x1x32xf32, #tpu.memory_space<vmem>>, %arg22: memref<2x3x32xf32, #tpu.memory_space<vmem>>, %arg23: memref<2x1x32xf32, #tpu.memory_space<vmem>>, %arg24: memref<2x1x32xf32, #tpu.memory_space<vmem>>, %arg25: memref<2x32x32xbf16, #tpu.memory_space<vmem>>, %arg26: memref<2x1x32xf32, #tpu.memory_space<vmem>>, %arg27: memref<2x32x128xbf16, #tpu.memory_space<vmem>>, %arg28: memref<2x1x128xf32, #tpu.memory_space<vmem>>, %arg29: memref<2x128x32xbf16, #tpu.memory_space<vmem>>, %arg30: memref<2x1x32xf32, #tpu.memory_space<vmem>>, %arg31: memref<32x64xbf16, #tpu.memory_space<vmem>>, %arg32: memref<32x64xbf16, #tpu.memory_space<vmem>>, %arg33: memref<1x64xf32, #tpu.memory_space<vmem>>, %arg34: memref<64x32xbf16, #tpu.memory_space<vmem>>, %arg35: memref<30x32xf32, #tpu.memory_space<vmem>>) attributes {dimension_semantics = [#tpu.dimension_semantics<arbitrary>], iteration_bounds = array<i64: 1>, scalar_prefetch = 0 : i64, scratch_operands = 0 : i64, tpu.core_type = #tpu.core_type<tc>, window_params = [{pipeline_mode = #tpu.pipeline_mode<synchronous>, transform_indices = @transform_0, window_bounds = array<i64: 30, 16>}, {pipeline_mode = #tpu.pipeline_mode<synchronous>, transform_indices = @transform_1, window_bounds = array<i64: 16, 32>}, {pipeline_mode = #tpu.pipeline_mode<synchronous>, transform_indices = @transform_2, window_bounds = array<i64: 1, 32>}, {pipeline_mode = #tpu.pipeline_mode<synchronous>, transform_indices = @transform_3, window_bounds = array<i64: 2, 5, 32>}, {pipeline_mode = #tpu.pipeline_mode<synchronous>, transform_indices = @transform_4, window_bounds = array<i64: 2, 5, 32>}, {pipeline_mode = #tpu.pipeline_mode<synchronous>, transform_indices = @transform_5, window_bounds = array<i64: 2, 32, 128>}, {pipeline_mode = #tpu.pipeline_mode<synchronous>, transform_indices = @transform_6, window_bounds = array<i64: 2, 1, 128>}, {pipeline_mode = #tpu.pipeline_mode<synchronous>, transform_indices = @transform_7, window_bounds = array<i64: 2, 128, 32>}, {pipeline_mode = #tpu.pipeline_mode<synchronous>, transform_indices = @transform_8, window_bounds = array<i64: 2, 1, 32>}, {pipeline_mode = #tpu.pipeline_mode<synchronous>, transform_indices = @transform_9, window_bounds = array<i64: 8, 32, 8>}, {pipeline_mode = #tpu.pipeline_mode<synchronous>, transform_indices = @transform_10, window_bounds = array<i64: 8, 32, 8>}, {pipeline_mode = #tpu.pipeline_mode<synchronous>, transform_indices = @transform_11, window_bounds = array<i64: 8, 32, 8>}, {pipeline_mode = #tpu.pipeline_mode<synchronous>, transform_indices = @transform_12, window_bounds = array<i64: 8, 1, 8>}, {pipeline_mode = #tpu.pipeline_mode<synchronous>, transform_indices = @transform_13, window_bounds = array<i64: 8, 1, 8>}, {pipeline_mode = #tpu.pipeline_mode<synchronous>, transform_indices = @transform_14, window_bounds = array<i64: 8, 1, 8>}, {pipeline_mode = #tpu.pipeline_mode<synchronous>, transform_indices = @transform_15, window_bounds = array<i64: 2, 32, 32>}, {pipeline_mode = #tpu.pipeline_mode<synchronous>, transform_indices = @transform_16, window_bounds = array<i64: 2, 1, 32>}, {pipeline_mode = #tpu.pipeline_mode<synchronous>, transform_indices = @transform_17, window_bounds = array<i64: 2, 32, 32>}, {pipeline_mode = #tpu.pipeline_mode<synchronous>, transform_indices = @transform_18, window_bounds = array<i64: 2, 1, 32>}, {pipeline_mode = #tpu.pipeline_mode<synchronous>, transform_indices = @transform_19, window_bounds = array<i64: 2, 32, 32>}, {pipeline_mode = #tpu.pipeline_mode<synchronous>, transform_indices = @transform_20, window_bounds = array<i64: 2, 1, 32>}, {pipeline_mode = #tpu.pipeline_mode<synchronous>, transform_indices = @transform_21, window_bounds = array<i64: 2, 3, 32>}, {pipeline_mode = #tpu.pipeline_mode<synchronous>, transform_indices = @transform_22, window_bounds = array<i64: 2, 1, 32>}, {pipeline_mode = #tpu.pipeline_mode<synchronous>, transform_indices = @transform_23, window_bounds = array<i64: 2, 1, 32>}, {pipeline_mode = #tpu.pipeline_mode<synchronous>, transform_indices = @transform_24, window_bounds = array<i64: 2, 32, 32>}, {pipeline_mode = #tpu.pipeline_mode<synchronous>, transform_indices = @transform_25, window_bounds = array<i64: 2, 1, 32>}, {pipeline_mode = #tpu.pipeline_mode<synchronous>, transform_indices = @transform_26, window_bounds = array<i64: 2, 32, 128>}, {pipeline_mode = #tpu.pipeline_mode<synchronous>, transform_indices = @transform_27, window_bounds = array<i64: 2, 1, 128>}, {pipeline_mode = #tpu.pipeline_mode<synchronous>, transform_indices = @transform_28, window_bounds = array<i64: 2, 128, 32>}, {pipeline_mode = #tpu.pipeline_mode<synchronous>, transform_indices = @transform_29, window_bounds = array<i64: 2, 1, 32>}, {pipeline_mode = #tpu.pipeline_mode<synchronous>, transform_indices = @transform_30, window_bounds = array<i64: 32, 64>}, {pipeline_mode = #tpu.pipeline_mode<synchronous>, transform_indices = @transform_31, window_bounds = array<i64: 32, 64>}, {pipeline_mode = #tpu.pipeline_mode<synchronous>, transform_indices = @transform_32, window_bounds = array<i64: 1, 64>}, {pipeline_mode = #tpu.pipeline_mode<synchronous>, transform_indices = @transform_33, window_bounds = array<i64: 64, 32>}, {pipeline_mode = #tpu.pipeline_mode<synchronous>, transform_indices = @transform_34, window_bounds = array<i64: 30, 32>}]} {
    %0 = tpu.iota {dimensions = array<i32: 0>} : vector<30x30xi32>
    %1 = tpu.iota {dimensions = array<i32: 1>} : vector<30x30xi32>
    %c0_i32 = arith.constant 0 : i32
    %2 = vector.broadcast %c0_i32 : i32 to vector<30x30xi32>
    %3 = arith.cmpi sge, %0, %2 : vector<30x30xi32>
    %c15_i32 = arith.constant 15 : i32
    %4 = vector.broadcast %c15_i32 : i32 to vector<30x30xi32>
    %5 = arith.cmpi slt, %0, %4 : vector<30x30xi32>
    %6 = arith.andi %3, %5 : vector<30x30xi1>
    %c0_i32_0 = arith.constant 0 : i32
    %7 = vector.broadcast %c0_i32_0 : i32 to vector<30x30xi32>
    %8 = arith.cmpi sge, %1, %7 : vector<30x30xi32>
    %c15_i32_1 = arith.constant 15 : i32
    %9 = vector.broadcast %c15_i32_1 : i32 to vector<30x30xi32>
    %10 = arith.cmpi slt, %1, %9 : vector<30x30xi32>
    %11 = arith.andi %8, %10 : vector<30x30xi1>
    %12 = arith.andi %6, %11 : vector<30x30xi1>
    %c15_i32_2 = arith.constant 15 : i32
    %13 = vector.broadcast %c15_i32_2 : i32 to vector<30x30xi32>
    %14 = arith.cmpi sge, %0, %13 : vector<30x30xi32>
    %c30_i32 = arith.constant 30 : i32
    %15 = vector.broadcast %c30_i32 : i32 to vector<30x30xi32>
    %16 = arith.cmpi slt, %0, %15 : vector<30x30xi32>
    %17 = arith.andi %14, %16 : vector<30x30xi1>
    %c15_i32_3 = arith.constant 15 : i32
    %18 = vector.broadcast %c15_i32_3 : i32 to vector<30x30xi32>
    %19 = arith.cmpi sge, %1, %18 : vector<30x30xi32>
    %c30_i32_4 = arith.constant 30 : i32
    %20 = vector.broadcast %c30_i32_4 : i32 to vector<30x30xi32>
    %21 = arith.cmpi slt, %1, %20 : vector<30x30xi32>
    %22 = arith.andi %19, %21 : vector<30x30xi1>
    %23 = arith.andi %17, %22 : vector<30x30xi1>
    %24 = arith.ori %12, %23 : vector<30x30xi1>
    %25 = tpu.iota {dimensions = array<i32: 0>} : vector<30x1xi32>
    %c1_i32 = arith.constant 1 : i32
    %26 = vector.broadcast %c1_i32 : i32 to vector<30x1xi32>
    %27 = arith.cmpi sge, %25, %26 : vector<30x1xi32>
    %c14_i32 = arith.constant 14 : i32
    %28 = vector.broadcast %c14_i32 : i32 to vector<30x1xi32>
    %29 = arith.cmpi sle, %25, %28 : vector<30x1xi32>
    %30 = arith.andi %27, %29 : vector<30x1xi1>
    %c16_i32 = arith.constant 16 : i32
    %31 = vector.broadcast %c16_i32 : i32 to vector<30x1xi32>
    %32 = arith.cmpi sge, %25, %31 : vector<30x1xi32>
    %c29_i32 = arith.constant 29 : i32
    %33 = vector.broadcast %c29_i32 : i32 to vector<30x1xi32>
    %34 = arith.cmpi sle, %25, %33 : vector<30x1xi32>
    %35 = arith.andi %32, %34 : vector<30x1xi1>
    %36 = arith.ori %30, %35 : vector<30x1xi1>
    %c0_i32_5 = arith.constant 0 : i32
    %37 = vector.broadcast %c0_i32_5 : i32 to vector<30x1xi32>
    %38 = arith.cmpi sge, %25, %37 : vector<30x1xi32>
    %c13_i32 = arith.constant 13 : i32
    %39 = vector.broadcast %c13_i32 : i32 to vector<30x1xi32>
    %40 = arith.cmpi sle, %25, %39 : vector<30x1xi32>
    %41 = arith.andi %38, %40 : vector<30x1xi1>
    %c15_i32_6 = arith.constant 15 : i32
    %42 = vector.broadcast %c15_i32_6 : i32 to vector<30x1xi32>
    %43 = arith.cmpi sge, %25, %42 : vector<30x1xi32>
    %c28_i32 = arith.constant 28 : i32
    %44 = vector.broadcast %c28_i32 : i32 to vector<30x1xi32>
    %45 = arith.cmpi sle, %25, %44 : vector<30x1xi32>
    %46 = arith.andi %43, %45 : vector<30x1xi1>
    %47 = arith.ori %41, %46 : vector<30x1xi1>
    %c0 = arith.constant 0 : index
    %c0_7 = arith.constant 0 : index
    %48 = vector.load %arg1[%c0, %c0_7] : memref<30x16xf32, #tpu.memory_space<vmem>>, vector<30x16xf32>
    %c0_8 = arith.constant 0 : index
    %c0_9 = arith.constant 0 : index
    %49 = vector.load %arg2[%c0_8, %c0_9] : memref<16x32xbf16, #tpu.memory_space<vmem>>, vector<16x32xbf16>
    %c0_10 = arith.constant 0 : index
    %c0_11 = arith.constant 0 : index
    %50 = vector.load %arg3[%c0_10, %c0_11] : memref<1x32xf32, #tpu.memory_space<vmem>>, vector<1x32xf32>
    %51 = arith.truncf %48 : vector<30x16xf32> to vector<30x16xbf16>
    %cst = arith.constant dense<0.000000e+00> : vector<30x32xf32>
    %52 = tpu.matmul %51, %49, %cst {dimension_numbers = #tpu.dot_dimension_numbers<[1], [0], [0], [1], [0, 0, 1, 1], [], []>} : vector<30x16xbf16>, vector<16x32xbf16>, vector<30x32xf32> -> vector<30x32xf32>
    %53 = vector.broadcast %50 : vector<1x32xf32> to vector<30x32xf32>
    %54 = arith.addf %52, %53 : vector<30x32xf32>
    %cst_12 = arith.constant 0.000000e+00 : f32
    %55 = vector.broadcast %cst_12 : f32 to vector<30x32xf32>
    %56 = arith.maximumf %54, %55 : vector<30x32xf32>
    %c0_13 = arith.constant 0 : index
    %c0_14 = arith.constant 0 : index
    %c0_15 = arith.constant 0 : index
    %57 = vector.load %arg4[%c0_13, %c0_14, %c0_15] : memref<2x5x32xf32, #tpu.memory_space<vmem>>, vector<1x5x32xf32>
    %58 = vector.shape_cast %57 : vector<1x5x32xf32> to vector<5x32xf32>
    %c0_16 = arith.constant 0 : index
    %c0_17 = arith.constant 0 : index
    %c0_18 = arith.constant 0 : index
    %59 = vector.load %arg5[%c0_16, %c0_17, %c0_18] : memref<2x5x32xf32, #tpu.memory_space<vmem>>, vector<1x5x32xf32>
    %60 = vector.shape_cast %59 : vector<1x5x32xf32> to vector<5x32xf32>
    %61 = vector.extract_strided_slice %58 {offsets = [0, 0], sizes = [1, 32], strides = [1, 1]} : vector<5x32xf32> to vector<1x32xf32>
    %62 = vector.extract_strided_slice %60 {offsets = [0, 0], sizes = [1, 32], strides = [1, 1]} : vector<5x32xf32> to vector<1x32xf32>
    %cst_19 = arith.constant dense<0.000000e+00> : vector<30xf32>
    %63 = vector.multi_reduction <add>, %56, %cst_19 [1] : vector<30x32xf32> to vector<30xf32>
    %64 = vector.shape_cast %63 : vector<30xf32> to vector<30x1xf32>
    %cst_20 = arith.constant 3.200000e+01 : f32
    %65 = vector.broadcast %cst_20 : f32 to vector<30x1xf32>
    %66 = arith.divf %64, %65 : vector<30x1xf32>
    %67 = vector.broadcast %66 : vector<30x1xf32> to vector<30x32xf32>
    %68 = arith.subf %56, %67 : vector<30x32xf32>
    %69 = arith.mulf %68, %68 : vector<30x32xf32>
    %cst_21 = arith.constant dense<0.000000e+00> : vector<30xf32>
    %70 = vector.multi_reduction <add>, %69, %cst_21 [1] : vector<30x32xf32> to vector<30xf32>
    %71 = vector.shape_cast %70 : vector<30xf32> to vector<30x1xf32>
    %cst_22 = arith.constant 3.200000e+01 : f32
    %72 = vector.broadcast %cst_22 : f32 to vector<30x1xf32>
    %73 = arith.divf %71, %72 : vector<30x1xf32>
    %cst_23 = arith.constant 9.99999974E-6 : f32
    %74 = vector.broadcast %cst_23 : f32 to vector<30x1xf32>
    %75 = arith.addf %73, %74 : vector<30x1xf32>
    %76 = math.rsqrt %75 : vector<30x1xf32>
    %77 = vector.broadcast %76 : vector<30x1xf32> to vector<30x32xf32>
    %78 = arith.mulf %68, %77 : vector<30x32xf32>
    %79 = vector.broadcast %61 : vector<1x32xf32> to vector<30x32xf32>
    %80 = arith.mulf %78, %79 : vector<30x32xf32>
    %81 = vector.broadcast %62 : vector<1x32xf32> to vector<30x32xf32>
    %82 = arith.addf %80, %81 : vector<30x32xf32>
    %c0_24 = arith.constant 0 : index
    %c0_25 = arith.constant 0 : index
    %c0_26 = arith.constant 0 : index
    %83 = vector.load %arg6[%c0_24, %c0_25, %c0_26] : memref<2x32x128xbf16, #tpu.memory_space<vmem>>, vector<1x32x128xbf16>
    %84 = vector.shape_cast %83 : vector<1x32x128xbf16> to vector<32x128xbf16>
    %c0_27 = arith.constant 0 : index
    %c0_28 = arith.constant 0 : index
    %c0_29 = arith.constant 0 : index
    %85 = vector.load %arg7[%c0_27, %c0_28, %c0_29] : memref<2x1x128xf32, #tpu.memory_space<vmem>>, vector<1x1x128xf32>
    %86 = vector.shape_cast %85 : vector<1x1x128xf32> to vector<1x128xf32>
    %87 = arith.truncf %82 : vector<30x32xf32> to vector<30x32xbf16>
    %cst_30 = arith.constant dense<0.000000e+00> : vector<30x128xf32>
    %88 = tpu.matmul %87, %84, %cst_30 {dimension_numbers = #tpu.dot_dimension_numbers<[1], [0], [0], [1], [0, 0, 1, 1], [], []>} : vector<30x32xbf16>, vector<32x128xbf16>, vector<30x128xf32> -> vector<30x128xf32>
    %89 = vector.broadcast %86 : vector<1x128xf32> to vector<30x128xf32>
    %90 = arith.addf %88, %89 : vector<30x128xf32>
    %91 = arith.negf %90 : vector<30x128xf32>
    %92 = math.exp %91 : vector<30x128xf32>
    %cst_31 = arith.constant 1.000000e+00 : f32
    %93 = vector.broadcast %cst_31 : f32 to vector<30x128xf32>
    %94 = arith.addf %93, %92 : vector<30x128xf32>
    %95 = arith.divf %93, %94 : vector<30x128xf32>
    %96 = arith.mulf %90, %95 : vector<30x128xf32>
    %c0_32 = arith.constant 0 : index
    %c0_33 = arith.constant 0 : index
    %c0_34 = arith.constant 0 : index
    %97 = vector.load %arg8[%c0_32, %c0_33, %c0_34] : memref<2x128x32xbf16, #tpu.memory_space<vmem>>, vector<1x128x32xbf16>
    %98 = vector.shape_cast %97 : vector<1x128x32xbf16> to vector<128x32xbf16>
    %c0_35 = arith.constant 0 : index
    %c0_36 = arith.constant 0 : index
    %c0_37 = arith.constant 0 : index
    %99 = vector.load %arg9[%c0_35, %c0_36, %c0_37] : memref<2x1x32xf32, #tpu.memory_space<vmem>>, vector<1x1x32xf32>
    %100 = vector.shape_cast %99 : vector<1x1x32xf32> to vector<1x32xf32>
    %101 = arith.truncf %96 : vector<30x128xf32> to vector<30x128xbf16>
    %cst_38 = arith.constant dense<0.000000e+00> : vector<30x32xf32>
    %102 = tpu.matmul %101, %98, %cst_38 {dimension_numbers = #tpu.dot_dimension_numbers<[1], [0], [0], [1], [0, 0, 1, 1], [], []>} : vector<30x128xbf16>, vector<128x32xbf16>, vector<30x32xf32> -> vector<30x32xf32>
    %103 = vector.broadcast %100 : vector<1x32xf32> to vector<30x32xf32>
    %104 = arith.addf %102, %103 : vector<30x32xf32>
    %cst_39 = arith.constant 5.000000e-01 : f32
    %105 = vector.broadcast %cst_39 : f32 to vector<30x32xf32>
    %106 = arith.mulf %105, %104 : vector<30x32xf32>
    %107 = arith.addf %56, %106 : vector<30x32xf32>
    %108 = vector.extract_strided_slice %58 {offsets = [1, 0], sizes = [1, 32], strides = [1, 1]} : vector<5x32xf32> to vector<1x32xf32>
    %109 = vector.extract_strided_slice %60 {offsets = [1, 0], sizes = [1, 32], strides = [1, 1]} : vector<5x32xf32> to vector<1x32xf32>
    %cst_40 = arith.constant dense<0.000000e+00> : vector<30xf32>
    %110 = vector.multi_reduction <add>, %107, %cst_40 [1] : vector<30x32xf32> to vector<30xf32>
    %111 = vector.shape_cast %110 : vector<30xf32> to vector<30x1xf32>
    %cst_41 = arith.constant 3.200000e+01 : f32
    %112 = vector.broadcast %cst_41 : f32 to vector<30x1xf32>
    %113 = arith.divf %111, %112 : vector<30x1xf32>
    %114 = vector.broadcast %113 : vector<30x1xf32> to vector<30x32xf32>
    %115 = arith.subf %107, %114 : vector<30x32xf32>
    %116 = arith.mulf %115, %115 : vector<30x32xf32>
    %cst_42 = arith.constant dense<0.000000e+00> : vector<30xf32>
    %117 = vector.multi_reduction <add>, %116, %cst_42 [1] : vector<30x32xf32> to vector<30xf32>
    %118 = vector.shape_cast %117 : vector<30xf32> to vector<30x1xf32>
    %cst_43 = arith.constant 3.200000e+01 : f32
    %119 = vector.broadcast %cst_43 : f32 to vector<30x1xf32>
    %120 = arith.divf %118, %119 : vector<30x1xf32>
    %cst_44 = arith.constant 9.99999974E-6 : f32
    %121 = vector.broadcast %cst_44 : f32 to vector<30x1xf32>
    %122 = arith.addf %120, %121 : vector<30x1xf32>
    %123 = math.rsqrt %122 : vector<30x1xf32>
    %124 = vector.broadcast %123 : vector<30x1xf32> to vector<30x32xf32>
    %125 = arith.mulf %115, %124 : vector<30x32xf32>
    %126 = vector.broadcast %108 : vector<1x32xf32> to vector<30x32xf32>
    %127 = arith.mulf %125, %126 : vector<30x32xf32>
    %128 = vector.broadcast %109 : vector<1x32xf32> to vector<30x32xf32>
    %129 = arith.addf %127, %128 : vector<30x32xf32>
    %c0_45 = arith.constant 0 : index
    %c0_46 = arith.constant 0 : index
    %c0_47 = arith.constant 0 : index
    %130 = vector.load %arg10[%c0_45, %c0_46, %c0_47] : memref<8x32x8xbf16, #tpu.memory_space<vmem>>, vector<1x32x8xbf16>
    %131 = vector.shape_cast %130 : vector<1x32x8xbf16> to vector<32x8xbf16>
    %c0_48 = arith.constant 0 : index
    %c0_49 = arith.constant 0 : index
    %c0_50 = arith.constant 0 : index
    %132 = vector.load %arg13[%c0_48, %c0_49, %c0_50] : memref<8x1x8xf32, #tpu.memory_space<vmem>>, vector<1x1x8xf32>
    %133 = vector.shape_cast %132 : vector<1x1x8xf32> to vector<1x8xf32>
    %134 = arith.truncf %129 : vector<30x32xf32> to vector<30x32xbf16>
    %cst_51 = arith.constant dense<0.000000e+00> : vector<30x8xf32>
    %135 = tpu.matmul %134, %131, %cst_51 {dimension_numbers = #tpu.dot_dimension_numbers<[1], [0], [0], [1], [0, 0, 1, 1], [], []>} : vector<30x32xbf16>, vector<32x8xbf16>, vector<30x8xf32> -> vector<30x8xf32>
    %136 = vector.broadcast %133 : vector<1x8xf32> to vector<30x8xf32>
    %137 = arith.addf %135, %136 : vector<30x8xf32>
    %c0_52 = arith.constant 0 : index
    %c0_53 = arith.constant 0 : index
    %c0_54 = arith.constant 0 : index
    %138 = vector.load %arg11[%c0_52, %c0_53, %c0_54] : memref<8x32x8xbf16, #tpu.memory_space<vmem>>, vector<1x32x8xbf16>
    %139 = vector.shape_cast %138 : vector<1x32x8xbf16> to vector<32x8xbf16>
    %c0_55 = arith.constant 0 : index
    %c0_56 = arith.constant 0 : index
    %c0_57 = arith.constant 0 : index
    %140 = vector.load %arg14[%c0_55, %c0_56, %c0_57] : memref<8x1x8xf32, #tpu.memory_space<vmem>>, vector<1x1x8xf32>
    %141 = vector.shape_cast %140 : vector<1x1x8xf32> to vector<1x8xf32>
    %142 = arith.truncf %129 : vector<30x32xf32> to vector<30x32xbf16>
    %cst_58 = arith.constant dense<0.000000e+00> : vector<30x8xf32>
    %143 = tpu.matmul %142, %139, %cst_58 {dimension_numbers = #tpu.dot_dimension_numbers<[1], [0], [0], [1], [0, 0, 1, 1], [], []>} : vector<30x32xbf16>, vector<32x8xbf16>, vector<30x8xf32> -> vector<30x8xf32>
    %144 = vector.broadcast %141 : vector<1x8xf32> to vector<30x8xf32>
    %145 = arith.addf %143, %144 : vector<30x8xf32>
    %c0_59 = arith.constant 0 : index
    %c0_60 = arith.constant 0 : index
    %c0_61 = arith.constant 0 : index
    %146 = vector.load %arg12[%c0_59, %c0_60, %c0_61] : memref<8x32x8xbf16, #tpu.memory_space<vmem>>, vector<1x32x8xbf16>
    %147 = vector.shape_cast %146 : vector<1x32x8xbf16> to vector<32x8xbf16>
    %c0_62 = arith.constant 0 : index
    %c0_63 = arith.constant 0 : index
    %c0_64 = arith.constant 0 : index
    %148 = vector.load %arg15[%c0_62, %c0_63, %c0_64] : memref<8x1x8xf32, #tpu.memory_space<vmem>>, vector<1x1x8xf32>
    %149 = vector.shape_cast %148 : vector<1x1x8xf32> to vector<1x8xf32>
    %150 = arith.truncf %129 : vector<30x32xf32> to vector<30x32xbf16>
    %cst_65 = arith.constant dense<0.000000e+00> : vector<30x8xf32>
    %151 = tpu.matmul %150, %147, %cst_65 {dimension_numbers = #tpu.dot_dimension_numbers<[1], [0], [0], [1], [0, 0, 1, 1], [], []>} : vector<30x32xbf16>, vector<32x8xbf16>, vector<30x8xf32> -> vector<30x8xf32>
    %152 = vector.broadcast %149 : vector<1x8xf32> to vector<30x8xf32>
    %153 = arith.addf %151, %152 : vector<30x8xf32>
    %154 = arith.truncf %137 : vector<30x8xf32> to vector<30x8xbf16>
    %155 = arith.truncf %145 : vector<30x8xf32> to vector<30x8xbf16>
    %cst_66 = arith.constant dense<0.000000e+00> : vector<30x30xf32>
    %156 = tpu.matmul %154, %155, %cst_66 {dimension_numbers = #tpu.dot_dimension_numbers<[1], [1], [0], [0], [0, 0, 1, 0], [], []>} : vector<30x8xbf16>, vector<30x8xbf16>, vector<30x30xf32> -> vector<30x30xf32>
    %cst_67 = arith.constant 0.353553385 : f32
    %157 = vector.broadcast %cst_67 : f32 to vector<30x30xf32>
    %158 = arith.mulf %156, %157 : vector<30x30xf32>
    %cst_68 = arith.constant -1.000000e+30 : f32
    %159 = vector.broadcast %cst_68 : f32 to vector<30x30xf32>
    %160 = arith.select %24, %158, %159 : vector<30x30xi1>, vector<30x30xf32>
    %cst_69 = arith.constant dense<0xFF800000> : vector<30xf32>
    %161 = vector.multi_reduction <maximumf>, %160, %cst_69 [1] : vector<30x30xf32> to vector<30xf32>
    %162 = vector.shape_cast %161 : vector<30xf32> to vector<30x1xf32>
    %163 = vector.broadcast %162 : vector<30x1xf32> to vector<30x30xf32>
    %164 = arith.subf %160, %163 : vector<30x30xf32>
    %165 = math.exp %164 : vector<30x30xf32>
    %cst_70 = arith.constant dense<0.000000e+00> : vector<30xf32>
    %166 = vector.multi_reduction <add>, %165, %cst_70 [1] : vector<30x30xf32> to vector<30xf32>
    %167 = vector.shape_cast %166 : vector<30xf32> to vector<30x1xf32>
    %168 = tpu.reciprocal %167 {approx = true} : vector<30x1xf32> -> vector<30x1xf32>
    %169 = vector.broadcast %168 : vector<30x1xf32> to vector<30x30xf32>
    %170 = arith.mulf %165, %169 : vector<30x30xf32>
    %171 = arith.truncf %170 : vector<30x30xf32> to vector<30x30xbf16>
    %172 = arith.truncf %153 : vector<30x8xf32> to vector<30x8xbf16>
    %cst_71 = arith.constant dense<0.000000e+00> : vector<30x8xf32>
    %173 = tpu.matmul %171, %172, %cst_71 {dimension_numbers = #tpu.dot_dimension_numbers<[1], [0], [0], [1], [0, 0, 1, 1], [], []>} : vector<30x30xbf16>, vector<30x8xbf16>, vector<30x8xf32> -> vector<30x8xf32>
    %c1 = arith.constant 1 : index
    %c0_72 = arith.constant 0 : index
    %c0_73 = arith.constant 0 : index
    %174 = vector.load %arg10[%c1, %c0_72, %c0_73] : memref<8x32x8xbf16, #tpu.memory_space<vmem>>, vector<1x32x8xbf16>
    %175 = vector.shape_cast %174 : vector<1x32x8xbf16> to vector<32x8xbf16>
    %c1_74 = arith.constant 1 : index
    %c0_75 = arith.constant 0 : index
    %c0_76 = arith.constant 0 : index
    %176 = vector.load %arg13[%c1_74, %c0_75, %c0_76] : memref<8x1x8xf32, #tpu.memory_space<vmem>>, vector<1x1x8xf32>
    %177 = vector.shape_cast %176 : vector<1x1x8xf32> to vector<1x8xf32>
    %178 = arith.truncf %129 : vector<30x32xf32> to vector<30x32xbf16>
    %cst_77 = arith.constant dense<0.000000e+00> : vector<30x8xf32>
    %179 = tpu.matmul %178, %175, %cst_77 {dimension_numbers = #tpu.dot_dimension_numbers<[1], [0], [0], [1], [0, 0, 1, 1], [], []>} : vector<30x32xbf16>, vector<32x8xbf16>, vector<30x8xf32> -> vector<30x8xf32>
    %180 = vector.broadcast %177 : vector<1x8xf32> to vector<30x8xf32>
    %181 = arith.addf %179, %180 : vector<30x8xf32>
    %c1_78 = arith.constant 1 : index
    %c0_79 = arith.constant 0 : index
    %c0_80 = arith.constant 0 : index
    %182 = vector.load %arg11[%c1_78, %c0_79, %c0_80] : memref<8x32x8xbf16, #tpu.memory_space<vmem>>, vector<1x32x8xbf16>
    %183 = vector.shape_cast %182 : vector<1x32x8xbf16> to vector<32x8xbf16>
    %c1_81 = arith.constant 1 : index
    %c0_82 = arith.constant 0 : index
    %c0_83 = arith.constant 0 : index
    %184 = vector.load %arg14[%c1_81, %c0_82, %c0_83] : memref<8x1x8xf32, #tpu.memory_space<vmem>>, vector<1x1x8xf32>
    %185 = vector.shape_cast %184 : vector<1x1x8xf32> to vector<1x8xf32>
    %186 = arith.truncf %129 : vector<30x32xf32> to vector<30x32xbf16>
    %cst_84 = arith.constant dense<0.000000e+00> : vector<30x8xf32>
    %187 = tpu.matmul %186, %183, %cst_84 {dimension_numbers = #tpu.dot_dimension_numbers<[1], [0], [0], [1], [0, 0, 1, 1], [], []>} : vector<30x32xbf16>, vector<32x8xbf16>, vector<30x8xf32> -> vector<30x8xf32>
    %188 = vector.broadcast %185 : vector<1x8xf32> to vector<30x8xf32>
    %189 = arith.addf %187, %188 : vector<30x8xf32>
    %c1_85 = arith.constant 1 : index
    %c0_86 = arith.constant 0 : index
    %c0_87 = arith.constant 0 : index
    %190 = vector.load %arg12[%c1_85, %c0_86, %c0_87] : memref<8x32x8xbf16, #tpu.memory_space<vmem>>, vector<1x32x8xbf16>
    %191 = vector.shape_cast %190 : vector<1x32x8xbf16> to vector<32x8xbf16>
    %c1_88 = arith.constant 1 : index
    %c0_89 = arith.constant 0 : index
    %c0_90 = arith.constant 0 : index
    %192 = vector.load %arg15[%c1_88, %c0_89, %c0_90] : memref<8x1x8xf32, #tpu.memory_space<vmem>>, vector<1x1x8xf32>
    %193 = vector.shape_cast %192 : vector<1x1x8xf32> to vector<1x8xf32>
    %194 = arith.truncf %129 : vector<30x32xf32> to vector<30x32xbf16>
    %cst_91 = arith.constant dense<0.000000e+00> : vector<30x8xf32>
    %195 = tpu.matmul %194, %191, %cst_91 {dimension_numbers = #tpu.dot_dimension_numbers<[1], [0], [0], [1], [0, 0, 1, 1], [], []>} : vector<30x32xbf16>, vector<32x8xbf16>, vector<30x8xf32> -> vector<30x8xf32>
    %196 = vector.broadcast %193 : vector<1x8xf32> to vector<30x8xf32>
    %197 = arith.addf %195, %196 : vector<30x8xf32>
    %198 = arith.truncf %181 : vector<30x8xf32> to vector<30x8xbf16>
    %199 = arith.truncf %189 : vector<30x8xf32> to vector<30x8xbf16>
    %cst_92 = arith.constant dense<0.000000e+00> : vector<30x30xf32>
    %200 = tpu.matmul %198, %199, %cst_92 {dimension_numbers = #tpu.dot_dimension_numbers<[1], [1], [0], [0], [0, 0, 1, 0], [], []>} : vector<30x8xbf16>, vector<30x8xbf16>, vector<30x30xf32> -> vector<30x30xf32>
    %cst_93 = arith.constant 0.353553385 : f32
    %201 = vector.broadcast %cst_93 : f32 to vector<30x30xf32>
    %202 = arith.mulf %200, %201 : vector<30x30xf32>
    %cst_94 = arith.constant -1.000000e+30 : f32
    %203 = vector.broadcast %cst_94 : f32 to vector<30x30xf32>
    %204 = arith.select %24, %202, %203 : vector<30x30xi1>, vector<30x30xf32>
    %cst_95 = arith.constant dense<0xFF800000> : vector<30xf32>
    %205 = vector.multi_reduction <maximumf>, %204, %cst_95 [1] : vector<30x30xf32> to vector<30xf32>
    %206 = vector.shape_cast %205 : vector<30xf32> to vector<30x1xf32>
    %207 = vector.broadcast %206 : vector<30x1xf32> to vector<30x30xf32>
    %208 = arith.subf %204, %207 : vector<30x30xf32>
    %209 = math.exp %208 : vector<30x30xf32>
    %cst_96 = arith.constant dense<0.000000e+00> : vector<30xf32>
    %210 = vector.multi_reduction <add>, %209, %cst_96 [1] : vector<30x30xf32> to vector<30xf32>
    %211 = vector.shape_cast %210 : vector<30xf32> to vector<30x1xf32>
    %212 = tpu.reciprocal %211 {approx = true} : vector<30x1xf32> -> vector<30x1xf32>
    %213 = vector.broadcast %212 : vector<30x1xf32> to vector<30x30xf32>
    %214 = arith.mulf %209, %213 : vector<30x30xf32>
    %215 = arith.truncf %214 : vector<30x30xf32> to vector<30x30xbf16>
    %216 = arith.truncf %197 : vector<30x8xf32> to vector<30x8xbf16>
    %cst_97 = arith.constant dense<0.000000e+00> : vector<30x8xf32>
    %217 = tpu.matmul %215, %216, %cst_97 {dimension_numbers = #tpu.dot_dimension_numbers<[1], [0], [0], [1], [0, 0, 1, 1], [], []>} : vector<30x30xbf16>, vector<30x8xbf16>, vector<30x8xf32> -> vector<30x8xf32>
    %c2 = arith.constant 2 : index
    %c0_98 = arith.constant 0 : index
    %c0_99 = arith.constant 0 : index
    %218 = vector.load %arg10[%c2, %c0_98, %c0_99] : memref<8x32x8xbf16, #tpu.memory_space<vmem>>, vector<1x32x8xbf16>
    %219 = vector.shape_cast %218 : vector<1x32x8xbf16> to vector<32x8xbf16>
    %c2_100 = arith.constant 2 : index
    %c0_101 = arith.constant 0 : index
    %c0_102 = arith.constant 0 : index
    %220 = vector.load %arg13[%c2_100, %c0_101, %c0_102] : memref<8x1x8xf32, #tpu.memory_space<vmem>>, vector<1x1x8xf32>
    %221 = vector.shape_cast %220 : vector<1x1x8xf32> to vector<1x8xf32>
    %222 = arith.truncf %129 : vector<30x32xf32> to vector<30x32xbf16>
    %cst_103 = arith.constant dense<0.000000e+00> : vector<30x8xf32>
    %223 = tpu.matmul %222, %219, %cst_103 {dimension_numbers = #tpu.dot_dimension_numbers<[1], [0], [0], [1], [0, 0, 1, 1], [], []>} : vector<30x32xbf16>, vector<32x8xbf16>, vector<30x8xf32> -> vector<30x8xf32>
    %224 = vector.broadcast %221 : vector<1x8xf32> to vector<30x8xf32>
    %225 = arith.addf %223, %224 : vector<30x8xf32>
    %c2_104 = arith.constant 2 : index
    %c0_105 = arith.constant 0 : index
    %c0_106 = arith.constant 0 : index
    %226 = vector.load %arg11[%c2_104, %c0_105, %c0_106] : memref<8x32x8xbf16, #tpu.memory_space<vmem>>, vector<1x32x8xbf16>
    %227 = vector.shape_cast %226 : vector<1x32x8xbf16> to vector<32x8xbf16>
    %c2_107 = arith.constant 2 : index
    %c0_108 = arith.constant 0 : index
    %c0_109 = arith.constant 0 : index
    %228 = vector.load %arg14[%c2_107, %c0_108, %c0_109] : memref<8x1x8xf32, #tpu.memory_space<vmem>>, vector<1x1x8xf32>
    %229 = vector.shape_cast %228 : vector<1x1x8xf32> to vector<1x8xf32>
    %230 = arith.truncf %129 : vector<30x32xf32> to vector<30x32xbf16>
    %cst_110 = arith.constant dense<0.000000e+00> : vector<30x8xf32>
    %231 = tpu.matmul %230, %227, %cst_110 {dimension_numbers = #tpu.dot_dimension_numbers<[1], [0], [0], [1], [0, 0, 1, 1], [], []>} : vector<30x32xbf16>, vector<32x8xbf16>, vector<30x8xf32> -> vector<30x8xf32>
    %232 = vector.broadcast %229 : vector<1x8xf32> to vector<30x8xf32>
    %233 = arith.addf %231, %232 : vector<30x8xf32>
    %c2_111 = arith.constant 2 : index
    %c0_112 = arith.constant 0 : index
    %c0_113 = arith.constant 0 : index
    %234 = vector.load %arg12[%c2_111, %c0_112, %c0_113] : memref<8x32x8xbf16, #tpu.memory_space<vmem>>, vector<1x32x8xbf16>
    %235 = vector.shape_cast %234 : vector<1x32x8xbf16> to vector<32x8xbf16>
    %c2_114 = arith.constant 2 : index
    %c0_115 = arith.constant 0 : index
    %c0_116 = arith.constant 0 : index
    %236 = vector.load %arg15[%c2_114, %c0_115, %c0_116] : memref<8x1x8xf32, #tpu.memory_space<vmem>>, vector<1x1x8xf32>
    %237 = vector.shape_cast %236 : vector<1x1x8xf32> to vector<1x8xf32>
    %238 = arith.truncf %129 : vector<30x32xf32> to vector<30x32xbf16>
    %cst_117 = arith.constant dense<0.000000e+00> : vector<30x8xf32>
    %239 = tpu.matmul %238, %235, %cst_117 {dimension_numbers = #tpu.dot_dimension_numbers<[1], [0], [0], [1], [0, 0, 1, 1], [], []>} : vector<30x32xbf16>, vector<32x8xbf16>, vector<30x8xf32> -> vector<30x8xf32>
    %240 = vector.broadcast %237 : vector<1x8xf32> to vector<30x8xf32>
    %241 = arith.addf %239, %240 : vector<30x8xf32>
    %242 = arith.truncf %225 : vector<30x8xf32> to vector<30x8xbf16>
    %243 = arith.truncf %233 : vector<30x8xf32> to vector<30x8xbf16>
    %cst_118 = arith.constant dense<0.000000e+00> : vector<30x30xf32>
    %244 = tpu.matmul %242, %243, %cst_118 {dimension_numbers = #tpu.dot_dimension_numbers<[1], [1], [0], [0], [0, 0, 1, 0], [], []>} : vector<30x8xbf16>, vector<30x8xbf16>, vector<30x30xf32> -> vector<30x30xf32>
    %cst_119 = arith.constant 0.353553385 : f32
    %245 = vector.broadcast %cst_119 : f32 to vector<30x30xf32>
    %246 = arith.mulf %244, %245 : vector<30x30xf32>
    %cst_120 = arith.constant -1.000000e+30 : f32
    %247 = vector.broadcast %cst_120 : f32 to vector<30x30xf32>
    %248 = arith.select %24, %246, %247 : vector<30x30xi1>, vector<30x30xf32>
    %cst_121 = arith.constant dense<0xFF800000> : vector<30xf32>
    %249 = vector.multi_reduction <maximumf>, %248, %cst_121 [1] : vector<30x30xf32> to vector<30xf32>
    %250 = vector.shape_cast %249 : vector<30xf32> to vector<30x1xf32>
    %251 = vector.broadcast %250 : vector<30x1xf32> to vector<30x30xf32>
    %252 = arith.subf %248, %251 : vector<30x30xf32>
    %253 = math.exp %252 : vector<30x30xf32>
    %cst_122 = arith.constant dense<0.000000e+00> : vector<30xf32>
    %254 = vector.multi_reduction <add>, %253, %cst_122 [1] : vector<30x30xf32> to vector<30xf32>
    %255 = vector.shape_cast %254 : vector<30xf32> to vector<30x1xf32>
    %256 = tpu.reciprocal %255 {approx = true} : vector<30x1xf32> -> vector<30x1xf32>
    %257 = vector.broadcast %256 : vector<30x1xf32> to vector<30x30xf32>
    %258 = arith.mulf %253, %257 : vector<30x30xf32>
    %259 = arith.truncf %258 : vector<30x30xf32> to vector<30x30xbf16>
    %260 = arith.truncf %241 : vector<30x8xf32> to vector<30x8xbf16>
    %cst_123 = arith.constant dense<0.000000e+00> : vector<30x8xf32>
    %261 = tpu.matmul %259, %260, %cst_123 {dimension_numbers = #tpu.dot_dimension_numbers<[1], [0], [0], [1], [0, 0, 1, 1], [], []>} : vector<30x30xbf16>, vector<30x8xbf16>, vector<30x8xf32> -> vector<30x8xf32>
    %c3 = arith.constant 3 : index
    %c0_124 = arith.constant 0 : index
    %c0_125 = arith.constant 0 : index
    %262 = vector.load %arg10[%c3, %c0_124, %c0_125] : memref<8x32x8xbf16, #tpu.memory_space<vmem>>, vector<1x32x8xbf16>
    %263 = vector.shape_cast %262 : vector<1x32x8xbf16> to vector<32x8xbf16>
    %c3_126 = arith.constant 3 : index
    %c0_127 = arith.constant 0 : index
    %c0_128 = arith.constant 0 : index
    %264 = vector.load %arg13[%c3_126, %c0_127, %c0_128] : memref<8x1x8xf32, #tpu.memory_space<vmem>>, vector<1x1x8xf32>
    %265 = vector.shape_cast %264 : vector<1x1x8xf32> to vector<1x8xf32>
    %266 = arith.truncf %129 : vector<30x32xf32> to vector<30x32xbf16>
    %cst_129 = arith.constant dense<0.000000e+00> : vector<30x8xf32>
    %267 = tpu.matmul %266, %263, %cst_129 {dimension_numbers = #tpu.dot_dimension_numbers<[1], [0], [0], [1], [0, 0, 1, 1], [], []>} : vector<30x32xbf16>, vector<32x8xbf16>, vector<30x8xf32> -> vector<30x8xf32>
    %268 = vector.broadcast %265 : vector<1x8xf32> to vector<30x8xf32>
    %269 = arith.addf %267, %268 : vector<30x8xf32>
    %c3_130 = arith.constant 3 : index
    %c0_131 = arith.constant 0 : index
    %c0_132 = arith.constant 0 : index
    %270 = vector.load %arg11[%c3_130, %c0_131, %c0_132] : memref<8x32x8xbf16, #tpu.memory_space<vmem>>, vector<1x32x8xbf16>
    %271 = vector.shape_cast %270 : vector<1x32x8xbf16> to vector<32x8xbf16>
    %c3_133 = arith.constant 3 : index
    %c0_134 = arith.constant 0 : index
    %c0_135 = arith.constant 0 : index
    %272 = vector.load %arg14[%c3_133, %c0_134, %c0_135] : memref<8x1x8xf32, #tpu.memory_space<vmem>>, vector<1x1x8xf32>
    %273 = vector.shape_cast %272 : vector<1x1x8xf32> to vector<1x8xf32>
    %274 = arith.truncf %129 : vector<30x32xf32> to vector<30x32xbf16>
    %cst_136 = arith.constant dense<0.000000e+00> : vector<30x8xf32>
    %275 = tpu.matmul %274, %271, %cst_136 {dimension_numbers = #tpu.dot_dimension_numbers<[1], [0], [0], [1], [0, 0, 1, 1], [], []>} : vector<30x32xbf16>, vector<32x8xbf16>, vector<30x8xf32> -> vector<30x8xf32>
    %276 = vector.broadcast %273 : vector<1x8xf32> to vector<30x8xf32>
    %277 = arith.addf %275, %276 : vector<30x8xf32>
    %c3_137 = arith.constant 3 : index
    %c0_138 = arith.constant 0 : index
    %c0_139 = arith.constant 0 : index
    %278 = vector.load %arg12[%c3_137, %c0_138, %c0_139] : memref<8x32x8xbf16, #tpu.memory_space<vmem>>, vector<1x32x8xbf16>
    %279 = vector.shape_cast %278 : vector<1x32x8xbf16> to vector<32x8xbf16>
    %c3_140 = arith.constant 3 : index
    %c0_141 = arith.constant 0 : index
    %c0_142 = arith.constant 0 : index
    %280 = vector.load %arg15[%c3_140, %c0_141, %c0_142] : memref<8x1x8xf32, #tpu.memory_space<vmem>>, vector<1x1x8xf32>
    %281 = vector.shape_cast %280 : vector<1x1x8xf32> to vector<1x8xf32>
    %282 = arith.truncf %129 : vector<30x32xf32> to vector<30x32xbf16>
    %cst_143 = arith.constant dense<0.000000e+00> : vector<30x8xf32>
    %283 = tpu.matmul %282, %279, %cst_143 {dimension_numbers = #tpu.dot_dimension_numbers<[1], [0], [0], [1], [0, 0, 1, 1], [], []>} : vector<30x32xbf16>, vector<32x8xbf16>, vector<30x8xf32> -> vector<30x8xf32>
    %284 = vector.broadcast %281 : vector<1x8xf32> to vector<30x8xf32>
    %285 = arith.addf %283, %284 : vector<30x8xf32>
    %286 = arith.truncf %269 : vector<30x8xf32> to vector<30x8xbf16>
    %287 = arith.truncf %277 : vector<30x8xf32> to vector<30x8xbf16>
    %cst_144 = arith.constant dense<0.000000e+00> : vector<30x30xf32>
    %288 = tpu.matmul %286, %287, %cst_144 {dimension_numbers = #tpu.dot_dimension_numbers<[1], [1], [0], [0], [0, 0, 1, 0], [], []>} : vector<30x8xbf16>, vector<30x8xbf16>, vector<30x30xf32> -> vector<30x30xf32>
    %cst_145 = arith.constant 0.353553385 : f32
    %289 = vector.broadcast %cst_145 : f32 to vector<30x30xf32>
    %290 = arith.mulf %288, %289 : vector<30x30xf32>
    %cst_146 = arith.constant -1.000000e+30 : f32
    %291 = vector.broadcast %cst_146 : f32 to vector<30x30xf32>
    %292 = arith.select %24, %290, %291 : vector<30x30xi1>, vector<30x30xf32>
    %cst_147 = arith.constant dense<0xFF800000> : vector<30xf32>
    %293 = vector.multi_reduction <maximumf>, %292, %cst_147 [1] : vector<30x30xf32> to vector<30xf32>
    %294 = vector.shape_cast %293 : vector<30xf32> to vector<30x1xf32>
    %295 = vector.broadcast %294 : vector<30x1xf32> to vector<30x30xf32>
    %296 = arith.subf %292, %295 : vector<30x30xf32>
    %297 = math.exp %296 : vector<30x30xf32>
    %cst_148 = arith.constant dense<0.000000e+00> : vector<30xf32>
    %298 = vector.multi_reduction <add>, %297, %cst_148 [1] : vector<30x30xf32> to vector<30xf32>
    %299 = vector.shape_cast %298 : vector<30xf32> to vector<30x1xf32>
    %300 = tpu.reciprocal %299 {approx = true} : vector<30x1xf32> -> vector<30x1xf32>
    %301 = vector.broadcast %300 : vector<30x1xf32> to vector<30x30xf32>
    %302 = arith.mulf %297, %301 : vector<30x30xf32>
    %303 = arith.truncf %302 : vector<30x30xf32> to vector<30x30xbf16>
    %304 = arith.truncf %285 : vector<30x8xf32> to vector<30x8xbf16>
    %cst_149 = arith.constant dense<0.000000e+00> : vector<30x8xf32>
    %305 = tpu.matmul %303, %304, %cst_149 {dimension_numbers = #tpu.dot_dimension_numbers<[1], [0], [0], [1], [0, 0, 1, 1], [], []>} : vector<30x30xbf16>, vector<30x8xbf16>, vector<30x8xf32> -> vector<30x8xf32>
    %306 = tpu.concatenate %173, %217, %261, %305 in 1 : vector<30x8xf32>, vector<30x8xf32>, vector<30x8xf32>, vector<30x8xf32> -> vector<30x32xf32>
    %c0_150 = arith.constant 0 : index
    %c0_151 = arith.constant 0 : index
    %c0_152 = arith.constant 0 : index
    %307 = vector.load %arg16[%c0_150, %c0_151, %c0_152] : memref<2x32x32xbf16, #tpu.memory_space<vmem>>, vector<1x32x32xbf16>
    %308 = vector.shape_cast %307 : vector<1x32x32xbf16> to vector<32x32xbf16>
    %c0_153 = arith.constant 0 : index
    %c0_154 = arith.constant 0 : index
    %c0_155 = arith.constant 0 : index
    %309 = vector.load %arg17[%c0_153, %c0_154, %c0_155] : memref<2x1x32xf32, #tpu.memory_space<vmem>>, vector<1x1x32xf32>
    %310 = vector.shape_cast %309 : vector<1x1x32xf32> to vector<1x32xf32>
    %311 = arith.truncf %306 : vector<30x32xf32> to vector<30x32xbf16>
    %cst_156 = arith.constant dense<0.000000e+00> : vector<30x32xf32>
    %312 = tpu.matmul %311, %308, %cst_156 {dimension_numbers = #tpu.dot_dimension_numbers<[1], [0], [0], [1], [0, 0, 1, 1], [], []>} : vector<30x32xbf16>, vector<32x32xbf16>, vector<30x32xf32> -> vector<30x32xf32>
    %313 = vector.broadcast %310 : vector<1x32xf32> to vector<30x32xf32>
    %314 = arith.addf %312, %313 : vector<30x32xf32>
    %315 = arith.addf %107, %314 : vector<30x32xf32>
    %316 = vector.extract_strided_slice %58 {offsets = [2, 0], sizes = [1, 32], strides = [1, 1]} : vector<5x32xf32> to vector<1x32xf32>
    %317 = vector.extract_strided_slice %60 {offsets = [2, 0], sizes = [1, 32], strides = [1, 1]} : vector<5x32xf32> to vector<1x32xf32>
    %cst_157 = arith.constant dense<0.000000e+00> : vector<30xf32>
    %318 = vector.multi_reduction <add>, %315, %cst_157 [1] : vector<30x32xf32> to vector<30xf32>
    %319 = vector.shape_cast %318 : vector<30xf32> to vector<30x1xf32>
    %cst_158 = arith.constant 3.200000e+01 : f32
    %320 = vector.broadcast %cst_158 : f32 to vector<30x1xf32>
    %321 = arith.divf %319, %320 : vector<30x1xf32>
    %322 = vector.broadcast %321 : vector<30x1xf32> to vector<30x32xf32>
    %323 = arith.subf %315, %322 : vector<30x32xf32>
    %324 = arith.mulf %323, %323 : vector<30x32xf32>
    %cst_159 = arith.constant dense<0.000000e+00> : vector<30xf32>
    %325 = vector.multi_reduction <add>, %324, %cst_159 [1] : vector<30x32xf32> to vector<30xf32>
    %326 = vector.shape_cast %325 : vector<30xf32> to vector<30x1xf32>
    %cst_160 = arith.constant 3.200000e+01 : f32
    %327 = vector.broadcast %cst_160 : f32 to vector<30x1xf32>
    %328 = arith.divf %326, %327 : vector<30x1xf32>
    %cst_161 = arith.constant 9.99999974E-6 : f32
    %329 = vector.broadcast %cst_161 : f32 to vector<30x1xf32>
    %330 = arith.addf %328, %329 : vector<30x1xf32>
    %331 = math.rsqrt %330 : vector<30x1xf32>
    %332 = vector.broadcast %331 : vector<30x1xf32> to vector<30x32xf32>
    %333 = arith.mulf %323, %332 : vector<30x32xf32>
    %334 = vector.broadcast %316 : vector<1x32xf32> to vector<30x32xf32>
    %335 = arith.mulf %333, %334 : vector<30x32xf32>
    %336 = vector.broadcast %317 : vector<1x32xf32> to vector<30x32xf32>
    %337 = arith.addf %335, %336 : vector<30x32xf32>
    %c0_162 = arith.constant 0 : index
    %c0_163 = arith.constant 0 : index
    %c0_164 = arith.constant 0 : index
    %338 = vector.load %arg18[%c0_162, %c0_163, %c0_164] : memref<2x32x32xbf16, #tpu.memory_space<vmem>>, vector<1x32x32xbf16>
    %339 = vector.shape_cast %338 : vector<1x32x32xbf16> to vector<32x32xbf16>
    %c0_165 = arith.constant 0 : index
    %c0_166 = arith.constant 0 : index
    %c0_167 = arith.constant 0 : index
    %340 = vector.load %arg19[%c0_165, %c0_166, %c0_167] : memref<2x1x32xf32, #tpu.memory_space<vmem>>, vector<1x1x32xf32>
    %341 = vector.shape_cast %340 : vector<1x1x32xf32> to vector<1x32xf32>
    %342 = arith.truncf %337 : vector<30x32xf32> to vector<30x32xbf16>
    %cst_168 = arith.constant dense<0.000000e+00> : vector<30x32xf32>
    %343 = tpu.matmul %342, %339, %cst_168 {dimension_numbers = #tpu.dot_dimension_numbers<[1], [0], [0], [1], [0, 0, 1, 1], [], []>} : vector<30x32xbf16>, vector<32x32xbf16>, vector<30x32xf32> -> vector<30x32xf32>
    %344 = vector.broadcast %341 : vector<1x32xf32> to vector<30x32xf32>
    %345 = arith.addf %343, %344 : vector<30x32xf32>
    %c0_169 = arith.constant 0 : index
    %c0_170 = arith.constant 0 : index
    %c0_171 = arith.constant 0 : index
    %346 = vector.load %arg20[%c0_169, %c0_170, %c0_171] : memref<2x32x32xbf16, #tpu.memory_space<vmem>>, vector<1x32x32xbf16>
    %347 = vector.shape_cast %346 : vector<1x32x32xbf16> to vector<32x32xbf16>
    %c0_172 = arith.constant 0 : index
    %c0_173 = arith.constant 0 : index
    %c0_174 = arith.constant 0 : index
    %348 = vector.load %arg21[%c0_172, %c0_173, %c0_174] : memref<2x1x32xf32, #tpu.memory_space<vmem>>, vector<1x1x32xf32>
    %349 = vector.shape_cast %348 : vector<1x1x32xf32> to vector<1x32xf32>
    %350 = arith.truncf %337 : vector<30x32xf32> to vector<30x32xbf16>
    %cst_175 = arith.constant dense<0.000000e+00> : vector<30x32xf32>
    %351 = tpu.matmul %350, %347, %cst_175 {dimension_numbers = #tpu.dot_dimension_numbers<[1], [0], [0], [1], [0, 0, 1, 1], [], []>} : vector<30x32xbf16>, vector<32x32xbf16>, vector<30x32xf32> -> vector<30x32xf32>
    %352 = vector.broadcast %349 : vector<1x32xf32> to vector<30x32xf32>
    %353 = arith.addf %351, %352 : vector<30x32xf32>
    %354 = arith.negf %353 : vector<30x32xf32>
    %355 = math.exp %354 : vector<30x32xf32>
    %cst_176 = arith.constant 1.000000e+00 : f32
    %356 = vector.broadcast %cst_176 : f32 to vector<30x32xf32>
    %357 = arith.addf %356, %355 : vector<30x32xf32>
    %358 = arith.divf %356, %357 : vector<30x32xf32>
    %359 = arith.mulf %345, %358 : vector<30x32xf32>
    %c0_177 = arith.constant 0 : index
    %c0_178 = arith.constant 0 : index
    %c0_179 = arith.constant 0 : index
    %360 = vector.load %arg22[%c0_177, %c0_178, %c0_179] : memref<2x3x32xf32, #tpu.memory_space<vmem>>, vector<1x3x32xf32>
    %361 = vector.shape_cast %360 : vector<1x3x32xf32> to vector<3x32xf32>
    %cst_180 = arith.constant 0.000000e+00 : f32
    %362 = vector.broadcast %cst_180 : f32 to vector<1x32xf32>
    %363 = vector.extract_strided_slice %359 {offsets = [0, 0], sizes = [29, 32], strides = [1, 1]} : vector<30x32xf32> to vector<29x32xf32>
    %364 = tpu.concatenate %362, %363 in 0 : vector<1x32xf32>, vector<29x32xf32> -> vector<30x32xf32>
    %cst_181 = arith.constant 0.000000e+00 : f32
    %365 = vector.shape_cast %36 : vector<30x1xi1> to vector<30x1xi1>
    %366 = vector.broadcast %365 : vector<30x1xi1> to vector<30x32xi1>
    %367 = vector.broadcast %cst_181 : f32 to vector<30x32xf32>
    %368 = arith.select %366, %364, %367 : vector<30x32xi1>, vector<30x32xf32>
    %369 = vector.extract_strided_slice %361 {offsets = [0, 0], sizes = [1, 32], strides = [1, 1]} : vector<3x32xf32> to vector<1x32xf32>
    %370 = vector.broadcast %369 : vector<1x32xf32> to vector<30x32xf32>
    %371 = arith.mulf %368, %370 : vector<30x32xf32>
    %372 = vector.extract_strided_slice %361 {offsets = [1, 0], sizes = [1, 32], strides = [1, 1]} : vector<3x32xf32> to vector<1x32xf32>
    %373 = vector.broadcast %372 : vector<1x32xf32> to vector<30x32xf32>
    %374 = arith.mulf %359, %373 : vector<30x32xf32>
    %375 = arith.addf %371, %374 : vector<30x32xf32>
    %376 = vector.extract_strided_slice %359 {offsets = [1, 0], sizes = [29, 32], strides = [1, 1]} : vector<30x32xf32> to vector<29x32xf32>
    %cst_182 = arith.constant 0.000000e+00 : f32
    %377 = vector.broadcast %cst_182 : f32 to vector<1x32xf32>
    %378 = tpu.concatenate %376, %377 in 0 : vector<29x32xf32>, vector<1x32xf32> -> vector<30x32xf32>
    %cst_183 = arith.constant 0.000000e+00 : f32
    %379 = vector.shape_cast %47 : vector<30x1xi1> to vector<30x1xi1>
    %380 = vector.broadcast %379 : vector<30x1xi1> to vector<30x32xi1>
    %381 = vector.broadcast %cst_183 : f32 to vector<30x32xf32>
    %382 = arith.select %380, %378, %381 : vector<30x32xi1>, vector<30x32xf32>
    %383 = vector.extract_strided_slice %361 {offsets = [2, 0], sizes = [1, 32], strides = [1, 1]} : vector<3x32xf32> to vector<1x32xf32>
    %384 = vector.broadcast %383 : vector<1x32xf32> to vector<30x32xf32>
    %385 = arith.mulf %382, %384 : vector<30x32xf32>
    %386 = arith.addf %375, %385 : vector<30x32xf32>
    %c0_184 = arith.constant 0 : index
    %c0_185 = arith.constant 0 : index
    %c0_186 = arith.constant 0 : index
    %387 = vector.load %arg23[%c0_184, %c0_185, %c0_186] : memref<2x1x32xf32, #tpu.memory_space<vmem>>, vector<1x1x32xf32>
    %388 = vector.shape_cast %387 : vector<1x1x32xf32> to vector<1x32xf32>
    %389 = vector.broadcast %388 : vector<1x32xf32> to vector<30x32xf32>
    %390 = arith.mulf %386, %389 : vector<30x32xf32>
    %c0_187 = arith.constant 0 : index
    %c0_188 = arith.constant 0 : index
    %c0_189 = arith.constant 0 : index
    %391 = vector.load %arg24[%c0_187, %c0_188, %c0_189] : memref<2x1x32xf32, #tpu.memory_space<vmem>>, vector<1x1x32xf32>
    %392 = vector.shape_cast %391 : vector<1x1x32xf32> to vector<1x32xf32>
    %393 = vector.broadcast %392 : vector<1x32xf32> to vector<30x32xf32>
    %394 = arith.addf %390, %393 : vector<30x32xf32>
    %395 = arith.negf %394 : vector<30x32xf32>
    %396 = math.exp %395 : vector<30x32xf32>
    %cst_190 = arith.constant 1.000000e+00 : f32
    %397 = vector.broadcast %cst_190 : f32 to vector<30x32xf32>
    %398 = arith.addf %397, %396 : vector<30x32xf32>
    %399 = arith.divf %397, %398 : vector<30x32xf32>
    %400 = arith.mulf %394, %399 : vector<30x32xf32>
    %c0_191 = arith.constant 0 : index
    %c0_192 = arith.constant 0 : index
    %c0_193 = arith.constant 0 : index
    %401 = vector.load %arg25[%c0_191, %c0_192, %c0_193] : memref<2x32x32xbf16, #tpu.memory_space<vmem>>, vector<1x32x32xbf16>
    %402 = vector.shape_cast %401 : vector<1x32x32xbf16> to vector<32x32xbf16>
    %c0_194 = arith.constant 0 : index
    %c0_195 = arith.constant 0 : index
    %c0_196 = arith.constant 0 : index
    %403 = vector.load %arg26[%c0_194, %c0_195, %c0_196] : memref<2x1x32xf32, #tpu.memory_space<vmem>>, vector<1x1x32xf32>
    %404 = vector.shape_cast %403 : vector<1x1x32xf32> to vector<1x32xf32>
    %405 = arith.truncf %400 : vector<30x32xf32> to vector<30x32xbf16>
    %cst_197 = arith.constant dense<0.000000e+00> : vector<30x32xf32>
    %406 = tpu.matmul %405, %402, %cst_197 {dimension_numbers = #tpu.dot_dimension_numbers<[1], [0], [0], [1], [0, 0, 1, 1], [], []>} : vector<30x32xbf16>, vector<32x32xbf16>, vector<30x32xf32> -> vector<30x32xf32>
    %407 = vector.broadcast %404 : vector<1x32xf32> to vector<30x32xf32>
    %408 = arith.addf %406, %407 : vector<30x32xf32>
    %409 = arith.addf %315, %408 : vector<30x32xf32>
    %410 = vector.extract_strided_slice %58 {offsets = [3, 0], sizes = [1, 32], strides = [1, 1]} : vector<5x32xf32> to vector<1x32xf32>
    %411 = vector.extract_strided_slice %60 {offsets = [3, 0], sizes = [1, 32], strides = [1, 1]} : vector<5x32xf32> to vector<1x32xf32>
    %cst_198 = arith.constant dense<0.000000e+00> : vector<30xf32>
    %412 = vector.multi_reduction <add>, %409, %cst_198 [1] : vector<30x32xf32> to vector<30xf32>
    %413 = vector.shape_cast %412 : vector<30xf32> to vector<30x1xf32>
    %cst_199 = arith.constant 3.200000e+01 : f32
    %414 = vector.broadcast %cst_199 : f32 to vector<30x1xf32>
    %415 = arith.divf %413, %414 : vector<30x1xf32>
    %416 = vector.broadcast %415 : vector<30x1xf32> to vector<30x32xf32>
    %417 = arith.subf %409, %416 : vector<30x32xf32>
    %418 = arith.mulf %417, %417 : vector<30x32xf32>
    %cst_200 = arith.constant dense<0.000000e+00> : vector<30xf32>
    %419 = vector.multi_reduction <add>, %418, %cst_200 [1] : vector<30x32xf32> to vector<30xf32>
    %420 = vector.shape_cast %419 : vector<30xf32> to vector<30x1xf32>
    %cst_201 = arith.constant 3.200000e+01 : f32
    %421 = vector.broadcast %cst_201 : f32 to vector<30x1xf32>
    %422 = arith.divf %420, %421 : vector<30x1xf32>
    %cst_202 = arith.constant 9.99999974E-6 : f32
    %423 = vector.broadcast %cst_202 : f32 to vector<30x1xf32>
    %424 = arith.addf %422, %423 : vector<30x1xf32>
    %425 = math.rsqrt %424 : vector<30x1xf32>
    %426 = vector.broadcast %425 : vector<30x1xf32> to vector<30x32xf32>
    %427 = arith.mulf %417, %426 : vector<30x32xf32>
    %428 = vector.broadcast %410 : vector<1x32xf32> to vector<30x32xf32>
    %429 = arith.mulf %427, %428 : vector<30x32xf32>
    %430 = vector.broadcast %411 : vector<1x32xf32> to vector<30x32xf32>
    %431 = arith.addf %429, %430 : vector<30x32xf32>
    %c0_203 = arith.constant 0 : index
    %c0_204 = arith.constant 0 : index
    %c0_205 = arith.constant 0 : index
    %432 = vector.load %arg27[%c0_203, %c0_204, %c0_205] : memref<2x32x128xbf16, #tpu.memory_space<vmem>>, vector<1x32x128xbf16>
    %433 = vector.shape_cast %432 : vector<1x32x128xbf16> to vector<32x128xbf16>
    %c0_206 = arith.constant 0 : index
    %c0_207 = arith.constant 0 : index
    %c0_208 = arith.constant 0 : index
    %434 = vector.load %arg28[%c0_206, %c0_207, %c0_208] : memref<2x1x128xf32, #tpu.memory_space<vmem>>, vector<1x1x128xf32>
    %435 = vector.shape_cast %434 : vector<1x1x128xf32> to vector<1x128xf32>
    %436 = arith.truncf %431 : vector<30x32xf32> to vector<30x32xbf16>
    %cst_209 = arith.constant dense<0.000000e+00> : vector<30x128xf32>
    %437 = tpu.matmul %436, %433, %cst_209 {dimension_numbers = #tpu.dot_dimension_numbers<[1], [0], [0], [1], [0, 0, 1, 1], [], []>} : vector<30x32xbf16>, vector<32x128xbf16>, vector<30x128xf32> -> vector<30x128xf32>
    %438 = vector.broadcast %435 : vector<1x128xf32> to vector<30x128xf32>
    %439 = arith.addf %437, %438 : vector<30x128xf32>
    %440 = arith.negf %439 : vector<30x128xf32>
    %441 = math.exp %440 : vector<30x128xf32>
    %cst_210 = arith.constant 1.000000e+00 : f32
    %442 = vector.broadcast %cst_210 : f32 to vector<30x128xf32>
    %443 = arith.addf %442, %441 : vector<30x128xf32>
    %444 = arith.divf %442, %443 : vector<30x128xf32>
    %445 = arith.mulf %439, %444 : vector<30x128xf32>
    %c0_211 = arith.constant 0 : index
    %c0_212 = arith.constant 0 : index
    %c0_213 = arith.constant 0 : index
    %446 = vector.load %arg29[%c0_211, %c0_212, %c0_213] : memref<2x128x32xbf16, #tpu.memory_space<vmem>>, vector<1x128x32xbf16>
    %447 = vector.shape_cast %446 : vector<1x128x32xbf16> to vector<128x32xbf16>
    %c0_214 = arith.constant 0 : index
    %c0_215 = arith.constant 0 : index
    %c0_216 = arith.constant 0 : index
    %448 = vector.load %arg30[%c0_214, %c0_215, %c0_216] : memref<2x1x32xf32, #tpu.memory_space<vmem>>, vector<1x1x32xf32>
    %449 = vector.shape_cast %448 : vector<1x1x32xf32> to vector<1x32xf32>
    %450 = arith.truncf %445 : vector<30x128xf32> to vector<30x128xbf16>
    %cst_217 = arith.constant dense<0.000000e+00> : vector<30x32xf32>
    %451 = tpu.matmul %450, %447, %cst_217 {dimension_numbers = #tpu.dot_dimension_numbers<[1], [0], [0], [1], [0, 0, 1, 1], [], []>} : vector<30x128xbf16>, vector<128x32xbf16>, vector<30x32xf32> -> vector<30x32xf32>
    %452 = vector.broadcast %449 : vector<1x32xf32> to vector<30x32xf32>
    %453 = arith.addf %451, %452 : vector<30x32xf32>
    %cst_218 = arith.constant 5.000000e-01 : f32
    %454 = vector.broadcast %cst_218 : f32 to vector<30x32xf32>
    %455 = arith.mulf %454, %453 : vector<30x32xf32>
    %456 = arith.addf %409, %455 : vector<30x32xf32>
    %457 = vector.extract_strided_slice %58 {offsets = [4, 0], sizes = [1, 32], strides = [1, 1]} : vector<5x32xf32> to vector<1x32xf32>
    %458 = vector.extract_strided_slice %60 {offsets = [4, 0], sizes = [1, 32], strides = [1, 1]} : vector<5x32xf32> to vector<1x32xf32>
    %cst_219 = arith.constant dense<0.000000e+00> : vector<30xf32>
    %459 = vector.multi_reduction <add>, %456, %cst_219 [1] : vector<30x32xf32> to vector<30xf32>
    %460 = vector.shape_cast %459 : vector<30xf32> to vector<30x1xf32>
    %cst_220 = arith.constant 3.200000e+01 : f32
    %461 = vector.broadcast %cst_220 : f32 to vector<30x1xf32>
    %462 = arith.divf %460, %461 : vector<30x1xf32>
    %463 = vector.broadcast %462 : vector<30x1xf32> to vector<30x32xf32>
    %464 = arith.subf %456, %463 : vector<30x32xf32>
    %465 = arith.mulf %464, %464 : vector<30x32xf32>
    %cst_221 = arith.constant dense<0.000000e+00> : vector<30xf32>
    %466 = vector.multi_reduction <add>, %465, %cst_221 [1] : vector<30x32xf32> to vector<30xf32>
    %467 = vector.shape_cast %466 : vector<30xf32> to vector<30x1xf32>
    %cst_222 = arith.constant 3.200000e+01 : f32
    %468 = vector.broadcast %cst_222 : f32 to vector<30x1xf32>
    %469 = arith.divf %467, %468 : vector<30x1xf32>
    %cst_223 = arith.constant 9.99999974E-6 : f32
    %470 = vector.broadcast %cst_223 : f32 to vector<30x1xf32>
    %471 = arith.addf %469, %470 : vector<30x1xf32>
    %472 = math.rsqrt %471 : vector<30x1xf32>
    %473 = vector.broadcast %472 : vector<30x1xf32> to vector<30x32xf32>
    %474 = arith.mulf %464, %473 : vector<30x32xf32>
    %475 = vector.broadcast %457 : vector<1x32xf32> to vector<30x32xf32>
    %476 = arith.mulf %474, %475 : vector<30x32xf32>
    %477 = vector.broadcast %458 : vector<1x32xf32> to vector<30x32xf32>
    %478 = arith.addf %476, %477 : vector<30x32xf32>
    %c1_224 = arith.constant 1 : index
    %c0_225 = arith.constant 0 : index
    %c0_226 = arith.constant 0 : index
    %479 = vector.load %arg4[%c1_224, %c0_225, %c0_226] : memref<2x5x32xf32, #tpu.memory_space<vmem>>, vector<1x5x32xf32>
    %480 = vector.shape_cast %479 : vector<1x5x32xf32> to vector<5x32xf32>
    %c1_227 = arith.constant 1 : index
    %c0_228 = arith.constant 0 : index
    %c0_229 = arith.constant 0 : index
    %481 = vector.load %arg5[%c1_227, %c0_228, %c0_229] : memref<2x5x32xf32, #tpu.memory_space<vmem>>, vector<1x5x32xf32>
    %482 = vector.shape_cast %481 : vector<1x5x32xf32> to vector<5x32xf32>
    %483 = vector.extract_strided_slice %480 {offsets = [0, 0], sizes = [1, 32], strides = [1, 1]} : vector<5x32xf32> to vector<1x32xf32>
    %484 = vector.extract_strided_slice %482 {offsets = [0, 0], sizes = [1, 32], strides = [1, 1]} : vector<5x32xf32> to vector<1x32xf32>
    %cst_230 = arith.constant dense<0.000000e+00> : vector<30xf32>
    %485 = vector.multi_reduction <add>, %478, %cst_230 [1] : vector<30x32xf32> to vector<30xf32>
    %486 = vector.shape_cast %485 : vector<30xf32> to vector<30x1xf32>
    %cst_231 = arith.constant 3.200000e+01 : f32
    %487 = vector.broadcast %cst_231 : f32 to vector<30x1xf32>
    %488 = arith.divf %486, %487 : vector<30x1xf32>
    %489 = vector.broadcast %488 : vector<30x1xf32> to vector<30x32xf32>
    %490 = arith.subf %478, %489 : vector<30x32xf32>
    %491 = arith.mulf %490, %490 : vector<30x32xf32>
    %cst_232 = arith.constant dense<0.000000e+00> : vector<30xf32>
    %492 = vector.multi_reduction <add>, %491, %cst_232 [1] : vector<30x32xf32> to vector<30xf32>
    %493 = vector.shape_cast %492 : vector<30xf32> to vector<30x1xf32>
    %cst_233 = arith.constant 3.200000e+01 : f32
    %494 = vector.broadcast %cst_233 : f32 to vector<30x1xf32>
    %495 = arith.divf %493, %494 : vector<30x1xf32>
    %cst_234 = arith.constant 9.99999974E-6 : f32
    %496 = vector.broadcast %cst_234 : f32 to vector<30x1xf32>
    %497 = arith.addf %495, %496 : vector<30x1xf32>
    %498 = math.rsqrt %497 : vector<30x1xf32>
    %499 = vector.broadcast %498 : vector<30x1xf32> to vector<30x32xf32>
    %500 = arith.mulf %490, %499 : vector<30x32xf32>
    %501 = vector.broadcast %483 : vector<1x32xf32> to vector<30x32xf32>
    %502 = arith.mulf %500, %501 : vector<30x32xf32>
    %503 = vector.broadcast %484 : vector<1x32xf32> to vector<30x32xf32>
    %504 = arith.addf %502, %503 : vector<30x32xf32>
    %c1_235 = arith.constant 1 : index
    %c0_236 = arith.constant 0 : index
    %c0_237 = arith.constant 0 : index
    %505 = vector.load %arg6[%c1_235, %c0_236, %c0_237] : memref<2x32x128xbf16, #tpu.memory_space<vmem>>, vector<1x32x128xbf16>
    %506 = vector.shape_cast %505 : vector<1x32x128xbf16> to vector<32x128xbf16>
    %c1_238 = arith.constant 1 : index
    %c0_239 = arith.constant 0 : index
    %c0_240 = arith.constant 0 : index
    %507 = vector.load %arg7[%c1_238, %c0_239, %c0_240] : memref<2x1x128xf32, #tpu.memory_space<vmem>>, vector<1x1x128xf32>
    %508 = vector.shape_cast %507 : vector<1x1x128xf32> to vector<1x128xf32>
    %509 = arith.truncf %504 : vector<30x32xf32> to vector<30x32xbf16>
    %cst_241 = arith.constant dense<0.000000e+00> : vector<30x128xf32>
    %510 = tpu.matmul %509, %506, %cst_241 {dimension_numbers = #tpu.dot_dimension_numbers<[1], [0], [0], [1], [0, 0, 1, 1], [], []>} : vector<30x32xbf16>, vector<32x128xbf16>, vector<30x128xf32> -> vector<30x128xf32>
    %511 = vector.broadcast %508 : vector<1x128xf32> to vector<30x128xf32>
    %512 = arith.addf %510, %511 : vector<30x128xf32>
    %513 = arith.negf %512 : vector<30x128xf32>
    %514 = math.exp %513 : vector<30x128xf32>
    %cst_242 = arith.constant 1.000000e+00 : f32
    %515 = vector.broadcast %cst_242 : f32 to vector<30x128xf32>
    %516 = arith.addf %515, %514 : vector<30x128xf32>
    %517 = arith.divf %515, %516 : vector<30x128xf32>
    %518 = arith.mulf %512, %517 : vector<30x128xf32>
    %c1_243 = arith.constant 1 : index
    %c0_244 = arith.constant 0 : index
    %c0_245 = arith.constant 0 : index
    %519 = vector.load %arg8[%c1_243, %c0_244, %c0_245] : memref<2x128x32xbf16, #tpu.memory_space<vmem>>, vector<1x128x32xbf16>
    %520 = vector.shape_cast %519 : vector<1x128x32xbf16> to vector<128x32xbf16>
    %c1_246 = arith.constant 1 : index
    %c0_247 = arith.constant 0 : index
    %c0_248 = arith.constant 0 : index
    %521 = vector.load %arg9[%c1_246, %c0_247, %c0_248] : memref<2x1x32xf32, #tpu.memory_space<vmem>>, vector<1x1x32xf32>
    %522 = vector.shape_cast %521 : vector<1x1x32xf32> to vector<1x32xf32>
    %523 = arith.truncf %518 : vector<30x128xf32> to vector<30x128xbf16>
    %cst_249 = arith.constant dense<0.000000e+00> : vector<30x32xf32>
    %524 = tpu.matmul %523, %520, %cst_249 {dimension_numbers = #tpu.dot_dimension_numbers<[1], [0], [0], [1], [0, 0, 1, 1], [], []>} : vector<30x128xbf16>, vector<128x32xbf16>, vector<30x32xf32> -> vector<30x32xf32>
    %525 = vector.broadcast %522 : vector<1x32xf32> to vector<30x32xf32>
    %526 = arith.addf %524, %525 : vector<30x32xf32>
    %cst_250 = arith.constant 5.000000e-01 : f32
    %527 = vector.broadcast %cst_250 : f32 to vector<30x32xf32>
    %528 = arith.mulf %527, %526 : vector<30x32xf32>
    %529 = arith.addf %478, %528 : vector<30x32xf32>
    %530 = vector.extract_strided_slice %480 {offsets = [1, 0], sizes = [1, 32], strides = [1, 1]} : vector<5x32xf32> to vector<1x32xf32>
    %531 = vector.extract_strided_slice %482 {offsets = [1, 0], sizes = [1, 32], strides = [1, 1]} : vector<5x32xf32> to vector<1x32xf32>
    %cst_251 = arith.constant dense<0.000000e+00> : vector<30xf32>
    %532 = vector.multi_reduction <add>, %529, %cst_251 [1] : vector<30x32xf32> to vector<30xf32>
    %533 = vector.shape_cast %532 : vector<30xf32> to vector<30x1xf32>
    %cst_252 = arith.constant 3.200000e+01 : f32
    %534 = vector.broadcast %cst_252 : f32 to vector<30x1xf32>
    %535 = arith.divf %533, %534 : vector<30x1xf32>
    %536 = vector.broadcast %535 : vector<30x1xf32> to vector<30x32xf32>
    %537 = arith.subf %529, %536 : vector<30x32xf32>
    %538 = arith.mulf %537, %537 : vector<30x32xf32>
    %cst_253 = arith.constant dense<0.000000e+00> : vector<30xf32>
    %539 = vector.multi_reduction <add>, %538, %cst_253 [1] : vector<30x32xf32> to vector<30xf32>
    %540 = vector.shape_cast %539 : vector<30xf32> to vector<30x1xf32>
    %cst_254 = arith.constant 3.200000e+01 : f32
    %541 = vector.broadcast %cst_254 : f32 to vector<30x1xf32>
    %542 = arith.divf %540, %541 : vector<30x1xf32>
    %cst_255 = arith.constant 9.99999974E-6 : f32
    %543 = vector.broadcast %cst_255 : f32 to vector<30x1xf32>
    %544 = arith.addf %542, %543 : vector<30x1xf32>
    %545 = math.rsqrt %544 : vector<30x1xf32>
    %546 = vector.broadcast %545 : vector<30x1xf32> to vector<30x32xf32>
    %547 = arith.mulf %537, %546 : vector<30x32xf32>
    %548 = vector.broadcast %530 : vector<1x32xf32> to vector<30x32xf32>
    %549 = arith.mulf %547, %548 : vector<30x32xf32>
    %550 = vector.broadcast %531 : vector<1x32xf32> to vector<30x32xf32>
    %551 = arith.addf %549, %550 : vector<30x32xf32>
    %c4 = arith.constant 4 : index
    %c0_256 = arith.constant 0 : index
    %c0_257 = arith.constant 0 : index
    %552 = vector.load %arg10[%c4, %c0_256, %c0_257] : memref<8x32x8xbf16, #tpu.memory_space<vmem>>, vector<1x32x8xbf16>
    %553 = vector.shape_cast %552 : vector<1x32x8xbf16> to vector<32x8xbf16>
    %c4_258 = arith.constant 4 : index
    %c0_259 = arith.constant 0 : index
    %c0_260 = arith.constant 0 : index
    %554 = vector.load %arg13[%c4_258, %c0_259, %c0_260] : memref<8x1x8xf32, #tpu.memory_space<vmem>>, vector<1x1x8xf32>
    %555 = vector.shape_cast %554 : vector<1x1x8xf32> to vector<1x8xf32>
    %556 = arith.truncf %551 : vector<30x32xf32> to vector<30x32xbf16>
    %cst_261 = arith.constant dense<0.000000e+00> : vector<30x8xf32>
    %557 = tpu.matmul %556, %553, %cst_261 {dimension_numbers = #tpu.dot_dimension_numbers<[1], [0], [0], [1], [0, 0, 1, 1], [], []>} : vector<30x32xbf16>, vector<32x8xbf16>, vector<30x8xf32> -> vector<30x8xf32>
    %558 = vector.broadcast %555 : vector<1x8xf32> to vector<30x8xf32>
    %559 = arith.addf %557, %558 : vector<30x8xf32>
    %c4_262 = arith.constant 4 : index
    %c0_263 = arith.constant 0 : index
    %c0_264 = arith.constant 0 : index
    %560 = vector.load %arg11[%c4_262, %c0_263, %c0_264] : memref<8x32x8xbf16, #tpu.memory_space<vmem>>, vector<1x32x8xbf16>
    %561 = vector.shape_cast %560 : vector<1x32x8xbf16> to vector<32x8xbf16>
    %c4_265 = arith.constant 4 : index
    %c0_266 = arith.constant 0 : index
    %c0_267 = arith.constant 0 : index
    %562 = vector.load %arg14[%c4_265, %c0_266, %c0_267] : memref<8x1x8xf32, #tpu.memory_space<vmem>>, vector<1x1x8xf32>
    %563 = vector.shape_cast %562 : vector<1x1x8xf32> to vector<1x8xf32>
    %564 = arith.truncf %551 : vector<30x32xf32> to vector<30x32xbf16>
    %cst_268 = arith.constant dense<0.000000e+00> : vector<30x8xf32>
    %565 = tpu.matmul %564, %561, %cst_268 {dimension_numbers = #tpu.dot_dimension_numbers<[1], [0], [0], [1], [0, 0, 1, 1], [], []>} : vector<30x32xbf16>, vector<32x8xbf16>, vector<30x8xf32> -> vector<30x8xf32>
    %566 = vector.broadcast %563 : vector<1x8xf32> to vector<30x8xf32>
    %567 = arith.addf %565, %566 : vector<30x8xf32>
    %c4_269 = arith.constant 4 : index
    %c0_270 = arith.constant 0 : index
    %c0_271 = arith.constant 0 : index
    %568 = vector.load %arg12[%c4_269, %c0_270, %c0_271] : memref<8x32x8xbf16, #tpu.memory_space<vmem>>, vector<1x32x8xbf16>
    %569 = vector.shape_cast %568 : vector<1x32x8xbf16> to vector<32x8xbf16>
    %c4_272 = arith.constant 4 : index
    %c0_273 = arith.constant 0 : index
    %c0_274 = arith.constant 0 : index
    %570 = vector.load %arg15[%c4_272, %c0_273, %c0_274] : memref<8x1x8xf32, #tpu.memory_space<vmem>>, vector<1x1x8xf32>
    %571 = vector.shape_cast %570 : vector<1x1x8xf32> to vector<1x8xf32>
    %572 = arith.truncf %551 : vector<30x32xf32> to vector<30x32xbf16>
    %cst_275 = arith.constant dense<0.000000e+00> : vector<30x8xf32>
    %573 = tpu.matmul %572, %569, %cst_275 {dimension_numbers = #tpu.dot_dimension_numbers<[1], [0], [0], [1], [0, 0, 1, 1], [], []>} : vector<30x32xbf16>, vector<32x8xbf16>, vector<30x8xf32> -> vector<30x8xf32>
    %574 = vector.broadcast %571 : vector<1x8xf32> to vector<30x8xf32>
    %575 = arith.addf %573, %574 : vector<30x8xf32>
    %576 = arith.truncf %559 : vector<30x8xf32> to vector<30x8xbf16>
    %577 = arith.truncf %567 : vector<30x8xf32> to vector<30x8xbf16>
    %cst_276 = arith.constant dense<0.000000e+00> : vector<30x30xf32>
    %578 = tpu.matmul %576, %577, %cst_276 {dimension_numbers = #tpu.dot_dimension_numbers<[1], [1], [0], [0], [0, 0, 1, 0], [], []>} : vector<30x8xbf16>, vector<30x8xbf16>, vector<30x30xf32> -> vector<30x30xf32>
    %cst_277 = arith.constant 0.353553385 : f32
    %579 = vector.broadcast %cst_277 : f32 to vector<30x30xf32>
    %580 = arith.mulf %578, %579 : vector<30x30xf32>
    %cst_278 = arith.constant -1.000000e+30 : f32
    %581 = vector.broadcast %cst_278 : f32 to vector<30x30xf32>
    %582 = arith.select %24, %580, %581 : vector<30x30xi1>, vector<30x30xf32>
    %cst_279 = arith.constant dense<0xFF800000> : vector<30xf32>
    %583 = vector.multi_reduction <maximumf>, %582, %cst_279 [1] : vector<30x30xf32> to vector<30xf32>
    %584 = vector.shape_cast %583 : vector<30xf32> to vector<30x1xf32>
    %585 = vector.broadcast %584 : vector<30x1xf32> to vector<30x30xf32>
    %586 = arith.subf %582, %585 : vector<30x30xf32>
    %587 = math.exp %586 : vector<30x30xf32>
    %cst_280 = arith.constant dense<0.000000e+00> : vector<30xf32>
    %588 = vector.multi_reduction <add>, %587, %cst_280 [1] : vector<30x30xf32> to vector<30xf32>
    %589 = vector.shape_cast %588 : vector<30xf32> to vector<30x1xf32>
    %590 = tpu.reciprocal %589 {approx = true} : vector<30x1xf32> -> vector<30x1xf32>
    %591 = vector.broadcast %590 : vector<30x1xf32> to vector<30x30xf32>
    %592 = arith.mulf %587, %591 : vector<30x30xf32>
    %593 = arith.truncf %592 : vector<30x30xf32> to vector<30x30xbf16>
    %594 = arith.truncf %575 : vector<30x8xf32> to vector<30x8xbf16>
    %cst_281 = arith.constant dense<0.000000e+00> : vector<30x8xf32>
    %595 = tpu.matmul %593, %594, %cst_281 {dimension_numbers = #tpu.dot_dimension_numbers<[1], [0], [0], [1], [0, 0, 1, 1], [], []>} : vector<30x30xbf16>, vector<30x8xbf16>, vector<30x8xf32> -> vector<30x8xf32>
    %c5 = arith.constant 5 : index
    %c0_282 = arith.constant 0 : index
    %c0_283 = arith.constant 0 : index
    %596 = vector.load %arg10[%c5, %c0_282, %c0_283] : memref<8x32x8xbf16, #tpu.memory_space<vmem>>, vector<1x32x8xbf16>
    %597 = vector.shape_cast %596 : vector<1x32x8xbf16> to vector<32x8xbf16>
    %c5_284 = arith.constant 5 : index
    %c0_285 = arith.constant 0 : index
    %c0_286 = arith.constant 0 : index
    %598 = vector.load %arg13[%c5_284, %c0_285, %c0_286] : memref<8x1x8xf32, #tpu.memory_space<vmem>>, vector<1x1x8xf32>
    %599 = vector.shape_cast %598 : vector<1x1x8xf32> to vector<1x8xf32>
    %600 = arith.truncf %551 : vector<30x32xf32> to vector<30x32xbf16>
    %cst_287 = arith.constant dense<0.000000e+00> : vector<30x8xf32>
    %601 = tpu.matmul %600, %597, %cst_287 {dimension_numbers = #tpu.dot_dimension_numbers<[1], [0], [0], [1], [0, 0, 1, 1], [], []>} : vector<30x32xbf16>, vector<32x8xbf16>, vector<30x8xf32> -> vector<30x8xf32>
    %602 = vector.broadcast %599 : vector<1x8xf32> to vector<30x8xf32>
    %603 = arith.addf %601, %602 : vector<30x8xf32>
    %c5_288 = arith.constant 5 : index
    %c0_289 = arith.constant 0 : index
    %c0_290 = arith.constant 0 : index
    %604 = vector.load %arg11[%c5_288, %c0_289, %c0_290] : memref<8x32x8xbf16, #tpu.memory_space<vmem>>, vector<1x32x8xbf16>
    %605 = vector.shape_cast %604 : vector<1x32x8xbf16> to vector<32x8xbf16>
    %c5_291 = arith.constant 5 : index
    %c0_292 = arith.constant 0 : index
    %c0_293 = arith.constant 0 : index
    %606 = vector.load %arg14[%c5_291, %c0_292, %c0_293] : memref<8x1x8xf32, #tpu.memory_space<vmem>>, vector<1x1x8xf32>
    %607 = vector.shape_cast %606 : vector<1x1x8xf32> to vector<1x8xf32>
    %608 = arith.truncf %551 : vector<30x32xf32> to vector<30x32xbf16>
    %cst_294 = arith.constant dense<0.000000e+00> : vector<30x8xf32>
    %609 = tpu.matmul %608, %605, %cst_294 {dimension_numbers = #tpu.dot_dimension_numbers<[1], [0], [0], [1], [0, 0, 1, 1], [], []>} : vector<30x32xbf16>, vector<32x8xbf16>, vector<30x8xf32> -> vector<30x8xf32>
    %610 = vector.broadcast %607 : vector<1x8xf32> to vector<30x8xf32>
    %611 = arith.addf %609, %610 : vector<30x8xf32>
    %c5_295 = arith.constant 5 : index
    %c0_296 = arith.constant 0 : index
    %c0_297 = arith.constant 0 : index
    %612 = vector.load %arg12[%c5_295, %c0_296, %c0_297] : memref<8x32x8xbf16, #tpu.memory_space<vmem>>, vector<1x32x8xbf16>
    %613 = vector.shape_cast %612 : vector<1x32x8xbf16> to vector<32x8xbf16>
    %c5_298 = arith.constant 5 : index
    %c0_299 = arith.constant 0 : index
    %c0_300 = arith.constant 0 : index
    %614 = vector.load %arg15[%c5_298, %c0_299, %c0_300] : memref<8x1x8xf32, #tpu.memory_space<vmem>>, vector<1x1x8xf32>
    %615 = vector.shape_cast %614 : vector<1x1x8xf32> to vector<1x8xf32>
    %616 = arith.truncf %551 : vector<30x32xf32> to vector<30x32xbf16>
    %cst_301 = arith.constant dense<0.000000e+00> : vector<30x8xf32>
    %617 = tpu.matmul %616, %613, %cst_301 {dimension_numbers = #tpu.dot_dimension_numbers<[1], [0], [0], [1], [0, 0, 1, 1], [], []>} : vector<30x32xbf16>, vector<32x8xbf16>, vector<30x8xf32> -> vector<30x8xf32>
    %618 = vector.broadcast %615 : vector<1x8xf32> to vector<30x8xf32>
    %619 = arith.addf %617, %618 : vector<30x8xf32>
    %620 = arith.truncf %603 : vector<30x8xf32> to vector<30x8xbf16>
    %621 = arith.truncf %611 : vector<30x8xf32> to vector<30x8xbf16>
    %cst_302 = arith.constant dense<0.000000e+00> : vector<30x30xf32>
    %622 = tpu.matmul %620, %621, %cst_302 {dimension_numbers = #tpu.dot_dimension_numbers<[1], [1], [0], [0], [0, 0, 1, 0], [], []>} : vector<30x8xbf16>, vector<30x8xbf16>, vector<30x30xf32> -> vector<30x30xf32>
    %cst_303 = arith.constant 0.353553385 : f32
    %623 = vector.broadcast %cst_303 : f32 to vector<30x30xf32>
    %624 = arith.mulf %622, %623 : vector<30x30xf32>
    %cst_304 = arith.constant -1.000000e+30 : f32
    %625 = vector.broadcast %cst_304 : f32 to vector<30x30xf32>
    %626 = arith.select %24, %624, %625 : vector<30x30xi1>, vector<30x30xf32>
    %cst_305 = arith.constant dense<0xFF800000> : vector<30xf32>
    %627 = vector.multi_reduction <maximumf>, %626, %cst_305 [1] : vector<30x30xf32> to vector<30xf32>
    %628 = vector.shape_cast %627 : vector<30xf32> to vector<30x1xf32>
    %629 = vector.broadcast %628 : vector<30x1xf32> to vector<30x30xf32>
    %630 = arith.subf %626, %629 : vector<30x30xf32>
    %631 = math.exp %630 : vector<30x30xf32>
    %cst_306 = arith.constant dense<0.000000e+00> : vector<30xf32>
    %632 = vector.multi_reduction <add>, %631, %cst_306 [1] : vector<30x30xf32> to vector<30xf32>
    %633 = vector.shape_cast %632 : vector<30xf32> to vector<30x1xf32>
    %634 = tpu.reciprocal %633 {approx = true} : vector<30x1xf32> -> vector<30x1xf32>
    %635 = vector.broadcast %634 : vector<30x1xf32> to vector<30x30xf32>
    %636 = arith.mulf %631, %635 : vector<30x30xf32>
    %637 = arith.truncf %636 : vector<30x30xf32> to vector<30x30xbf16>
    %638 = arith.truncf %619 : vector<30x8xf32> to vector<30x8xbf16>
    %cst_307 = arith.constant dense<0.000000e+00> : vector<30x8xf32>
    %639 = tpu.matmul %637, %638, %cst_307 {dimension_numbers = #tpu.dot_dimension_numbers<[1], [0], [0], [1], [0, 0, 1, 1], [], []>} : vector<30x30xbf16>, vector<30x8xbf16>, vector<30x8xf32> -> vector<30x8xf32>
    %c6 = arith.constant 6 : index
    %c0_308 = arith.constant 0 : index
    %c0_309 = arith.constant 0 : index
    %640 = vector.load %arg10[%c6, %c0_308, %c0_309] : memref<8x32x8xbf16, #tpu.memory_space<vmem>>, vector<1x32x8xbf16>
    %641 = vector.shape_cast %640 : vector<1x32x8xbf16> to vector<32x8xbf16>
    %c6_310 = arith.constant 6 : index
    %c0_311 = arith.constant 0 : index
    %c0_312 = arith.constant 0 : index
    %642 = vector.load %arg13[%c6_310, %c0_311, %c0_312] : memref<8x1x8xf32, #tpu.memory_space<vmem>>, vector<1x1x8xf32>
    %643 = vector.shape_cast %642 : vector<1x1x8xf32> to vector<1x8xf32>
    %644 = arith.truncf %551 : vector<30x32xf32> to vector<30x32xbf16>
    %cst_313 = arith.constant dense<0.000000e+00> : vector<30x8xf32>
    %645 = tpu.matmul %644, %641, %cst_313 {dimension_numbers = #tpu.dot_dimension_numbers<[1], [0], [0], [1], [0, 0, 1, 1], [], []>} : vector<30x32xbf16>, vector<32x8xbf16>, vector<30x8xf32> -> vector<30x8xf32>
    %646 = vector.broadcast %643 : vector<1x8xf32> to vector<30x8xf32>
    %647 = arith.addf %645, %646 : vector<30x8xf32>
    %c6_314 = arith.constant 6 : index
    %c0_315 = arith.constant 0 : index
    %c0_316 = arith.constant 0 : index
    %648 = vector.load %arg11[%c6_314, %c0_315, %c0_316] : memref<8x32x8xbf16, #tpu.memory_space<vmem>>, vector<1x32x8xbf16>
    %649 = vector.shape_cast %648 : vector<1x32x8xbf16> to vector<32x8xbf16>
    %c6_317 = arith.constant 6 : index
    %c0_318 = arith.constant 0 : index
    %c0_319 = arith.constant 0 : index
    %650 = vector.load %arg14[%c6_317, %c0_318, %c0_319] : memref<8x1x8xf32, #tpu.memory_space<vmem>>, vector<1x1x8xf32>
    %651 = vector.shape_cast %650 : vector<1x1x8xf32> to vector<1x8xf32>
    %652 = arith.truncf %551 : vector<30x32xf32> to vector<30x32xbf16>
    %cst_320 = arith.constant dense<0.000000e+00> : vector<30x8xf32>
    %653 = tpu.matmul %652, %649, %cst_320 {dimension_numbers = #tpu.dot_dimension_numbers<[1], [0], [0], [1], [0, 0, 1, 1], [], []>} : vector<30x32xbf16>, vector<32x8xbf16>, vector<30x8xf32> -> vector<30x8xf32>
    %654 = vector.broadcast %651 : vector<1x8xf32> to vector<30x8xf32>
    %655 = arith.addf %653, %654 : vector<30x8xf32>
    %c6_321 = arith.constant 6 : index
    %c0_322 = arith.constant 0 : index
    %c0_323 = arith.constant 0 : index
    %656 = vector.load %arg12[%c6_321, %c0_322, %c0_323] : memref<8x32x8xbf16, #tpu.memory_space<vmem>>, vector<1x32x8xbf16>
    %657 = vector.shape_cast %656 : vector<1x32x8xbf16> to vector<32x8xbf16>
    %c6_324 = arith.constant 6 : index
    %c0_325 = arith.constant 0 : index
    %c0_326 = arith.constant 0 : index
    %658 = vector.load %arg15[%c6_324, %c0_325, %c0_326] : memref<8x1x8xf32, #tpu.memory_space<vmem>>, vector<1x1x8xf32>
    %659 = vector.shape_cast %658 : vector<1x1x8xf32> to vector<1x8xf32>
    %660 = arith.truncf %551 : vector<30x32xf32> to vector<30x32xbf16>
    %cst_327 = arith.constant dense<0.000000e+00> : vector<30x8xf32>
    %661 = tpu.matmul %660, %657, %cst_327 {dimension_numbers = #tpu.dot_dimension_numbers<[1], [0], [0], [1], [0, 0, 1, 1], [], []>} : vector<30x32xbf16>, vector<32x8xbf16>, vector<30x8xf32> -> vector<30x8xf32>
    %662 = vector.broadcast %659 : vector<1x8xf32> to vector<30x8xf32>
    %663 = arith.addf %661, %662 : vector<30x8xf32>
    %664 = arith.truncf %647 : vector<30x8xf32> to vector<30x8xbf16>
    %665 = arith.truncf %655 : vector<30x8xf32> to vector<30x8xbf16>
    %cst_328 = arith.constant dense<0.000000e+00> : vector<30x30xf32>
    %666 = tpu.matmul %664, %665, %cst_328 {dimension_numbers = #tpu.dot_dimension_numbers<[1], [1], [0], [0], [0, 0, 1, 0], [], []>} : vector<30x8xbf16>, vector<30x8xbf16>, vector<30x30xf32> -> vector<30x30xf32>
    %cst_329 = arith.constant 0.353553385 : f32
    %667 = vector.broadcast %cst_329 : f32 to vector<30x30xf32>
    %668 = arith.mulf %666, %667 : vector<30x30xf32>
    %cst_330 = arith.constant -1.000000e+30 : f32
    %669 = vector.broadcast %cst_330 : f32 to vector<30x30xf32>
    %670 = arith.select %24, %668, %669 : vector<30x30xi1>, vector<30x30xf32>
    %cst_331 = arith.constant dense<0xFF800000> : vector<30xf32>
    %671 = vector.multi_reduction <maximumf>, %670, %cst_331 [1] : vector<30x30xf32> to vector<30xf32>
    %672 = vector.shape_cast %671 : vector<30xf32> to vector<30x1xf32>
    %673 = vector.broadcast %672 : vector<30x1xf32> to vector<30x30xf32>
    %674 = arith.subf %670, %673 : vector<30x30xf32>
    %675 = math.exp %674 : vector<30x30xf32>
    %cst_332 = arith.constant dense<0.000000e+00> : vector<30xf32>
    %676 = vector.multi_reduction <add>, %675, %cst_332 [1] : vector<30x30xf32> to vector<30xf32>
    %677 = vector.shape_cast %676 : vector<30xf32> to vector<30x1xf32>
    %678 = tpu.reciprocal %677 {approx = true} : vector<30x1xf32> -> vector<30x1xf32>
    %679 = vector.broadcast %678 : vector<30x1xf32> to vector<30x30xf32>
    %680 = arith.mulf %675, %679 : vector<30x30xf32>
    %681 = arith.truncf %680 : vector<30x30xf32> to vector<30x30xbf16>
    %682 = arith.truncf %663 : vector<30x8xf32> to vector<30x8xbf16>
    %cst_333 = arith.constant dense<0.000000e+00> : vector<30x8xf32>
    %683 = tpu.matmul %681, %682, %cst_333 {dimension_numbers = #tpu.dot_dimension_numbers<[1], [0], [0], [1], [0, 0, 1, 1], [], []>} : vector<30x30xbf16>, vector<30x8xbf16>, vector<30x8xf32> -> vector<30x8xf32>
    %c7 = arith.constant 7 : index
    %c0_334 = arith.constant 0 : index
    %c0_335 = arith.constant 0 : index
    %684 = vector.load %arg10[%c7, %c0_334, %c0_335] : memref<8x32x8xbf16, #tpu.memory_space<vmem>>, vector<1x32x8xbf16>
    %685 = vector.shape_cast %684 : vector<1x32x8xbf16> to vector<32x8xbf16>
    %c7_336 = arith.constant 7 : index
    %c0_337 = arith.constant 0 : index
    %c0_338 = arith.constant 0 : index
    %686 = vector.load %arg13[%c7_336, %c0_337, %c0_338] : memref<8x1x8xf32, #tpu.memory_space<vmem>>, vector<1x1x8xf32>
    %687 = vector.shape_cast %686 : vector<1x1x8xf32> to vector<1x8xf32>
    %688 = arith.truncf %551 : vector<30x32xf32> to vector<30x32xbf16>
    %cst_339 = arith.constant dense<0.000000e+00> : vector<30x8xf32>
    %689 = tpu.matmul %688, %685, %cst_339 {dimension_numbers = #tpu.dot_dimension_numbers<[1], [0], [0], [1], [0, 0, 1, 1], [], []>} : vector<30x32xbf16>, vector<32x8xbf16>, vector<30x8xf32> -> vector<30x8xf32>
    %690 = vector.broadcast %687 : vector<1x8xf32> to vector<30x8xf32>
    %691 = arith.addf %689, %690 : vector<30x8xf32>
    %c7_340 = arith.constant 7 : index
    %c0_341 = arith.constant 0 : index
    %c0_342 = arith.constant 0 : index
    %692 = vector.load %arg11[%c7_340, %c0_341, %c0_342] : memref<8x32x8xbf16, #tpu.memory_space<vmem>>, vector<1x32x8xbf16>
    %693 = vector.shape_cast %692 : vector<1x32x8xbf16> to vector<32x8xbf16>
    %c7_343 = arith.constant 7 : index
    %c0_344 = arith.constant 0 : index
    %c0_345 = arith.constant 0 : index
    %694 = vector.load %arg14[%c7_343, %c0_344, %c0_345] : memref<8x1x8xf32, #tpu.memory_space<vmem>>, vector<1x1x8xf32>
    %695 = vector.shape_cast %694 : vector<1x1x8xf32> to vector<1x8xf32>
    %696 = arith.truncf %551 : vector<30x32xf32> to vector<30x32xbf16>
    %cst_346 = arith.constant dense<0.000000e+00> : vector<30x8xf32>
    %697 = tpu.matmul %696, %693, %cst_346 {dimension_numbers = #tpu.dot_dimension_numbers<[1], [0], [0], [1], [0, 0, 1, 1], [], []>} : vector<30x32xbf16>, vector<32x8xbf16>, vector<30x8xf32> -> vector<30x8xf32>
    %698 = vector.broadcast %695 : vector<1x8xf32> to vector<30x8xf32>
    %699 = arith.addf %697, %698 : vector<30x8xf32>
    %c7_347 = arith.constant 7 : index
    %c0_348 = arith.constant 0 : index
    %c0_349 = arith.constant 0 : index
    %700 = vector.load %arg12[%c7_347, %c0_348, %c0_349] : memref<8x32x8xbf16, #tpu.memory_space<vmem>>, vector<1x32x8xbf16>
    %701 = vector.shape_cast %700 : vector<1x32x8xbf16> to vector<32x8xbf16>
    %c7_350 = arith.constant 7 : index
    %c0_351 = arith.constant 0 : index
    %c0_352 = arith.constant 0 : index
    %702 = vector.load %arg15[%c7_350, %c0_351, %c0_352] : memref<8x1x8xf32, #tpu.memory_space<vmem>>, vector<1x1x8xf32>
    %703 = vector.shape_cast %702 : vector<1x1x8xf32> to vector<1x8xf32>
    %704 = arith.truncf %551 : vector<30x32xf32> to vector<30x32xbf16>
    %cst_353 = arith.constant dense<0.000000e+00> : vector<30x8xf32>
    %705 = tpu.matmul %704, %701, %cst_353 {dimension_numbers = #tpu.dot_dimension_numbers<[1], [0], [0], [1], [0, 0, 1, 1], [], []>} : vector<30x32xbf16>, vector<32x8xbf16>, vector<30x8xf32> -> vector<30x8xf32>
    %706 = vector.broadcast %703 : vector<1x8xf32> to vector<30x8xf32>
    %707 = arith.addf %705, %706 : vector<30x8xf32>
    %708 = arith.truncf %691 : vector<30x8xf32> to vector<30x8xbf16>
    %709 = arith.truncf %699 : vector<30x8xf32> to vector<30x8xbf16>
    %cst_354 = arith.constant dense<0.000000e+00> : vector<30x30xf32>
    %710 = tpu.matmul %708, %709, %cst_354 {dimension_numbers = #tpu.dot_dimension_numbers<[1], [1], [0], [0], [0, 0, 1, 0], [], []>} : vector<30x8xbf16>, vector<30x8xbf16>, vector<30x30xf32> -> vector<30x30xf32>
    %cst_355 = arith.constant 0.353553385 : f32
    %711 = vector.broadcast %cst_355 : f32 to vector<30x30xf32>
    %712 = arith.mulf %710, %711 : vector<30x30xf32>
    %cst_356 = arith.constant -1.000000e+30 : f32
    %713 = vector.broadcast %cst_356 : f32 to vector<30x30xf32>
    %714 = arith.select %24, %712, %713 : vector<30x30xi1>, vector<30x30xf32>
    %cst_357 = arith.constant dense<0xFF800000> : vector<30xf32>
    %715 = vector.multi_reduction <maximumf>, %714, %cst_357 [1] : vector<30x30xf32> to vector<30xf32>
    %716 = vector.shape_cast %715 : vector<30xf32> to vector<30x1xf32>
    %717 = vector.broadcast %716 : vector<30x1xf32> to vector<30x30xf32>
    %718 = arith.subf %714, %717 : vector<30x30xf32>
    %719 = math.exp %718 : vector<30x30xf32>
    %cst_358 = arith.constant dense<0.000000e+00> : vector<30xf32>
    %720 = vector.multi_reduction <add>, %719, %cst_358 [1] : vector<30x30xf32> to vector<30xf32>
    %721 = vector.shape_cast %720 : vector<30xf32> to vector<30x1xf32>
    %722 = tpu.reciprocal %721 {approx = true} : vector<30x1xf32> -> vector<30x1xf32>
    %723 = vector.broadcast %722 : vector<30x1xf32> to vector<30x30xf32>
    %724 = arith.mulf %719, %723 : vector<30x30xf32>
    %725 = arith.truncf %724 : vector<30x30xf32> to vector<30x30xbf16>
    %726 = arith.truncf %707 : vector<30x8xf32> to vector<30x8xbf16>
    %cst_359 = arith.constant dense<0.000000e+00> : vector<30x8xf32>
    %727 = tpu.matmul %725, %726, %cst_359 {dimension_numbers = #tpu.dot_dimension_numbers<[1], [0], [0], [1], [0, 0, 1, 1], [], []>} : vector<30x30xbf16>, vector<30x8xbf16>, vector<30x8xf32> -> vector<30x8xf32>
    %728 = tpu.concatenate %595, %639, %683, %727 in 1 : vector<30x8xf32>, vector<30x8xf32>, vector<30x8xf32>, vector<30x8xf32> -> vector<30x32xf32>
    %c1_360 = arith.constant 1 : index
    %c0_361 = arith.constant 0 : index
    %c0_362 = arith.constant 0 : index
    %729 = vector.load %arg16[%c1_360, %c0_361, %c0_362] : memref<2x32x32xbf16, #tpu.memory_space<vmem>>, vector<1x32x32xbf16>
    %730 = vector.shape_cast %729 : vector<1x32x32xbf16> to vector<32x32xbf16>
    %c1_363 = arith.constant 1 : index
    %c0_364 = arith.constant 0 : index
    %c0_365 = arith.constant 0 : index
    %731 = vector.load %arg17[%c1_363, %c0_364, %c0_365] : memref<2x1x32xf32, #tpu.memory_space<vmem>>, vector<1x1x32xf32>
    %732 = vector.shape_cast %731 : vector<1x1x32xf32> to vector<1x32xf32>
    %733 = arith.truncf %728 : vector<30x32xf32> to vector<30x32xbf16>
    %cst_366 = arith.constant dense<0.000000e+00> : vector<30x32xf32>
    %734 = tpu.matmul %733, %730, %cst_366 {dimension_numbers = #tpu.dot_dimension_numbers<[1], [0], [0], [1], [0, 0, 1, 1], [], []>} : vector<30x32xbf16>, vector<32x32xbf16>, vector<30x32xf32> -> vector<30x32xf32>
    %735 = vector.broadcast %732 : vector<1x32xf32> to vector<30x32xf32>
    %736 = arith.addf %734, %735 : vector<30x32xf32>
    %737 = arith.addf %529, %736 : vector<30x32xf32>
    %738 = vector.extract_strided_slice %480 {offsets = [2, 0], sizes = [1, 32], strides = [1, 1]} : vector<5x32xf32> to vector<1x32xf32>
    %739 = vector.extract_strided_slice %482 {offsets = [2, 0], sizes = [1, 32], strides = [1, 1]} : vector<5x32xf32> to vector<1x32xf32>
    %cst_367 = arith.constant dense<0.000000e+00> : vector<30xf32>
    %740 = vector.multi_reduction <add>, %737, %cst_367 [1] : vector<30x32xf32> to vector<30xf32>
    %741 = vector.shape_cast %740 : vector<30xf32> to vector<30x1xf32>
    %cst_368 = arith.constant 3.200000e+01 : f32
    %742 = vector.broadcast %cst_368 : f32 to vector<30x1xf32>
    %743 = arith.divf %741, %742 : vector<30x1xf32>
    %744 = vector.broadcast %743 : vector<30x1xf32> to vector<30x32xf32>
    %745 = arith.subf %737, %744 : vector<30x32xf32>
    %746 = arith.mulf %745, %745 : vector<30x32xf32>
    %cst_369 = arith.constant dense<0.000000e+00> : vector<30xf32>
    %747 = vector.multi_reduction <add>, %746, %cst_369 [1] : vector<30x32xf32> to vector<30xf32>
    %748 = vector.shape_cast %747 : vector<30xf32> to vector<30x1xf32>
    %cst_370 = arith.constant 3.200000e+01 : f32
    %749 = vector.broadcast %cst_370 : f32 to vector<30x1xf32>
    %750 = arith.divf %748, %749 : vector<30x1xf32>
    %cst_371 = arith.constant 9.99999974E-6 : f32
    %751 = vector.broadcast %cst_371 : f32 to vector<30x1xf32>
    %752 = arith.addf %750, %751 : vector<30x1xf32>
    %753 = math.rsqrt %752 : vector<30x1xf32>
    %754 = vector.broadcast %753 : vector<30x1xf32> to vector<30x32xf32>
    %755 = arith.mulf %745, %754 : vector<30x32xf32>
    %756 = vector.broadcast %738 : vector<1x32xf32> to vector<30x32xf32>
    %757 = arith.mulf %755, %756 : vector<30x32xf32>
    %758 = vector.broadcast %739 : vector<1x32xf32> to vector<30x32xf32>
    %759 = arith.addf %757, %758 : vector<30x32xf32>
    %c1_372 = arith.constant 1 : index
    %c0_373 = arith.constant 0 : index
    %c0_374 = arith.constant 0 : index
    %760 = vector.load %arg18[%c1_372, %c0_373, %c0_374] : memref<2x32x32xbf16, #tpu.memory_space<vmem>>, vector<1x32x32xbf16>
    %761 = vector.shape_cast %760 : vector<1x32x32xbf16> to vector<32x32xbf16>
    %c1_375 = arith.constant 1 : index
    %c0_376 = arith.constant 0 : index
    %c0_377 = arith.constant 0 : index
    %762 = vector.load %arg19[%c1_375, %c0_376, %c0_377] : memref<2x1x32xf32, #tpu.memory_space<vmem>>, vector<1x1x32xf32>
    %763 = vector.shape_cast %762 : vector<1x1x32xf32> to vector<1x32xf32>
    %764 = arith.truncf %759 : vector<30x32xf32> to vector<30x32xbf16>
    %cst_378 = arith.constant dense<0.000000e+00> : vector<30x32xf32>
    %765 = tpu.matmul %764, %761, %cst_378 {dimension_numbers = #tpu.dot_dimension_numbers<[1], [0], [0], [1], [0, 0, 1, 1], [], []>} : vector<30x32xbf16>, vector<32x32xbf16>, vector<30x32xf32> -> vector<30x32xf32>
    %766 = vector.broadcast %763 : vector<1x32xf32> to vector<30x32xf32>
    %767 = arith.addf %765, %766 : vector<30x32xf32>
    %c1_379 = arith.constant 1 : index
    %c0_380 = arith.constant 0 : index
    %c0_381 = arith.constant 0 : index
    %768 = vector.load %arg20[%c1_379, %c0_380, %c0_381] : memref<2x32x32xbf16, #tpu.memory_space<vmem>>, vector<1x32x32xbf16>
    %769 = vector.shape_cast %768 : vector<1x32x32xbf16> to vector<32x32xbf16>
    %c1_382 = arith.constant 1 : index
    %c0_383 = arith.constant 0 : index
    %c0_384 = arith.constant 0 : index
    %770 = vector.load %arg21[%c1_382, %c0_383, %c0_384] : memref<2x1x32xf32, #tpu.memory_space<vmem>>, vector<1x1x32xf32>
    %771 = vector.shape_cast %770 : vector<1x1x32xf32> to vector<1x32xf32>
    %772 = arith.truncf %759 : vector<30x32xf32> to vector<30x32xbf16>
    %cst_385 = arith.constant dense<0.000000e+00> : vector<30x32xf32>
    %773 = tpu.matmul %772, %769, %cst_385 {dimension_numbers = #tpu.dot_dimension_numbers<[1], [0], [0], [1], [0, 0, 1, 1], [], []>} : vector<30x32xbf16>, vector<32x32xbf16>, vector<30x32xf32> -> vector<30x32xf32>
    %774 = vector.broadcast %771 : vector<1x32xf32> to vector<30x32xf32>
    %775 = arith.addf %773, %774 : vector<30x32xf32>
    %776 = arith.negf %775 : vector<30x32xf32>
    %777 = math.exp %776 : vector<30x32xf32>
    %cst_386 = arith.constant 1.000000e+00 : f32
    %778 = vector.broadcast %cst_386 : f32 to vector<30x32xf32>
    %779 = arith.addf %778, %777 : vector<30x32xf32>
    %780 = arith.divf %778, %779 : vector<30x32xf32>
    %781 = arith.mulf %767, %780 : vector<30x32xf32>
    %c1_387 = arith.constant 1 : index
    %c0_388 = arith.constant 0 : index
    %c0_389 = arith.constant 0 : index
    %782 = vector.load %arg22[%c1_387, %c0_388, %c0_389] : memref<2x3x32xf32, #tpu.memory_space<vmem>>, vector<1x3x32xf32>
    %783 = vector.shape_cast %782 : vector<1x3x32xf32> to vector<3x32xf32>
    %cst_390 = arith.constant 0.000000e+00 : f32
    %784 = vector.broadcast %cst_390 : f32 to vector<1x32xf32>
    %785 = vector.extract_strided_slice %781 {offsets = [0, 0], sizes = [29, 32], strides = [1, 1]} : vector<30x32xf32> to vector<29x32xf32>
    %786 = tpu.concatenate %784, %785 in 0 : vector<1x32xf32>, vector<29x32xf32> -> vector<30x32xf32>
    %cst_391 = arith.constant 0.000000e+00 : f32
    %787 = vector.shape_cast %36 : vector<30x1xi1> to vector<30x1xi1>
    %788 = vector.broadcast %787 : vector<30x1xi1> to vector<30x32xi1>
    %789 = vector.broadcast %cst_391 : f32 to vector<30x32xf32>
    %790 = arith.select %788, %786, %789 : vector<30x32xi1>, vector<30x32xf32>
    %791 = vector.extract_strided_slice %783 {offsets = [0, 0], sizes = [1, 32], strides = [1, 1]} : vector<3x32xf32> to vector<1x32xf32>
    %792 = vector.broadcast %791 : vector<1x32xf32> to vector<30x32xf32>
    %793 = arith.mulf %790, %792 : vector<30x32xf32>
    %794 = vector.extract_strided_slice %783 {offsets = [1, 0], sizes = [1, 32], strides = [1, 1]} : vector<3x32xf32> to vector<1x32xf32>
    %795 = vector.broadcast %794 : vector<1x32xf32> to vector<30x32xf32>
    %796 = arith.mulf %781, %795 : vector<30x32xf32>
    %797 = arith.addf %793, %796 : vector<30x32xf32>
    %798 = vector.extract_strided_slice %781 {offsets = [1, 0], sizes = [29, 32], strides = [1, 1]} : vector<30x32xf32> to vector<29x32xf32>
    %cst_392 = arith.constant 0.000000e+00 : f32
    %799 = vector.broadcast %cst_392 : f32 to vector<1x32xf32>
    %800 = tpu.concatenate %798, %799 in 0 : vector<29x32xf32>, vector<1x32xf32> -> vector<30x32xf32>
    %cst_393 = arith.constant 0.000000e+00 : f32
    %801 = vector.shape_cast %47 : vector<30x1xi1> to vector<30x1xi1>
    %802 = vector.broadcast %801 : vector<30x1xi1> to vector<30x32xi1>
    %803 = vector.broadcast %cst_393 : f32 to vector<30x32xf32>
    %804 = arith.select %802, %800, %803 : vector<30x32xi1>, vector<30x32xf32>
    %805 = vector.extract_strided_slice %783 {offsets = [2, 0], sizes = [1, 32], strides = [1, 1]} : vector<3x32xf32> to vector<1x32xf32>
    %806 = vector.broadcast %805 : vector<1x32xf32> to vector<30x32xf32>
    %807 = arith.mulf %804, %806 : vector<30x32xf32>
    %808 = arith.addf %797, %807 : vector<30x32xf32>
    %c1_394 = arith.constant 1 : index
    %c0_395 = arith.constant 0 : index
    %c0_396 = arith.constant 0 : index
    %809 = vector.load %arg23[%c1_394, %c0_395, %c0_396] : memref<2x1x32xf32, #tpu.memory_space<vmem>>, vector<1x1x32xf32>
    %810 = vector.shape_cast %809 : vector<1x1x32xf32> to vector<1x32xf32>
    %811 = vector.broadcast %810 : vector<1x32xf32> to vector<30x32xf32>
    %812 = arith.mulf %808, %811 : vector<30x32xf32>
    %c1_397 = arith.constant 1 : index
    %c0_398 = arith.constant 0 : index
    %c0_399 = arith.constant 0 : index
    %813 = vector.load %arg24[%c1_397, %c0_398, %c0_399] : memref<2x1x32xf32, #tpu.memory_space<vmem>>, vector<1x1x32xf32>
    %814 = vector.shape_cast %813 : vector<1x1x32xf32> to vector<1x32xf32>
    %815 = vector.broadcast %814 : vector<1x32xf32> to vector<30x32xf32>
    %816 = arith.addf %812, %815 : vector<30x32xf32>
    %817 = arith.negf %816 : vector<30x32xf32>
    %818 = math.exp %817 : vector<30x32xf32>
    %cst_400 = arith.constant 1.000000e+00 : f32
    %819 = vector.broadcast %cst_400 : f32 to vector<30x32xf32>
    %820 = arith.addf %819, %818 : vector<30x32xf32>
    %821 = arith.divf %819, %820 : vector<30x32xf32>
    %822 = arith.mulf %816, %821 : vector<30x32xf32>
    %c1_401 = arith.constant 1 : index
    %c0_402 = arith.constant 0 : index
    %c0_403 = arith.constant 0 : index
    %823 = vector.load %arg25[%c1_401, %c0_402, %c0_403] : memref<2x32x32xbf16, #tpu.memory_space<vmem>>, vector<1x32x32xbf16>
    %824 = vector.shape_cast %823 : vector<1x32x32xbf16> to vector<32x32xbf16>
    %c1_404 = arith.constant 1 : index
    %c0_405 = arith.constant 0 : index
    %c0_406 = arith.constant 0 : index
    %825 = vector.load %arg26[%c1_404, %c0_405, %c0_406] : memref<2x1x32xf32, #tpu.memory_space<vmem>>, vector<1x1x32xf32>
    %826 = vector.shape_cast %825 : vector<1x1x32xf32> to vector<1x32xf32>
    %827 = arith.truncf %822 : vector<30x32xf32> to vector<30x32xbf16>
    %cst_407 = arith.constant dense<0.000000e+00> : vector<30x32xf32>
    %828 = tpu.matmul %827, %824, %cst_407 {dimension_numbers = #tpu.dot_dimension_numbers<[1], [0], [0], [1], [0, 0, 1, 1], [], []>} : vector<30x32xbf16>, vector<32x32xbf16>, vector<30x32xf32> -> vector<30x32xf32>
    %829 = vector.broadcast %826 : vector<1x32xf32> to vector<30x32xf32>
    %830 = arith.addf %828, %829 : vector<30x32xf32>
    %831 = arith.addf %737, %830 : vector<30x32xf32>
    %832 = vector.extract_strided_slice %480 {offsets = [3, 0], sizes = [1, 32], strides = [1, 1]} : vector<5x32xf32> to vector<1x32xf32>
    %833 = vector.extract_strided_slice %482 {offsets = [3, 0], sizes = [1, 32], strides = [1, 1]} : vector<5x32xf32> to vector<1x32xf32>
    %cst_408 = arith.constant dense<0.000000e+00> : vector<30xf32>
    %834 = vector.multi_reduction <add>, %831, %cst_408 [1] : vector<30x32xf32> to vector<30xf32>
    %835 = vector.shape_cast %834 : vector<30xf32> to vector<30x1xf32>
    %cst_409 = arith.constant 3.200000e+01 : f32
    %836 = vector.broadcast %cst_409 : f32 to vector<30x1xf32>
    %837 = arith.divf %835, %836 : vector<30x1xf32>
    %838 = vector.broadcast %837 : vector<30x1xf32> to vector<30x32xf32>
    %839 = arith.subf %831, %838 : vector<30x32xf32>
    %840 = arith.mulf %839, %839 : vector<30x32xf32>
    %cst_410 = arith.constant dense<0.000000e+00> : vector<30xf32>
    %841 = vector.multi_reduction <add>, %840, %cst_410 [1] : vector<30x32xf32> to vector<30xf32>
    %842 = vector.shape_cast %841 : vector<30xf32> to vector<30x1xf32>
    %cst_411 = arith.constant 3.200000e+01 : f32
    %843 = vector.broadcast %cst_411 : f32 to vector<30x1xf32>
    %844 = arith.divf %842, %843 : vector<30x1xf32>
    %cst_412 = arith.constant 9.99999974E-6 : f32
    %845 = vector.broadcast %cst_412 : f32 to vector<30x1xf32>
    %846 = arith.addf %844, %845 : vector<30x1xf32>
    %847 = math.rsqrt %846 : vector<30x1xf32>
    %848 = vector.broadcast %847 : vector<30x1xf32> to vector<30x32xf32>
    %849 = arith.mulf %839, %848 : vector<30x32xf32>
    %850 = vector.broadcast %832 : vector<1x32xf32> to vector<30x32xf32>
    %851 = arith.mulf %849, %850 : vector<30x32xf32>
    %852 = vector.broadcast %833 : vector<1x32xf32> to vector<30x32xf32>
    %853 = arith.addf %851, %852 : vector<30x32xf32>
    %c1_413 = arith.constant 1 : index
    %c0_414 = arith.constant 0 : index
    %c0_415 = arith.constant 0 : index
    %854 = vector.load %arg27[%c1_413, %c0_414, %c0_415] : memref<2x32x128xbf16, #tpu.memory_space<vmem>>, vector<1x32x128xbf16>
    %855 = vector.shape_cast %854 : vector<1x32x128xbf16> to vector<32x128xbf16>
    %c1_416 = arith.constant 1 : index
    %c0_417 = arith.constant 0 : index
    %c0_418 = arith.constant 0 : index
    %856 = vector.load %arg28[%c1_416, %c0_417, %c0_418] : memref<2x1x128xf32, #tpu.memory_space<vmem>>, vector<1x1x128xf32>
    %857 = vector.shape_cast %856 : vector<1x1x128xf32> to vector<1x128xf32>
    %858 = arith.truncf %853 : vector<30x32xf32> to vector<30x32xbf16>
    %cst_419 = arith.constant dense<0.000000e+00> : vector<30x128xf32>
    %859 = tpu.matmul %858, %855, %cst_419 {dimension_numbers = #tpu.dot_dimension_numbers<[1], [0], [0], [1], [0, 0, 1, 1], [], []>} : vector<30x32xbf16>, vector<32x128xbf16>, vector<30x128xf32> -> vector<30x128xf32>
    %860 = vector.broadcast %857 : vector<1x128xf32> to vector<30x128xf32>
    %861 = arith.addf %859, %860 : vector<30x128xf32>
    %862 = arith.negf %861 : vector<30x128xf32>
    %863 = math.exp %862 : vector<30x128xf32>
    %cst_420 = arith.constant 1.000000e+00 : f32
    %864 = vector.broadcast %cst_420 : f32 to vector<30x128xf32>
    %865 = arith.addf %864, %863 : vector<30x128xf32>
    %866 = arith.divf %864, %865 : vector<30x128xf32>
    %867 = arith.mulf %861, %866 : vector<30x128xf32>
    %c1_421 = arith.constant 1 : index
    %c0_422 = arith.constant 0 : index
    %c0_423 = arith.constant 0 : index
    %868 = vector.load %arg29[%c1_421, %c0_422, %c0_423] : memref<2x128x32xbf16, #tpu.memory_space<vmem>>, vector<1x128x32xbf16>
    %869 = vector.shape_cast %868 : vector<1x128x32xbf16> to vector<128x32xbf16>
    %c1_424 = arith.constant 1 : index
    %c0_425 = arith.constant 0 : index
    %c0_426 = arith.constant 0 : index
    %870 = vector.load %arg30[%c1_424, %c0_425, %c0_426] : memref<2x1x32xf32, #tpu.memory_space<vmem>>, vector<1x1x32xf32>
    %871 = vector.shape_cast %870 : vector<1x1x32xf32> to vector<1x32xf32>
    %872 = arith.truncf %867 : vector<30x128xf32> to vector<30x128xbf16>
    %cst_427 = arith.constant dense<0.000000e+00> : vector<30x32xf32>
    %873 = tpu.matmul %872, %869, %cst_427 {dimension_numbers = #tpu.dot_dimension_numbers<[1], [0], [0], [1], [0, 0, 1, 1], [], []>} : vector<30x128xbf16>, vector<128x32xbf16>, vector<30x32xf32> -> vector<30x32xf32>
    %874 = vector.broadcast %871 : vector<1x32xf32> to vector<30x32xf32>
    %875 = arith.addf %873, %874 : vector<30x32xf32>
    %cst_428 = arith.constant 5.000000e-01 : f32
    %876 = vector.broadcast %cst_428 : f32 to vector<30x32xf32>
    %877 = arith.mulf %876, %875 : vector<30x32xf32>
    %878 = arith.addf %831, %877 : vector<30x32xf32>
    %879 = vector.extract_strided_slice %480 {offsets = [4, 0], sizes = [1, 32], strides = [1, 1]} : vector<5x32xf32> to vector<1x32xf32>
    %880 = vector.extract_strided_slice %482 {offsets = [4, 0], sizes = [1, 32], strides = [1, 1]} : vector<5x32xf32> to vector<1x32xf32>
    %cst_429 = arith.constant dense<0.000000e+00> : vector<30xf32>
    %881 = vector.multi_reduction <add>, %878, %cst_429 [1] : vector<30x32xf32> to vector<30xf32>
    %882 = vector.shape_cast %881 : vector<30xf32> to vector<30x1xf32>
    %cst_430 = arith.constant 3.200000e+01 : f32
    %883 = vector.broadcast %cst_430 : f32 to vector<30x1xf32>
    %884 = arith.divf %882, %883 : vector<30x1xf32>
    %885 = vector.broadcast %884 : vector<30x1xf32> to vector<30x32xf32>
    %886 = arith.subf %878, %885 : vector<30x32xf32>
    %887 = arith.mulf %886, %886 : vector<30x32xf32>
    %cst_431 = arith.constant dense<0.000000e+00> : vector<30xf32>
    %888 = vector.multi_reduction <add>, %887, %cst_431 [1] : vector<30x32xf32> to vector<30xf32>
    %889 = vector.shape_cast %888 : vector<30xf32> to vector<30x1xf32>
    %cst_432 = arith.constant 3.200000e+01 : f32
    %890 = vector.broadcast %cst_432 : f32 to vector<30x1xf32>
    %891 = arith.divf %889, %890 : vector<30x1xf32>
    %cst_433 = arith.constant 9.99999974E-6 : f32
    %892 = vector.broadcast %cst_433 : f32 to vector<30x1xf32>
    %893 = arith.addf %891, %892 : vector<30x1xf32>
    %894 = math.rsqrt %893 : vector<30x1xf32>
    %895 = vector.broadcast %894 : vector<30x1xf32> to vector<30x32xf32>
    %896 = arith.mulf %886, %895 : vector<30x32xf32>
    %897 = vector.broadcast %879 : vector<1x32xf32> to vector<30x32xf32>
    %898 = arith.mulf %896, %897 : vector<30x32xf32>
    %899 = vector.broadcast %880 : vector<1x32xf32> to vector<30x32xf32>
    %900 = arith.addf %898, %899 : vector<30x32xf32>
    %c0_434 = arith.constant 0 : index
    %c0_435 = arith.constant 0 : index
    %901 = vector.load %arg32[%c0_434, %c0_435] : memref<32x64xbf16, #tpu.memory_space<vmem>>, vector<32x64xbf16>
    %c0_436 = arith.constant 0 : index
    %c0_437 = arith.constant 0 : index
    %902 = vector.load %arg33[%c0_436, %c0_437] : memref<1x64xf32, #tpu.memory_space<vmem>>, vector<1x64xf32>
    %903 = arith.truncf %900 : vector<30x32xf32> to vector<30x32xbf16>
    %cst_438 = arith.constant dense<0.000000e+00> : vector<30x64xf32>
    %904 = tpu.matmul %903, %901, %cst_438 {dimension_numbers = #tpu.dot_dimension_numbers<[1], [0], [0], [1], [0, 0, 1, 1], [], []>} : vector<30x32xbf16>, vector<32x64xbf16>, vector<30x64xf32> -> vector<30x64xf32>
    %905 = vector.broadcast %902 : vector<1x64xf32> to vector<30x64xf32>
    %906 = arith.addf %904, %905 : vector<30x64xf32>
    %c0_439 = arith.constant 0 : index
    %c0_440 = arith.constant 0 : index
    %907 = vector.load %arg31[%c0_439, %c0_440] : memref<32x64xbf16, #tpu.memory_space<vmem>>, vector<32x64xbf16>
    %908 = arith.truncf %56 : vector<30x32xf32> to vector<30x32xbf16>
    %cst_441 = arith.constant dense<0.000000e+00> : vector<30x64xf32>
    %909 = tpu.matmul %908, %907, %cst_441 {dimension_numbers = #tpu.dot_dimension_numbers<[1], [0], [0], [1], [0, 0, 1, 1], [], []>} : vector<30x32xbf16>, vector<32x64xbf16>, vector<30x64xf32> -> vector<30x64xf32>
    %910 = arith.negf %906 : vector<30x64xf32>
    %911 = math.exp %910 : vector<30x64xf32>
    %cst_442 = arith.constant 1.000000e+00 : f32
    %912 = vector.broadcast %cst_442 : f32 to vector<30x64xf32>
    %913 = arith.addf %912, %911 : vector<30x64xf32>
    %914 = arith.divf %912, %913 : vector<30x64xf32>
    %915 = arith.mulf %909, %914 : vector<30x64xf32>
    %c0_443 = arith.constant 0 : index
    %c0_444 = arith.constant 0 : index
    %916 = vector.load %arg34[%c0_443, %c0_444] : memref<64x32xbf16, #tpu.memory_space<vmem>>, vector<64x32xbf16>
    %917 = arith.truncf %915 : vector<30x64xf32> to vector<30x64xbf16>
    %cst_445 = arith.constant dense<0.000000e+00> : vector<30x32xf32>
    %918 = tpu.matmul %917, %916, %cst_445 {dimension_numbers = #tpu.dot_dimension_numbers<[1], [0], [0], [1], [0, 0, 1, 1], [], []>} : vector<30x64xbf16>, vector<64x32xbf16>, vector<30x32xf32> -> vector<30x32xf32>
    %c0_446 = arith.constant 0 : index
    %c0_447 = arith.constant 0 : index
    %919 = vector.load %arg35[%c0_446, %c0_447] : memref<30x32xf32, #tpu.memory_space<vmem>>, vector<30x32xf32>
    tpu.vector_store %arg35[%c0_446, %c0_447], %918 {strides = array<i32>} : memref<30x32xf32, #tpu.memory_space<vmem>>, vector<30x32xf32>,
    return
  }
  func.func @transform_0(%arg0: i32) -> (i32, i32) {
    %c0_i32 = arith.constant 0 : i32
    %c0_i32_0 = arith.constant 0 : i32
    %c0_i32_1 = arith.constant 0 : i32
    return %c0_i32, %c0_i32_0 : i32, i32
  }
  func.func @transform_1(%arg0: i32) -> (i32, i32) {
    %c0_i32 = arith.constant 0 : i32
    %c0_i32_0 = arith.constant 0 : i32
    %c0_i32_1 = arith.constant 0 : i32
    return %c0_i32, %c0_i32_0 : i32, i32
  }
  func.func @transform_2(%arg0: i32) -> (i32, i32) {
    %c0_i32 = arith.constant 0 : i32
    %c0_i32_0 = arith.constant 0 : i32
    %c0_i32_1 = arith.constant 0 : i32
    return %c0_i32, %c0_i32_0 : i32, i32
  }
  func.func @transform_3(%arg0: i32) -> (i32, i32, i32) {
    %c0_i32 = arith.constant 0 : i32
    %c0_i32_0 = arith.constant 0 : i32
    %c0_i32_1 = arith.constant 0 : i32
    %c0_i32_2 = arith.constant 0 : i32
    return %c0_i32, %c0_i32_0, %c0_i32_1 : i32, i32, i32
  }
  func.func @transform_4(%arg0: i32) -> (i32, i32, i32) {
    %c0_i32 = arith.constant 0 : i32
    %c0_i32_0 = arith.constant 0 : i32
    %c0_i32_1 = arith.constant 0 : i32
    %c0_i32_2 = arith.constant 0 : i32
    return %c0_i32, %c0_i32_0, %c0_i32_1 : i32, i32, i32
  }
  func.func @transform_5(%arg0: i32) -> (i32, i32, i32) {
    %c0_i32 = arith.constant 0 : i32
    %c0_i32_0 = arith.constant 0 : i32
    %c0_i32_1 = arith.constant 0 : i32
    %c0_i32_2 = arith.constant 0 : i32
    return %c0_i32, %c0_i32_0, %c0_i32_1 : i32, i32, i32
  }
  func.func @transform_6(%arg0: i32) -> (i32, i32, i32) {
    %c0_i32 = arith.constant 0 : i32
    %c0_i32_0 = arith.constant 0 : i32
    %c0_i32_1 = arith.constant 0 : i32
    %c0_i32_2 = arith.constant 0 : i32
    return %c0_i32, %c0_i32_0, %c0_i32_1 : i32, i32, i32
  }
  func.func @transform_7(%arg0: i32) -> (i32, i32, i32) {
    %c0_i32 = arith.constant 0 : i32
    %c0_i32_0 = arith.constant 0 : i32
    %c0_i32_1 = arith.constant 0 : i32
    %c0_i32_2 = arith.constant 0 : i32
    return %c0_i32, %c0_i32_0, %c0_i32_1 : i32, i32, i32
  }
  func.func @transform_8(%arg0: i32) -> (i32, i32, i32) {
    %c0_i32 = arith.constant 0 : i32
    %c0_i32_0 = arith.constant 0 : i32
    %c0_i32_1 = arith.constant 0 : i32
    %c0_i32_2 = arith.constant 0 : i32
    return %c0_i32, %c0_i32_0, %c0_i32_1 : i32, i32, i32
  }
  func.func @transform_9(%arg0: i32) -> (i32, i32, i32) {
    %c0_i32 = arith.constant 0 : i32
    %c0_i32_0 = arith.constant 0 : i32
    %c0_i32_1 = arith.constant 0 : i32
    %c0_i32_2 = arith.constant 0 : i32
    return %c0_i32, %c0_i32_0, %c0_i32_1 : i32, i32, i32
  }
  func.func @transform_10(%arg0: i32) -> (i32, i32, i32) {
    %c0_i32 = arith.constant 0 : i32
    %c0_i32_0 = arith.constant 0 : i32
    %c0_i32_1 = arith.constant 0 : i32
    %c0_i32_2 = arith.constant 0 : i32
    return %c0_i32, %c0_i32_0, %c0_i32_1 : i32, i32, i32
  }
  func.func @transform_11(%arg0: i32) -> (i32, i32, i32) {
    %c0_i32 = arith.constant 0 : i32
    %c0_i32_0 = arith.constant 0 : i32
    %c0_i32_1 = arith.constant 0 : i32
    %c0_i32_2 = arith.constant 0 : i32
    return %c0_i32, %c0_i32_0, %c0_i32_1 : i32, i32, i32
  }
  func.func @transform_12(%arg0: i32) -> (i32, i32, i32) {
    %c0_i32 = arith.constant 0 : i32
    %c0_i32_0 = arith.constant 0 : i32
    %c0_i32_1 = arith.constant 0 : i32
    %c0_i32_2 = arith.constant 0 : i32
    return %c0_i32, %c0_i32_0, %c0_i32_1 : i32, i32, i32
  }
  func.func @transform_13(%arg0: i32) -> (i32, i32, i32) {
    %c0_i32 = arith.constant 0 : i32
    %c0_i32_0 = arith.constant 0 : i32
    %c0_i32_1 = arith.constant 0 : i32
    %c0_i32_2 = arith.constant 0 : i32
    return %c0_i32, %c0_i32_0, %c0_i32_1 : i32, i32, i32
  }
  func.func @transform_14(%arg0: i32) -> (i32, i32, i32) {
    %c0_i32 = arith.constant 0 : i32
    %c0_i32_0 = arith.constant 0 : i32
    %c0_i32_1 = arith.constant 0 : i32
    %c0_i32_2 = arith.constant 0 : i32
    return %c0_i32, %c0_i32_0, %c0_i32_1 : i32, i32, i32
  }
  func.func @transform_15(%arg0: i32) -> (i32, i32, i32) {
    %c0_i32 = arith.constant 0 : i32
    %c0_i32_0 = arith.constant 0 : i32
    %c0_i32_1 = arith.constant 0 : i32
    %c0_i32_2 = arith.constant 0 : i32
    return %c0_i32, %c0_i32_0, %c0_i32_1 : i32, i32, i32
  }
  func.func @transform_16(%arg0: i32) -> (i32, i32, i32) {
    %c0_i32 = arith.constant 0 : i32
    %c0_i32_0 = arith.constant 0 : i32
    %c0_i32_1 = arith.constant 0 : i32
    %c0_i32_2 = arith.constant 0 : i32
    return %c0_i32, %c0_i32_0, %c0_i32_1 : i32, i32, i32
  }
  func.func @transform_17(%arg0: i32) -> (i32, i32, i32) {
    %c0_i32 = arith.constant 0 : i32
    %c0_i32_0 = arith.constant 0 : i32
    %c0_i32_1 = arith.constant 0 : i32
    %c0_i32_2 = arith.constant 0 : i32
    return %c0_i32, %c0_i32_0, %c0_i32_1 : i32, i32, i32
  }
  func.func @transform_18(%arg0: i32) -> (i32, i32, i32) {
    %c0_i32 = arith.constant 0 : i32
    %c0_i32_0 = arith.constant 0 : i32
    %c0_i32_1 = arith.constant 0 : i32
    %c0_i32_2 = arith.constant 0 : i32
    return %c0_i32, %c0_i32_0, %c0_i32_1 : i32, i32, i32
  }
  func.func @transform_19(%arg0: i32) -> (i32, i32, i32) {
    %c0_i32 = arith.constant 0 : i32
    %c0_i32_0 = arith.constant 0 : i32
    %c0_i32_1 = arith.constant 0 : i32
    %c0_i32_2 = arith.constant 0 : i32
    return %c0_i32, %c0_i32_0, %c0_i32_1 : i32, i32, i32
  }
  func.func @transform_20(%arg0: i32) -> (i32, i32, i32) {
    %c0_i32 = arith.constant 0 : i32
    %c0_i32_0 = arith.constant 0 : i32
    %c0_i32_1 = arith.constant 0 : i32
    %c0_i32_2 = arith.constant 0 : i32
    return %c0_i32, %c0_i32_0, %c0_i32_1 : i32, i32, i32
  }
  func.func @transform_21(%arg0: i32) -> (i32, i32, i32) {
    %c0_i32 = arith.constant 0 : i32
    %c0_i32_0 = arith.constant 0 : i32
    %c0_i32_1 = arith.constant 0 : i32
    %c0_i32_2 = arith.constant 0 : i32
    return %c0_i32, %c0_i32_0, %c0_i32_1 : i32, i32, i32
  }
  func.func @transform_22(%arg0: i32) -> (i32, i32, i32) {
    %c0_i32 = arith.constant 0 : i32
    %c0_i32_0 = arith.constant 0 : i32
    %c0_i32_1 = arith.constant 0 : i32
    %c0_i32_2 = arith.constant 0 : i32
    return %c0_i32, %c0_i32_0, %c0_i32_1 : i32, i32, i32
  }
  func.func @transform_23(%arg0: i32) -> (i32, i32, i32) {
    %c0_i32 = arith.constant 0 : i32
    %c0_i32_0 = arith.constant 0 : i32
    %c0_i32_1 = arith.constant 0 : i32
    %c0_i32_2 = arith.constant 0 : i32
    return %c0_i32, %c0_i32_0, %c0_i32_1 : i32, i32, i32
  }
  func.func @transform_24(%arg0: i32) -> (i32, i32, i32) {
    %c0_i32 = arith.constant 0 : i32
    %c0_i32_0 = arith.constant 0 : i32
    %c0_i32_1 = arith.constant 0 : i32
    %c0_i32_2 = arith.constant 0 : i32
    return %c0_i32, %c0_i32_0, %c0_i32_1 : i32, i32, i32
  }
  func.func @transform_25(%arg0: i32) -> (i32, i32, i32) {
    %c0_i32 = arith.constant 0 : i32
    %c0_i32_0 = arith.constant 0 : i32
    %c0_i32_1 = arith.constant 0 : i32
    %c0_i32_2 = arith.constant 0 : i32
    return %c0_i32, %c0_i32_0, %c0_i32_1 : i32, i32, i32
  }
  func.func @transform_26(%arg0: i32) -> (i32, i32, i32) {
    %c0_i32 = arith.constant 0 : i32
    %c0_i32_0 = arith.constant 0 : i32
    %c0_i32_1 = arith.constant 0 : i32
    %c0_i32_2 = arith.constant 0 : i32
    return %c0_i32, %c0_i32_0, %c0_i32_1 : i32, i32, i32
  }
  func.func @transform_27(%arg0: i32) -> (i32, i32, i32) {
    %c0_i32 = arith.constant 0 : i32
    %c0_i32_0 = arith.constant 0 : i32
    %c0_i32_1 = arith.constant 0 : i32
    %c0_i32_2 = arith.constant 0 : i32
    return %c0_i32, %c0_i32_0, %c0_i32_1 : i32, i32, i32
  }
  func.func @transform_28(%arg0: i32) -> (i32, i32, i32) {
    %c0_i32 = arith.constant 0 : i32
    %c0_i32_0 = arith.constant 0 : i32
    %c0_i32_1 = arith.constant 0 : i32
    %c0_i32_2 = arith.constant 0 : i32
    return %c0_i32, %c0_i32_0, %c0_i32_1 : i32, i32, i32
  }
  func.func @transform_29(%arg0: i32) -> (i32, i32, i32) {
    %c0_i32 = arith.constant 0 : i32
    %c0_i32_0 = arith.constant 0 : i32
    %c0_i32_1 = arith.constant 0 : i32
    %c0_i32_2 = arith.constant 0 : i32
    return %c0_i32, %c0_i32_0, %c0_i32_1 : i32, i32, i32
  }
  func.func @transform_30(%arg0: i32) -> (i32, i32) {
    %c0_i32 = arith.constant 0 : i32
    %c0_i32_0 = arith.constant 0 : i32
    %c0_i32_1 = arith.constant 0 : i32
    return %c0_i32, %c0_i32_0 : i32, i32
  }
  func.func @transform_31(%arg0: i32) -> (i32, i32) {
    %c0_i32 = arith.constant 0 : i32
    %c0_i32_0 = arith.constant 0 : i32
    %c0_i32_1 = arith.constant 0 : i32
    return %c0_i32, %c0_i32_0 : i32, i32
  }
  func.func @transform_32(%arg0: i32) -> (i32, i32) {
    %c0_i32 = arith.constant 0 : i32
    %c0_i32_0 = arith.constant 0 : i32
    %c0_i32_1 = arith.constant 0 : i32
    return %c0_i32, %c0_i32_0 : i32, i32
  }
  func.func @transform_33(%arg0: i32) -> (i32, i32) {
    %c0_i32 = arith.constant 0 : i32
    %c0_i32_0 = arith.constant 0 : i32
    %c0_i32_1 = arith.constant 0 : i32
    return %c0_i32, %c0_i32_0 : i32, i32
  }
  func.func @transform_34(%arg0: i32) -> (i32, i32) {
    %c0_i32 = arith.constant 0 : i32
    %c0_i32_0 = arith.constant 0 : i32
    %c0_i32_1 = arith.constant 0 : i32
    return %c0_i32, %c0_i32_0 : i32, i32
  }
}

</mosaic_0001>

<bundles_post_ra>
// kernel: conformer_bss_forward.1
= control target key start
LH: loop header
LB: loop body
LE: loop exit
PB: predicated region body
PF: predicated region fallthrough
CT: control target
= control target key end

     0   :  { %s8452_s3 = smov 1   ;;  %vm9700_vm0 = vcmask 130048   ;;  %s8453_s10 = smov 2   ;;  %vm323_vm1 = vcmask 261120   ;;  %vm333_vm2 = vcmask 259072   ;;  %v143_v55 = vlaneseq  ;;  %s9698_s0 = inlined_call_operand.smem [shape: u32[35], index: -1, kind: input, shape index: {}] }
   0x1   :  { %s6555_s6 = sld [smem:[%s9698_s0 + %s8452_s3]]   ;;  %s8454_s14 = smov 5   ;;  %vm928_vm3 = vcmask 64512   ;;  %vm1054_vm4 = vcmask 1046528   ;;  %vm9702_vm13 = vcmask 244736  }
   0x2   :  { %s1_s9 = sld [smem:[%s9698_s0]]   ;;  %s8455_s18 = smov 3   ;;  %v8539_v59 = vshrl.u32 %v143_v55, 7 }
   0x3   :  { %s6556_s13 = sld [smem:[%s9698_s0 + %s8453_s10]]   ;;  %s8456_s22 = smov 4  }
   0x4   :  { %s8529_s17 = sld [smem:[%s9698_s0 + %s8454_s14]]   ;;  %v8547_v60 = vsub.s32 0, %v8539_v59  ;;  %s8457_s26 = smov 7  }
   0x5   :  { %s8536_s21 = sld [smem:[%s9698_s0 + %s8455_s18]]   ;;  %s8458_s30 = smov 6  }
   0x6   :  { %s8544_s25 = sld [smem:[%s9698_s0 + %s8456_s22]]   ;;  %s9708_s4 = smov 8  }
   0x7   :  { %v7983_v0 = vld [vmem:[%s6555_s6] sm:$0xff]   ;;  %s8564_s29 = sld [smem:[%s9698_s0 + %s8457_s26]]   ;;  %s8460_s8 = smov 9  }
   0x8   :  { %v240_v1 = vld [vmem:[%s1_s9] sm:$0xff]  ;;  %v241_v2 = vld [vmem:[%s1_s9 + $0x8] sm:$0xff]  ;;  %v242_v3 = vld [vmem:[%s1_s9 + $0x10] sm:$0xff]  ;;  %7335 = vmatprep.subr.bf16.mxu0 %v7983_v0  ;;  %s8577_s3 = sld [smem:[%s9698_s0 + %s8458_s30]]   ;;  %s8461_s12 = smov 10  }
   0x9   :  { %v247_v4 = vpack.c.bf16 %v241_v2, %v240_v1  ;;  %v243_v5 = vld [vmem:[%s1_s9 + $0x18] sm:$0x3f]  ;;  %7336 = vmatpush3.bf16.msra.mxu0 %v7983_v0  ;;  %v6589_v7 = vld [vmem:[%s6556_s13] ss:$0 sm:$0xff]  ;;  %s8584_s7 = sld [smem:[%s9698_s0 + %s9708_s4]]   ;;  %s8462_s16 = smov 11  }
   0xa   :  { %v248_v6 = vpack.c.bf16 %v243_v5, %v242_v3  ;;  %v7984_v44 = vld [vmem:[%s8529_s17 + $0x8] sm:$0xff]   ;;  %v7985_v45 = vld [vmem:[%s8529_s17] sm:$0xff]   ;;  %s8618_s11 = sld [smem:[%s9698_s0 + %s8460_s8]]   ;;  %s8463_s22 = smov 12  }
   0xb   :  { %7337 = vmatprep.mubr.msk.bf16.mxu0 %vm9700_vm0, %v247_v4  ;;  %7341 = vmatprep.subr.bf16.mxu1 %v7984_v44  ;;  %v8550_v61 = vld [vmem:[%s8536_s21] sm:$0x1f]  ;;  %s8624_s15 = sld [smem:[%s9698_s0 + %s8461_s12]]   ;;  %s8464_s27 = smov 13  }
   0xc   :  { %7338 = vmatmul.mubr.msk.bf16.vlgmr.msra.gmra.mxu0 %vm9700_vm0, %v248_v6  ;;  %7342 = vmatpush3.bf16.msra.mxu1 %v7984_v44  ;;  %v381_v0 = vrot.slane %v8550_v61, %v8547_v60  ;;  %v8555_v1 = vld [vmem:[%s8544_s25] sm:$0x1f]  ;;  %s8631_s20 = sld [smem:[%s9698_s0 + %s8462_s16]]   ;;  %s8465_s2 = smov 14  }
   0xd   :  { %7343 = vmatprep.subr.bf16.mxu1 %v7985_v45  ;;  %v389_v6 = vrot.slane %v8555_v1, %v8547_v60  ;;  %s8662_s26 = sld [smem:[%s9698_s0 + %s8463_s22]]   ;;  %s9706_s9 = smov 16  }
   0xe   :  { %s8667_s1 = sld [smem:[%s9698_s0 + %s8464_s27]]   ;;  %s9704_s10 = smov 24  }
   0xf   :  { %s8674_s8 = sld [smem:[%s9698_s0 + %s8465_s2]]   ;;  %s8468_s16 = smov 15  }
  0x10   :  { %7344 = vmatpush3.bf16.msra.mxu1 %v7985_v45  ;;  %s8928_s14 = sld [smem:[%s9698_s0 + %s9704_s10]]   ;;  %s8469_s28 = smov 19  }
  0x11   :  { %s8933_s22 = sld [smem:[%s9698_s0 + %s8468_s16]]   ;;  %s8470_s6 = smov 17  }
  0x12   :  { %s8961_s27 = sld [smem:[%s9698_s0 + %s9706_s9]]   ;;  %s8471_s18 = smov 20  }
  0x13   :  { %s8995_s5 = sld [smem:[%s9698_s0 + %s8469_s28]]   ;;  %s8472_s28 = smov 18  }
  0x14   :  { %s9000_s16 = sld [smem:[%s9698_s0 + %s8470_s6]]   ;;  %s8473_s12 = smov 21  }
  0x15   :  { %s9028_s24 = sld [smem:[%s9698_s0 + %s8471_s18]]   ;;  %s8474_s23 = smov 22  }
  0x16   :  { %s9034_s6 = sld [smem:[%s9698_s0 + %s8472_s28]]   ;;  %s8476_s28 = smov 25  }
  0x17   :  { %s9039_s19 = sld [smem:[%s9698_s0 + %s8473_s12]]   ;;  %s8475_s12 = smov 23  }
  0x18   :  { %s9050_s2 = sld [smem:[%s9698_s0 + %s8474_s23]]   ;;  %s8477_s18 = smov 26  }
  0x19   :  { %s9059_s23 = sld [smem:[%s9698_s0 + %s8475_s12]]  }
  0x1a   :  { %s9094_s13 = sld [smem:[%s9698_s0 + %s8476_s28]]  }
  0x1b   :  { %s9128_s12 = sld [smem:[%s9698_s0 + %s8477_s18]]   ;;  %s8478_s18 = smov 28  }
  0xcc   :  { %v7339_v8 = vpop.f32.mrf.mxu0 }
  0xcd   :  { %v311_v9 = vadd.f32 %v7339_v8, %v6589_v7 }
  0xce   :  { %v302_v10 = vpop.f32.mrf.mxu0 }
  0xcf   :  { %v8502_v11 = vmax.f32 %v311_v9, 0.0  ;;  %v303_v12 = vadd.f32 %v6589_v7, %v302_v10 }
  0xd0   :  { %v7340_v13 = vpop.f32.mrf.mxu0 }
  0xd1   :  { %v8504_v14 = vmax.f32 %v303_v12, 0.0  ;;  %v314_v15 = vadd.f32 %v7340_v13, %v6589_v7  ;;  %v330_v16 = vsel %vm323_vm1, %v8502_v11, 0.0 }
  0xd2   :  { %331 = vadd.xlane.f32.xlu1 %v330_v16  ;;  %v305_v17 = vpop.f32.mrf.mxu0 }
  0xd3   :  { %v8508_v18 = vmax.f32 %v314_v15, 0.0  ;;  %v306_v19 = vadd.f32 %v6589_v7, %v305_v17  ;;  %v324_v20 = vsel %vm323_vm1, %v8504_v14, 0.0 }
  0xd4   :  { %325 = vadd.xlane.f32.xlu0 %v324_v20 }
  0xd5   :  { %v8512_v21 = vmax.f32 %v306_v19, 0.0  ;;  %v334_v22 = vsel %vm333_vm2, %v8508_v18, 0.0 }
  0xd6   :  { %335 = vadd.xlane.f32.xlu1 %v334_v22 }
  0xd7   :  { %v327_v23 = vsel %vm323_vm1, %v8512_v21, 0.0 }
  0xd8   :  { %328 = vadd.xlane.f32.xlu0 %v327_v23  ;;  %v7986_v23 = vld [vmem:[%s8564_s29 + $0x38] sm:$0xff]  }
  0xd9   :  { %7349 = vmatprep.subr.bf16.mxu0 %v7986_v23 }
  0xda   :  { %7350 = vmatpush3.bf16.msra.mxu0 %v7986_v23 }
 0x15b   :  { %v332_v24 = vpop.xlane.xlu1 %331 }
 0x15c   :  { %v340_v25 = vmul.f32 0.03125, %v332_v24  ;;  %v7987_v24 = vld [vmem:[%s8564_s29 + $0x30] sm:$0xff]  }
 0x15d   :  { %v326_v26 = vpop.xlane.xlu0 %325  ;;  %7351 = vmatprep.subr.bf16.mxu0 %v7987_v24 }
 0x15e   :  { %v338_v27 = vmul.f32 0.03125, %v326_v26  ;;  %v344_v29 = vsub.f32 %v8502_v11, %v340_v25  ;;  %7352 = vmatpush3.bf16.msra.mxu0 %v7987_v24  ;;  %v7988_v25 = vld [vmem:[%s8564_s29 + $0x28] sm:$0xff]   ;;  %v7989_v26 = vld [vmem:[%s8564_s29 + $0x20] sm:$0xff]  }
 0x15f   :  { %v336_v28 = vpop.xlane.xlu1 %335  ;;  %7353 = vmatprep.subr.bf16.mxu0 %v7988_v25 }
 0x160   :  { %v342_v30 = vsub.f32 %v8504_v14, %v338_v27  ;;  %v341_v31 = vmul.f32 0.03125, %v336_v28  ;;  %v348_v38 = vmul.f32 %v344_v29, %v344_v29  ;;  %v7990_v27 = vld [vmem:[%s8564_s29 + $0x18] sm:$0xff]   ;;  %v7991_v28 = vld [vmem:[%s8564_s29 + $0x10] sm:$0xff]  }
 0x161   :  { %v329_v32 = vpop.xlane.xlu0 %328 }
 0x162   :  { %v339_v33 = vmul.f32 0.03125, %v329_v32  ;;  %v346_v34 = vmul.f32 %v342_v30, %v342_v30  ;;  %v345_v35 = vsub.f32 %v8508_v18, %v341_v31  ;;  %v356_v40 = vsel %vm323_vm1, %v348_v38, 0.0  ;;  %7354 = vmatpush3.bf16.msra.mxu0 %v7988_v25  ;;  %v6593_v31 = vld [vmem:[%s8577_s3] ss:$0 sm:$0xff] }
 0x163   :  { %7355 = vmatprep.subr.bf16.mxu0 %v7989_v26 }
 0x164   :  { %v343_v36 = vsub.f32 %v8512_v21, %v339_v33  ;;  %v350_v37 = vsel %vm323_vm1, %v346_v34, 0.0  ;;  %v349_v42 = vmul.f32 %v345_v35, %v345_v35 }
 0x165   :  { %351 = vadd.xlane.f32.xlu0 %v350_v37 }
 0x166   :  { %v347_v39 = vmul.f32 %v343_v36, %v343_v36  ;;  %v359_v43 = vsel %vm333_vm2, %v349_v42, 0.0  ;;  %7356 = vmatpush3.bf16.msra.mxu0 %v7989_v26 }
 0x167   :  { %7357 = vmatprep.subr.bf16.mxu0 %v7990_v27 }
 0x168   :  { %v353_v41 = vsel %vm323_vm1, %v347_v39, 0.0 }
 0x169   :  { %357 = vadd.xlane.f32.xlu0 %v356_v40  ;;  %354 = vadd.xlane.f32.xlu1 %v353_v41 }
 0x16a   :  { %7358 = vmatpush3.bf16.msra.mxu0 %v7990_v27 }
 0x16b   :  { %7359 = vmatprep.subr.bf16.mxu0 %v7991_v28 }
 0x16d   :  { %360 = vadd.xlane.f32.xlu1 %v359_v43 }
 0x16e   :  { %7360 = vmatpush3.bf16.msra.mxu0 %v7991_v28 }
 0x1ee   :  { %v352_v46 = vpop.xlane.xlu0 %351 }
 0x1ef   :  { %v362_v47 = vmul.f32 0.03125, %v352_v46 }
 0x1f1   :  { %v366_v48 = vadd.f32 1e-05, %v362_v47 }
 0x1f2   :  { %v355_v49 = vpop.xlane.xlu1 %354  ;;  %v358_v50 = vpop.xlane.xlu0 %357 }
 0x1f3   :  { %8096 = vrsqrt.f32 %v366_v48  ;;  %v363_v51 = vmul.f32 0.03125, %v355_v49  ;;  %v364_v52 = vmul.f32 0.03125, %v358_v50 }
 0x1f5   :  { %v367_v53 = vadd.f32 1e-05, %v363_v51  ;;  %v368_v54 = vadd.f32 1e-05, %v364_v52 }
 0x1f6   :  { %v361_v56 = vpop.xlane.xlu1 %360 }
 0x1f7   :  { %8098 = vrsqrt.f32 %v367_v53  ;;  %v365_v57 = vmul.f32 0.03125, %v361_v56 }
 0x1f8   :  { %8100 = vrsqrt.f32 %v368_v54 }
 0x1f9   :  { %v369_v58 = vadd.f32 1e-05, %v365_v57 }
 0x1fb   :  { %8102 = vrsqrt.f32 %v369_v58 }
 0x200   :  { %v8097_v62 = vpop.eup %8096 }
 0x201   :  { %v374_v63 = vmul.f32 %v8097_v62, %v342_v30  ;;  %v7993_v30 = vld [vmem:[%s8564_s29] sm:$0xff]  }
 0x203   :  { %v382_v5 = vmul.f32 %v381_v0, %v374_v63 }
 0x204   :  { %v8099_v2 = vpop.eup %8098 }
 0x205   :  { %v8101_v3 = vpop.eup %8100  ;;  %v375_v4 = vmul.f32 %v8099_v2, %v343_v36  ;;  %v390_v10 = vadd.f32 %v389_v6, %v382_v5 }
 0x206   :  { %v376_v7 = vmul.f32 %v8101_v3, %v344_v29  ;;  %v7992_v29 = vld [vmem:[%s8564_s29 + $0x8] sm:$0xff]   ;;  %v6602_v3 = vld [vmem:[%s8584_s7] ss:$0 sm:$0xff] }
 0x207   :  { %v383_v8 = vmul.f32 %v381_v0, %v375_v4  ;;  %7361 = vmatprep.subr.bf16.mxu0 %v7992_v29 }
 0x208   :  { %v8103_v9 = vpop.eup %8102  ;;  %v384_v15 = vmul.f32 %v381_v0, %v376_v7  ;;  %7362 = vmatpush3.bf16.msra.mxu0 %v7992_v29 }
 0x209   :  { %v391_v12 = vadd.f32 %v389_v6, %v383_v8  ;;  %v377_v13 = vmul.f32 %v8103_v9, %v345_v35  ;;  %7363 = vmatprep.subr.bf16.mxu0 %v7993_v30 }
 0x20a   :  { %v392_v19 = vadd.f32 %v389_v6, %v384_v15 }
 0x20b   :  { %v399_v16 = vpack.c.bf16 %v391_v12, %v390_v10  ;;  %v385_v17 = vmul.f32 %v381_v0, %v377_v13 }
 0x20c   :  { %7364 = vmatpush3.bf16.msra.mxu0 %v7993_v30 }
 0x20d   :  { %7345 = vmatprep.mubr.msk.bf16.mxu1 %vm323_vm1, %v399_v16  ;;  %v393_v20 = vadd.f32 %v389_v6, %v385_v17 }
 0x20f   :  { %v400_v22 = vpack.c.bf16 %v393_v20, %v392_v19 }
 0x211   :  { %7346 = vmatmul.mubr.msk.bf16.vlgmr.msra.gmra.mxu1 %vm323_vm1, %v400_v22 }
 0x2d1   :  { %v7347_v32 = vpop.f32.mrf.mxu1 }
 0x2d2   :  { %v468_v33 = vadd.f32 %v7347_v32, %v6593_v31 }
 0x2d3   :  { %v459_v34 = vpop.f32.mrf.mxu1 }
 0x2d4   :  { %v6600_v35 = vmul.f32 -1.442695, %v468_v33  ;;  %v460_v36 = vadd.f32 %v6593_v31, %v459_v34 }
 0x2d5   :  { %v7348_v37 = vpop.f32.mrf.mxu1 }
 0x2d6   :  { %v6598_v38 = vmul.f32 -1.442695, %v460_v36  ;;  %v471_v39 = vadd.f32 %v7348_v37, %v6593_v31  ;;  %8104 = vpow2.f32 %v6600_v35 }
 0x2d7   :  { %v462_v40 = vpop.f32.mrf.mxu1 }
 0x2d8   :  { %8106 = vpow2.f32 %v6598_v38  ;;  %v6601_v41 = vmul.f32 -1.442695, %v471_v39  ;;  %v463_v42 = vadd.f32 %v6593_v31, %v462_v40 }
 0x2da   :  { %8108 = vpow2.f32 %v6601_v41  ;;  %v6599_v43 = vmul.f32 -1.442695, %v463_v42 }
 0x2dc   :  { %8110 = vpow2.f32 %v6599_v43 }
 0x2e3   :  { %v8105_v44 = vpop.eup %8104 }
 0x2e4   :  { %v488_v48 = vadd.f32 1.0, %v8105_v44 }
 0x2e5   :  { %v8107_v45 = vpop.eup %8106 }
 0x2e6   :  { %v486_v46 = vadd.f32 1.0, %v8107_v45 }
 0x2e7   :  { %v8109_v47 = vpop.eup %8108 }
 0x2e8   :  { %v489_v49 = vadd.f32 1.0, %v8109_v47  ;;  %8112 = vrcp.f32 %v486_v46 }
 0x2e9   :  { %v8111_v50 = vpop.eup %8110 }
 0x2ea   :  { %8114 = vrcp.f32 %v489_v49  ;;  %v487_v51 = vadd.f32 1.0, %v8111_v50  ;;  %v7995_v49 = vld [vmem:[%s8618_s11] sm:$0xff]   ;;  %v7996_v50 = vld [vmem:[%s8624_s15 + $0x8] sm:$0xff]  }
 0x2eb   :  { %8116 = vrcp.f32 %v488_v48  ;;  %v7994_v48 = vld [vmem:[%s8618_s11 + $0x8] sm:$0xff]  }
 0x2ec   :  { %8118 = vrcp.f32 %v487_v51  ;;  %7369 = vmatprep.subr.bf16.mxu1 %v7994_v48 }
 0x2ed   :  { %7370 = vmatpush3.bf16.msra.mxu1 %v7994_v48 }
 0x2ee   :  { %7371 = vmatprep.subr.bf16.mxu1 %v7995_v49 }
 0x2f1   :  { %7372 = vmatpush3.bf16.msra.mxu1 %v7995_v49 }
 0x2f2   :  { %7377 = vmatprep.subr.bf16.mxu1 %v7996_v50 }
 0x2f5   :  { %v8113_v52 = vpop.eup %8112 }
 0x2f6   :  { %v498_v58 = vmul.f32 %v8113_v52, %v460_v36 }
 0x2f7   :  { %v8115_v53 = vpop.eup %8114 }
 0x2f8   :  { %v8117_v54 = vpop.eup %8116  ;;  %v501_v57 = vmul.f32 %v8115_v53, %v471_v39 }
 0x2f9   :  { %v8119_v56 = vpop.eup %8118  ;;  %v500_v63 = vmul.f32 %v8117_v54, %v468_v33 }
 0x2fa   :  { %v499_v62 = vmul.f32 %v8119_v56, %v463_v42 }
 0x2fb   :  { %v520_v2 = vpack.c.bf16 %v501_v57, %v500_v63 }
 0x2fc   :  { %v519_v0 = vpack.c.bf16 %v499_v62, %v498_v58 }
 0x2fe   :  { %7365 = vmatprep.mubr.bf16.mxu0 %v519_v0 }
 0x2ff   :  { %7366 = vmatmul.mubr.bf16.vlgmr.msra.gmra.mxu0 %v520_v2 }
 0x3bf   :  { %v7367_v4 = vpop.f32.mrf.mxu0 }
 0x3c0   :  { %v618_v5 = vadd.f32 %v7367_v4, %v6602_v3  ;;  %v8634_v4 = vsub.s32 1, %v8539_v59 }
 0x3c1   :  { %v609_v6 = vpop.f32.mrf.mxu0 }
 0x3c2   :  { %v610_v7 = vadd.f32 %v6602_v3, %v609_v6  ;;  %v626_v9 = vmul.f32 0.5, %v618_v5  ;;  %v687_v6 = vrot.slane %v8550_v61, %v8634_v4 }
 0x3c3   :  { %v7368_v8 = vpop.f32.mrf.mxu0 }
 0x3c4   :  { %v624_v10 = vmul.f32 0.5, %v610_v7  ;;  %v621_v12 = vadd.f32 %v7368_v8, %v6602_v3  ;;  %v8591_v17 = vadd.f32 %v626_v9, %v8502_v11 }
 0x3c5   :  { %v612_v13 = vpop.f32.mrf.mxu0 }
 0x3c6   :  { %v8588_v15 = vadd.f32 %v624_v10, %v8504_v14  ;;  %v613_v16 = vadd.f32 %v6602_v3, %v612_v13  ;;  %v627_v19 = vmul.f32 0.5, %v621_v12  ;;  %v638_v26 = vsel %vm323_vm1, %v8591_v17, 0.0 }
 0x3c7   :  { %v695_v10 = vrot.slane %v8555_v1, %v8634_v4 }
 0x3c8   :  { %v625_v20 = vmul.f32 0.5, %v613_v16  ;;  %v632_v22 = vsel %vm323_vm1, %v8588_v15, 0.0  ;;  %v8599_v24 = vadd.f32 %v627_v19, %v8508_v18 }
 0x3c9   :  { %633 = vadd.xlane.f32.xlu0 %v632_v22 }
 0x3ca   :  { %v8596_v23 = vadd.f32 %v625_v20, %v8512_v21  ;;  %v641_v27 = vsel %vm333_vm2, %v8599_v24, 0.0 }
 0x3cc   :  { %v635_v25 = vsel %vm323_vm1, %v8596_v23, 0.0 }
 0x3cd   :  { %636 = vadd.xlane.f32.xlu1 %v635_v25  ;;  %639 = vadd.xlane.f32.xlu0 %v638_v26 }
 0x3d1   :  { %642 = vadd.xlane.f32.xlu1 %v641_v27 }
 0x452   :  { %v634_v28 = vpop.xlane.xlu0 %633 }
 0x453   :  { %v644_v29 = vmul.f32 0.03125, %v634_v28 }
 0x455   :  { %v648_v30 = vsub.f32 %v8588_v15, %v644_v29 }
 0x456   :  { %v637_v31 = vpop.xlane.xlu1 %636  ;;  %v640_v32 = vpop.xlane.xlu0 %639 }
 0x457   :  { %v645_v33 = vmul.f32 0.03125, %v637_v31  ;;  %v646_v34 = vmul.f32 0.03125, %v640_v32  ;;  %v652_v35 = vmul.f32 %v648_v30, %v648_v30  ;;  %v7997_v31 = vld [vmem:[%s8624_s15] sm:$0xff]   ;;  %v7998_v32 = vld [vmem:[%s8631_s20 + $0x8] sm:$0xff]  }
 0x459   :  { %v649_v36 = vsub.f32 %v8596_v23, %v645_v33  ;;  %v650_v37 = vsub.f32 %v8591_v17, %v646_v34  ;;  %v656_v38 = vsel %vm323_vm1, %v652_v35, 0.0  ;;  %v7999_v33 = vld [vmem:[%s8631_s20] sm:$0xff]  }
 0x45a   :  { %v643_v39 = vpop.xlane.xlu1 %642  ;;  %657 = vadd.xlane.f32.xlu0 %v656_v38 }
 0x45b   :  { %v647_v40 = vmul.f32 0.03125, %v643_v39  ;;  %v653_v41 = vmul.f32 %v649_v36, %v649_v36  ;;  %v654_v42 = vmul.f32 %v650_v37, %v650_v37 }
 0x45d   :  { %v651_v43 = vsub.f32 %v8599_v24, %v647_v40  ;;  %v659_v44 = vsel %vm323_vm1, %v653_v41, 0.0  ;;  %v662_v45 = vsel %vm323_vm1, %v654_v42, 0.0 }
 0x45e   :  { %660 = vadd.xlane.f32.xlu1 %v659_v44  ;;  %663 = vadd.xlane.f32.xlu0 %v662_v45 }
 0x45f   :  { %v655_v46 = vmul.f32 %v651_v43, %v651_v43 }
 0x461   :  { %v665_v47 = vsel %vm333_vm2, %v655_v46, 0.0 }
 0x462   :  { %666 = vadd.xlane.f32.xlu1 %v665_v47 }
 0x4e3   :  { %v658_v51 = vpop.xlane.xlu0 %657 }
 0x4e4   :  { %v668_v52 = vmul.f32 0.03125, %v658_v51 }
 0x4e6   :  { %v672_v53 = vadd.f32 1e-05, %v668_v52 }
 0x4e7   :  { %v661_v54 = vpop.xlane.xlu1 %660  ;;  %v664_v56 = vpop.xlane.xlu0 %663 }
 0x4e8   :  { %8120 = vrsqrt.f32 %v672_v53  ;;  %v669_v57 = vmul.f32 0.03125, %v661_v54  ;;  %v670_v58 = vmul.f32 0.03125, %v664_v56  ;;  %v6621_v56 = vld [vmem:[%s8674_s8] ss:$0 sm:$0xff] }
 0x4ea   :  { %v673_v62 = vadd.f32 1e-05, %v669_v57  ;;  %v674_v63 = vadd.f32 1e-05, %v670_v58 }
 0x4eb   :  { %v667_v0 = vpop.xlane.xlu1 %666 }
 0x4ec   :  { %8122 = vrsqrt.f32 %v673_v62  ;;  %v671_v2 = vmul.f32 0.03125, %v667_v0 }
 0x4ed   :  { %8124 = vrsqrt.f32 %v674_v63 }
 0x4ee   :  { %v675_v3 = vadd.f32 1e-05, %v671_v2 }
 0x4f0   :  { %8126 = vrsqrt.f32 %v675_v3 }
 0x4f5   :  { %v8121_v5 = vpop.eup %8120 }
 0x4f6   :  { %v680_v7 = vmul.f32 %v8121_v5, %v648_v30 }
 0x4f8   :  { %v688_v12 = vmul.f32 %v687_v6, %v680_v7 }
 0x4f9   :  { %v8123_v8 = vpop.eup %8122 }
 0x4fa   :  { %v8125_v9 = vpop.eup %8124  ;;  %v681_v13 = vmul.f32 %v8123_v8, %v649_v36  ;;  %v696_v22 = vadd.f32 %v695_v10, %v688_v12 }
 0x4fb   :  { %v682_v16 = vmul.f32 %v8125_v9, %v650_v37  ;;  %v6611_v37 = vld [vmem:[%s8662_s26] ss:$0 sm:$0xff] }
 0x4fc   :  { %v689_v19 = vmul.f32 %v687_v6, %v681_v13 }
 0x4fd   :  { %v8127_v20 = vpop.eup %8126  ;;  %v690_v26 = vmul.f32 %v687_v6, %v682_v16  ;;  %v8001_v16 = vld [vmem:[%s8624_s15 + $0x10] sm:$0xff]  }
 0x4fe   :  { %v697_v25 = vadd.f32 %v695_v10, %v689_v19  ;;  %v683_v27 = vmul.f32 %v8127_v20, %v651_v43  ;;  %v6616_v43 = vld [vmem:[%s8667_s1] ss:$0 sm:$0xff]  ;;  %v8692_v19 = vand.u32 127, %v143_v55  ;;  %v8695_v20 = vadd.s32 8, %v8539_v59 }
 0x4ff   :  { %v698_v29 = vadd.f32 %v695_v10, %v690_v26  ;;  %v8707_v55 = vadd.s32 24, %v8539_v59 }
 0x500   :  { %v8640_v28 = vpack.c.bf16 %v697_v25, %v696_v22  ;;  %v691_v61 = vmul.f32 %v687_v6, %v683_v27  ;;  %v8000_v6 = vld [vmem:[%s8624_s15 + $0x18] sm:$0xff]   ;;  %vm181_vm5 = vcmp.ge.s32.totalorder %v8692_v19, 15  ;;  %vm182_vm6 = vcmp.lt.s32.totalorder %v8692_v19, 30 }
 0x501   :  { %vm155_vm7 = vcmp.lt.s32.totalorder %v8695_v20, 15  ;;  %vm170_vm8 = vcmp.ge.s32.totalorder %v8695_v20, 15  ;;  %vm9703_vm9 = vcmp.lt.s32.totalorder %v8692_v19, 15  ;;  %vm8702_vm10 = vmand %vm181_vm5, %vm182_vm6  ;;  %vm176_vm14 = vcmp.lt.s32.totalorder %v8707_v55, 30 }
 0x502   :  { %v699_v30 = vadd.f32 %v695_v10, %v691_v61  ;;  %7373 = vmatprep.mubr.msk.bf16.mxu1 %vm323_vm1, %v8640_v28  ;;  %vm166_vm11 = vmand %vm155_vm7, %vm9703_vm9  ;;  %vm9701_vm6 = vcmask 242688   ;;  %vm9699_vm7 = vcmask 195584  }
 0x503   :  { %vm185_vm12 = vmand %vm170_vm8, %vm8702_vm10 }
 0x504   :  { %v8644_v1 = vpack.c.bf16 %v699_v30, %v698_v29  ;;  %vm8719_vm15 = vmor %vm166_vm11, %vm185_vm12  ;;  %vm2708_vm11 = vcmask 1040384   ;;  %vm192_vm12 = vcmp.ge.s32.totalorder %v8539_v59, 1 }
 0x505   :  { %vm8727_vm5 = vmand %vm176_vm14, %vm8702_vm10  ;;  %vm9712_vm14 = vcmp.le.s32.totalorder %v8695_v20, 14 }
 0x506   :  { %7374 = vmatmul.mubr.msk.bf16.vlgmr.msra.gmra.mxu1 %vm323_vm1, %v8644_v1 }
 0x507   :  { %7378 = vmatpush3.bf16.msra.mxu1 %v7996_v50  ;;  %7381 = vmatprep.mubr.msk.bf16.mxu1 %vm323_vm1, %v8640_v28 }
 0x508   :  { %7379 = vmatprep.subr.bf16.mxu1 %v7997_v31 }
 0x50b   :  { %7380 = vmatpush3.bf16.msra.mxu1 %v7997_v31 }
 0x50c   :  { %7385 = vmatprep.subr.bf16.mxu1 %v7998_v32 }
 0x50e   :  { %7382 = vmatmul.mubr.msk.bf16.vlgmr.msra.gmra.mxu1 %vm323_vm1, %v8644_v1 }
 0x50f   :  { %7386 = vmatpush3.bf16.msra.mxu1 %v7998_v32  ;;  %7389 = vmatprep.mubr.msk.bf16.mxu1 %vm323_vm1, %v8640_v28 }
 0x510   :  { %7387 = vmatprep.subr.bf16.mxu1 %v7999_v33 }
 0x513   :  { %7388 = vmatpush3.bf16.msra.mxu1 %v7999_v33 }
 0x516   :  { %7390 = vmatmul.mubr.msk.bf16.vlgmr.msra.gmra.mxu1 %vm323_vm1, %v8644_v1 }
 0x5c6   :  { %v7375_v34 = vpop.f32.mrf.mxu1 }
 0x5c7   :  { %v774_v12 = vadd.f32 %v7375_v34, %v6611_v37 }
 0x5c8   :  { %v765_v35 = vpop.f32.mrf.mxu1 }
 0x5c9   :  { %v766_v39 = vadd.f32 %v6611_v37, %v765_v35 }
 0x5ca   :  { %v7376_v36 = vpop.f32.mrf.mxu1 }
 0x5cb   :  { %v777_v10 = vadd.f32 %v7376_v36, %v6611_v37 }
 0x5cc   :  { %v768_v38 = vpop.f32.mrf.mxu1 }
 0x5cd   :  { %v769_v40 = vadd.f32 %v6611_v37, %v768_v38  ;;  %v925_v13 = vpack.c.bf16 %v777_v10, %v774_v12 }
 0x5ce   :  { %v7383_v41 = vpop.f32.mrf.mxu1 }
 0x5cf   :  { %v924_v42 = vpack.c.bf16 %v769_v40, %v766_v39  ;;  %v846_v46 = vadd.f32 %v7383_v41, %v6616_v43  ;;  %v6645_v40 = vld [vmem:[%s8667_s1 + $0x1] ss:$0 sm:$0xff] }
 0x5d0   :  { %v837_v44 = vpop.f32.mrf.mxu1 }
 0x5d1   :  { %7397 = vmatprep.mubr.msk.bf16.mxu1 %vm928_vm3, %v924_v42  ;;  %v838_v49 = vadd.f32 %v6616_v43, %v837_v44 }
 0x5d2   :  { %v7384_v45 = vpop.f32.mrf.mxu1 }
 0x5d3   :  { %v849_v47 = vadd.f32 %v7384_v45, %v6616_v43 }
 0x5d4   :  { %v840_v48 = vpop.f32.mrf.mxu1 }
 0x5d5   :  { %v927_v50 = vpack.c.bf16 %v849_v47, %v846_v46  ;;  %v841_v51 = vadd.f32 %v6616_v43, %v840_v48 }
 0x5d6   :  { %v7391_v52 = vpop.f32.mrf.mxu1 }
 0x5d7   :  { %v926_v53 = vpack.c.bf16 %v841_v51, %v838_v49  ;;  %7865 = vmatprep.subr.msk.bf16.mxu1 %vm928_vm3, %v927_v50  ;;  %v939_v54 = vsel %vm928_vm3, %v927_v50, 0  ;;  %v918_v62 = vadd.f32 %v7391_v52, %v6621_v56 }
 0x5d8   :  { %v909_v57 = vpop.f32.mrf.mxu1  ;;  %7394 = vmatpush3.bf16.xpose.msra.mxu1 %v939_v54 }
 0x5d9   :  { %7866 = vmatprep.subr.msk.bf16.mxu1 %vm928_vm3, %v926_v53  ;;  %v910_v2 = vadd.f32 %v6621_v56, %v909_v57  ;;  %v936_v8 = vsel %vm928_vm3, %v926_v53, 0 }
 0x5da   :  { %v7392_v58 = vpop.f32.mrf.mxu1 }
 0x5db   :  { %v921_v63 = vadd.f32 %v7392_v58, %v6621_v56 }
 0x5dc   :  { %v912_v0 = vpop.f32.mrf.mxu1 }
 0x5dd   :  { %v1047_v3 = vpack.c.bf16 %v921_v63, %v918_v62  ;;  %v913_v5 = vadd.f32 %v6621_v56, %v912_v0 }
 0x5df   :  { %v1046_v7 = vpack.c.bf16 %v913_v5, %v910_v2  ;;  %7867 = vmatprep.subr.msk.bf16.mxu0 %vm1054_vm4, %v1047_v3  ;;  %v1056_v9 = vsel %vm1054_vm4, %v1047_v3, 0 }
 0x5e0   :  { %7396 = vmatpush3.bf16.xpose.msra.mxu1 %v936_v8  ;;  %7402 = vmatpush3.bf16.msra.mxu0 %v1056_v9 }
 0x5e1   :  { %7403 = vmatprep.subr.bf16.mxu0 %v1046_v7  ;;  %7417 = vmatprep.subr.bf16.mxu1 %v8000_v6 }
 0x5e4   :  { %7404 = vmatpush3.bf16.msra.mxu0 %v1046_v7 }
 0x5e7   :  { %7398 = vmatmul.mubr.msk.bf16.vlgmr.msra.gmra.mxu1 %vm928_vm3, %v925_v13 }
 0x5e8   :  { %7418 = vmatpush3.bf16.msra.mxu1 %v8000_v6  ;;  %7421 = vmatprep.mubr.msk.bf16.mxu1 %vm323_vm1, %v8640_v28 }
 0x5e9   :  { %7419 = vmatprep.subr.bf16.mxu1 %v8001_v16 }
 0x5ec   :  { %7420 = vmatpush3.bf16.msra.mxu1 %v8001_v16 }
 0x5ef   :  { %7422 = vmatmul.mubr.msk.bf16.vlgmr.msra.gmra.mxu1 %vm323_vm1, %v8644_v1 }
 0x6a7   :  { %v7399_v22 = vpop.f32.mrf.mxu1 }
 0x6a8   :  { %v992_v27 = vmul.f32 0.35355338, %v7399_v22 }
 0x6a9   :  { %v975_v26 = vpop.f32.mrf.mxu1 }
 0x6aa   :  { %v990_v61 = vmul.f32 0.35355338, %v975_v26  ;;  %v996_v36 = vsel %vm8702_vm10, %v992_v27, -1e+30 }
 0x6ab   :  { %v7400_v29 = vpop.f32.mrf.mxu1  ;;  %v1005_v42 = vsel %vm9702_vm13, %v996_v36, -inf }
 0x6ac   :  { %v994_v30 = vsel %vm9703_vm9, %v990_v61, -1e+30  ;;  %v993_v34 = vmul.f32 0.35355338, %v7400_v29  ;;  %v8002_v29 = vld [vmem:[%s8618_s11 + $0x18] sm:$0xff]  }
 0x6ad   :  { %v978_v31 = vpop.f32.mrf.mxu1  ;;  %v999_v32 = vsel %vm9702_vm13, %v994_v30, -inf  ;;  %7409 = vmatprep.subr.bf16.mxu0 %v8002_v29 }
 0x6ae   :  { %v991_v35 = vmul.f32 0.35355338, %v978_v31  ;;  %1000 = vmax.xlane.f32.xlu0 %v999_v32  ;;  %v997_v44 = vsel %vm8727_vm5, %v993_v34, -1e+30 }
 0x6af   :  { %v7423_v37 = vpop.f32.mrf.mxu1  ;;  %v1009_v49 = vsel %vm9701_vm6, %v997_v44, -inf }
 0x6b0   :  { %v995_v39 = vsel %vm8719_vm15, %v991_v35, -1e+30  ;;  %v1249_v46 = vadd.f32 %v7423_v37, %v6645_v40 }
 0x6b1   :  { %v1240_v41 = vpop.f32.mrf.mxu1  ;;  %v1002_v43 = vsel %vm9702_vm13, %v995_v39, -inf }
 0x6b2   :  { %1006 = vmax.xlane.f32.xlu0 %v1005_v42  ;;  %1003 = vmax.xlane.f32.xlu1 %v1002_v43  ;;  %v1241_v50 = vadd.f32 %v6645_v40, %v1240_v41 }
 0x6b3   :  { %v7424_v45 = vpop.f32.mrf.mxu1 }
 0x6b4   :  { %v1252_v47 = vadd.f32 %v7424_v45, %v6645_v40 }
 0x6b5   :  { %v1243_v48 = vpop.f32.mrf.mxu1 }
 0x6b6   :  { %v1332_v51 = vpack.c.bf16 %v1252_v47, %v1249_v46  ;;  %v1244_v52 = vadd.f32 %v6645_v40, %v1243_v48  ;;  %1010 = vmax.xlane.f32.xlu1 %v1009_v49  ;;  %v8003_v46 = vld [vmem:[%s8618_s11 + $0x10] sm:$0xff]   ;;  %v8004_v47 = vld [vmem:[%s8631_s20 + $0x18] sm:$0xff]   ;;  %v8006_v49 = vld [vmem:[%s8624_s15 + $0x28] sm:$0xff]  }
 0x6b7   :  { %v8005_v48 = vld [vmem:[%s8631_s20 + $0x10] sm:$0xff]  }
 0x6b8   :  { %v1331_v53 = vpack.c.bf16 %v1244_v52, %v1241_v50  ;;  %7868 = vmatprep.subr.msk.bf16.mxu1 %vm928_vm3, %v1332_v51  ;;  %v1343_v54 = vsel %vm928_vm3, %v1332_v51, 0 }
 0x6b9   :  { %7434 = vmatpush3.bf16.xpose.msra.mxu1 %v1343_v54 }
 0x6ba   :  { %7869 = vmatprep.subr.msk.bf16.mxu1 %vm928_vm3, %v1331_v53  ;;  %v1340_v56 = vsel %vm928_vm3, %v1331_v53, 0 }
 0x6c1   :  { %7436 = vmatpush3.bf16.xpose.msra.mxu1 %v1340_v56 }
 0x6c2   :  { %7457 = vmatprep.subr.bf16.mxu1 %v8006_v49 }
 0x737   :  { %v1001_v57 = vpop.xlane.xlu0 %1000 }
 0x738   :  { %v1012_v58 = vsub.f32 %v994_v30, %v1001_v57 }
 0x73a   :  { %v1016_v62 = vmul.f32 1.442695, %v1012_v58  ;;  %v6635_v58 = vld [vmem:[%s8662_s26 + $0x1] ss:$0 sm:$0xff] }
 0x73b   :  { %v1007_v63 = vpop.xlane.xlu0 %1006  ;;  %v1004_v0 = vpop.xlane.xlu1 %1003 }
 0x73c   :  { %8128 = vpow2.f32 %v1016_v62  ;;  %v1014_v2 = vsub.f32 %v996_v36, %v1007_v63  ;;  %v1013_v3 = vsub.f32 %v995_v39, %v1004_v0 }
 0x73e   :  { %v1020_v5 = vmul.f32 1.442695, %v1014_v2  ;;  %v1018_v6 = vmul.f32 1.442695, %v1013_v3 }
 0x73f   :  { %v1011_v7 = vpop.xlane.xlu1 %1010 }
 0x740   :  { %8130 = vpow2.f32 %v1020_v5  ;;  %v1015_v8 = vsub.f32 %v997_v44, %v1011_v7 }
 0x741   :  { %8132 = vpow2.f32 %v1018_v6 }
 0x742   :  { %v1022_v9 = vmul.f32 1.442695, %v1015_v8  ;;  %v6655_v8 = vld [vmem:[%s8674_s8 + $0x1] ss:$0 sm:$0xff] }
 0x744   :  { %8134 = vpow2.f32 %v1022_v9 }
 0x749   :  { %v8129_v10 = vpop.eup %8128 }
 0x74a   :  { %v1024_v12 = vsel %vm9702_vm13, %v8129_v10, 0.0 }
 0x74b   :  { %1025 = vadd.xlane.f32.xlu0 %v1024_v12 }
 0x74d   :  { %v8131_v13 = vpop.eup %8130 }
 0x74e   :  { %v8133_v16 = vpop.eup %8132  ;;  %v1030_v22 = vsel %vm9702_vm13, %v8131_v13, 0.0 }
 0x74f   :  { %1031 = vadd.xlane.f32.xlu0 %v1030_v22  ;;  %v1027_v26 = vsel %vm9702_vm13, %v8133_v16, 0.0 }
 0x750   :  { %1028 = vadd.xlane.f32.xlu1 %v1027_v26 }
 0x751   :  { %v8135_v27 = vpop.eup %8134 }
 0x752   :  { %v1033_v61 = vsel %vm9701_vm6, %v8135_v27, 0.0 }
 0x754   :  { %1034 = vadd.xlane.f32.xlu1 %v1033_v61 }
 0x7d4   :  { %v1026_v30 = vpop.xlane.xlu0 %1025 }
 0x7d5   :  { %8136 = vrcp.f32 %v1026_v30 }
 0x7d8   :  { %v1032_v31 = vpop.xlane.xlu0 %1031 }
 0x7d9   :  { %v1029_v32 = vpop.xlane.xlu1 %1028 }
 0x7da   :  { %8138 = vrcp.f32 %v1029_v32 }
 0x7db   :  { %8140 = vrcp.f32 %v1032_v31 }
 0x7dd   :  { %v1035_v34 = vpop.xlane.xlu1 %1034 }
 0x7de   :  { %8142 = vrcp.f32 %v1035_v34 }
 0x7e2   :  { %v8137_v35 = vpop.eup %8136 }
 0x7e3   :  { %v1040_v37 = vmul.f32 %v8137_v35, %v8129_v10  ;;  %v8007_v10 = vld [vmem:[%s8624_s15 + $0x20] sm:$0xff]  }
 0x7e7   :  { %v8139_v36 = vpop.eup %8138 }
 0x7e8   :  { %v1041_v39 = vmul.f32 %v8139_v36, %v8133_v16  ;;  %v8141_v40 = vpop.eup %8140 }
 0x7e9   :  { %v1042_v43 = vmul.f32 %v8141_v40, %v8131_v13 }
 0x7ea   :  { %v1044_v41 = vpack.c.bf16 %v1041_v39, %v1040_v37 }
 0x7eb   :  { %v8143_v42 = vpop.eup %8142 }
 0x7ec   :  { %7405 = vmatprep.mubr.msk.bf16.mxu0 %vm9702_vm13, %v1044_v41  ;;  %v1043_v44 = vmul.f32 %v8143_v42, %v8135_v27 }
 0x7ee   :  { %v1045_v45 = vpack.c.bf16 %v1043_v44, %v1042_v43 }
 0x7f0   :  { %7406 = vmatmul.mubr.msk.bf16.vlgmr.msra.gmra.mxu0 %vm9702_vm13, %v1045_v45 }
 0x7f1   :  { %7410 = vmatpush3.bf16.msra.mxu0 %v8002_v29  ;;  %7413 = vmatprep.mubr.msk.bf16.mxu0 %vm323_vm1, %v8640_v28 }
 0x7f2   :  { %7411 = vmatprep.subr.bf16.mxu0 %v8003_v46 }
 0x7f5   :  { %7412 = vmatpush3.bf16.msra.mxu0 %v8003_v46  ;;  %v6679_v46 = vld [vmem:[%s8667_s1 + $0x2] ss:$0 sm:$0xff] }
 0x7f6   :  { %7425 = vmatprep.subr.bf16.mxu0 %v8004_v47 }
 0x7f8   :  { %7414 = vmatmul.mubr.msk.bf16.vlgmr.msra.gmra.mxu0 %vm323_vm1, %v8644_v1 }
 0x7f9   :  { %7426 = vmatpush3.bf16.msra.mxu0 %v8004_v47  ;;  %7429 = vmatprep.mubr.msk.bf16.mxu0 %vm323_vm1, %v8640_v28 }
 0x7fa   :  { %7427 = vmatprep.subr.bf16.mxu0 %v8005_v48 }
 0x7fd   :  { %7428 = vmatpush3.bf16.msra.mxu0 %v8005_v48 }
 0x800   :  { %7430 = vmatmul.mubr.msk.bf16.vlgmr.msra.gmra.mxu0 %vm323_vm1, %v8644_v1 }
 0x8b0   :  { %v8762_v50 = vpop.f32.mrf.mxu0 }
 0x8b2   :  { %v8764_v51 = vpop.f32.mrf.mxu0 }
 0x8b4   :  { %v8766_v52 = vpop.f32.mrf.mxu0 }
 0x8b6   :  { %v8768_v53 = vpop.f32.mrf.mxu0 }
 0x8b8   :  { %v7415_v54 = vpop.f32.mrf.mxu0 }
 0x8b9   :  { %v1175_v3 = vadd.f32 %v7415_v54, %v6635_v58 }
 0x8ba   :  { %v1166_v56 = vpop.f32.mrf.mxu0 }
 0x8bb   :  { %v1167_v0 = vadd.f32 %v6635_v58, %v1166_v56 }
 0x8bc   :  { %v7416_v57 = vpop.f32.mrf.mxu0 }
 0x8bd   :  { %v1178_v62 = vadd.f32 %v7416_v57, %v6635_v58 }
 0x8be   :  { %v1169_v63 = vpop.f32.mrf.mxu0 }
 0x8bf   :  { %v1170_v2 = vadd.f32 %v6635_v58, %v1169_v63  ;;  %v1330_v7 = vpack.c.bf16 %v1178_v62, %v1175_v3 }
 0x8c0   :  { %v7431_v5 = vpop.f32.mrf.mxu0 }
 0x8c1   :  { %v1329_v6 = vpack.c.bf16 %v1170_v2, %v1167_v0  ;;  %v1323_v13 = vadd.f32 %v7431_v5, %v6655_v8 }
 0x8c2   :  { %v1314_v9 = vpop.f32.mrf.mxu0 }
 0x8c3   :  { %7437 = vmatprep.mubr.msk.bf16.mxu1 %vm928_vm3, %v1329_v6  ;;  %v1315_v26 = vadd.f32 %v6655_v8, %v1314_v9 }
 0x8c4   :  { %v7432_v12 = vpop.f32.mrf.mxu0  ;;  %7438 = vmatmul.mubr.msk.bf16.vlgmr.msra.gmra.mxu1 %vm928_vm3, %v1330_v7 }
 0x8c5   :  { %v1326_v16 = vadd.f32 %v7432_v12, %v6655_v8  ;;  %7458 = vmatpush3.bf16.msra.mxu1 %v8006_v49  ;;  %7461 = vmatprep.mubr.msk.bf16.mxu1 %vm323_vm1, %v8640_v28 }
 0x8c6   :  { %v1317_v22 = vpop.f32.mrf.mxu0  ;;  %7459 = vmatprep.subr.bf16.mxu1 %v8007_v10 }
 0x8c7   :  { %v1449_v27 = vpack.c.bf16 %v1326_v16, %v1323_v13  ;;  %v1318_v61 = vadd.f32 %v6655_v8, %v1317_v22 }
 0x8c9   :  { %v1448_v29 = vpack.c.bf16 %v1318_v61, %v1315_v26  ;;  %7870 = vmatprep.subr.msk.bf16.mxu0 %vm1054_vm4, %v1449_v27  ;;  %7460 = vmatpush3.bf16.msra.mxu1 %v8007_v10  ;;  %v1457_v30 = vsel %vm1054_vm4, %v1449_v27, 0 }
 0x8ca   :  { %7442 = vmatpush3.bf16.msra.mxu0 %v1457_v30 }
 0x8cb   :  { %7443 = vmatprep.subr.bf16.mxu0 %v1448_v29 }
 0x8cc   :  { %7462 = vmatmul.mubr.msk.bf16.vlgmr.msra.gmra.mxu1 %vm323_vm1, %v8644_v1 }
 0x8ce   :  { %7444 = vmatpush3.bf16.msra.mxu0 %v1448_v29 }
 0x984   :  { %v7439_v31 = vpop.f32.mrf.mxu1 }
 0x985   :  { %v1396_v34 = vmul.f32 0.35355338, %v7439_v31 }
 0x986   :  { %v1379_v32 = vpop.f32.mrf.mxu1 }
 0x987   :  { %v1394_v35 = vmul.f32 0.35355338, %v1379_v32  ;;  %v1400_v43 = vsel %vm8702_vm10, %v1396_v34, -1e+30 }
 0x988   :  { %v7440_v36 = vpop.f32.mrf.mxu1  ;;  %v1408_v48 = vsel %vm9702_vm13, %v1400_v43, -inf }
 0x989   :  { %v1398_v37 = vsel %vm9703_vm9, %v1394_v35, -1e+30  ;;  %v1397_v41 = vmul.f32 0.35355338, %v7440_v36 }
 0x98a   :  { %v1382_v39 = vpop.f32.mrf.mxu1  ;;  %v1402_v40 = vsel %vm9702_vm13, %v1398_v37, -inf }
 0x98b   :  { %v1395_v42 = vmul.f32 0.35355338, %v1382_v39  ;;  %1403 = vmax.xlane.f32.xlu0 %v1402_v40  ;;  %v1401_v54 = vsel %vm8727_vm5, %v1397_v41, -1e+30  ;;  %v8008_v41 = vld [vmem:[%s8618_s11 + $0x28] sm:$0xff]  }
 0x98c   :  { %v7463_v44 = vpop.f32.mrf.mxu1  ;;  %v1411_v63 = vsel %vm9701_vm6, %v1401_v54, -inf  ;;  %7449 = vmatprep.subr.bf16.mxu0 %v8008_v41 }
 0x98d   :  { %v1399_v45 = vsel %vm8719_vm15, %v1395_v42, -1e+30  ;;  %v1650_v57 = vadd.f32 %v7463_v44, %v6679_v46 }
 0x98e   :  { %v1641_v47 = vpop.f32.mrf.mxu1  ;;  %v1405_v49 = vsel %vm9702_vm13, %v1399_v45, -inf }
 0x98f   :  { %1409 = vmax.xlane.f32.xlu0 %v1408_v48  ;;  %1406 = vmax.xlane.f32.xlu1 %v1405_v49  ;;  %v1642_v0 = vadd.f32 %v6679_v46, %v1641_v47 }
 0x990   :  { %v7464_v56 = vpop.f32.mrf.mxu1 }
 0x991   :  { %v1653_v58 = vadd.f32 %v7464_v56, %v6679_v46 }
 0x992   :  { %v1644_v62 = vpop.f32.mrf.mxu1 }
 0x993   :  { %v1733_v2 = vpack.c.bf16 %v1653_v58, %v1650_v57  ;;  %v1645_v3 = vadd.f32 %v6679_v46, %v1644_v62  ;;  %1412 = vmax.xlane.f32.xlu1 %v1411_v63 }
 0x995   :  { %v1732_v5 = vpack.c.bf16 %v1645_v3, %v1642_v0  ;;  %7871 = vmatprep.subr.msk.bf16.mxu1 %vm928_vm3, %v1733_v2  ;;  %v1744_v6 = vsel %vm928_vm3, %v1733_v2, 0  ;;  %v8009_v0 = vld [vmem:[%s8618_s11 + $0x20] sm:$0xff]   ;;  %v8010_v2 = vld [vmem:[%s8631_s20 + $0x28] sm:$0xff]  }
 0x996   :  { %7474 = vmatpush3.bf16.xpose.msra.mxu1 %v1744_v6  ;;  %v8011_v3 = vld [vmem:[%s8631_s20 + $0x20] sm:$0xff]  }
 0x997   :  { %7872 = vmatprep.subr.msk.bf16.mxu1 %vm928_vm3, %v1732_v5  ;;  %v1741_v7 = vsel %vm928_vm3, %v1732_v5, 0  ;;  %v8012_v5 = vld [vmem:[%s8624_s15 + $0x38] sm:$0xff]  }
 0x99e   :  { %7476 = vmatpush3.bf16.xpose.msra.mxu1 %v1741_v7 }
 0x99f   :  { %7497 = vmatprep.subr.bf16.mxu1 %v8012_v5 }
 0xa14   :  { %v1404_v8 = vpop.xlane.xlu0 %1403 }
 0xa15   :  { %v1414_v9 = vsub.f32 %v1398_v37, %v1404_v8 }
 0xa17   :  { %v1418_v10 = vmul.f32 1.442695, %v1414_v9 }
 0xa18   :  { %v1410_v12 = vpop.xlane.xlu0 %1409  ;;  %v1407_v13 = vpop.xlane.xlu1 %1406 }
 0xa19   :  { %8144 = vpow2.f32 %v1418_v10  ;;  %v1416_v16 = vsub.f32 %v1400_v43, %v1410_v12  ;;  %v1415_v22 = vsub.f32 %v1399_v45, %v1407_v13 }
 0xa1b   :  { %v1422_v26 = vmul.f32 1.442695, %v1416_v16  ;;  %v1420_v27 = vmul.f32 1.442695, %v1415_v22  ;;  %v6669_v22 = vld [vmem:[%s8662_s26 + $0x2] ss:$0 sm:$0xff] }
 0xa1c   :  { %v1413_v61 = vpop.xlane.xlu1 %1412 }
 0xa1d   :  { %8146 = vpow2.f32 %v1422_v26  ;;  %v1417_v29 = vsub.f32 %v1401_v54, %v1413_v61 }
 0xa1e   :  { %8148 = vpow2.f32 %v1420_v27 }
 0xa1f   :  { %v1424_v30 = vmul.f32 1.442695, %v1417_v29 }
 0xa21   :  { %8150 = vpow2.f32 %v1424_v30 }
 0xa26   :  { %v8145_v31 = vpop.eup %8144 }
 0xa27   :  { %v1426_v32 = vsel %vm9702_vm13, %v8145_v31, 0.0 }
 0xa28   :  { %1427 = vadd.xlane.f32.xlu0 %v1426_v32 }
 0xa2a   :  { %v8147_v34 = vpop.eup %8146 }
 0xa2b   :  { %v8149_v35 = vpop.eup %8148  ;;  %v1432_v36 = vsel %vm9702_vm13, %v8147_v34, 0.0 }
 0xa2c   :  { %1433 = vadd.xlane.f32.xlu0 %v1432_v36  ;;  %v1429_v37 = vsel %vm9702_vm13, %v8149_v35, 0.0 }
 0xa2d   :  { %1430 = vadd.xlane.f32.xlu1 %v1429_v37  ;;  %v8013_v37 = vld [vmem:[%s8624_s15 + $0x30] sm:$0xff]  }
 0xa2e   :  { %v8151_v39 = vpop.eup %8150 }
 0xa2f   :  { %v1435_v40 = vsel %vm9701_vm6, %v8151_v39, 0.0 }
 0xa31   :  { %1436 = vadd.xlane.f32.xlu1 %v1435_v40 }
 0xab1   :  { %v1428_v42 = vpop.xlane.xlu0 %1427 }
 0xab2   :  { %8152 = vrcp.f32 %v1428_v42 }
 0xab5   :  { %v1434_v43 = vpop.xlane.xlu0 %1433 }
 0xab6   :  { %v1431_v44 = vpop.xlane.xlu1 %1430 }
 0xab7   :  { %8154 = vrcp.f32 %v1431_v44 }
 0xab8   :  { %8156 = vrcp.f32 %v1434_v43 }
 0xaba   :  { %v1437_v45 = vpop.xlane.xlu1 %1436 }
 0xabb   :  { %8158 = vrcp.f32 %v1437_v45 }
 0xabf   :  { %v8153_v46 = vpop.eup %8152 }
 0xac0   :  { %v1442_v48 = vmul.f32 %v8153_v46, %v8145_v31 }
 0xac4   :  { %v8155_v47 = vpop.eup %8154 }
 0xac5   :  { %v1443_v49 = vmul.f32 %v8155_v47, %v8149_v35  ;;  %v8157_v54 = vpop.eup %8156  ;;  %v6689_v35 = vld [vmem:[%s8674_s8 + $0x2] ss:$0 sm:$0xff] }
 0xac6   :  { %v1444_v58 = vmul.f32 %v8157_v54, %v8147_v34 }
 0xac7   :  { %v1446_v56 = vpack.c.bf16 %v1443_v49, %v1442_v48 }
 0xac8   :  { %v8159_v57 = vpop.eup %8158 }
 0xac9   :  { %7445 = vmatprep.mubr.msk.bf16.mxu0 %vm9702_vm13, %v1446_v56  ;;  %v1445_v62 = vmul.f32 %v8159_v57, %v8151_v39 }
 0xacb   :  { %v1447_v63 = vpack.c.bf16 %v1445_v62, %v1444_v58 }
 0xacd   :  { %7446 = vmatmul.mubr.msk.bf16.vlgmr.msra.gmra.mxu0 %vm9702_vm13, %v1447_v63 }
 0xace   :  { %7450 = vmatpush3.bf16.msra.mxu0 %v8008_v41  ;;  %7453 = vmatprep.mubr.msk.bf16.mxu0 %vm323_vm1, %v8640_v28 }
 0xacf   :  { %7451 = vmatprep.subr.bf16.mxu0 %v8009_v0 }
 0xad2   :  { %7452 = vmatpush3.bf16.msra.mxu0 %v8009_v0 }
 0xad3   :  { %7465 = vmatprep.subr.bf16.mxu0 %v8010_v2 }
 0xad5   :  { %7454 = vmatmul.mubr.msk.bf16.vlgmr.msra.gmra.mxu0 %vm323_vm1, %v8644_v1 }
 0xad6   :  { %7466 = vmatpush3.bf16.msra.mxu0 %v8010_v2  ;;  %7469 = vmatprep.mubr.msk.bf16.mxu0 %vm323_vm1, %v8640_v28 }
 0xad7   :  { %7467 = vmatprep.subr.bf16.mxu0 %v8011_v3 }
 0xada   :  { %7468 = vmatpush3.bf16.msra.mxu0 %v8011_v3 }
 0xadd   :  { %7470 = vmatmul.mubr.msk.bf16.vlgmr.msra.gmra.mxu0 %vm323_vm1, %v8644_v1 }
 0xb8d   :  { %v8817_v6 = vpop.f32.mrf.mxu0 }
 0xb8f   :  { %v8819_v7 = vpop.f32.mrf.mxu0 }
 0xb91   :  { %v8821_v8 = vpop.f32.mrf.mxu0 }
 0xb92   :  { %v7928_v9 = vpack.i.bf16 %v8821_v8, %v8817_v6 }
 0xb93   :  { %v8825_v10 = vpop.f32.mrf.mxu0 }
 0xb95   :  { %v7455_v12 = vpop.f32.mrf.mxu0 }
 0xb96   :  { %v1576_v30 = vadd.f32 %v7455_v12, %v6669_v22 }
 0xb97   :  { %v1567_v13 = vpop.f32.mrf.mxu0 }
 0xb98   :  { %v1568_v61 = vadd.f32 %v6669_v22, %v1567_v13  ;;  %v6713_v13 = vld [vmem:[%s8667_s1 + $0x3] ss:$0 sm:$0xff] }
 0xb99   :  { %v7456_v16 = vpop.f32.mrf.mxu0 }
 0xb9a   :  { %v1579_v26 = vadd.f32 %v7456_v16, %v6669_v22 }
 0xb9b   :  { %v1570_v27 = vpop.f32.mrf.mxu0 }
 0xb9c   :  { %v1571_v29 = vadd.f32 %v6669_v22, %v1570_v27  ;;  %v1731_v34 = vpack.c.bf16 %v1579_v26, %v1576_v30 }
 0xb9d   :  { %v7471_v31 = vpop.f32.mrf.mxu0 }
 0xb9e   :  { %v1730_v32 = vpack.c.bf16 %v1571_v29, %v1568_v61  ;;  %v1724_v40 = vadd.f32 %v7471_v31, %v6689_v35 }
 0xb9f   :  { %v1715_v36 = vpop.f32.mrf.mxu0 }
 0xba0   :  { %7477 = vmatprep.mubr.msk.bf16.mxu1 %vm928_vm3, %v1730_v32  ;;  %v1716_v43 = vadd.f32 %v6689_v35, %v1715_v36 }
 0xba1   :  { %v7472_v39 = vpop.f32.mrf.mxu0  ;;  %7478 = vmatmul.mubr.msk.bf16.vlgmr.msra.gmra.mxu1 %vm928_vm3, %v1731_v34 }
 0xba2   :  { %v1727_v41 = vadd.f32 %v7472_v39, %v6689_v35  ;;  %7498 = vmatpush3.bf16.msra.mxu1 %v8012_v5  ;;  %7501 = vmatprep.mubr.msk.bf16.mxu1 %vm323_vm1, %v8640_v28 }
 0xba3   :  { %v1718_v42 = vpop.f32.mrf.mxu0  ;;  %7499 = vmatprep.subr.bf16.mxu1 %v8013_v37 }
 0xba4   :  { %v1850_v44 = vpack.c.bf16 %v1727_v41, %v1724_v40  ;;  %v1719_v45 = vadd.f32 %v6689_v35, %v1718_v42 }
 0xba6   :  { %v1849_v46 = vpack.c.bf16 %v1719_v45, %v1716_v43  ;;  %7873 = vmatprep.subr.msk.bf16.mxu0 %vm1054_vm4, %v1850_v44  ;;  %7500 = vmatpush3.bf16.msra.mxu1 %v8013_v37  ;;  %v1858_v47 = vsel %vm1054_vm4, %v1850_v44, 0 }
 0xba7   :  { %7482 = vmatpush3.bf16.msra.mxu0 %v1858_v47 }
 0xba8   :  { %7483 = vmatprep.subr.bf16.mxu0 %v1849_v46 }
 0xba9   :  { %7502 = vmatmul.mubr.msk.bf16.vlgmr.msra.gmra.mxu1 %vm323_vm1, %v8644_v1 }
 0xbab   :  { %7484 = vmatpush3.bf16.msra.mxu0 %v1849_v46 }
 0xc61   :  { %v7479_v48 = vpop.f32.mrf.mxu1 }
 0xc62   :  { %v1797_v54 = vmul.f32 0.35355338, %v7479_v48 }
 0xc63   :  { %v1780_v49 = vpop.f32.mrf.mxu1 }
 0xc64   :  { %v1795_v56 = vmul.f32 0.35355338, %v1780_v49  ;;  %v1801_v3 = vsel %vm8702_vm10, %v1797_v54, -1e+30 }
 0xc65   :  { %v7480_v57 = vpop.f32.mrf.mxu1  ;;  %v1809_v22 = vsel %vm9702_vm13, %v1801_v3, -inf }
 0xc66   :  { %v1799_v58 = vsel %vm9703_vm9, %v1795_v56, -1e+30  ;;  %v1798_v0 = vmul.f32 0.35355338, %v7480_v57 }
 0xc67   :  { %v1783_v62 = vpop.f32.mrf.mxu1  ;;  %v1803_v63 = vsel %vm9702_vm13, %v1799_v58, -inf }
 0xc68   :  { %v1796_v2 = vmul.f32 0.35355338, %v1783_v62  ;;  %1804 = vmax.xlane.f32.xlu0 %v1803_v63  ;;  %v1802_v27 = vsel %vm8727_vm5, %v1798_v0, -1e+30 }
 0xc69   :  { %v7503_v5 = vpop.f32.mrf.mxu1  ;;  %v1812_v32 = vsel %vm9701_vm6, %v1802_v27, -inf }
 0xc6a   :  { %v1800_v12 = vsel %vm8719_vm15, %v1796_v2, -1e+30  ;;  %v2051_v29 = vadd.f32 %v7503_v5, %v6713_v13 }
 0xc6b   :  { %v2042_v16 = vpop.f32.mrf.mxu1  ;;  %v1806_v26 = vsel %vm9702_vm13, %v1800_v12, -inf }
 0xc6c   :  { %1810 = vmax.xlane.f32.xlu0 %v1809_v22  ;;  %1807 = vmax.xlane.f32.xlu1 %v1806_v26  ;;  %v2043_v34 = vadd.f32 %v6713_v13, %v2042_v16 }
 0xc6d   :  { %v7504_v61 = vpop.f32.mrf.mxu1 }
 0xc6e   :  { %v2054_v30 = vadd.f32 %v7504_v61, %v6713_v13 }
 0xc6f   :  { %v2045_v31 = vpop.f32.mrf.mxu1 }
 0xc70   :  { %v2134_v35 = vpack.c.bf16 %v2054_v30, %v2051_v29  ;;  %v2046_v36 = vadd.f32 %v6713_v13, %v2045_v31  ;;  %1813 = vmax.xlane.f32.xlu1 %v1812_v32  ;;  %v8014_v13 = vld [vmem:[%s8618_s11 + $0x38] sm:$0xff]  }
 0xc71   :  { %7489 = vmatprep.subr.bf16.mxu0 %v8014_v13 }
 0xc72   :  { %v2133_v37 = vpack.c.bf16 %v2046_v36, %v2043_v34  ;;  %7874 = vmatprep.subr.msk.bf16.mxu1 %vm928_vm3, %v2134_v35  ;;  %v2145_v39 = vsel %vm928_vm3, %v2134_v35, 0 }
 0xc73   :  { %7514 = vmatpush3.bf16.xpose.msra.mxu1 %v2145_v39 }
 0xc74   :  { %7875 = vmatprep.subr.msk.bf16.mxu1 %vm928_vm3, %v2133_v37  ;;  %v2142_v40 = vsel %vm928_vm3, %v2133_v37, 0 }
 0xc7b   :  { %7516 = vmatpush3.bf16.xpose.msra.mxu1 %v2142_v40  ;;  %v8015_v40 = vld [vmem:[%s8618_s11 + $0x30] sm:$0xff]  }
 0xcf1   :  { %v1805_v41 = vpop.xlane.xlu0 %1804 }
 0xcf2   :  { %v1815_v42 = vsub.f32 %v1799_v58, %v1805_v41  ;;  %v8016_v41 = vld [vmem:[%s8631_s20 + $0x38] sm:$0xff]  }
 0xcf4   :  { %v1819_v43 = vmul.f32 1.442695, %v1815_v42  ;;  %v8017_v42 = vld [vmem:[%s8631_s20 + $0x30] sm:$0xff]  }
 0xcf5   :  { %v1811_v44 = vpop.xlane.xlu0 %1810  ;;  %v1808_v45 = vpop.xlane.xlu1 %1807 }
 0xcf6   :  { %8160 = vpow2.f32 %v1819_v43  ;;  %v1817_v46 = vsub.f32 %v1801_v3, %v1811_v44  ;;  %v1816_v47 = vsub.f32 %v1800_v12, %v1808_v45 }
 0xcf8   :  { %v1823_v48 = vmul.f32 1.442695, %v1817_v46  ;;  %v1821_v49 = vmul.f32 1.442695, %v1816_v47 }
 0xcf9   :  { %v1814_v54 = vpop.xlane.xlu1 %1813 }
 0xcfa   :  { %8162 = vpow2.f32 %v1823_v48  ;;  %v1818_v56 = vsub.f32 %v1802_v27, %v1814_v54 }
 0xcfb   :  { %8164 = vpow2.f32 %v1821_v49 }
 0xcfc   :  { %v1825_v57 = vmul.f32 1.442695, %v1818_v56  ;;  %v6703_v56 = vld [vmem:[%s8662_s26 + $0x3] ss:$0 sm:$0xff] }
 0xcfe   :  { %8166 = vpow2.f32 %v1825_v57 }
 0xd03   :  { %v8161_v62 = vpop.eup %8160 }
 0xd04   :  { %v1827_v63 = vsel %vm9702_vm13, %v8161_v62, 0.0 }
 0xd05   :  { %1828 = vadd.xlane.f32.xlu0 %v1827_v63 }
 0xd07   :  { %v8163_v58 = vpop.eup %8162 }
 0xd08   :  { %v8165_v0 = vpop.eup %8164  ;;  %v1833_v2 = vsel %vm9702_vm13, %v8163_v58, 0.0 }
 0xd09   :  { %1834 = vadd.xlane.f32.xlu0 %v1833_v2  ;;  %v1830_v3 = vsel %vm9702_vm13, %v8165_v0, 0.0 }
 0xd0a   :  { %1831 = vadd.xlane.f32.xlu1 %v1830_v3 }
 0xd0b   :  { %v8167_v5 = vpop.eup %8166 }
 0xd0c   :  { %v1836_v12 = vsel %vm9701_vm6, %v8167_v5, 0.0 }
 0xd0e   :  { %1837 = vadd.xlane.f32.xlu1 %v1836_v12 }
 0xd8e   :  { %v1829_v16 = vpop.xlane.xlu0 %1828 }
 0xd8f   :  { %8168 = vrcp.f32 %v1829_v16 }
 0xd92   :  { %v1835_v22 = vpop.xlane.xlu0 %1834 }
 0xd93   :  { %v1832_v26 = vpop.xlane.xlu1 %1831 }
 0xd94   :  { %8170 = vrcp.f32 %v1832_v26 }
 0xd95   :  { %8172 = vrcp.f32 %v1835_v22 }
 0xd97   :  { %v1838_v27 = vpop.xlane.xlu1 %1837 }
 0xd98   :  { %8174 = vrcp.f32 %v1838_v27 }
 0xd9c   :  { %v8169_v61 = vpop.eup %8168 }
 0xd9d   :  { %v1843_v30 = vmul.f32 %v8169_v61, %v8161_v62 }
 0xda1   :  { %v8171_v29 = vpop.eup %8170 }
 0xda2   :  { %v1844_v31 = vmul.f32 %v8171_v29, %v8165_v0  ;;  %v8173_v32 = vpop.eup %8172 }
 0xda3   :  { %v1845_v36 = vmul.f32 %v8173_v32, %v8163_v58 }
 0xda4   :  { %v1847_v34 = vpack.c.bf16 %v1844_v31, %v1843_v30 }
 0xda5   :  { %v8175_v35 = vpop.eup %8174 }
 0xda6   :  { %7485 = vmatprep.mubr.msk.bf16.mxu0 %vm9702_vm13, %v1847_v34  ;;  %v1846_v37 = vmul.f32 %v8175_v35, %v8167_v5  ;;  %v6723_v5 = vld [vmem:[%s8674_s8 + $0x3] ss:$0 sm:$0xff] }
 0xda8   :  { %v1848_v39 = vpack.c.bf16 %v1846_v37, %v1845_v36 }
 0xdaa   :  { %7486 = vmatmul.mubr.msk.bf16.vlgmr.msra.gmra.mxu0 %vm9702_vm13, %v1848_v39 }
 0xdab   :  { %7490 = vmatpush3.bf16.msra.mxu0 %v8014_v13  ;;  %7493 = vmatprep.mubr.msk.bf16.mxu0 %vm323_vm1, %v8640_v28 }
 0xdac   :  { %7491 = vmatprep.subr.bf16.mxu0 %v8015_v40 }
 0xdaf   :  { %7492 = vmatpush3.bf16.msra.mxu0 %v8015_v40 }
 0xdb0   :  { %7505 = vmatprep.subr.bf16.mxu0 %v8016_v41 }
 0xdb2   :  { %7494 = vmatmul.mubr.msk.bf16.vlgmr.msra.gmra.mxu0 %vm323_vm1, %v8644_v1 }
 0xdb3   :  { %7506 = vmatpush3.bf16.msra.mxu0 %v8016_v41  ;;  %7509 = vmatprep.mubr.msk.bf16.mxu0 %vm323_vm1, %v8640_v28 }
 0xdb4   :  { %7507 = vmatprep.subr.bf16.mxu0 %v8017_v42 }
 0xdb7   :  { %7508 = vmatpush3.bf16.msra.mxu0 %v8017_v42 }
 0xdba   :  { %7510 = vmatmul.mubr.msk.bf16.vlgmr.msra.gmra.mxu0 %vm323_vm1, %v8644_v1 }
 0xe6a   :  { %v8873_v43 = vpop.f32.mrf.mxu0 }
 0xe6c   :  { %v8875_v44 = vpop.f32.mrf.mxu0 }
 0xe6e   :  { %v8877_v45 = vpop.f32.mrf.mxu0 }
 0xe6f   :  { %v7938_v46 = vpack.i.bf16 %v8877_v45, %v8873_v43 }
 0xe70   :  { %v8881_v47 = vpop.f32.mrf.mxu0 }
 0xe71   :  { %v7933_v28 = vpack.i.bf16 %v8881_v47, %v8875_v44 }
 0xe72   :  { %v7495_v48 = vpop.f32.mrf.mxu0 }
 0xe73   :  { %v1977_v58 = vadd.f32 %v7495_v48, %v6703_v56 }
 0xe74   :  { %v1968_v49 = vpop.f32.mrf.mxu0 }
 0xe75   :  { %v1969_v62 = vadd.f32 %v6703_v56, %v1968_v49 }
 0xe76   :  { %v7496_v54 = vpop.f32.mrf.mxu0 }
 0xe77   :  { %v1980_v1 = vadd.f32 %v7496_v54, %v6703_v56 }
 0xe78   :  { %v1971_v57 = vpop.f32.mrf.mxu0 }
 0xe79   :  { %v1972_v63 = vadd.f32 %v6703_v56, %v1971_v57  ;;  %v2132_v3 = vpack.c.bf16 %v1980_v1, %v1977_v58 }
 0xe7a   :  { %v7511_v0 = vpop.f32.mrf.mxu0 }
 0xe7b   :  { %v2131_v2 = vpack.c.bf16 %v1972_v63, %v1969_v62  ;;  %v2125_v16 = vadd.f32 %v7511_v0, %v6723_v5 }
 0xe7c   :  { %v2116_v12 = vpop.f32.mrf.mxu0 }
 0xe7d   :  { %7517 = vmatprep.mubr.msk.bf16.mxu1 %vm928_vm3, %v2131_v2  ;;  %v2117_v27 = vadd.f32 %v6723_v5, %v2116_v12 }
 0xe7e   :  { %v7512_v13 = vpop.f32.mrf.mxu0  ;;  %7518 = vmatmul.mubr.msk.bf16.vlgmr.msra.gmra.mxu1 %vm928_vm3, %v2132_v3 }
 0xe7f   :  { %v2128_v22 = vadd.f32 %v7512_v13, %v6723_v5 }
 0xe80   :  { %v2119_v26 = vpop.f32.mrf.mxu0 }
 0xe81   :  { %v2251_v61 = vpack.c.bf16 %v2128_v22, %v2125_v16  ;;  %v2120_v29 = vadd.f32 %v6723_v5, %v2119_v26 }
 0xe83   :  { %v2250_v30 = vpack.c.bf16 %v2120_v29, %v2117_v27  ;;  %7876 = vmatprep.subr.msk.bf16.mxu0 %vm1054_vm4, %v2251_v61  ;;  %v2259_v31 = vsel %vm1054_vm4, %v2251_v61, 0 }
 0xe84   :  { %7522 = vmatpush3.bf16.msra.mxu0 %v2259_v31 }
 0xe85   :  { %7523 = vmatprep.subr.bf16.mxu0 %v2250_v30 }
 0xe88   :  { %7524 = vmatpush3.bf16.msra.mxu0 %v2250_v30 }
 0xf3e   :  { %v7519_v32 = vpop.f32.mrf.mxu1 }
 0xf3f   :  { %v2198_v35 = vmul.f32 0.35355338, %v7519_v32 }
 0xf40   :  { %v2181_v34 = vpop.f32.mrf.mxu1 }
 0xf41   :  { %v2196_v36 = vmul.f32 0.35355338, %v2181_v34  ;;  %v2202_v49 = vsel %vm8702_vm10, %v2198_v35, -1e+30 }
 0xf42   :  { %v7520_v37 = vpop.f32.mrf.mxu1  ;;  %v2210_v56 = vsel %vm9702_vm13, %v2202_v49, -inf }
 0xf43   :  { %v2200_v39 = vsel %vm9703_vm9, %v2196_v36, -1e+30  ;;  %v2199_v42 = vmul.f32 0.35355338, %v7520_v37  ;;  %v7923_v37 = vpack.i.bf16 %v8825_v10, %v8819_v7 }
 0xf44   :  { %v2184_v40 = vpop.f32.mrf.mxu1  ;;  %v2204_v41 = vsel %vm9702_vm13, %v2200_v39, -inf }
 0xf45   :  { %v2197_v48 = vmul.f32 0.35355338, %v2184_v40  ;;  %2205 = vmax.xlane.f32.xlu0 %v2204_v41  ;;  %v2203_v57 = vsel %vm8727_vm5, %v2199_v42, -1e+30 }
 0xf46   :  { %v2213_v62 = vsel %vm9701_vm6, %v2203_v57, -inf }
 0xf47   :  { %v2201_v54 = vsel %vm8719_vm15, %v2197_v48, -1e+30  ;;  %v8019_v48 = vld [vmem:[%s8933_s22] sm:$0xff]  }
 0xf48   :  { %v2207_v1 = vsel %vm9702_vm13, %v2201_v54, -inf }
 0xf49   :  { %2211 = vmax.xlane.f32.xlu0 %v2210_v56  ;;  %2208 = vmax.xlane.f32.xlu1 %v2207_v1 }
 0xf4d   :  { %2214 = vmax.xlane.f32.xlu1 %v2213_v62 }
 0xfce   :  { %v2206_v63 = vpop.xlane.xlu0 %2205 }
 0xfcf   :  { %v2216_v58 = vsub.f32 %v2200_v39, %v2206_v63 }
 0xfd1   :  { %v2220_v0 = vmul.f32 1.442695, %v2216_v58 }
 0xfd2   :  { %v2212_v2 = vpop.xlane.xlu0 %2211  ;;  %v2209_v3 = vpop.xlane.xlu1 %2208 }
 0xfd3   :  { %8176 = vpow2.f32 %v2220_v0  ;;  %v2218_v5 = vsub.f32 %v2202_v49, %v2212_v2  ;;  %v2217_v12 = vsub.f32 %v2201_v54, %v2209_v3 }
 0xfd5   :  { %v2224_v13 = vmul.f32 1.442695, %v2218_v5  ;;  %v2222_v16 = vmul.f32 1.442695, %v2217_v12 }
 0xfd6   :  { %v2215_v22 = vpop.xlane.xlu1 %2214 }
 0xfd7   :  { %8178 = vpow2.f32 %v2224_v13  ;;  %v2219_v26 = vsub.f32 %v2203_v57, %v2215_v22 }
 0xfd8   :  { %8180 = vpow2.f32 %v2222_v16 }
 0xfd9   :  { %v2226_v27 = vmul.f32 1.442695, %v2219_v26 }
 0xfdb   :  { %8182 = vpow2.f32 %v2226_v27 }
 0xfe0   :  { %v8177_v61 = vpop.eup %8176 }
 0xfe1   :  { %v2228_v29 = vsel %vm9702_vm13, %v8177_v61, 0.0 }
 0xfe2   :  { %2229 = vadd.xlane.f32.xlu0 %v2228_v29 }
 0xfe4   :  { %v8179_v30 = vpop.eup %8178 }
 0xfe5   :  { %v8181_v31 = vpop.eup %8180  ;;  %v2234_v32 = vsel %vm9702_vm13, %v8179_v30, 0.0 }
 0xfe6   :  { %2235 = vadd.xlane.f32.xlu0 %v2234_v32  ;;  %v2231_v34 = vsel %vm9702_vm13, %v8181_v31, 0.0 }
 0xfe7   :  { %2232 = vadd.xlane.f32.xlu1 %v2231_v34 }
 0xfe8   :  { %v8183_v35 = vpop.eup %8182 }
 0xfe9   :  { %v2237_v36 = vsel %vm9701_vm6, %v8183_v35, 0.0  ;;  %vm9710_vm6 = vcmp.le.s32.totalorder %v8707_v55, 28 }
 0xfeb   :  { %2238 = vadd.xlane.f32.xlu1 %v2237_v36 }
 0xffc   :  { %7929 = vrot.lane.b32.xlu1 %v7928_v9, %s9708_s4  ;;  %7924 = vrot.lane.b32.xlu0 %v7923_v37, %s9708_s4 }
0x1000   :  { %7934 = vrot.lane.b32.xlu1 %v7933_v28, %s9706_s9 }
0x1004   :  { %7939 = vrot.lane.b32.xlu1 %v7938_v46, %s9706_s9  ;;  %v8018_v46 = vld [vmem:[%s8933_s22 + $0x8] sm:$0xff]  }
0x1005   :  { %7529 = vmatprep.subr.bf16.mxu0 %v8018_v46 }
0x106b   :  { %v2230_v39 = vpop.xlane.xlu0 %2229 }
0x106c   :  { %8184 = vrcp.f32 %v2230_v39 }
0x106f   :  { %v2236_v7 = vpop.xlane.xlu0 %2235 }
0x1070   :  { %v2233_v10 = vpop.xlane.xlu1 %2232 }
0x1071   :  { %8186 = vrcp.f32 %v2233_v10 }
0x1072   :  { %8188 = vrcp.f32 %v2236_v7 }
0x1073   :  { %v7925_v0 = vpop.permute.xlu0 %7924 }
0x1074   :  { %v2239_v6 = vpop.xlane.xlu1 %2238  ;;  %v7927_v3 = vunpack.i.h.bf16 %v7925_v0  ;;  %v7926_v5 = vunpack.i.l.bf16 %v7925_v0 }
0x1075   :  { %8190 = vrcp.f32 %v2239_v6 }
0x1076   :  { %v2358_v32 = vsel %vm928_vm3, %v8764_v51, %v7926_v5 }
0x1078   :  { %v7930_v63 = vpop.permute.xlu1 %7929 }
0x1079   :  { %v8185_v8 = vpop.eup %8184  ;;  %v7932_v12 = vunpack.i.h.bf16 %v7930_v63  ;;  %v7931_v13 = vunpack.i.l.bf16 %v7930_v63 }
0x107a   :  { %v2244_v40 = vmul.f32 %v8185_v8, %v8177_v61 }
0x107b   :  { %v2361_v34 = vsel %vm928_vm3, %v8766_v52, %v7932_v12 }
0x107c   :  { %v7935_v58 = vpop.permute.xlu1 %7934 }
0x107d   :  { %v7937_v26 = vunpack.i.h.bf16 %v7935_v58  ;;  %v7936_v27 = vunpack.i.l.bf16 %v7935_v58 }
0x107e   :  { %v8187_v9 = vpop.eup %8186 }
0x107f   :  { %v2245_v41 = vmul.f32 %v8187_v9, %v8181_v31  ;;  %v8189_v42 = vpop.eup %8188  ;;  %v2359_v31 = vsel %vm928_vm3, %v8768_v53, %v7927_v3  ;;  %v2362_v53 = vsel %vm9700_vm0, %v2358_v32, %v7936_v27 }
0x1080   :  { %v2246_v28 = vmul.f32 %v8189_v42, %v8179_v30  ;;  %v7940_v2 = vpop.permute.xlu1 %7939  ;;  %v2363_v6 = vsel %vm9700_vm0, %v2359_v31, %v7937_v26  ;;  %v6732_v42 = vld [vmem:[%s8961_s27] ss:$0 sm:$0xff] }
0x1081   :  { %v2248_v44 = vpack.c.bf16 %v2245_v41, %v2244_v40  ;;  %v7942_v16 = vunpack.i.h.bf16 %v7940_v2  ;;  %v7941_v22 = vunpack.i.l.bf16 %v7940_v2 }
0x1082   :  { %v8191_v47 = vpop.eup %8190 }
0x1083   :  { %7525 = vmatprep.mubr.msk.bf16.mxu0 %vm9702_vm13, %v2248_v44  ;;  %v2247_v43 = vmul.f32 %v8191_v47, %v8183_v35  ;;  %v2360_v35 = vsel %vm928_vm3, %v8762_v50, %v7931_v13  ;;  %v2365_v39 = vsel %vm9700_vm0, %v2361_v34, %v7942_v16 }
0x1084   :  { %v2364_v37 = vsel %vm9700_vm0, %v2360_v35, %v7941_v22  ;;  %v8020_v35 = vld [vmem:[%s8995_s5 + $0x8] sm:$0xff]   ;;  %vm9711_vm0 = vcmp.le.s32.totalorder %v8707_v55, 29 }
0x1085   :  { %v2249_v45 = vpack.c.bf16 %v2247_v43, %v2246_v28 }
0x1087   :  { %7526 = vmatmul.mubr.msk.bf16.vlgmr.msra.gmra.mxu0 %vm9702_vm13, %v2249_v45  ;;  %vm2764_vm13 = vcmask 1044480  }
0x1088   :  { %7530 = vmatpush3.bf16.msra.mxu0 %v8018_v46 }
0x1089   :  { %7531 = vmatprep.subr.bf16.mxu0 %v8019_v48 }
0x108c   :  { %7532 = vmatpush3.bf16.msra.mxu0 %v8019_v48 }
0x108d   :  { %7545 = vmatprep.subr.bf16.mxu0 %v8020_v35 }
0x1147   :  { %v7527_v49 = vpop.f32.mrf.mxu0 }
0x1149   :  { %v2295_v54 = vpop.f32.mrf.mxu0 }
0x114b   :  { %v7528_v56 = vpop.f32.mrf.mxu0 }
0x114c   :  { %v7948_v1 = vpack.i.bf16 %v7528_v56, %v7527_v49 }
0x114d   :  { %v2298_v57 = vpop.f32.mrf.mxu0 }
0x114e   :  { %v7943_v62 = vpack.i.bf16 %v2298_v57, %v2295_v54  ;;  %7949 = vrot.lane.b32.xlu1 %v7948_v1, %s9704_s10 }
0x1150   :  { %7944 = vrot.lane.b32.xlu0 %v7943_v62, %s9704_s10  ;;  %s9144_s10 = sld [smem:[%s9698_s0 + %s8478_s18]]   ;;  %s8479_s18 = smov 27  }
0x1151   :  { %s9157_s9 = sld [smem:[%s9698_s0 + %s8479_s18]]   ;;  %s8480_s18 = smov 29  }
0x1152   :  { %s9163_s4 = sld [smem:[%s9698_s0 + %s8480_s18]]  }
0x11c0   :  { %v7950_v61 = vpop.permute.xlu1 %7949 }
0x11c1   :  { %v7952_v29 = vunpack.i.h.bf16 %v7950_v61  ;;  %v7951_v30 = vunpack.i.l.bf16 %v7950_v61 }
0x11c2   :  { %v7945_v36 = vpop.permute.xlu0 %7944 }
0x11c3   :  { %v7947_v7 = vunpack.i.h.bf16 %v7945_v36  ;;  %v7946_v10 = vunpack.i.l.bf16 %v7945_v36  ;;  %v2369_v8 = vsel %vm9699_vm7, %v2364_v37, %v7951_v30  ;;  %v2370_v51 = vsel %vm9699_vm7, %v2365_v39, %v7952_v29  ;;  %v8021_v36 = vld [vmem:[%s9000_s16 + $0x8] sm:$0xff]   ;;  %v8022_v37 = vld [vmem:[%s8995_s5] sm:$0xff]  }
0x11c4   :  { %v2377_v40 = vpack.c.bf16 %v2370_v51, %v2369_v8  ;;  %7537 = vmatprep.subr.bf16.mxu1 %v8021_v36  ;;  %v8023_v39 = vld [vmem:[%s9000_s16] sm:$0xff]  }
0x11c5   :  { %v2367_v52 = vsel %vm9699_vm7, %v2362_v53, %v7946_v10  ;;  %v2368_v9 = vsel %vm9699_vm7, %v2363_v6, %v7947_v7  ;;  %7538 = vmatpush3.bf16.msra.mxu1 %v8021_v36  ;;  %vm221_vm7 = vcmp.le.s32.totalorder %v8695_v20, 13 }
0x11c6   :  { %v2376_v50 = vpack.c.bf16 %v2368_v9, %v2367_v52  ;;  %7539 = vmatprep.subr.bf16.mxu1 %v8023_v39  ;;  %vm9068_vm9 = vmor %vm221_vm7, %vm170_vm8  ;;  %vm9721_vm8 = vcmp.lt.s32.totalorder %v8692_v19, 15  ;;  %vm9722_vm7 = vcmask 244736  }
0x11c8   :  { %7533 = vmatprep.mubr.msk.bf16.mxu0 %vm323_vm1, %v2376_v50 }
0x11c9   :  { %7534 = vmatmul.mubr.msk.bf16.vlgmr.msra.gmra.mxu0 %vm323_vm1, %v2377_v40  ;;  %7540 = vmatpush3.bf16.msra.mxu1 %v8023_v39 }
0x11ca   :  { %7546 = vmatpush3.bf16.msra.mxu0 %v8020_v35 }
0x11cb   :  { %7547 = vmatprep.subr.bf16.mxu0 %v8022_v37 }
0x11ce   :  { %7548 = vmatpush3.bf16.msra.mxu0 %v8022_v37 }
0x1289   :  { %v7535_v41 = vpop.f32.mrf.mxu0 }
0x128a   :  { %v2445_v47 = vadd.f32 %v7535_v41, %v6732_v42 }
0x128b   :  { %v2436_v44 = vpop.f32.mrf.mxu0 }
0x128c   :  { %v2437_v28 = vadd.f32 %v6732_v42, %v2436_v44  ;;  %v8968_v48 = vadd.f32 %v2445_v47, %v8591_v17  ;;  %v9007_v44 = vsub.s32 2, %v8539_v59 }
0x128d   :  { %v7536_v43 = vpop.f32.mrf.mxu0 }
0x128e   :  { %v8965_v45 = vadd.f32 %v2437_v28, %v8588_v15  ;;  %v2448_v49 = vadd.f32 %v7536_v43, %v6732_v42  ;;  %v2461_v62 = vsel %vm323_vm1, %v8968_v48, 0.0  ;;  %v9010_v43 = vld [vmem:[%s8536_s21] sm:$0x1f] }
0x128f   :  { %v2439_v46 = vpop.f32.mrf.mxu0 }
0x1290   :  { %v2440_v54 = vadd.f32 %v6732_v42, %v2439_v46  ;;  %v2455_v56 = vsel %vm323_vm1, %v8965_v45, 0.0  ;;  %v8976_v57 = vadd.f32 %v2448_v49, %v8599_v24  ;;  %v2510_v46 = vrot.slane %v9010_v43, %v9007_v44 }
0x1291   :  { %2456 = vadd.xlane.f32.xlu0 %v2455_v56 }
0x1292   :  { %v8973_v1 = vadd.f32 %v2440_v54, %v8596_v23  ;;  %v2464_v17 = vsel %vm333_vm2, %v8976_v57, 0.0 }
0x1294   :  { %v2458_v15 = vsel %vm323_vm1, %v8973_v1, 0.0 }
0x1295   :  { %2459 = vadd.xlane.f32.xlu1 %v2458_v15  ;;  %2462 = vadd.xlane.f32.xlu0 %v2461_v62  ;;  %v9015_v62 = vld [vmem:[%s8544_s25] sm:$0x1f] }
0x1299   :  { %2465 = vadd.xlane.f32.xlu0 %v2464_v17  ;;  %v2518_v17 = vrot.slane %v9015_v62, %v9007_v44 }
0x131a   :  { %v2457_v63 = vpop.xlane.xlu0 %2456 }
0x131b   :  { %v2467_v58 = vmul.f32 0.03125, %v2457_v63 }
0x131d   :  { %v2471_v23 = vsub.f32 %v8965_v45, %v2467_v58 }
0x131e   :  { %v2460_v0 = vpop.xlane.xlu1 %2459  ;;  %v2463_v2 = vpop.xlane.xlu0 %2462 }
0x131f   :  { %v2468_v24 = vmul.f32 0.03125, %v2460_v0  ;;  %v2469_v3 = vmul.f32 0.03125, %v2463_v2  ;;  %v2475_v5 = vmul.f32 %v2471_v23, %v2471_v23 }
0x1321   :  { %v2472_v12 = vsub.f32 %v8973_v1, %v2468_v24  ;;  %v2473_v13 = vsub.f32 %v8968_v48, %v2469_v3  ;;  %v2479_v16 = vsel %vm323_vm1, %v2475_v5, 0.0 }
0x1322   :  { %2480 = vadd.xlane.f32.xlu0 %v2479_v16  ;;  %v2466_v22 = vpop.xlane.xlu0 %2465 }
0x1323   :  { %v2470_v26 = vmul.f32 0.03125, %v2466_v22  ;;  %v2476_v27 = vmul.f32 %v2472_v12, %v2472_v12  ;;  %v2477_v61 = vmul.f32 %v2473_v13, %v2473_v13 }
0x1325   :  { %v2474_v29 = vsub.f32 %v8976_v57, %v2470_v26  ;;  %v2482_v30 = vsel %vm323_vm1, %v2476_v27, 0.0  ;;  %v2485_v31 = vsel %vm323_vm1, %v2477_v61, 0.0  ;;  %v8025_v27 = vld [vmem:[%s8928_s14] sm:$0xff]  }
0x1326   :  { %2483 = vadd.xlane.f32.xlu1 %v2482_v30  ;;  %2486 = vadd.xlane.f32.xlu0 %v2485_v31  ;;  %v6742_v61 = vld [vmem:[%s9028_s24] ss:$0 sm:$0xff] }
0x1327   :  { %v2478_v32 = vmul.f32 %v2474_v29, %v2474_v29 }
0x1329   :  { %v2488_v34 = vsel %vm333_vm2, %v2478_v32, 0.0 }
0x132a   :  { %2489 = vadd.xlane.f32.xlu1 %v2488_v34 }
0x13ab   :  { %v2481_v7 = vpop.xlane.xlu0 %2480 }
0x13ac   :  { %v2491_v10 = vmul.f32 0.03125, %v2481_v7 }
0x13ae   :  { %v2495_v6 = vadd.f32 1e-05, %v2491_v10 }
0x13af   :  { %v2484_v53 = vpop.xlane.xlu1 %2483  ;;  %v2487_v8 = vpop.xlane.xlu0 %2486 }
0x13b0   :  { %8192 = vrsqrt.f32 %v2495_v6  ;;  %v2492_v51 = vmul.f32 0.03125, %v2484_v53  ;;  %v2493_v52 = vmul.f32 0.03125, %v2487_v8 }
0x13b2   :  { %v2496_v9 = vadd.f32 1e-05, %v2492_v51  ;;  %v2497_v50 = vadd.f32 1e-05, %v2493_v52 }
0x13b3   :  { %v2490_v40 = vpop.xlane.xlu1 %2489 }
0x13b4   :  { %8194 = vrsqrt.f32 %v2496_v9  ;;  %v2494_v41 = vmul.f32 0.03125, %v2490_v40 }
0x13b5   :  { %8196 = vrsqrt.f32 %v2497_v50 }
0x13b6   :  { %v2498_v42 = vadd.f32 1e-05, %v2494_v41 }
0x13b8   :  { %8198 = vrsqrt.f32 %v2498_v42 }
0x13bd   :  { %v8193_v47 = vpop.eup %8192 }
0x13be   :  { %v2503_v28 = vmul.f32 %v8193_v47, %v2471_v23 }
0x13c0   :  { %v2511_v15 = vmul.f32 %v2510_v46, %v2503_v28 }
0x13c1   :  { %v8195_v49 = vpop.eup %8194 }
0x13c2   :  { %v8197_v54 = vpop.eup %8196  ;;  %v2504_v56 = vmul.f32 %v8195_v49, %v2472_v12  ;;  %v2519_v2 = vadd.f32 %v2518_v17, %v2511_v15  ;;  %v2703_v49 = vld [vmem:[%s9039_s19] sm:$0x7] }
0x13c3   :  { %v2505_v63 = vmul.f32 %v8197_v54, %v2473_v13  ;;  %v8024_v13 = vld [vmem:[%s8928_s14 + $0x8] sm:$0xff]  }
0x13c4   :  { %v2512_v58 = vmul.f32 %v2510_v46, %v2504_v56  ;;  %7553 = vmatprep.subr.bf16.mxu1 %v8024_v13 }
0x13c5   :  { %v8199_v0 = vpop.eup %8198  ;;  %v2513_v3 = vmul.f32 %v2510_v46, %v2505_v63 }
0x13c6   :  { %v2506_v23 = vmul.f32 %v8199_v0, %v2474_v29  ;;  %v2520_v24 = vadd.f32 %v2518_v17, %v2512_v58 }
0x13c7   :  { %v2521_v12 = vadd.f32 %v2518_v17, %v2513_v3  ;;  %v2736_v3 = vrot.slane %v2703_v49, %v8547_v60 }
0x13c8   :  { %v2528_v5 = vpack.c.bf16 %v2520_v24, %v2519_v2  ;;  %v2514_v16 = vmul.f32 %v2510_v46, %v2506_v23  ;;  %v6737_v46 = vld [vmem:[%s9034_s6] ss:$0 sm:$0xff]  ;;  %v2744_v23 = vrot.slane %v2703_v49, %v8634_v4 }
0x13ca   :  { %7541 = vmatprep.mubr.msk.bf16.mxu1 %vm323_vm1, %v2528_v5  ;;  %7549 = vmatprep.mubr.msk.bf16.mxu0 %vm323_vm1, %v2528_v5  ;;  %v2522_v22 = vadd.f32 %v2518_v17, %v2514_v16 }
0x13cc   :  { %v2529_v26 = vpack.c.bf16 %v2522_v22, %v2521_v12 }
0x13ce   :  { %7542 = vmatmul.mubr.msk.bf16.vlgmr.msra.gmra.mxu1 %vm323_vm1, %v2529_v26  ;;  %7550 = vmatmul.mubr.msk.bf16.vlgmr.msra.gmra.mxu0 %vm323_vm1, %v2529_v26  ;;  %v2781_v26 = vrot.slane %v2703_v49, %v9007_v44  ;;  %v6751_v49 = vld [vmem:[%s9050_s2] ss:$0 sm:$0xff] }
0x13cf   :  { %7554 = vmatpush3.bf16.msra.mxu1 %v8024_v13 }
0x13d0   :  { %7555 = vmatprep.subr.bf16.mxu1 %v8025_v27 }
0x13d3   :  { %7556 = vmatpush3.bf16.msra.mxu1 %v8025_v27 }
0x148e   :  { %v7551_v29 = vpop.f32.mrf.mxu0  ;;  %v7543_v41 = vpop.f32.mrf.mxu1 }
0x148f   :  { %v2669_v30 = vadd.f32 %v7551_v29, %v6742_v61  ;;  %v2597_v17 = vadd.f32 %v7543_v41, %v6737_v46 }
0x1490   :  { %v2660_v31 = vpop.f32.mrf.mxu0  ;;  %v2588_v47 = vpop.f32.mrf.mxu1 }
0x1491   :  { %v6749_v32 = vmul.f32 -1.442695, %v2669_v30  ;;  %v2661_v34 = vadd.f32 %v6742_v61, %v2660_v31  ;;  %v2589_v56 = vadd.f32 %v6737_v46, %v2588_v47 }
0x1492   :  { %v7552_v35 = vpop.f32.mrf.mxu0  ;;  %v7544_v28 = vpop.f32.mrf.mxu1 }
0x1493   :  { %8200 = vpow2.f32 %v6749_v32  ;;  %v6747_v36 = vmul.f32 -1.442695, %v2661_v34  ;;  %v2672_v37 = vadd.f32 %v7552_v35, %v6742_v61  ;;  %v2600_v0 = vadd.f32 %v7544_v28, %v6737_v46 }
0x1494   :  { %v2663_v39 = vpop.f32.mrf.mxu0  ;;  %v2591_v63 = vpop.f32.mrf.mxu1 }
0x1495   :  { %8202 = vpow2.f32 %v6747_v36  ;;  %v6750_v7 = vmul.f32 -1.442695, %v2672_v37  ;;  %v2664_v10 = vadd.f32 %v6742_v61, %v2663_v39  ;;  %v2592_v16 = vadd.f32 %v6737_v46, %v2591_v63  ;;  %v6996_v36 = vld [vmem:[%s9059_s23 + $0x1] ss:$0 sm:$0xff] }
0x1497   :  { %8204 = vpow2.f32 %v6750_v7  ;;  %v6748_v6 = vmul.f32 -1.442695, %v2664_v10 }
0x1499   :  { %8206 = vpow2.f32 %v6748_v6 }
0x14a0   :  { %v8201_v53 = vpop.eup %8200 }
0x14a1   :  { %v2689_v8 = vadd.f32 1.0, %v8201_v53 }
0x14a2   :  { %v8203_v51 = vpop.eup %8202 }
0x14a3   :  { %v2687_v52 = vadd.f32 1.0, %v8203_v51  ;;  %8208 = vrcp.f32 %v2689_v8 }
0x14a4   :  { %v8205_v9 = vpop.eup %8204 }
0x14a5   :  { %8210 = vrcp.f32 %v2687_v52  ;;  %v2690_v50 = vadd.f32 1.0, %v8205_v9 }
0x14a6   :  { %v8207_v40 = vpop.eup %8206 }
0x14a7   :  { %8212 = vrcp.f32 %v2690_v50  ;;  %v2688_v42 = vadd.f32 1.0, %v8207_v40 }
0x14a9   :  { %8214 = vrcp.f32 %v2688_v42 }
0x14b0   :  { %v8209_v54 = vpop.eup %8208 }
0x14b1   :  { %v2701_v24 = vmul.f32 %v8209_v54, %v2597_v17 }
0x14b2   :  { %v8211_v15 = vpop.eup %8210 }
0x14b3   :  { %v2699_v58 = vmul.f32 %v8211_v15, %v2589_v56  ;;  %v2712_v30 = vrot.slane %v2701_v24, 7  ;;  %v2756_v34 = vrot.slane %v2701_v24, 1  ;;  %v2747_v6 = vmul.f32 %v2744_v23, %v2701_v24  ;;  %v6752_v24 = vld [vmem:[%s9059_s23] ss:$0 sm:$0xff] }
0x14b4   :  { %v8213_v2 = vpop.eup %8212 }
0x14b5   :  { %v2702_v5 = vmul.f32 %v8213_v2, %v2600_v0  ;;  %v2709_v12 = vrot.slane %v2699_v58, 7  ;;  %v2745_v32 = vmul.f32 %v2744_v23, %v2699_v58  ;;  %v2753_v39 = vrot.slane %v2699_v58, 1 }
0x14b6   :  { %v8215_v22 = vpop.eup %8214 }
0x14b7   :  { %v2714_v13 = vrot.slane %v2702_v5, 7  ;;  %v2758_v27 = vrot.slane %v2702_v5, 1  ;;  %v2700_v61 = vmul.f32 %v8215_v22, %v2592_v16  ;;  %v2720_v29 = vsel %vm2708_vm11, 0.0, %v2709_v12 }
0x14b8   :  { %v2729_v31 = vsel %vm192_vm12, %v2720_v29, 0.0  ;;  %v2748_v63 = vmul.f32 %v2744_v23, %v2702_v5 }
0x14b9   :  { %v2710_v35 = vrot.slane %v2700_v61, 7  ;;  %v2737_v37 = vmul.f32 %v2736_v3, %v2729_v31  ;;  %v2754_v7 = vrot.slane %v2700_v61, 1  ;;  %v2715_v10 = vsel %vm2708_vm11, %v2712_v30, %v2714_v13 }
0x14ba   :  { %v2759_v53 = vsel %vm1054_vm4, %v2756_v34, %v2758_v27  ;;  %v2765_v8 = vsel %vm2764_vm13, %v2758_v27, 0.0  ;;  %v2746_v46 = vmul.f32 %v2744_v23, %v2700_v61  ;;  %v2732_v54 = vsel %vm9711_vm0, %v2715_v10, 0.0 }
0x14bb   :  { %v2711_v51 = vsel %vm2708_vm11, %v2709_v12, %v2710_v35  ;;  %v2749_v52 = vadd.f32 %v2745_v32, %v2737_v37  ;;  %v2755_v9 = vsel %vm1054_vm4, %v2753_v39, %v2754_v7  ;;  %v2757_v50 = vsel %vm1054_vm4, %v2754_v7, %v2756_v34 }
0x14bc   :  { %v2730_v40 = vsel %vm9712_vm14, %v2711_v51, 0.0  ;;  %v2775_v41 = vsel %vm9068_vm9, %v2757_v50, 0.0  ;;  %v2782_v42 = vmul.f32 %v2781_v26, %v2755_v9  ;;  %v2713_v47 = vsel %vm2708_vm11, %v2710_v35, %v2712_v30 }
0x14bd   :  { %v2738_v28 = vmul.f32 %v2736_v3, %v2730_v40  ;;  %v2739_v56 = vmul.f32 %v2736_v3, %v2713_v47  ;;  %v2740_v17 = vmul.f32 %v2736_v3, %v2732_v54  ;;  %v2777_v58 = vsel %vm9710_vm6, %v2765_v8, 0.0  ;;  %vm9723_vm6 = vmmov %vm9722_vm7 }
0x14be   :  { %v2786_v15 = vadd.f32 %v2782_v42, %v2749_v52  ;;  %v2783_v2 = vmul.f32 %v2781_v26, %v2775_v41  ;;  %v2784_v12 = vmul.f32 %v2781_v26, %v2759_v53  ;;  %v2785_v27 = vmul.f32 %v2781_v26, %v2777_v58  ;;  %vm9724_vm0 = vmmov %vm9723_vm6 }
0x14bf   :  { %v2750_v0 = vadd.f32 %v2746_v46, %v2738_v28  ;;  %v2751_v16 = vadd.f32 %v2747_v6, %v2739_v56  ;;  %v2752_v13 = vadd.f32 %v2748_v63, %v2740_v17  ;;  %v6757_v63 = vld [vmem:[%s9094_s13] ss:$0 sm:$0xff] }
0x14c0   :  { %v2797_v22 = vmul.f32 %v6751_v49, %v2786_v15 }
0x14c1   :  { %v2787_v61 = vadd.f32 %v2783_v2, %v2750_v0  ;;  %v2788_v29 = vadd.f32 %v2784_v12, %v2751_v16  ;;  %v2789_v31 = vadd.f32 %v2785_v27, %v2752_v13 }
0x14c2   :  { %v2808_v30 = vadd.f32 %v6752_v24, %v2797_v22 }
0x14c3   :  { %v2798_v32 = vmul.f32 %v6751_v49, %v2787_v61  ;;  %v2799_v34 = vmul.f32 %v6751_v49, %v2788_v29  ;;  %v2800_v3 = vmul.f32 %v6751_v49, %v2789_v31 }
0x14c4   :  { %v6753_v35 = vmul.f32 -1.442695, %v2808_v30 }
0x14c5   :  { %v2809_v23 = vadd.f32 %v6752_v24, %v2798_v32  ;;  %v2810_v5 = vadd.f32 %v6752_v24, %v2799_v34  ;;  %v2811_v37 = vadd.f32 %v6752_v24, %v2800_v3 }
0x14c6   :  { %8216 = vpow2.f32 %v6753_v35 }
0x14c7   :  { %v6754_v39 = vmul.f32 -1.442695, %v2809_v23  ;;  %v6755_v7 = vmul.f32 -1.442695, %v2810_v5  ;;  %v6756_v10 = vmul.f32 -1.442695, %v2811_v37 }
0x14c9   :  { %8218 = vpow2.f32 %v6754_v39 }
0x14ca   :  { %8220 = vpow2.f32 %v6755_v7 }
0x14cb   :  { %8222 = vpow2.f32 %v6756_v10 }
0x14d3   :  { %v8217_v6 = vpop.eup %8216 }
0x14d4   :  { %v2824_v26 = vadd.f32 1.0, %v8217_v6 }
0x14d6   :  { %v8219_v53 = vpop.eup %8218  ;;  %8224 = vrcp.f32 %v2824_v26 }
0x14d7   :  { %v8221_v8 = vpop.eup %8220  ;;  %v2825_v51 = vadd.f32 1.0, %v8219_v53 }
0x14d8   :  { %v8223_v52 = vpop.eup %8222  ;;  %v2826_v9 = vadd.f32 1.0, %v8221_v8 }
0x14d9   :  { %8226 = vrcp.f32 %v2825_v51  ;;  %v2827_v50 = vadd.f32 1.0, %v8223_v52 }
0x14da   :  { %8228 = vrcp.f32 %v2826_v9 }
0x14db   :  { %8230 = vrcp.f32 %v2827_v50 }
0x14e3   :  { %v8225_v40 = vpop.eup %8224 }
0x14e4   :  { %v2836_v47 = vmul.f32 %v8225_v40, %v2808_v30  ;;  %v8026_v40 = vld [vmem:[%s9128_s12 + $0x8] sm:$0xff]  }
0x14e5   :  { %7561 = vmatprep.subr.bf16.mxu0 %v8026_v40 }
0x14e6   :  { %v8227_v41 = vpop.eup %8226  ;;  %7562 = vmatpush3.bf16.msra.mxu0 %v8026_v40  ;;  %v6762_v40 = vld [vmem:[%s9157_s9] ss:$0 sm:$0xff] }
0x14e7   :  { %v8229_v42 = vpop.eup %8228  ;;  %v2837_v28 = vmul.f32 %v8227_v41, %v2809_v23  ;;  %v8027_v41 = vld [vmem:[%s9128_s12] sm:$0xff]  }
0x14e8   :  { %v8231_v46 = vpop.eup %8230  ;;  %v2838_v49 = vmul.f32 %v8229_v42, %v2810_v5  ;;  %7563 = vmatprep.subr.bf16.mxu0 %v8027_v41 }
0x14e9   :  { %v2845_v54 = vpack.c.bf16 %v2837_v28, %v2836_v47  ;;  %v2839_v56 = vmul.f32 %v8231_v46, %v2811_v37 }
0x14ea   :  { %7564 = vmatpush3.bf16.msra.mxu0 %v8027_v41 }
0x14eb   :  { %7557 = vmatprep.mubr.msk.bf16.mxu1 %vm323_vm1, %v2845_v54  ;;  %v2846_v15 = vpack.c.bf16 %v2839_v56, %v2838_v49 }
0x14ed   :  { %7558 = vmatmul.mubr.msk.bf16.vlgmr.msra.gmra.mxu1 %vm323_vm1, %v2846_v15 }
0x15ad   :  { %v7559_v17 = vpop.f32.mrf.mxu1 }
0x15ae   :  { %v2914_v0 = vadd.f32 %v7559_v17, %v6757_v63 }
0x15af   :  { %v2905_v58 = vpop.f32.mrf.mxu1 }
0x15b0   :  { %v2906_v2 = vadd.f32 %v6757_v63, %v2905_v58  ;;  %v9101_v22 = vadd.f32 %v2914_v0, %v8968_v48 }
0x15b1   :  { %v7560_v24 = vpop.f32.mrf.mxu1 }
0x15b2   :  { %v9098_v16 = vadd.f32 %v2906_v2, %v8965_v45  ;;  %v2917_v13 = vadd.f32 %v7560_v24, %v6757_v63  ;;  %v2930_v31 = vsel %vm323_vm1, %v9101_v22, 0.0  ;;  %v9133_v2 = vsub.s32 3, %v8539_v59 }
0x15b3   :  { %v2908_v12 = vpop.f32.mrf.mxu1 }
0x15b4   :  { %v2909_v27 = vadd.f32 %v6757_v63, %v2908_v12  ;;  %v2924_v61 = vsel %vm323_vm1, %v9098_v16, 0.0  ;;  %v9109_v30 = vadd.f32 %v2917_v13, %v8976_v57  ;;  %v2979_v13 = vrot.slane %v9010_v43, %v9133_v2 }
0x15b5   :  { %2925 = vadd.xlane.f32.xlu0 %v2924_v61 }
0x15b6   :  { %v9106_v29 = vadd.f32 %v2909_v27, %v8973_v1  ;;  %v2933_v48 = vsel %vm333_vm2, %v9109_v30, 0.0 }
0x15b8   :  { %v2927_v45 = vsel %vm323_vm1, %v9106_v29, 0.0 }
0x15b9   :  { %2928 = vadd.xlane.f32.xlu1 %v2927_v45  ;;  %2931 = vadd.xlane.f32.xlu0 %v2930_v31 }
0x15bd   :  { %2934 = vadd.xlane.f32.xlu1 %v2933_v48  ;;  %v2987_v48 = vrot.slane %v9015_v62, %v9133_v2 }
0x163e   :  { %v2926_v32 = vpop.xlane.xlu0 %2925 }
0x163f   :  { %v2936_v34 = vmul.f32 0.03125, %v2926_v32 }
0x1641   :  { %v2940_v1 = vsub.f32 %v9098_v16, %v2936_v34 }
0x1642   :  { %v2929_v35 = vpop.xlane.xlu1 %2928  ;;  %v2932_v3 = vpop.xlane.xlu0 %2931 }
0x1643   :  { %v2937_v57 = vmul.f32 0.03125, %v2929_v35  ;;  %v2938_v23 = vmul.f32 0.03125, %v2932_v3  ;;  %v2944_v5 = vmul.f32 %v2940_v1, %v2940_v1 }
0x1645   :  { %v2941_v37 = vsub.f32 %v9106_v29, %v2937_v57  ;;  %v2942_v39 = vsub.f32 %v9101_v22, %v2938_v23  ;;  %v2948_v7 = vsel %vm323_vm1, %v2944_v5, 0.0 }
0x1646   :  { %v2935_v10 = vpop.xlane.xlu1 %2934  ;;  %2949 = vadd.xlane.f32.xlu0 %v2948_v7 }
0x1647   :  { %v2939_v6 = vmul.f32 0.03125, %v2935_v10  ;;  %v2945_v26 = vmul.f32 %v2941_v37, %v2941_v37  ;;  %v2946_v53 = vmul.f32 %v2942_v39, %v2942_v39 }
0x1649   :  { %v2943_v8 = vsub.f32 %v9109_v30, %v2939_v6  ;;  %v2951_v51 = vsel %vm323_vm1, %v2945_v26, 0.0  ;;  %v2954_v52 = vsel %vm323_vm1, %v2946_v53, 0.0  ;;  %v8030_v53 = vld [vmem:[%s9144_s10 + $0x28] sm:$0xff]  }
0x164a   :  { %2952 = vadd.xlane.f32.xlu1 %v2951_v51  ;;  %2955 = vadd.xlane.f32.xlu0 %v2954_v52  ;;  %v8032_v51 = vld [vmem:[%s9144_s10 + $0x18] sm:$0xff]   ;;  %v8033_v52 = vld [vmem:[%s9144_s10 + $0x10] sm:$0xff]  }
0x164b   :  { %v2947_v9 = vmul.f32 %v2943_v8, %v2943_v8 }
0x164d   :  { %v2957_v50 = vsel %vm333_vm2, %v2947_v9, 0.0  ;;  %v8034_v9 = vld [vmem:[%s9144_s10 + $0x8] sm:$0xff]  }
0x164e   :  { %2958 = vadd.xlane.f32.xlu1 %v2957_v50  ;;  %v8035_v50 = vld [vmem:[%s9144_s10] sm:$0xff]  }
0x16cf   :  { %v2950_v42 = vpop.xlane.xlu0 %2949 }
0x16d0   :  { %v2960_v47 = vmul.f32 0.03125, %v2950_v42 }
0x16d2   :  { %v2964_v28 = vadd.f32 1e-05, %v2960_v47 }
0x16d3   :  { %v2953_v46 = vpop.xlane.xlu1 %2952  ;;  %v2956_v49 = vpop.xlane.xlu0 %2955 }
0x16d4   :  { %8232 = vrsqrt.f32 %v2964_v28  ;;  %v2961_v54 = vmul.f32 0.03125, %v2953_v46  ;;  %v2962_v56 = vmul.f32 0.03125, %v2956_v49 }
0x16d6   :  { %v2965_v15 = vadd.f32 1e-05, %v2961_v54  ;;  %v2966_v17 = vadd.f32 1e-05, %v2962_v56 }
0x16d7   :  { %v2959_v63 = vpop.xlane.xlu1 %2958 }
0x16d8   :  { %8234 = vrsqrt.f32 %v2965_v15  ;;  %v2963_v58 = vmul.f32 0.03125, %v2959_v63 }
0x16d9   :  { %8236 = vrsqrt.f32 %v2966_v17 }
0x16da   :  { %v2967_v0 = vadd.f32 1e-05, %v2963_v58 }
0x16dc   :  { %8238 = vrsqrt.f32 %v2967_v0 }
0x16e1   :  { %v8233_v24 = vpop.eup %8232 }
0x16e2   :  { %v2972_v12 = vmul.f32 %v8233_v24, %v2940_v1 }
0x16e4   :  { %v2980_v31 = vmul.f32 %v2979_v13, %v2972_v12 }
0x16e5   :  { %v8235_v27 = vpop.eup %8234 }
0x16e6   :  { %v8237_v61 = vpop.eup %8236  ;;  %v2973_v45 = vmul.f32 %v8235_v27, %v2941_v37  ;;  %v2988_v57 = vadd.f32 %v2987_v48, %v2980_v31  ;;  %v8028_v37 = vld [vmem:[%s9144_s10 + $0x38] sm:$0xff]  }
0x16e7   :  { %v2974_v32 = vmul.f32 %v8237_v61, %v2942_v39  ;;  %7569 = vmatprep.subr.bf16.mxu1 %v8028_v37  ;;  %v8029_v39 = vld [vmem:[%s9144_s10 + $0x30] sm:$0xff]  }
0x16e8   :  { %v2981_v34 = vmul.f32 %v2979_v13, %v2973_v45  ;;  %7570 = vmatpush3.bf16.msra.mxu1 %v8028_v37 }
0x16e9   :  { %v8239_v35 = vpop.eup %8238  ;;  %v2982_v5 = vmul.f32 %v2979_v13, %v2974_v32  ;;  %7571 = vmatprep.subr.bf16.mxu1 %v8029_v39 }
0x16ea   :  { %v2975_v3 = vmul.f32 %v8239_v35, %v2943_v8  ;;  %v2989_v23 = vadd.f32 %v2987_v48, %v2981_v34  ;;  %v8031_v8 = vld [vmem:[%s9144_s10 + $0x20] sm:$0xff]  }
0x16eb   :  { %v2990_v1 = vadd.f32 %v2987_v48, %v2982_v5 }
0x16ec   :  { %v2997_v7 = vpack.c.bf16 %v2989_v23, %v2988_v57  ;;  %v2983_v10 = vmul.f32 %v2979_v13, %v2975_v3  ;;  %7572 = vmatpush3.bf16.msra.mxu1 %v8029_v39 }
0x16ed   :  { %7573 = vmatprep.subr.bf16.mxu1 %v8030_v53 }
0x16ee   :  { %7565 = vmatprep.mubr.msk.bf16.mxu0 %vm323_vm1, %v2997_v7  ;;  %v2991_v6 = vadd.f32 %v2987_v48, %v2983_v10 }
0x16f0   :  { %v2998_v26 = vpack.c.bf16 %v2991_v6, %v2990_v1  ;;  %7574 = vmatpush3.bf16.msra.mxu1 %v8030_v53  ;;  %v6771_v1 = vld [vmem:[%s9163_s4] ss:$0 sm:$0xff] }
0x16f1   :  { %7575 = vmatprep.subr.bf16.mxu1 %v8031_v8 }
0x16f2   :  { %7566 = vmatmul.mubr.msk.bf16.vlgmr.msra.gmra.mxu0 %vm323_vm1, %v2998_v26 }
0x16f4   :  { %7576 = vmatpush3.bf16.msra.mxu1 %v8031_v8 }
0x16f5   :  { %7577 = vmatprep.subr.bf16.mxu1 %v8032_v51 }
0x16f8   :  { %7578 = vmatpush3.bf16.msra.mxu1 %v8032_v51 }
0x16f9   :  { %7579 = vmatprep.subr.bf16.mxu1 %v8033_v52 }
0x16fc   :  { %7580 = vmatpush3.bf16.msra.mxu1 %v8033_v52 }
0x16fd   :  { %7581 = vmatprep.subr.bf16.mxu1 %v8034_v9 }
0x1700   :  { %7582 = vmatpush3.bf16.msra.mxu1 %v8034_v9 }
0x1701   :  { %7583 = vmatprep.subr.bf16.mxu1 %v8035_v50 }
0x1704   :  { %7584 = vmatpush3.bf16.msra.mxu1 %v8035_v50 }
0x17b2   :  { %v7567_v41 = vpop.f32.mrf.mxu0 }
0x17b3   :  { %v3066_v42 = vadd.f32 %v7567_v41, %v6762_v40 }
0x17b4   :  { %v3057_v47 = vpop.f32.mrf.mxu0 }
0x17b5   :  { %v6769_v28 = vmul.f32 -1.442695, %v3066_v42  ;;  %v3058_v46 = vadd.f32 %v6762_v40, %v3057_v47 }
0x17b6   :  { %v7568_v49 = vpop.f32.mrf.mxu0 }
0x17b7   :  { %v6767_v54 = vmul.f32 -1.442695, %v3058_v46  ;;  %v3069_v56 = vadd.f32 %v7568_v49, %v6762_v40  ;;  %8240 = vpow2.f32 %v6769_v28 }
0x17b8   :  { %v3060_v15 = vpop.f32.mrf.mxu0 }
0x17b9   :  { %8242 = vpow2.f32 %v6767_v54  ;;  %v6770_v17 = vmul.f32 -1.442695, %v3069_v56  ;;  %v3061_v63 = vadd.f32 %v6762_v40, %v3060_v15 }
0x17bb   :  { %8244 = vpow2.f32 %v6770_v17  ;;  %v6768_v58 = vmul.f32 -1.442695, %v3061_v63 }
0x17bd   :  { %8246 = vpow2.f32 %v6768_v58 }
0x17c4   :  { %v8241_v0 = vpop.eup %8240 }
0x17c5   :  { %v3086_v27 = vadd.f32 1.0, %v8241_v0 }
0x17c6   :  { %v8243_v24 = vpop.eup %8242 }
0x17c7   :  { %v3084_v12 = vadd.f32 1.0, %v8243_v24 }
0x17c8   :  { %v8245_v13 = vpop.eup %8244 }
0x17c9   :  { %v3087_v61 = vadd.f32 1.0, %v8245_v13  ;;  %8248 = vrcp.f32 %v3084_v12 }
0x17ca   :  { %v8247_v45 = vpop.eup %8246 }
0x17cb   :  { %8250 = vrcp.f32 %v3087_v61  ;;  %v3085_v31 = vadd.f32 1.0, %v8247_v45 }
0x17cc   :  { %8252 = vrcp.f32 %v3086_v27 }
0x17cd   :  { %8254 = vrcp.f32 %v3085_v31 }
0x17d6   :  { %v8249_v48 = vpop.eup %8248 }
0x17d7   :  { %v3096_v57 = vmul.f32 %v8249_v48, %v3058_v46 }
0x17d8   :  { %v8251_v32 = vpop.eup %8250 }
0x17d9   :  { %v8253_v34 = vpop.eup %8252  ;;  %v3099_v3 = vmul.f32 %v8251_v32, %v3069_v56 }
0x17da   :  { %v8255_v35 = vpop.eup %8254  ;;  %v3098_v5 = vmul.f32 %v8253_v34, %v3066_v42 }
0x17db   :  { %v3097_v23 = vmul.f32 %v8255_v35, %v3061_v63 }
0x17dc   :  { %v3118_v10 = vpack.c.bf16 %v3099_v3, %v3098_v5 }
0x17dd   :  { %v3117_v7 = vpack.c.bf16 %v3097_v23, %v3096_v57 }
0x17df   :  { %7585 = vmatprep.mubr.bf16.mxu1 %v3117_v7 }
0x17e0   :  { %7586 = vmatmul.mubr.bf16.vlgmr.msra.gmra.mxu1 %v3118_v10 }
0x18a0   :  { %v7587_v6 = vpop.f32.mrf.mxu1 }
0x18a1   :  { %v3216_v26 = vadd.f32 %v7587_v6, %v6771_v1 }
0x18a2   :  { %v3207_v37 = vpop.f32.mrf.mxu1 }
0x18a3   :  { %v3208_v39 = vadd.f32 %v6771_v1, %v3207_v37  ;;  %v3224_v8 = vmul.f32 0.5, %v3216_v26 }
0x18a4   :  { %v7588_v53 = vpop.f32.mrf.mxu1 }
0x18a5   :  { %v3222_v51 = vmul.f32 0.5, %v3208_v39  ;;  %v3219_v52 = vadd.f32 %v7588_v53, %v6771_v1  ;;  %v3228_v28 = vadd.f32 %v3224_v8, %v9101_v22 }
0x18a6   :  { %v3210_v9 = vpop.f32.mrf.mxu1 }
0x18a7   :  { %v3211_v50 = vadd.f32 %v6771_v1, %v3210_v9  ;;  %v3226_v40 = vadd.f32 %v3222_v51, %v9098_v16  ;;  %v3225_v41 = vmul.f32 0.5, %v3219_v52  ;;  %v3236_v54 = vsel %vm323_vm1, %v3228_v28, 0.0 }
0x18a8   :  { %v9179_v51 = vsub.s32 4, %v8539_v59 }
0x18a9   :  { %v3223_v42 = vmul.f32 0.5, %v3211_v50  ;;  %v3230_v47 = vsel %vm323_vm1, %v3226_v40, 0.0  ;;  %v3229_v56 = vadd.f32 %v3225_v41, %v9109_v30 }
0x18aa   :  { %3231 = vadd.xlane.f32.xlu0 %v3230_v47  ;;  %v3285_v52 = vrot.slane %v9010_v43, %v9179_v51 }
0x18ab   :  { %v3227_v46 = vadd.f32 %v3223_v42, %v9106_v29  ;;  %v3239_v15 = vsel %vm333_vm2, %v3229_v56, 0.0 }
0x18ad   :  { %v3233_v49 = vsel %vm323_vm1, %v3227_v46, 0.0 }
0x18ae   :  { %3234 = vadd.xlane.f32.xlu1 %v3233_v49  ;;  %3237 = vadd.xlane.f32.xlu0 %v3236_v54 }
0x18b2   :  { %3240 = vadd.xlane.f32.xlu1 %v3239_v15 }
0x1933   :  { %v3232_v16 = vpop.xlane.xlu0 %3231 }
0x1934   :  { %v3242_v17 = vmul.f32 0.03125, %v3232_v16 }
0x1936   :  { %v3246_v63 = vsub.f32 %v3226_v40, %v3242_v17  ;;  %v3293_v40 = vrot.slane %v9015_v62, %v9179_v51 }
0x1937   :  { %v3235_v58 = vpop.xlane.xlu1 %3234  ;;  %v3238_v0 = vpop.xlane.xlu0 %3237 }
0x1938   :  { %v3243_v22 = vmul.f32 0.03125, %v3235_v58  ;;  %v3244_v24 = vmul.f32 0.03125, %v3238_v0  ;;  %v3250_v12 = vmul.f32 %v3246_v63, %v3246_v63 }
0x193a   :  { %v3247_v29 = vsub.f32 %v3227_v46, %v3243_v22  ;;  %v3248_v13 = vsub.f32 %v3228_v28, %v3244_v24  ;;  %v3254_v27 = vsel %vm323_vm1, %v3250_v12, 0.0 }
0x193b   :  { %v3241_v61 = vpop.xlane.xlu1 %3240  ;;  %3255 = vadd.xlane.f32.xlu0 %v3254_v27 }
0x193c   :  { %v3245_v30 = vmul.f32 0.03125, %v3241_v61  ;;  %v3251_v45 = vmul.f32 %v3247_v29, %v3247_v29  ;;  %v3252_v31 = vmul.f32 %v3248_v13, %v3248_v13 }
0x193e   :  { %v3249_v48 = vsub.f32 %v3229_v56, %v3245_v30  ;;  %v3257_v32 = vsel %vm323_vm1, %v3251_v45, 0.0  ;;  %v3260_v34 = vsel %vm323_vm1, %v3252_v31, 0.0 }
0x193f   :  { %3258 = vadd.xlane.f32.xlu1 %v3257_v32  ;;  %3261 = vadd.xlane.f32.xlu0 %v3260_v34 }
0x1940   :  { %v3253_v35 = vmul.f32 %v3249_v48, %v3249_v48 }
0x1942   :  { %v3263_v3 = vsel %vm333_vm2, %v3253_v35, 0.0 }
0x1943   :  { %3264 = vadd.xlane.f32.xlu1 %v3263_v3 }
0x19c4   :  { %v3256_v57 = vpop.xlane.xlu0 %3255 }
0x19c5   :  { %v3266_v23 = vmul.f32 0.03125, %v3256_v57 }
0x19c7   :  { %v3270_v5 = vadd.f32 1e-05, %v3266_v23 }
0x19c8   :  { %v3259_v7 = vpop.xlane.xlu1 %3258  ;;  %v3262_v10 = vpop.xlane.xlu0 %3261 }
0x19c9   :  { %8256 = vrsqrt.f32 %v3270_v5  ;;  %v3267_v1 = vmul.f32 0.03125, %v3259_v7  ;;  %v3268_v6 = vmul.f32 0.03125, %v3262_v10 }
0x19cb   :  { %v3271_v26 = vadd.f32 1e-05, %v3267_v1  ;;  %v3272_v37 = vadd.f32 1e-05, %v3268_v6 }
0x19cc   :  { %v3265_v39 = vpop.xlane.xlu1 %3264 }
0x19cd   :  { %8258 = vrsqrt.f32 %v3271_v26  ;;  %v3269_v53 = vmul.f32 0.03125, %v3265_v39  ;;  %v8036_v26 = vld [vmem:[%s8529_s17 + $0x18] sm:$0xff]  }
0x19ce   :  { %8260 = vrsqrt.f32 %v3272_v37  ;;  %v8037_v37 = vld [vmem:[%s8529_s17 + $0x10] sm:$0xff]   ;;  %7589 = vmatprep.subr.bf16.mxu0 %v8036_v26  ;;  %s9753_s17 = smov 8  }
0x19cf   :  { %v3273_v8 = vadd.f32 1e-05, %v3269_v53  ;;  %7590 = vmatpush3.bf16.msra.mxu0 %v8036_v26  ;;  %v8045_v26 = vld [vmem:[%s8564_s29 + $0x40] sm:$0xff]  }
0x19d0   :  { %7591 = vmatprep.subr.bf16.mxu0 %v8037_v37 }
0x19d1   :  { %8262 = vrsqrt.f32 %v3273_v8 }
0x19d3   :  { %7592 = vmatpush3.bf16.msra.mxu0 %v8037_v37  ;;  %v6787_v37 = vld [vmem:[%s8577_s3 + $0x1] ss:$0 sm:$0xff]  ;;  %s9757_s3 = smov 24  }
0x19d6   :  { %v8257_v9 = vpop.eup %8256 }
0x19d7   :  { %v3278_v50 = vmul.f32 %v8257_v9, %v3246_v63 }
0x19d9   :  { %v3286_v41 = vmul.f32 %v3285_v52, %v3278_v50 }
0x19da   :  { %v8259_v42 = vpop.eup %8258 }
0x19db   :  { %v8261_v47 = vpop.eup %8260  ;;  %v9185_v28 = vadd.f32 %v3293_v40, %v3286_v41  ;;  %v3279_v46 = vmul.f32 %v8259_v42, %v3247_v29 }
0x19dc   :  { %v3280_v49 = vmul.f32 %v8261_v47, %v3248_v13 }
0x19dd   :  { %v3302_v54 = vsel %vm323_vm1, %v9185_v28, 0.0  ;;  %v3287_v56 = vmul.f32 %v3285_v52, %v3279_v46 }
0x19de   :  { %v8263_v15 = vpop.eup %8262  ;;  %3303 = vadd.xlane.f32.xlu0 %v3302_v54  ;;  %v3288_v16 = vmul.f32 %v3285_v52, %v3280_v49  ;;  %v9212_v54 = vld [vmem:[%s8536_s21 + $0x8] sm:$0x1f] }
0x19df   :  { %v9189_v43 = vadd.f32 %v3293_v40, %v3287_v56  ;;  %v3281_v17 = vmul.f32 %v8263_v15, %v3249_v48 }
0x19e0   :  { %v9191_v63 = vadd.f32 %v3293_v40, %v3288_v16  ;;  %v3357_v16 = vrot.slane %v9212_v54, %v8547_v60 }
0x19e1   :  { %v3305_v62 = vsel %vm323_vm1, %v9189_v43, 0.0  ;;  %v3289_v58 = vmul.f32 %v3285_v52, %v3281_v17  ;;  %v9217_v17 = vld [vmem:[%s8544_s25 + $0x8] sm:$0x1f] }
0x19e2   :  { %3306 = vadd.xlane.f32.xlu1 %v3305_v62  ;;  %v3308_v0 = vsel %vm323_vm1, %v9191_v63, 0.0 }
0x19e3   :  { %3309 = vadd.xlane.f32.xlu0 %v3308_v0  ;;  %v9197_v22 = vadd.f32 %v3293_v40, %v3289_v58 }
0x19e5   :  { %v3311_v24 = vsel %vm333_vm2, %v9197_v22, 0.0 }
0x19e6   :  { %3312 = vadd.xlane.f32.xlu1 %v3311_v24 }
0x1a67   :  { %v3304_v12 = vpop.xlane.xlu0 %3303 }
0x1a68   :  { %v3314_v29 = vmul.f32 0.03125, %v3304_v12  ;;  %v3365_v12 = vrot.slane %v9217_v17, %v8547_v60 }
0x1a6a   :  { %v3318_v13 = vsub.f32 %v9185_v28, %v3314_v29 }
0x1a6b   :  { %v3307_v27 = vpop.xlane.xlu1 %3306 }
0x1a6c   :  { %v3315_v61 = vmul.f32 0.03125, %v3307_v27  ;;  %v3310_v30 = vpop.xlane.xlu0 %3309  ;;  %v3322_v45 = vmul.f32 %v3318_v13, %v3318_v13 }
0x1a6d   :  { %v3316_v31 = vmul.f32 0.03125, %v3310_v30 }
0x1a6e   :  { %v3319_v48 = vsub.f32 %v9189_v43, %v3315_v61  ;;  %v3326_v32 = vsel %vm323_vm1, %v3322_v45, 0.0 }
0x1a6f   :  { %v3320_v34 = vsub.f32 %v9191_v63, %v3316_v31  ;;  %v3313_v35 = vpop.xlane.xlu1 %3312  ;;  %3327 = vadd.xlane.f32.xlu0 %v3326_v32 }
0x1a70   :  { %v3317_v3 = vmul.f32 0.03125, %v3313_v35  ;;  %v3323_v57 = vmul.f32 %v3319_v48, %v3319_v48 }
0x1a71   :  { %v3324_v23 = vmul.f32 %v3320_v34, %v3320_v34 }
0x1a72   :  { %v3321_v5 = vsub.f32 %v9197_v22, %v3317_v3  ;;  %v3329_v7 = vsel %vm323_vm1, %v3323_v57, 0.0 }
0x1a73   :  { %3330 = vadd.xlane.f32.xlu1 %v3329_v7  ;;  %v3332_v10 = vsel %vm323_vm1, %v3324_v23, 0.0  ;;  %v8039_v23 = vld [vmem:[%s8564_s29 + $0x70] sm:$0xff]   ;;  %v8041_v7 = vld [vmem:[%s8564_s29 + $0x60] sm:$0xff]  }
0x1a74   :  { %3333 = vadd.xlane.f32.xlu0 %v3332_v10  ;;  %v3325_v1 = vmul.f32 %v3321_v5, %v3321_v5  ;;  %v8042_v10 = vld [vmem:[%s8564_s29 + $0x58] sm:$0xff]  }
0x1a76   :  { %v3335_v6 = vsel %vm333_vm2, %v3325_v1, 0.0  ;;  %v8043_v1 = vld [vmem:[%s8564_s29 + $0x50] sm:$0xff]  }
0x1a77   :  { %3336 = vadd.xlane.f32.xlu1 %v3335_v6  ;;  %v8044_v6 = vld [vmem:[%s8564_s29 + $0x48] sm:$0xff]  }
0x1af8   :  { %v3328_v39 = vpop.xlane.xlu0 %3327 }
0x1af9   :  { %v3338_v53 = vmul.f32 0.03125, %v3328_v39 }
0x1afb   :  { %v3342_v8 = vadd.f32 1e-05, %v3338_v53 }
0x1afc   :  { %v3331_v52 = vpop.xlane.xlu1 %3330 }
0x1afd   :  { %8264 = vrsqrt.f32 %v3342_v8  ;;  %v3339_v9 = vmul.f32 0.03125, %v3331_v52  ;;  %v3334_v50 = vpop.xlane.xlu0 %3333 }
0x1afe   :  { %v3340_v40 = vmul.f32 0.03125, %v3334_v50 }
0x1aff   :  { %v3343_v41 = vadd.f32 1e-05, %v3339_v9 }
0x1b00   :  { %v3344_v42 = vadd.f32 1e-05, %v3340_v40  ;;  %v3337_v47 = vpop.xlane.xlu1 %3336 }
0x1b01   :  { %8266 = vrsqrt.f32 %v3343_v41  ;;  %v3341_v46 = vmul.f32 0.03125, %v3337_v47 }
0x1b02   :  { %8268 = vrsqrt.f32 %v3344_v42 }
0x1b03   :  { %v3345_v49 = vadd.f32 1e-05, %v3341_v46 }
0x1b05   :  { %8270 = vrsqrt.f32 %v3345_v49 }
0x1b0a   :  { %v8265_v56 = vpop.eup %8264 }
0x1b0b   :  { %v3350_v15 = vmul.f32 %v8265_v56, %v3318_v13 }
0x1b0d   :  { %v3358_v24 = vmul.f32 %v3357_v16, %v3350_v15 }
0x1b0e   :  { %v8267_v62 = vpop.eup %8266 }
0x1b0f   :  { %v8269_v58 = vpop.eup %8268  ;;  %v3351_v0 = vmul.f32 %v8267_v62, %v3319_v48  ;;  %v3366_v45 = vadd.f32 %v3365_v12, %v3358_v24 }
0x1b10   :  { %v3352_v29 = vmul.f32 %v8269_v58, %v3320_v34  ;;  %v8038_v34 = vld [vmem:[%s8564_s29 + $0x78] sm:$0xff]  }
0x1b11   :  { %v3359_v27 = vmul.f32 %v3357_v16, %v3351_v0  ;;  %7597 = vmatprep.subr.bf16.mxu0 %v8038_v34 }
0x1b12   :  { %v8271_v61 = vpop.eup %8270  ;;  %v3360_v31 = vmul.f32 %v3357_v16, %v3352_v29 }
0x1b13   :  { %v3353_v30 = vmul.f32 %v8271_v61, %v3321_v5  ;;  %v3367_v13 = vadd.f32 %v3365_v12, %v3359_v27  ;;  %v8040_v5 = vld [vmem:[%s8564_s29 + $0x68] sm:$0xff]   ;;  %s9754_s29 = smov 16  }
0x1b14   :  { %v3368_v48 = vadd.f32 %v3365_v12, %v3360_v31 }
0x1b15   :  { %v3377_v32 = vpack.c.bf16 %v3367_v13, %v3366_v45  ;;  %v3361_v35 = vmul.f32 %v3357_v16, %v3353_v30 }
0x1b17   :  { %7593 = vmatprep.mubr.msk.bf16.mxu0 %vm323_vm1, %v3377_v32  ;;  %v3369_v3 = vadd.f32 %v3365_v12, %v3361_v35 }
0x1b19   :  { %v3378_v57 = vpack.c.bf16 %v3369_v3, %v3368_v48  ;;  %v6813_v3 = vld [vmem:[%s8584_s7 + $0x1] ss:$0 sm:$0xff] }
0x1b1b   :  { %7594 = vmatmul.mubr.msk.bf16.vlgmr.msra.gmra.mxu0 %vm323_vm1, %v3378_v57 }
0x1b1c   :  { %7598 = vmatpush3.bf16.msra.mxu0 %v8038_v34 }
0x1b1d   :  { %7599 = vmatprep.subr.bf16.mxu0 %v8039_v23 }
0x1b20   :  { %7600 = vmatpush3.bf16.msra.mxu0 %v8039_v23 }
0x1b21   :  { %7601 = vmatprep.subr.bf16.mxu0 %v8040_v5 }
0x1b24   :  { %7602 = vmatpush3.bf16.msra.mxu0 %v8040_v5 }
0x1b25   :  { %7603 = vmatprep.subr.bf16.mxu0 %v8041_v7 }
0x1b28   :  { %7604 = vmatpush3.bf16.msra.mxu0 %v8041_v7 }
0x1b29   :  { %7605 = vmatprep.subr.bf16.mxu0 %v8042_v10 }
0x1b2c   :  { %7606 = vmatpush3.bf16.msra.mxu0 %v8042_v10 }
0x1b2d   :  { %7607 = vmatprep.subr.bf16.mxu0 %v8043_v1 }
0x1b30   :  { %7608 = vmatpush3.bf16.msra.mxu0 %v8043_v1 }
0x1b31   :  { %7609 = vmatprep.subr.bf16.mxu0 %v8044_v6 }
0x1b34   :  { %7610 = vmatpush3.bf16.msra.mxu0 %v8044_v6 }
0x1b35   :  { %7611 = vmatprep.subr.bf16.mxu0 %v8045_v26 }
0x1b38   :  { %7612 = vmatpush3.bf16.msra.mxu0 %v8045_v26 }
0x1bdb   :  { %v7595_v39 = vpop.f32.mrf.mxu0 }
0x1bdc   :  { %v3446_v53 = vadd.f32 %v7595_v39, %v6787_v37 }
0x1bdd   :  { %v3437_v8 = vpop.f32.mrf.mxu0 }
0x1bde   :  { %v6794_v52 = vmul.f32 -1.442695, %v3446_v53  ;;  %v3438_v9 = vadd.f32 %v6787_v37, %v3437_v8 }
0x1bdf   :  { %v7596_v50 = vpop.f32.mrf.mxu0 }
0x1be0   :  { %v6792_v40 = vmul.f32 -1.442695, %v3438_v9  ;;  %v3449_v41 = vadd.f32 %v7596_v50, %v6787_v37  ;;  %8272 = vpow2.f32 %v6794_v52 }
0x1be1   :  { %v3440_v42 = vpop.f32.mrf.mxu0 }
0x1be2   :  { %8274 = vpow2.f32 %v6792_v40  ;;  %v6795_v47 = vmul.f32 -1.442695, %v3449_v41  ;;  %v3441_v46 = vadd.f32 %v6787_v37, %v3440_v42 }
0x1be4   :  { %8276 = vpow2.f32 %v6795_v47  ;;  %v6793_v49 = vmul.f32 -1.442695, %v3441_v46 }
0x1be6   :  { %8278 = vpow2.f32 %v6793_v49 }
0x1bed   :  { %v8273_v56 = vpop.eup %8272 }
0x1bee   :  { %v3466_v58 = vadd.f32 1.0, %v8273_v56 }
0x1bef   :  { %v8275_v15 = vpop.eup %8274 }
0x1bf0   :  { %v3464_v16 = vadd.f32 1.0, %v8275_v15 }
0x1bf1   :  { %v8277_v62 = vpop.eup %8276 }
0x1bf2   :  { %v3467_v0 = vadd.f32 1.0, %v8277_v62  ;;  %8280 = vrcp.f32 %v3464_v16 }
0x1bf3   :  { %v8279_v24 = vpop.eup %8278 }
0x1bf4   :  { %8282 = vrcp.f32 %v3467_v0  ;;  %v3465_v12 = vadd.f32 1.0, %v8279_v24 }
0x1bf5   :  { %8284 = vrcp.f32 %v3466_v58 }
0x1bf6   :  { %8286 = vrcp.f32 %v3465_v12 }
0x1bff   :  { %v8281_v29 = vpop.eup %8280 }
0x1c00   :  { %v3476_v13 = vmul.f32 %v8281_v29, %v3438_v9 }
0x1c01   :  { %v8283_v27 = vpop.eup %8282 }
0x1c02   :  { %v8285_v61 = vpop.eup %8284  ;;  %v3479_v45 = vmul.f32 %v8283_v27, %v3449_v41 }
0x1c03   :  { %v8287_v30 = vpop.eup %8286  ;;  %v3478_v32 = vmul.f32 %v8285_v61, %v3446_v53 }
0x1c04   :  { %v3477_v31 = vmul.f32 %v8287_v30, %v3441_v46 }
0x1c05   :  { %v3500_v48 = vpack.c.bf16 %v3479_v45, %v3478_v32  ;;  %v8047_v32 = vld [vmem:[%s8631_s20 + $0x48] sm:$0xff]  }
0x1c06   :  { %v3499_v35 = vpack.c.bf16 %v3477_v31, %v3476_v13  ;;  %v8046_v31 = vld [vmem:[%s8618_s11 + $0x48] sm:$0xff]   ;;  %7633 = vmatprep.subr.bf16.mxu0 %v8047_v32 }
0x1c07   :  { %7617 = vmatprep.subr.bf16.mxu1 %v8046_v31 }
0x1c08   :  { %7613 = vmatprep.mubr.bf16.mxu0 %v3499_v35  ;;  %7618 = vmatpush3.bf16.msra.mxu1 %v8046_v31  ;;  %v8048_v35 = vld [vmem:[%s8618_s11 + $0x40] sm:$0xff]  }
0x1c09   :  { %7614 = vmatmul.mubr.bf16.vlgmr.msra.gmra.mxu0 %v3500_v48  ;;  %v8049_v48 = vld [vmem:[%s8631_s20 + $0x40] sm:$0xff]   ;;  %7619 = vmatprep.subr.bf16.mxu1 %v8048_v35 }
0x1c0a   :  { %7634 = vmatpush3.bf16.msra.mxu0 %v8047_v32 }
0x1c0b   :  { %7635 = vmatprep.subr.bf16.mxu0 %v8049_v48 }
0x1c0c   :  { %7620 = vmatpush3.bf16.msra.mxu1 %v8048_v35  ;;  %v6827_v35 = vld [vmem:[%s8662_s26 + $0x4] ss:$0 sm:$0xff] }
0x1c0e   :  { %7636 = vmatpush3.bf16.msra.mxu0 %v8049_v48 }
0x1cc9   :  { %v7615_v57 = vpop.f32.mrf.mxu0 }
0x1cca   :  { %v3598_v34 = vadd.f32 %v7615_v57, %v6813_v3 }
0x1ccb   :  { %v3589_v23 = vpop.f32.mrf.mxu0 }
0x1ccc   :  { %v3590_v5 = vadd.f32 %v6813_v3, %v3589_v23  ;;  %v3606_v10 = vmul.f32 0.5, %v3598_v34 }
0x1ccd   :  { %v7616_v7 = vpop.f32.mrf.mxu0 }
0x1cce   :  { %v3604_v1 = vmul.f32 0.5, %v3590_v5  ;;  %v3601_v6 = vadd.f32 %v7616_v7, %v6813_v3  ;;  %v9237_v53 = vadd.f32 %v3606_v10, %v9191_v63 }
0x1ccf   :  { %v3592_v26 = vpop.f32.mrf.mxu0 }
0x1cd0   :  { %v9234_v37 = vadd.f32 %v3604_v1, %v9185_v28  ;;  %v3593_v39 = vadd.f32 %v6813_v3, %v3592_v26  ;;  %v3607_v8 = vmul.f32 0.5, %v3601_v6  ;;  %v3618_v41 = vsel %vm323_vm1, %v9237_v53, 0.0  ;;  %v8050_v3 = vld [vmem:[%s8624_s15 + $0x48] sm:$0xff]  }
0x1cd1   :  { %7625 = vmatprep.subr.bf16.mxu1 %v8050_v3 }
0x1cd2   :  { %v3605_v52 = vmul.f32 0.5, %v3593_v39  ;;  %v3612_v9 = vsel %vm323_vm1, %v9234_v37, 0.0  ;;  %v9245_v40 = vadd.f32 %v3607_v8, %v9197_v22 }
0x1cd3   :  { %3613 = vadd.xlane.f32.xlu0 %v3612_v9 }
0x1cd4   :  { %v9242_v50 = vadd.f32 %v3605_v52, %v9189_v43  ;;  %v3621_v63 = vsel %vm333_vm2, %v9245_v40, 0.0 }
0x1cd6   :  { %v3615_v28 = vsel %vm323_vm1, %v9242_v50, 0.0 }
0x1cd7   :  { %3616 = vadd.xlane.f32.xlu1 %v3615_v28  ;;  %3619 = vadd.xlane.f32.xlu0 %v3618_v41  ;;  %v3667_v28 = vrot.slane %v9212_v54, %v8634_v4 }
0x1cdb   :  { %3622 = vadd.xlane.f32.xlu1 %v3621_v63 }
0x1d5c   :  { %v3614_v42 = vpop.xlane.xlu0 %3613 }
0x1d5d   :  { %v3624_v47 = vmul.f32 0.03125, %v3614_v42 }
0x1d5f   :  { %v3628_v43 = vsub.f32 %v9234_v37, %v3624_v47  ;;  %v3675_v47 = vrot.slane %v9217_v17, %v8634_v4 }
0x1d60   :  { %v3617_v46 = vpop.xlane.xlu1 %3616  ;;  %v3620_v49 = vpop.xlane.xlu0 %3619 }
0x1d61   :  { %v3625_v22 = vmul.f32 0.03125, %v3617_v46  ;;  %v3626_v56 = vmul.f32 0.03125, %v3620_v49  ;;  %v3632_v15 = vmul.f32 %v3628_v43, %v3628_v43 }
0x1d63   :  { %v3629_v16 = vsub.f32 %v9242_v50, %v3625_v22  ;;  %v3630_v62 = vsub.f32 %v9237_v53, %v3626_v56  ;;  %v3636_v58 = vsel %vm323_vm1, %v3632_v15, 0.0 }
0x1d64   :  { %v3623_v0 = vpop.xlane.xlu1 %3622  ;;  %3637 = vadd.xlane.f32.xlu0 %v3636_v58 }
0x1d65   :  { %v3627_v24 = vmul.f32 0.03125, %v3623_v0  ;;  %v3633_v12 = vmul.f32 %v3629_v16, %v3629_v16  ;;  %v3634_v29 = vmul.f32 %v3630_v62, %v3630_v62 }
0x1d67   :  { %v3631_v27 = vsub.f32 %v9245_v40, %v3627_v24  ;;  %v3639_v61 = vsel %vm323_vm1, %v3633_v12, 0.0  ;;  %v3642_v30 = vsel %vm323_vm1, %v3634_v29, 0.0 }
0x1d68   :  { %3640 = vadd.xlane.f32.xlu1 %v3639_v61  ;;  %3643 = vadd.xlane.f32.xlu0 %v3642_v30  ;;  %v6847_v30 = vld [vmem:[%s8674_s8 + $0x4] ss:$0 sm:$0xff] }
0x1d69   :  { %v3635_v45 = vmul.f32 %v3631_v27, %v3631_v27 }
0x1d6b   :  { %v3645_v13 = vsel %vm333_vm2, %v3635_v45, 0.0 }
0x1d6c   :  { %3646 = vadd.xlane.f32.xlu1 %v3645_v13 }
0x1ded   :  { %v3638_v57 = vpop.xlane.xlu0 %3637 }
0x1dee   :  { %v3648_v34 = vmul.f32 0.03125, %v3638_v57 }
0x1df0   :  { %v3652_v23 = vadd.f32 1e-05, %v3648_v34 }
0x1df1   :  { %v3641_v5 = vpop.xlane.xlu1 %3640  ;;  %v3644_v7 = vpop.xlane.xlu0 %3643 }
0x1df2   :  { %8288 = vrsqrt.f32 %v3652_v23  ;;  %v3649_v10 = vmul.f32 0.03125, %v3641_v5  ;;  %v3650_v1 = vmul.f32 0.03125, %v3644_v7 }
0x1df4   :  { %v3653_v6 = vadd.f32 1e-05, %v3649_v10  ;;  %v3654_v26 = vadd.f32 1e-05, %v3650_v1 }
0x1df5   :  { %v3647_v39 = vpop.xlane.xlu1 %3646 }
0x1df6   :  { %8290 = vrsqrt.f32 %v3653_v6  ;;  %v3651_v8 = vmul.f32 0.03125, %v3647_v39 }
0x1df7   :  { %8292 = vrsqrt.f32 %v3654_v26 }
0x1df8   :  { %v3655_v52 = vadd.f32 1e-05, %v3651_v8 }
0x1dfa   :  { %8294 = vrsqrt.f32 %v3655_v52  ;;  %v6837_v52 = vld [vmem:[%s8667_s1 + $0x4] ss:$0 sm:$0xff] }
0x1dff   :  { %v8289_v9 = vpop.eup %8288 }
0x1e00   :  { %v3660_v41 = vmul.f32 %v8289_v9, %v3628_v43 }
0x1e02   :  { %v3668_v46 = vmul.f32 %v3667_v28, %v3660_v41 }
0x1e03   :  { %v8291_v63 = vpop.eup %8290 }
0x1e04   :  { %v8293_v42 = vpop.eup %8292  ;;  %v3661_v49 = vmul.f32 %v8291_v63, %v3629_v16  ;;  %v3676_v58 = vadd.f32 %v3675_v47, %v3668_v46  ;;  %v8051_v16 = vld [vmem:[%s8624_s15 + $0x40] sm:$0xff]  }
0x1e05   :  { %v3662_v22 = vmul.f32 %v8293_v42, %v3630_v62 }
0x1e06   :  { %v3669_v56 = vmul.f32 %v3667_v28, %v3661_v49 }
0x1e07   :  { %v8295_v15 = vpop.eup %8294  ;;  %v3670_v24 = vmul.f32 %v3667_v28, %v3662_v22 }
0x1e08   :  { %v3677_v0 = vadd.f32 %v3675_v47, %v3669_v56  ;;  %v3663_v12 = vmul.f32 %v8295_v15, %v3631_v27  ;;  %v8052_v15 = vld [vmem:[%s8624_s15 + $0x58] sm:$0xff]  }
0x1e09   :  { %v3678_v54 = vadd.f32 %v3675_v47, %v3670_v24 }
0x1e0a   :  { %v9270_v29 = vpack.c.bf16 %v3677_v0, %v3676_v58  ;;  %v3671_v61 = vmul.f32 %v3667_v28, %v3663_v12 }
0x1e0c   :  { %v3679_v43 = vadd.f32 %v3675_v47, %v3671_v61  ;;  %7621 = vmatprep.mubr.msk.bf16.mxu1 %vm323_vm1, %v9270_v29  ;;  %7637 = vmatprep.mubr.msk.bf16.mxu0 %vm323_vm1, %v9270_v29  ;;  %v8053_v61 = vld [vmem:[%s8624_s15 + $0x50] sm:$0xff]  }
0x1e0e   :  { %v9276_v17 = vpack.c.bf16 %v3679_v43, %v3678_v54 }
0x1e10   :  { %7622 = vmatmul.mubr.msk.bf16.vlgmr.msra.gmra.mxu1 %vm323_vm1, %v9276_v17  ;;  %7638 = vmatmul.mubr.msk.bf16.vlgmr.msra.gmra.mxu0 %vm323_vm1, %v9276_v17 }
0x1e11   :  { %7626 = vmatpush3.bf16.msra.mxu1 %v8050_v3  ;;  %7629 = vmatprep.mubr.msk.bf16.mxu1 %vm323_vm1, %v9270_v29 }
0x1e12   :  { %7627 = vmatprep.subr.bf16.mxu1 %v8051_v16 }
0x1e15   :  { %7628 = vmatpush3.bf16.msra.mxu1 %v8051_v16 }
0x1e18   :  { %7630 = vmatmul.mubr.msk.bf16.vlgmr.msra.gmra.mxu1 %vm323_vm1, %v9276_v17 }
0x1ed0   :  { %v7623_v62 = vpop.f32.mrf.mxu1  ;;  %v7639_v27 = vpop.f32.mrf.mxu0 }
0x1ed1   :  { %v3904_v48 = vadd.f32 %v7639_v27, %v6847_v30  ;;  %v3756_v24 = vadd.f32 %v7623_v62, %v6827_v35 }
0x1ed2   :  { %v3747_v45 = vpop.f32.mrf.mxu1  ;;  %v3895_v13 = vpop.f32.mrf.mxu0 }
0x1ed3   :  { %v3748_v3 = vadd.f32 %v6827_v35, %v3747_v45  ;;  %v3896_v5 = vadd.f32 %v6847_v30, %v3895_v13 }
0x1ed4   :  { %v7624_v31 = vpop.f32.mrf.mxu1  ;;  %v7640_v32 = vpop.f32.mrf.mxu0 }
0x1ed5   :  { %v3907_v57 = vadd.f32 %v7640_v32, %v6847_v30  ;;  %v3759_v0 = vadd.f32 %v7624_v31, %v6827_v35 }
0x1ed6   :  { %v3750_v34 = vpop.f32.mrf.mxu1  ;;  %v3898_v23 = vpop.f32.mrf.mxu0 }
0x1ed7   :  { %v4030_v7 = vpack.c.bf16 %v3907_v57, %v3904_v48  ;;  %v3751_v10 = vadd.f32 %v6827_v35, %v3750_v34  ;;  %v3899_v1 = vadd.f32 %v6847_v30, %v3898_v23  ;;  %v3911_v12 = vpack.c.bf16 %v3759_v0, %v3756_v24 }
0x1ed8   :  { %v7631_v6 = vpop.f32.mrf.mxu1 }
0x1ed9   :  { %v3910_v26 = vpack.c.bf16 %v3751_v10, %v3748_v3  ;;  %v4029_v39 = vpack.c.bf16 %v3899_v1, %v3896_v5  ;;  %7879 = vmatprep.subr.msk.bf16.mxu0 %vm1054_vm4, %v4030_v7  ;;  %v4038_v8 = vsel %vm1054_vm4, %v4030_v7, 0  ;;  %v3830_v41 = vadd.f32 %v7631_v6, %v6837_v52  ;;  %v6871_v3 = vld [vmem:[%s8667_s1 + $0x5] ss:$0 sm:$0xff] }
0x1eda   :  { %v3821_v9 = vpop.f32.mrf.mxu1  ;;  %7650 = vmatpush3.bf16.msra.mxu0 %v4038_v8 }
0x1edb   :  { %7645 = vmatprep.mubr.msk.bf16.mxu1 %vm928_vm3, %v3910_v26  ;;  %7651 = vmatprep.subr.bf16.mxu0 %v4029_v39  ;;  %v3822_v47 = vadd.f32 %v6837_v52, %v3821_v9 }
0x1edc   :  { %v7632_v28 = vpop.f32.mrf.mxu1 }
0x1edd   :  { %v3833_v63 = vadd.f32 %v7632_v28, %v6837_v52 }
0x1ede   :  { %v3824_v42 = vpop.f32.mrf.mxu1  ;;  %7652 = vmatpush3.bf16.msra.mxu0 %v4029_v39 }
0x1edf   :  { %v3913_v46 = vpack.c.bf16 %v3833_v63, %v3830_v41  ;;  %v3825_v49 = vadd.f32 %v6837_v52, %v3824_v42 }
0x1ee1   :  { %v3912_v22 = vpack.c.bf16 %v3825_v49, %v3822_v47  ;;  %7877 = vmatprep.subr.msk.bf16.mxu1 %vm928_vm3, %v3913_v46  ;;  %v3924_v56 = vsel %vm928_vm3, %v3913_v46, 0 }
0x1ee2   :  { %7642 = vmatpush3.bf16.xpose.msra.mxu1 %v3924_v56 }
0x1ee3   :  { %7878 = vmatprep.subr.msk.bf16.mxu1 %vm928_vm3, %v3912_v22  ;;  %v3921_v58 = vsel %vm928_vm3, %v3912_v22, 0 }
0x1eea   :  { %7644 = vmatpush3.bf16.xpose.msra.mxu1 %v3921_v58 }
0x1eeb   :  { %7665 = vmatprep.subr.bf16.mxu1 %v8052_v15 }
0x1ef1   :  { %7646 = vmatmul.mubr.msk.bf16.vlgmr.msra.gmra.mxu1 %vm928_vm3, %v3911_v12 }
0x1ef2   :  { %7666 = vmatpush3.bf16.msra.mxu1 %v8052_v15  ;;  %7669 = vmatprep.mubr.msk.bf16.mxu1 %vm323_vm1, %v9270_v29 }
0x1ef3   :  { %7667 = vmatprep.subr.bf16.mxu1 %v8053_v61 }
0x1ef6   :  { %7668 = vmatpush3.bf16.msra.mxu1 %v8053_v61 }
0x1ef9   :  { %7670 = vmatmul.mubr.msk.bf16.vlgmr.msra.gmra.mxu1 %vm323_vm1, %v9276_v17 }
0x1fb1   :  { %v7647_v54 = vpop.f32.mrf.mxu1 }
0x1fb2   :  { %v3977_v16 = vmul.f32 0.35355338, %v7647_v54 }
0x1fb3   :  { %v3960_v43 = vpop.f32.mrf.mxu1 }
0x1fb4   :  { %v3975_v27 = vmul.f32 0.35355338, %v3960_v43  ;;  %v3981_v35 = vsel %vm8702_vm10, %v3977_v16, -1e+30 }
0x1fb5   :  { %v7648_v30 = vpop.f32.mrf.mxu1  ;;  %v3989_v23 = vsel %vm9723_vm6, %v3981_v35, -inf  ;;  %vm9726_vm6 = vmmov %vm9724_vm0 }
0x1fb6   :  { %v3979_v62 = vsel %vm9721_vm8, %v3975_v27, -1e+30  ;;  %v3978_v31 = vmul.f32 0.35355338, %v7648_v30  ;;  %vm9725_vm8 = vcmask 242688  }
0x1fb7   :  { %v3963_v45 = vpop.f32.mrf.mxu1  ;;  %v3983_v13 = vsel %vm9722_vm7, %v3979_v62, -inf  ;;  %vm9727_vm7 = vmmov %vm9724_vm0 }
0x1fb8   :  { %v3976_v32 = vmul.f32 0.35355338, %v3963_v45  ;;  %3984 = vmax.xlane.f32.xlu0 %v3983_v13  ;;  %v3982_v7 = vsel %vm8727_vm5, %v3978_v31, -1e+30  ;;  %v8054_v31 = vld [vmem:[%s8618_s11 + $0x58] sm:$0xff]  }
0x1fb9   :  { %v7671_v48 = vpop.f32.mrf.mxu1  ;;  %v3992_v39 = vsel %vm9725_vm8, %v3982_v7, -inf  ;;  %7657 = vmatprep.subr.bf16.mxu0 %v8054_v31 }
0x1fba   :  { %v3980_v57 = vsel %vm8719_vm15, %v3976_v32, -1e+30  ;;  %v4231_v1 = vadd.f32 %v7671_v48, %v6871_v3 }
0x1fbb   :  { %v4222_v34 = vpop.f32.mrf.mxu1  ;;  %v3986_v5 = vsel %vm9724_vm0, %v3980_v57, -inf }
0x1fbc   :  { %3990 = vmax.xlane.f32.xlu0 %v3989_v23  ;;  %3987 = vmax.xlane.f32.xlu1 %v3986_v5  ;;  %v4223_v8 = vadd.f32 %v6871_v3, %v4222_v34 }
0x1fbd   :  { %v7672_v10 = vpop.f32.mrf.mxu1 }
0x1fbe   :  { %v4234_v6 = vadd.f32 %v7672_v10, %v6871_v3 }
0x1fbf   :  { %v4225_v26 = vpop.f32.mrf.mxu1 }
0x1fc0   :  { %v4314_v52 = vpack.c.bf16 %v4234_v6, %v4231_v1  ;;  %v4226_v9 = vadd.f32 %v6871_v3, %v4225_v26  ;;  %3993 = vmax.xlane.f32.xlu1 %v3992_v39 }
0x1fc2   :  { %v4313_v28 = vpack.c.bf16 %v4226_v9, %v4223_v8  ;;  %7880 = vmatprep.subr.msk.bf16.mxu1 %vm928_vm3, %v4314_v52  ;;  %v4325_v41 = vsel %vm928_vm3, %v4314_v52, 0  ;;  %v8055_v8 = vld [vmem:[%s8618_s11 + $0x50] sm:$0xff]   ;;  %v8056_v52 = vld [vmem:[%s8631_s20 + $0x58] sm:$0xff]  }
0x1fc3   :  { %7682 = vmatpush3.bf16.xpose.msra.mxu1 %v4325_v41  ;;  %v8057_v9 = vld [vmem:[%s8631_s20 + $0x50] sm:$0xff]  }
0x1fc4   :  { %7881 = vmatprep.subr.msk.bf16.mxu1 %vm928_vm3, %v4313_v28  ;;  %v4322_v63 = vsel %vm928_vm3, %v4313_v28, 0  ;;  %v8058_v28 = vld [vmem:[%s8624_s15 + $0x68] sm:$0xff]  }
0x1fcb   :  { %7684 = vmatpush3.bf16.xpose.msra.mxu1 %v4322_v63 }
0x1fcc   :  { %7705 = vmatprep.subr.bf16.mxu1 %v8058_v28 }
0x2041   :  { %v3985_v42 = vpop.xlane.xlu0 %3984 }
0x2042   :  { %v3995_v47 = vsub.f32 %v3979_v62, %v3985_v42 }
0x2044   :  { %v3999_v46 = vmul.f32 1.442695, %v3995_v47 }
0x2045   :  { %v3991_v49 = vpop.xlane.xlu0 %3990  ;;  %v3988_v22 = vpop.xlane.xlu1 %3987 }
0x2046   :  { %8296 = vpow2.f32 %v3999_v46  ;;  %v3997_v56 = vsub.f32 %v3981_v35, %v3991_v49  ;;  %v3996_v15 = vsub.f32 %v3980_v57, %v3988_v22 }
0x2048   :  { %v4003_v58 = vmul.f32 1.442695, %v3997_v56  ;;  %v4001_v0 = vmul.f32 1.442695, %v3996_v15  ;;  %v6861_v56 = vld [vmem:[%s8662_s26 + $0x5] ss:$0 sm:$0xff] }
0x2049   :  { %v3994_v24 = vpop.xlane.xlu1 %3993 }
0x204a   :  { %8298 = vpow2.f32 %v4003_v58  ;;  %v3998_v12 = vsub.f32 %v3982_v7, %v3994_v24 }
0x204b   :  { %8300 = vpow2.f32 %v4001_v0 }
0x204c   :  { %v4005_v61 = vmul.f32 1.442695, %v3998_v12 }
0x204e   :  { %8302 = vpow2.f32 %v4005_v61 }
0x2053   :  { %v8297_v54 = vpop.eup %8296 }
0x2054   :  { %v4007_v43 = vsel %vm9724_vm0, %v8297_v54, 0.0 }
0x2055   :  { %4008 = vadd.xlane.f32.xlu0 %v4007_v43 }
0x2057   :  { %v8299_v16 = vpop.eup %8298 }
0x2058   :  { %v8301_v27 = vpop.eup %8300  ;;  %v4013_v30 = vsel %vm9726_vm6, %v8299_v16, 0.0  ;;  %vm9728_vm6 = vmmov %vm9724_vm0 }
0x2059   :  { %4014 = vadd.xlane.f32.xlu0 %v4013_v30  ;;  %v4010_v62 = vsel %vm9727_vm7, %v8301_v27, 0.0  ;;  %v8059_v30 = vld [vmem:[%s8624_s15 + $0x60] sm:$0xff]   ;;  %vm9729_vm7 = vcmp.lt.s32.totalorder %v8692_v19, 15 }
0x205a   :  { %4011 = vadd.xlane.f32.xlu1 %v4010_v62 }
0x205b   :  { %v8303_v45 = vpop.eup %8302 }
0x205c   :  { %v4016_v13 = vsel %vm9725_vm8, %v8303_v45, 0.0  ;;  %vm9730_vm8 = vmmov %vm9724_vm0 }
0x205e   :  { %4017 = vadd.xlane.f32.xlu1 %v4016_v13 }
0x20de   :  { %v4009_v32 = vpop.xlane.xlu0 %4008 }
0x20df   :  { %8304 = vrcp.f32 %v4009_v32 }
0x20e2   :  { %v4015_v35 = vpop.xlane.xlu0 %4014 }
0x20e3   :  { %v4012_v48 = vpop.xlane.xlu1 %4011 }
0x20e4   :  { %8306 = vrcp.f32 %v4012_v48 }
0x20e5   :  { %8308 = vrcp.f32 %v4015_v35 }
0x20e7   :  { %v4018_v57 = vpop.xlane.xlu1 %4017 }
0x20e8   :  { %8310 = vrcp.f32 %v4018_v57 }
0x20ec   :  { %v8305_v3 = vpop.eup %8304 }
0x20ed   :  { %v4023_v23 = vmul.f32 %v8305_v3, %v8297_v54 }
0x20f1   :  { %v8307_v34 = vpop.eup %8306 }
0x20f2   :  { %v4024_v5 = vmul.f32 %v8307_v34, %v8301_v27  ;;  %v8309_v7 = vpop.eup %8308 }
0x20f3   :  { %v4025_v6 = vmul.f32 %v8309_v7, %v8299_v16  ;;  %v6881_v16 = vld [vmem:[%s8674_s8 + $0x5] ss:$0 sm:$0xff] }
0x20f4   :  { %v4027_v10 = vpack.c.bf16 %v4024_v5, %v4023_v23 }
0x20f5   :  { %v8311_v1 = vpop.eup %8310 }
0x20f6   :  { %7653 = vmatprep.mubr.msk.bf16.mxu0 %vm9724_vm0, %v4027_v10  ;;  %v4026_v26 = vmul.f32 %v8311_v1, %v8303_v45 }
0x20f8   :  { %v4028_v39 = vpack.c.bf16 %v4026_v26, %v4025_v6 }
0x20fa   :  { %7654 = vmatmul.mubr.msk.bf16.vlgmr.msra.gmra.mxu0 %vm9728_vm6, %v4028_v39  ;;  %vm9731_vm6 = vmmov %vm9724_vm0 }
0x20fb   :  { %7658 = vmatpush3.bf16.msra.mxu0 %v8054_v31  ;;  %7661 = vmatprep.mubr.msk.bf16.mxu0 %vm323_vm1, %v9270_v29 }
0x20fc   :  { %7659 = vmatprep.subr.bf16.mxu0 %v8055_v8 }
0x20ff   :  { %7660 = vmatpush3.bf16.msra.mxu0 %v8055_v8 }
0x2100   :  { %7673 = vmatprep.subr.bf16.mxu0 %v8056_v52 }
0x2102   :  { %7662 = vmatmul.mubr.msk.bf16.vlgmr.msra.gmra.mxu0 %vm323_vm1, %v9276_v17 }
0x2103   :  { %7674 = vmatpush3.bf16.msra.mxu0 %v8056_v52  ;;  %7677 = vmatprep.mubr.msk.bf16.mxu0 %vm323_vm1, %v9270_v29 }
0x2104   :  { %7675 = vmatprep.subr.bf16.mxu0 %v8057_v9 }
0x2107   :  { %7676 = vmatpush3.bf16.msra.mxu0 %v8057_v9 }
0x210a   :  { %7678 = vmatmul.mubr.msk.bf16.vlgmr.msra.gmra.mxu0 %vm323_vm1, %v9276_v17 }
0x21ba   :  { %v9340_v41 = vpop.f32.mrf.mxu0 }
0x21bc   :  { %v9342_v63 = vpop.f32.mrf.mxu0 }
0x21be   :  { %v9344_v42 = vpop.f32.mrf.mxu0 }
0x21c0   :  { %v9346_v47 = vpop.f32.mrf.mxu0 }
0x21c2   :  { %v7663_v46 = vpop.f32.mrf.mxu0 }
0x21c3   :  { %v4157_v12 = vadd.f32 %v7663_v46, %v6861_v56  ;;  %v6905_v46 = vld [vmem:[%s8667_s1 + $0x6] ss:$0 sm:$0xff] }
0x21c4   :  { %v4148_v49 = vpop.f32.mrf.mxu0 }
0x21c5   :  { %v4149_v0 = vadd.f32 %v6861_v56, %v4148_v49 }
0x21c6   :  { %v7664_v22 = vpop.f32.mrf.mxu0 }
0x21c7   :  { %v4160_v15 = vadd.f32 %v7664_v22, %v6861_v56 }
0x21c8   :  { %v4151_v58 = vpop.f32.mrf.mxu0 }
0x21c9   :  { %v4152_v24 = vadd.f32 %v6861_v56, %v4151_v58  ;;  %v4312_v43 = vpack.c.bf16 %v4160_v15, %v4157_v12 }
0x21ca   :  { %v7679_v61 = vpop.f32.mrf.mxu0 }
0x21cb   :  { %v4311_v54 = vpack.c.bf16 %v4152_v24, %v4149_v0  ;;  %v4305_v45 = vadd.f32 %v7679_v61, %v6881_v16 }
0x21cc   :  { %v4296_v27 = vpop.f32.mrf.mxu0 }
0x21cd   :  { %7685 = vmatprep.mubr.msk.bf16.mxu1 %vm928_vm3, %v4311_v54  ;;  %v4297_v32 = vadd.f32 %v6881_v16, %v4296_v27 }
0x21ce   :  { %v7680_v62 = vpop.f32.mrf.mxu0  ;;  %7686 = vmatmul.mubr.msk.bf16.vlgmr.msra.gmra.mxu1 %vm928_vm3, %v4312_v43 }
0x21cf   :  { %v4308_v13 = vadd.f32 %v7680_v62, %v6881_v16  ;;  %7706 = vmatpush3.bf16.msra.mxu1 %v8058_v28  ;;  %7709 = vmatprep.mubr.msk.bf16.mxu1 %vm323_vm1, %v9270_v29 }
0x21d0   :  { %v4299_v31 = vpop.f32.mrf.mxu0  ;;  %7707 = vmatprep.subr.bf16.mxu1 %v8059_v30 }
0x21d1   :  { %v4431_v35 = vpack.c.bf16 %v4308_v13, %v4305_v45  ;;  %v4300_v48 = vadd.f32 %v6881_v16, %v4299_v31 }
0x21d3   :  { %v4430_v57 = vpack.c.bf16 %v4300_v48, %v4297_v32  ;;  %7882 = vmatprep.subr.msk.bf16.mxu0 %vm1054_vm4, %v4431_v35  ;;  %7708 = vmatpush3.bf16.msra.mxu1 %v8059_v30  ;;  %v4439_v3 = vsel %vm1054_vm4, %v4431_v35, 0 }
0x21d4   :  { %7690 = vmatpush3.bf16.msra.mxu0 %v4439_v3 }
0x21d5   :  { %7691 = vmatprep.subr.bf16.mxu0 %v4430_v57 }
0x21d6   :  { %7710 = vmatmul.mubr.msk.bf16.vlgmr.msra.gmra.mxu1 %vm323_vm1, %v9276_v17 }
0x21d8   :  { %7692 = vmatpush3.bf16.msra.mxu0 %v4430_v57 }
0x228e   :  { %v7687_v34 = vpop.f32.mrf.mxu1 }
0x228f   :  { %v4378_v5 = vmul.f32 0.35355338, %v7687_v34 }
0x2290   :  { %v4361_v23 = vpop.f32.mrf.mxu1 }
0x2291   :  { %v4376_v7 = vmul.f32 0.35355338, %v4361_v23  ;;  %v4382_v39 = vsel %vm8702_vm10, %v4378_v5, -1e+30 }
0x2292   :  { %v7688_v10 = vpop.f32.mrf.mxu1  ;;  %v4390_v22 = vsel %vm9724_vm0, %v4382_v39, -inf }
0x2293   :  { %v4380_v1 = vsel %vm9729_vm7, %v4376_v7, -1e+30  ;;  %v4379_v8 = vmul.f32 0.35355338, %v7688_v10  ;;  %vm9732_vm7 = vcmask 242688  }
0x2294   :  { %v4364_v6 = vpop.f32.mrf.mxu1  ;;  %v4384_v26 = vsel %vm9730_vm8, %v4380_v1, -inf  ;;  %vm9733_vm8 = vmmov %vm9724_vm0 }
0x2295   :  { %v4377_v52 = vmul.f32 0.35355338, %v4364_v6  ;;  %4385 = vmax.xlane.f32.xlu0 %v4384_v26  ;;  %v4383_v15 = vsel %vm8727_vm5, %v4379_v8, -1e+30 }
0x2296   :  { %v7711_v9 = vpop.f32.mrf.mxu1  ;;  %v4393_v61 = vsel %vm9732_vm7, %v4383_v15, -inf }
0x2297   :  { %v4381_v28 = vsel %vm8719_vm15, %v4377_v52, -1e+30  ;;  %v4632_v0 = vadd.f32 %v7711_v9, %v6905_v46 }
0x2298   :  { %v4623_v49 = vpop.f32.mrf.mxu1  ;;  %v4387_v56 = vsel %vm9731_vm6, %v4381_v28, -inf  ;;  %vm9734_vm6 = vmmov %vm9724_vm0 }
0x2299   :  { %4391 = vmax.xlane.f32.xlu0 %v4390_v22  ;;  %4388 = vmax.xlane.f32.xlu1 %v4387_v56  ;;  %v4624_v54 = vadd.f32 %v6905_v46, %v4623_v49 }
0x229a   :  { %v7712_v58 = vpop.f32.mrf.mxu1 }
0x229b   :  { %v4635_v24 = vadd.f32 %v7712_v58, %v6905_v46 }
0x229c   :  { %v4626_v12 = vpop.f32.mrf.mxu1 }
0x229d   :  { %v4715_v43 = vpack.c.bf16 %v4635_v24, %v4632_v0  ;;  %v4627_v16 = vadd.f32 %v6905_v46, %v4626_v12  ;;  %4394 = vmax.xlane.f32.xlu1 %v4393_v61 }
0x229f   :  { %v4714_v27 = vpack.c.bf16 %v4627_v16, %v4624_v54  ;;  %7883 = vmatprep.subr.msk.bf16.mxu1 %vm928_vm3, %v4715_v43  ;;  %v4726_v30 = vsel %vm928_vm3, %v4715_v43, 0 }
0x22a0   :  { %7722 = vmatpush3.bf16.xpose.msra.mxu1 %v4726_v30  ;;  %v8061_v30 = vld [vmem:[%s8618_s11 + $0x60] sm:$0xff]  }
0x22a1   :  { %7884 = vmatprep.subr.msk.bf16.mxu1 %vm928_vm3, %v4714_v27  ;;  %v4723_v62 = vsel %vm928_vm3, %v4714_v27, 0 }
0x22a8   :  { %7724 = vmatpush3.bf16.xpose.msra.mxu1 %v4723_v62  ;;  %v8062_v62 = vld [vmem:[%s8631_s20 + $0x68] sm:$0xff]  }
0x231e   :  { %v4386_v45 = vpop.xlane.xlu0 %4385 }
0x231f   :  { %v4396_v13 = vsub.f32 %v4380_v1, %v4386_v45  ;;  %v8063_v45 = vld [vmem:[%s8631_s20 + $0x60] sm:$0xff]  }
0x2321   :  { %v4400_v31 = vmul.f32 1.442695, %v4396_v13  ;;  %v8064_v13 = vld [vmem:[%s8624_s15 + $0x78] sm:$0xff]  }
0x2322   :  { %v4392_v32 = vpop.xlane.xlu0 %4391  ;;  %v4389_v35 = vpop.xlane.xlu1 %4388  ;;  %7745 = vmatprep.subr.bf16.mxu1 %v8064_v13 }
0x2323   :  { %8312 = vpow2.f32 %v4400_v31  ;;  %v4398_v48 = vsub.f32 %v4382_v39, %v4392_v32  ;;  %v4397_v57 = vsub.f32 %v4381_v28, %v4389_v35  ;;  %v8060_v28 = vld [vmem:[%s8618_s11 + $0x68] sm:$0xff]  }
0x2324   :  { %7697 = vmatprep.subr.bf16.mxu0 %v8060_v28 }
0x2325   :  { %v4404_v3 = vmul.f32 1.442695, %v4398_v48  ;;  %v4402_v34 = vmul.f32 1.442695, %v4397_v57 }
0x2326   :  { %v4395_v23 = vpop.xlane.xlu1 %4394 }
0x2327   :  { %8314 = vpow2.f32 %v4404_v3  ;;  %v4399_v5 = vsub.f32 %v4383_v15, %v4395_v23 }
0x2328   :  { %8316 = vpow2.f32 %v4402_v34 }
0x2329   :  { %v4406_v7 = vmul.f32 1.442695, %v4399_v5 }
0x232b   :  { %8318 = vpow2.f32 %v4406_v7  ;;  %v6895_v7 = vld [vmem:[%s8662_s26 + $0x6] ss:$0 sm:$0xff] }
0x2330   :  { %v8313_v10 = vpop.eup %8312 }
0x2331   :  { %v4408_v6 = vsel %vm9733_vm8, %v8313_v10, 0.0  ;;  %vm9735_vm8 = vmmov %vm9724_vm0 }
0x2332   :  { %4409 = vadd.xlane.f32.xlu0 %v4408_v6 }
0x2334   :  { %v8315_v1 = vpop.eup %8314 }
0x2335   :  { %v8317_v26 = vpop.eup %8316  ;;  %v4414_v8 = vsel %vm9724_vm0, %v8315_v1, 0.0 }
0x2336   :  { %4415 = vadd.xlane.f32.xlu0 %v4414_v8  ;;  %v4411_v39 = vsel %vm9734_vm6, %v8317_v26, 0.0  ;;  %vm9736_vm6 = vcmp.lt.s32.totalorder %v8692_v19, 15 }
0x2337   :  { %4412 = vadd.xlane.f32.xlu1 %v4411_v39 }
0x2338   :  { %v8319_v52 = vpop.eup %8318 }
0x2339   :  { %v4417_v9 = vsel %vm9732_vm7, %v8319_v52, 0.0  ;;  %vm9737_vm7 = vmmov %vm9724_vm0 }
0x233b   :  { %4418 = vadd.xlane.f32.xlu1 %v4417_v9 }
0x23bb   :  { %v4410_v46 = vpop.xlane.xlu0 %4409 }
0x23bc   :  { %8320 = vrcp.f32 %v4410_v46 }
0x23bf   :  { %v4416_v49 = vpop.xlane.xlu0 %4415 }
0x23c0   :  { %v4413_v22 = vpop.xlane.xlu1 %4412 }
0x23c1   :  { %8322 = vrcp.f32 %v4413_v22 }
0x23c2   :  { %8324 = vrcp.f32 %v4416_v49  ;;  %v8065_v49 = vld [vmem:[%s8624_s15 + $0x70] sm:$0xff]  }
0x23c4   :  { %v4419_v56 = vpop.xlane.xlu1 %4418 }
0x23c5   :  { %8326 = vrcp.f32 %v4419_v56 }
0x23c9   :  { %v8321_v15 = vpop.eup %8320 }
0x23ca   :  { %v4424_v0 = vmul.f32 %v8321_v15, %v8313_v10 }
0x23ce   :  { %v8323_v58 = vpop.eup %8322 }
0x23cf   :  { %v4425_v24 = vmul.f32 %v8323_v58, %v8317_v26  ;;  %v8325_v12 = vpop.eup %8324 }
0x23d0   :  { %v4426_v43 = vmul.f32 %v8325_v12, %v8315_v1 }
0x23d1   :  { %v4428_v61 = vpack.c.bf16 %v4425_v24, %v4424_v0 }
0x23d2   :  { %v8327_v54 = vpop.eup %8326 }
0x23d3   :  { %7693 = vmatprep.mubr.msk.bf16.mxu0 %vm9735_vm8, %v4428_v61  ;;  %v4427_v16 = vmul.f32 %v8327_v54, %v8319_v52  ;;  %vm9738_vm8 = vmmov %vm9724_vm0 }
0x23d5   :  { %v4429_v27 = vpack.c.bf16 %v4427_v16, %v4426_v43 }
0x23d7   :  { %7694 = vmatmul.mubr.msk.bf16.vlgmr.msra.gmra.mxu0 %vm9724_vm0, %v4429_v27 }
0x23d8   :  { %7698 = vmatpush3.bf16.msra.mxu0 %v8060_v28  ;;  %7701 = vmatprep.mubr.msk.bf16.mxu0 %vm323_vm1, %v9270_v29  ;;  %v6915_v28 = vld [vmem:[%s8674_s8 + $0x6] ss:$0 sm:$0xff] }
0x23d9   :  { %7699 = vmatprep.subr.bf16.mxu0 %v8061_v30 }
0x23dc   :  { %7700 = vmatpush3.bf16.msra.mxu0 %v8061_v30 }
0x23dd   :  { %7713 = vmatprep.subr.bf16.mxu0 %v8062_v62 }
0x23df   :  { %7702 = vmatmul.mubr.msk.bf16.vlgmr.msra.gmra.mxu0 %vm323_vm1, %v9276_v17 }
0x23e0   :  { %7714 = vmatpush3.bf16.msra.mxu0 %v8062_v62  ;;  %7717 = vmatprep.mubr.msk.bf16.mxu0 %vm323_vm1, %v9270_v29 }
0x23e1   :  { %7715 = vmatprep.subr.bf16.mxu0 %v8063_v45 }
0x23e4   :  { %7716 = vmatpush3.bf16.msra.mxu0 %v8063_v45 }
0x23e7   :  { %7718 = vmatmul.mubr.msk.bf16.vlgmr.msra.gmra.mxu0 %vm323_vm1, %v9276_v17 }
0x2497   :  { %v9395_v31 = vpop.f32.mrf.mxu0 }
0x2499   :  { %v9397_v32 = vpop.f32.mrf.mxu0 }
0x249b   :  { %v9399_v35 = vpop.f32.mrf.mxu0 }
0x249c   :  { %v7958_v48 = vpack.i.bf16 %v9399_v35, %v9395_v31 }
0x249d   :  { %v9403_v57 = vpop.f32.mrf.mxu0 }
0x249e   :  { %v7953_v3 = vpack.i.bf16 %v9403_v57, %v9397_v32 }
0x249f   :  { %v7703_v34 = vpop.f32.mrf.mxu0 }
0x24a0   :  { %v4558_v8 = vadd.f32 %v7703_v34, %v6895_v7 }
0x24a1   :  { %v4549_v23 = vpop.f32.mrf.mxu0 }
0x24a2   :  { %v4550_v1 = vadd.f32 %v6895_v7, %v4549_v23 }
0x24a3   :  { %v7704_v5 = vpop.f32.mrf.mxu0 }
0x24a4   :  { %v4561_v10 = vadd.f32 %v7704_v5, %v6895_v7 }
0x24a5   :  { %v4552_v6 = vpop.f32.mrf.mxu0 }
0x24a6   :  { %v4553_v26 = vadd.f32 %v6895_v7, %v4552_v6  ;;  %v4713_v9 = vpack.c.bf16 %v4561_v10, %v4558_v8 }
0x24a7   :  { %v7719_v39 = vpop.f32.mrf.mxu0 }
0x24a8   :  { %v4712_v52 = vpack.c.bf16 %v4553_v26, %v4550_v1  ;;  %v4706_v56 = vadd.f32 %v7719_v39, %v6915_v28  ;;  %v6939_v1 = vld [vmem:[%s8667_s1 + $0x7] ss:$0 sm:$0xff]  ;;  %s8483_s1 = smov 33  }
0x24a9   :  { %v4697_v46 = vpop.f32.mrf.mxu0 }
0x24aa   :  { %7725 = vmatprep.mubr.msk.bf16.mxu1 %vm928_vm3, %v4712_v52  ;;  %v4698_v0 = vadd.f32 %v6915_v28, %v4697_v46 }
0x24ab   :  { %v7720_v22 = vpop.f32.mrf.mxu0  ;;  %7726 = vmatmul.mubr.msk.bf16.vlgmr.msra.gmra.mxu1 %vm928_vm3, %v4713_v9 }
0x24ac   :  { %v4709_v15 = vadd.f32 %v7720_v22, %v6915_v28  ;;  %7746 = vmatpush3.bf16.msra.mxu1 %v8064_v13  ;;  %7749 = vmatprep.mubr.msk.bf16.mxu1 %vm323_vm1, %v9270_v29 }
0x24ad   :  { %v4700_v58 = vpop.f32.mrf.mxu0  ;;  %7747 = vmatprep.subr.bf16.mxu1 %v8065_v49 }
0x24ae   :  { %v4832_v24 = vpack.c.bf16 %v4709_v15, %v4706_v56  ;;  %v4701_v12 = vadd.f32 %v6915_v28, %v4700_v58 }
0x24b0   :  { %v4831_v61 = vpack.c.bf16 %v4701_v12, %v4698_v0  ;;  %7885 = vmatprep.subr.msk.bf16.mxu0 %vm1054_vm4, %v4832_v24  ;;  %7748 = vmatpush3.bf16.msra.mxu1 %v8065_v49  ;;  %v4840_v54 = vsel %vm1054_vm4, %v4832_v24, 0 }
0x24b1   :  { %7730 = vmatpush3.bf16.msra.mxu0 %v4840_v54 }
0x24b2   :  { %7731 = vmatprep.subr.bf16.mxu0 %v4831_v61 }
0x24b3   :  { %7750 = vmatmul.mubr.msk.bf16.vlgmr.msra.gmra.mxu1 %vm323_vm1, %v9276_v17 }
0x24b5   :  { %7732 = vmatpush3.bf16.msra.mxu0 %v4831_v61 }
0x256b   :  { %v7727_v43 = vpop.f32.mrf.mxu1 }
0x256c   :  { %v4779_v27 = vmul.f32 0.35355338, %v7727_v43 }
0x256d   :  { %v4762_v16 = vpop.f32.mrf.mxu1 }
0x256e   :  { %v4777_v30 = vmul.f32 0.35355338, %v4762_v16  ;;  %v4783_v23 = vsel %vm8702_vm10, %v4779_v27, -1e+30 }
0x256f   :  { %v7728_v62 = vpop.f32.mrf.mxu1  ;;  %v4791_v8 = vsel %vm9738_vm8, %v4783_v23, -inf  ;;  %vm9741_vm8 = vmmov %vm9724_vm0 }
0x2570   :  { %v4781_v45 = vsel %vm9736_vm6, %v4777_v30, -1e+30  ;;  %v4780_v5 = vmul.f32 0.35355338, %v7728_v62  ;;  %vm9739_vm6 = vcmask 242688  }
0x2571   :  { %v4765_v13 = vpop.f32.mrf.mxu1  ;;  %v4785_v34 = vsel %vm9737_vm7, %v4781_v45, -inf  ;;  %vm9740_vm7 = vmmov %vm9724_vm0 }
0x2572   :  { %v4778_v7 = vmul.f32 0.35355338, %v4765_v13  ;;  %4786 = vmax.xlane.f32.xlu0 %v4785_v34  ;;  %v4784_v52 = vsel %vm8727_vm5, %v4780_v5, -1e+30 }
0x2573   :  { %v7751_v10 = vpop.f32.mrf.mxu1  ;;  %v4794_v22 = vsel %vm9739_vm6, %v4784_v52, -inf }
0x2574   :  { %v4782_v6 = vsel %vm8719_vm15, %v4778_v7, -1e+30  ;;  %v5033_v28 = vadd.f32 %v7751_v10, %v6939_v1 }
0x2575   :  { %v5024_v26 = vpop.f32.mrf.mxu1  ;;  %v4788_v39 = vsel %vm9724_vm0, %v4782_v6, -inf }
0x2576   :  { %4792 = vmax.xlane.f32.xlu0 %v4791_v8  ;;  %4789 = vmax.xlane.f32.xlu1 %v4788_v39  ;;  %v5025_v56 = vadd.f32 %v6939_v1, %v5024_v26 }
0x2577   :  { %v7752_v9 = vpop.f32.mrf.mxu1 }
0x2578   :  { %v5036_v46 = vadd.f32 %v7752_v9, %v6939_v1 }
0x2579   :  { %v5027_v49 = vpop.f32.mrf.mxu1 }
0x257a   :  { %v5116_v15 = vpack.c.bf16 %v5036_v46, %v5033_v28  ;;  %v5028_v58 = vadd.f32 %v6939_v1, %v5027_v49  ;;  %4795 = vmax.xlane.f32.xlu1 %v4794_v22 }
0x257c   :  { %v5115_v0 = vpack.c.bf16 %v5028_v58, %v5025_v56  ;;  %7886 = vmatprep.subr.msk.bf16.mxu1 %vm928_vm3, %v5116_v15  ;;  %v5127_v24 = vsel %vm928_vm3, %v5116_v15, 0 }
0x257d   :  { %7762 = vmatpush3.bf16.xpose.msra.mxu1 %v5127_v24 }
0x257e   :  { %7887 = vmatprep.subr.msk.bf16.mxu1 %vm928_vm3, %v5115_v0  ;;  %v5124_v12 = vsel %vm928_vm3, %v5115_v0, 0 }
0x2585   :  { %7764 = vmatpush3.bf16.xpose.msra.mxu1 %v5124_v12 }
0x25fb   :  { %v4787_v61 = vpop.xlane.xlu0 %4786 }
0x25fc   :  { %v4797_v54 = vsub.f32 %v4781_v45, %v4787_v61 }
0x25fe   :  { %v4801_v43 = vmul.f32 1.442695, %v4797_v54 }
0x25ff   :  { %v4793_v16 = vpop.xlane.xlu0 %4792  ;;  %v4790_v27 = vpop.xlane.xlu1 %4789 }
0x2600   :  { %8328 = vpow2.f32 %v4801_v43  ;;  %v4799_v30 = vsub.f32 %v4783_v23, %v4793_v16  ;;  %v4798_v62 = vsub.f32 %v4782_v6, %v4790_v27  ;;  %v8067_v27 = vld [vmem:[%s8618_s11 + $0x70] sm:$0xff]  }
0x2602   :  { %v4805_v13 = vmul.f32 1.442695, %v4799_v30  ;;  %v4803_v34 = vmul.f32 1.442695, %v4798_v62  ;;  %v8068_v30 = vld [vmem:[%s8631_s20 + $0x78] sm:$0xff]   ;;  %v8069_v62 = vld [vmem:[%s8631_s20 + $0x70] sm:$0xff]  }
0x2603   :  { %v4796_v5 = vpop.xlane.xlu1 %4795 }
0x2604   :  { %8330 = vpow2.f32 %v4805_v13  ;;  %v4800_v7 = vsub.f32 %v4784_v52, %v4796_v5  ;;  %v8066_v52 = vld [vmem:[%s8618_s11 + $0x78] sm:$0xff]   ;;  %s8482_s11 = smov 30  }
0x2605   :  { %8332 = vpow2.f32 %v4803_v34  ;;  %7737 = vmatprep.subr.bf16.mxu0 %v8066_v52 }
0x2606   :  { %v4807_v10 = vmul.f32 1.442695, %v4800_v7 }
0x2608   :  { %8334 = vpow2.f32 %v4807_v10 }
0x260d   :  { %v8329_v1 = vpop.eup %8328 }
0x260e   :  { %v4809_v26 = vsel %vm9740_vm7, %v8329_v1, 0.0  ;;  %vm9742_vm7 = vmmov %vm9724_vm0 }
0x260f   :  { %4810 = vadd.xlane.f32.xlu0 %v4809_v26 }
0x2611   :  { %v8331_v45 = vpop.eup %8330 }
0x2612   :  { %v8333_v8 = vpop.eup %8332  ;;  %v4815_v39 = vsel %vm9741_vm8, %v8331_v45, 0.0  ;;  %vm9743_vm8 = vmmov %vm9724_vm0 }
0x2613   :  { %4816 = vadd.xlane.f32.xlu0 %v4815_v39  ;;  %v4812_v23 = vsel %vm9724_vm0, %v8333_v8, 0.0  ;;  %vm9744_vm0 = vcmp.lt.s32.totalorder %v8692_v19, 15 }
0x2614   :  { %4813 = vadd.xlane.f32.xlu1 %v4812_v23 }
0x2615   :  { %v8335_v6 = vpop.eup %8334 }
0x2616   :  { %v4818_v9 = vsel %vm9739_vm6, %v8335_v6, 0.0  ;;  %vm9745_vm6 = vmmov %vm9742_vm7 }
0x2618   :  { %4819 = vadd.xlane.f32.xlu1 %v4818_v9 }
0x2698   :  { %v4811_v28 = vpop.xlane.xlu0 %4810 }
0x2699   :  { %8336 = vrcp.f32 %v4811_v28 }
0x269c   :  { %v4817_v46 = vpop.xlane.xlu0 %4816 }
0x269d   :  { %v4814_v49 = vpop.xlane.xlu1 %4813 }
0x269e   :  { %8338 = vrcp.f32 %v4814_v49  ;;  %v6949_v49 = vld [vmem:[%s8674_s8 + $0x7] ss:$0 sm:$0xff] }
0x269f   :  { %8340 = vrcp.f32 %v4817_v46 }
0x26a1   :  { %v4820_v22 = vpop.xlane.xlu1 %4819 }
0x26a2   :  { %8342 = vrcp.f32 %v4820_v22 }
0x26a6   :  { %v8337_v56 = vpop.eup %8336 }
0x26a7   :  { %v4825_v58 = vmul.f32 %v8337_v56, %v8329_v1 }
0x26ab   :  { %v8339_v15 = vpop.eup %8338 }
0x26ac   :  { %v4826_v0 = vmul.f32 %v8339_v15, %v8333_v8  ;;  %v8341_v24 = vpop.eup %8340  ;;  %v6929_v8 = vld [vmem:[%s8662_s26 + $0x7] ss:$0 sm:$0xff]  ;;  %s9669_s26 = sld [smem:[%s9698_s0 + %s8482_s11]]  }
0x26ad   :  { %v4827_v54 = vmul.f32 %v8341_v24, %v8331_v45 }
0x26ae   :  { %v4829_v12 = vpack.c.bf16 %v4826_v0, %v4825_v58 }
0x26af   :  { %v8343_v61 = vpop.eup %8342 }
0x26b0   :  { %7733 = vmatprep.mubr.msk.bf16.mxu0 %vm9742_vm7, %v4829_v12  ;;  %v4828_v43 = vmul.f32 %v8343_v61, %v8335_v6  ;;  %vm9746_vm7 = vmmov %vm9745_vm6 }
0x26b2   :  { %v4830_v16 = vpack.c.bf16 %v4828_v43, %v4827_v54 }
0x26b4   :  { %7734 = vmatmul.mubr.msk.bf16.vlgmr.msra.gmra.mxu0 %vm9743_vm8, %v4830_v16  ;;  %vm9747_vm8 = vmmov %vm9745_vm6 }
0x26b5   :  { %7738 = vmatpush3.bf16.msra.mxu0 %v8066_v52  ;;  %7741 = vmatprep.mubr.msk.bf16.mxu0 %vm323_vm1, %v9270_v29 }
0x26b6   :  { %7739 = vmatprep.subr.bf16.mxu0 %v8067_v27 }
0x26b9   :  { %7740 = vmatpush3.bf16.msra.mxu0 %v8067_v27 }
0x26ba   :  { %7753 = vmatprep.subr.bf16.mxu0 %v8068_v30 }
0x26bc   :  { %7742 = vmatmul.mubr.msk.bf16.vlgmr.msra.gmra.mxu0 %vm323_vm1, %v9276_v17 }
0x26bd   :  { %7754 = vmatpush3.bf16.msra.mxu0 %v8068_v30  ;;  %7757 = vmatprep.mubr.msk.bf16.mxu0 %vm323_vm1, %v9270_v29 }
0x26be   :  { %7755 = vmatprep.subr.bf16.mxu0 %v8069_v62 }
0x26c1   :  { %7756 = vmatpush3.bf16.msra.mxu0 %v8069_v62 }
0x26c4   :  { %7758 = vmatmul.mubr.msk.bf16.vlgmr.msra.gmra.mxu0 %vm323_vm1, %v9276_v17 }
0x2774   :  { %v9453_v13 = vpop.f32.mrf.mxu0 }
0x2776   :  { %v9455_v34 = vpop.f32.mrf.mxu0 }
0x2778   :  { %v9457_v5 = vpop.f32.mrf.mxu0 }
0x2779   :  { %v7968_v7 = vpack.i.bf16 %v9457_v5, %v9453_v13 }
0x277a   :  { %v9461_v10 = vpop.f32.mrf.mxu0 }
0x277b   :  { %v7963_v29 = vpack.i.bf16 %v9461_v10, %v9455_v34 }
0x277c   :  { %v7743_v1 = vpop.f32.mrf.mxu0 }
0x277d   :  { %v4959_v9 = vadd.f32 %v7743_v1, %v6929_v8 }
0x277e   :  { %v4950_v26 = vpop.f32.mrf.mxu0 }
0x277f   :  { %v4951_v23 = vadd.f32 %v6929_v8, %v4950_v26 }
0x2780   :  { %v7744_v45 = vpop.f32.mrf.mxu0 }
0x2781   :  { %v4962_v17 = vadd.f32 %v7744_v45, %v6929_v8 }
0x2782   :  { %v4953_v39 = vpop.f32.mrf.mxu0 }
0x2783   :  { %v4954_v6 = vadd.f32 %v6929_v8, %v4953_v39  ;;  %v5114_v46 = vpack.c.bf16 %v4962_v17, %v4959_v9 }
0x2784   :  { %v7759_v52 = vpop.f32.mrf.mxu0 }
0x2785   :  { %v5113_v28 = vpack.c.bf16 %v4954_v6, %v4951_v23  ;;  %v5107_v15 = vadd.f32 %v7759_v52, %v6949_v49 }
0x2786   :  { %v5098_v22 = vpop.f32.mrf.mxu0 }
0x2787   :  { %7765 = vmatprep.mubr.msk.bf16.mxu1 %vm928_vm3, %v5113_v28  ;;  %v5099_v24 = vadd.f32 %v6949_v49, %v5098_v22 }
0x2788   :  { %v7760_v56 = vpop.f32.mrf.mxu0  ;;  %7766 = vmatmul.mubr.msk.bf16.vlgmr.msra.gmra.mxu1 %vm928_vm3, %v5114_v46 }
0x2789   :  { %v5110_v58 = vadd.f32 %v7760_v56, %v6949_v49 }
0x278a   :  { %v5101_v0 = vpop.f32.mrf.mxu0 }
0x278b   :  { %v5233_v12 = vpack.c.bf16 %v5110_v58, %v5107_v15  ;;  %v5102_v61 = vadd.f32 %v6949_v49, %v5101_v0 }
0x278d   :  { %v5232_v54 = vpack.c.bf16 %v5102_v61, %v5099_v24  ;;  %7888 = vmatprep.subr.msk.bf16.mxu0 %vm1054_vm4, %v5233_v12  ;;  %v5241_v43 = vsel %vm1054_vm4, %v5233_v12, 0 }
0x278e   :  { %7770 = vmatpush3.bf16.msra.mxu0 %v5241_v43 }
0x278f   :  { %7771 = vmatprep.subr.bf16.mxu0 %v5232_v54 }
0x2792   :  { %7772 = vmatpush3.bf16.msra.mxu0 %v5232_v54 }
0x2848   :  { %v7767_v16 = vpop.f32.mrf.mxu1 }
0x2849   :  { %v5180_v30 = vmul.f32 0.35355338, %v7767_v16 }
0x284a   :  { %v5163_v27 = vpop.f32.mrf.mxu1 }
0x284b   :  { %v5178_v62 = vmul.f32 0.35355338, %v5163_v27  ;;  %v5184_v17 = vsel %vm8702_vm10, %v5180_v30, -1e+30  ;;  %vm9749_vm10 = vmmov %vm9745_vm6 }
0x284c   :  { %v7768_v1 = vpop.f32.mrf.mxu1  ;;  %v5192_v9 = vsel %vm9746_vm7, %v5184_v17, -inf }
0x284d   :  { %v5182_v26 = vsel %vm9744_vm0, %v5178_v62, -1e+30  ;;  %v5181_v39 = vmul.f32 0.35355338, %v7768_v1  ;;  %vm9748_vm0 = vcmask 242688  }
0x284e   :  { %v5166_v45 = vpop.f32.mrf.mxu1  ;;  %v5186_v8 = vsel %vm9745_vm6, %v5182_v26, -inf }
0x284f   :  { %v5179_v23 = vmul.f32 0.35355338, %v5166_v45  ;;  %5187 = vmax.xlane.f32.xlu0 %v5186_v8  ;;  %v5185_v19 = vsel %vm8727_vm5, %v5181_v39, -1e+30  ;;  %vm9751_vm5 = vmmov %vm9745_vm6  ;;  %v8070_v8 = vld [vmem:[%s8933_s22 + $0x18] sm:$0xff]  }
0x2850   :  { %v5195_v28 = vsel %vm9748_vm0, %v5185_v19, -inf  ;;  %vm9755_vm7 = vmmov %vm9751_vm5  ;;  %7777 = vmatprep.subr.bf16.mxu0 %v8070_v8 }
0x2851   :  { %v5183_v6 = vsel %vm8719_vm15, %v5179_v23, -1e+30  ;;  %vm9750_vm15 = vmmov %vm9745_vm6 }
0x2852   :  { %v5189_v52 = vsel %vm9747_vm8, %v5183_v6, -inf  ;;  %vm9752_vm6 = vmmov %vm9748_vm0  ;;  %vm9758_vm0 = vcmask 130048  }
0x2853   :  { %5193 = vmax.xlane.f32.xlu0 %v5192_v9  ;;  %5190 = vmax.xlane.f32.xlu1 %v5189_v52  ;;  %vm9756_vm8 = vmmov %vm9751_vm5 }
0x2857   :  { %5196 = vmax.xlane.f32.xlu1 %v5195_v28 }
0x28d8   :  { %v5188_v25 = vpop.xlane.xlu0 %5187 }
0x28d9   :  { %v5198_v46 = vsub.f32 %v5182_v26, %v5188_v25 }
0x28db   :  { %v5202_v49 = vmul.f32 1.442695, %v5198_v46 }
0x28dc   :  { %v5194_v22 = vpop.xlane.xlu0 %5193  ;;  %v5191_v56 = vpop.xlane.xlu1 %5190 }
0x28dd   :  { %8344 = vpow2.f32 %v5202_v49  ;;  %v5200_v33 = vsub.f32 %v5184_v17, %v5194_v22  ;;  %v5199_v15 = vsub.f32 %v5183_v6, %v5191_v56  ;;  %v8071_v17 = vld [vmem:[%s8933_s22 + $0x10] sm:$0xff]  }
0x28df   :  { %v5206_v58 = vmul.f32 1.442695, %v5200_v33  ;;  %v5204_v0 = vmul.f32 1.442695, %v5199_v15 }
0x28e0   :  { %v5197_v24 = vpop.xlane.xlu1 %5196 }
0x28e1   :  { %8346 = vpow2.f32 %v5206_v58  ;;  %v5201_v12 = vsub.f32 %v5185_v19, %v5197_v24 }
0x28e2   :  { %8348 = vpow2.f32 %v5204_v0 }
0x28e3   :  { %v5208_v38 = vmul.f32 1.442695, %v5201_v12 }
0x28e5   :  { %8350 = vpow2.f32 %v5208_v38 }
0x28ea   :  { %v8345_v61 = vpop.eup %8344 }
0x28eb   :  { %v5210_v54 = vsel %vm9749_vm10, %v8345_v61, 0.0  ;;  %vm9759_vm10 = vmmov %vm9758_vm0 }
0x28ec   :  { %5211 = vadd.xlane.f32.xlu0 %v5210_v54 }
0x28ee   :  { %v8347_v43 = vpop.eup %8346 }
0x28ef   :  { %v8349_v16 = vpop.eup %8348  ;;  %v5216_v27 = vsel %vm9750_vm15, %v8347_v43, 0.0  ;;  %vm9760_vm15 = vmmov %vm9758_vm0 }
0x28f0   :  { %5217 = vadd.xlane.f32.xlu0 %v5216_v27  ;;  %v5213_v30 = vsel %vm9751_vm5, %v8349_v16, 0.0  ;;  %vm9761_vm5 = vmmov %vm9758_vm0 }
0x28f1   :  { %5214 = vadd.xlane.f32.xlu1 %v5213_v30 }
0x28f2   :  { %v8351_v62 = vpop.eup %8350 }
0x28f3   :  { %v5219_v1 = vsel %vm9752_vm6, %v8351_v62, 0.0  ;;  %vm9762_vm6 = vcmask 195584  }
0x28f4   :  { %vm9765_vm14 = vmmov %vm9762_vm6 }
0x28f5   :  { %5220 = vadd.xlane.f32.xlu1 %v5219_v1 }
0x2906   :  { %7959 = vrot.lane.b32.xlu1 %v7958_v48, %s9753_s17  ;;  %7954 = vrot.lane.b32.xlu0 %v7953_v3, %s9753_s17 }
0x290a   :  { %7964 = vrot.lane.b32.xlu1 %v7963_v29, %s9754_s29 }
0x290e   :  { %7969 = vrot.lane.b32.xlu1 %v7968_v7, %s9754_s29 }
0x2975   :  { %v5212_v26 = vpop.xlane.xlu0 %5211 }
0x2976   :  { %8352 = vrcp.f32 %v5212_v26 }
0x2979   :  { %v5218_v45 = vpop.xlane.xlu0 %5217 }
0x297a   :  { %v5215_v31 = vpop.xlane.xlu1 %5214 }
0x297b   :  { %8354 = vrcp.f32 %v5215_v31 }
0x297c   :  { %8356 = vrcp.f32 %v5218_v45 }
0x297d   :  { %v7955_v46 = vpop.permute.xlu0 %7954 }
0x297e   :  { %v5221_v35 = vpop.xlane.xlu1 %5220  ;;  %v7957_v22 = vunpack.i.h.bf16 %v7955_v46  ;;  %v7956_v56 = vunpack.i.l.bf16 %v7955_v46 }
0x297f   :  { %8358 = vrcp.f32 %v5221_v35 }
0x2982   :  { %v7960_v28 = vpop.permute.xlu1 %7959 }
0x2983   :  { %v8353_v32 = vpop.eup %8352  ;;  %v7962_v33 = vunpack.i.h.bf16 %v7960_v28  ;;  %v7961_v15 = vunpack.i.l.bf16 %v7960_v28 }
0x2984   :  { %v5226_v57 = vmul.f32 %v8353_v32, %v8345_v61 }
0x2985   :  { %v5343_v27 = vsel %vm928_vm3, %v9344_v42, %v7962_v33  ;;  %v5342_v30 = vsel %vm928_vm3, %v9340_v41, %v7961_v15 }
0x2986   :  { %v7965_v25 = vpop.permute.xlu1 %7964 }
0x2987   :  { %v7967_v24 = vunpack.i.h.bf16 %v7965_v25  ;;  %v7966_v12 = vunpack.i.l.bf16 %v7965_v25 }
0x2988   :  { %v8355_v48 = vpop.eup %8354 }
0x2989   :  { %v5227_v3 = vmul.f32 %v8355_v48, %v8349_v16  ;;  %v8357_v34 = vpop.eup %8356  ;;  %v5340_v16 = vsel %vm928_vm3, %v9342_v63, %v7956_v56 }
0x298a   :  { %v5228_v13 = vmul.f32 %v8357_v34, %v8347_v43  ;;  %v7970_v49 = vpop.permute.xlu1 %7969  ;;  %v5341_v43 = vsel %vm928_vm3, %v9346_v47, %v7957_v22  ;;  %v5344_v47 = vsel %vm9761_vm5, %v5340_v16, %v7966_v12  ;;  %v6963_v34 = vld [vmem:[%s8961_s27 + $0x1] ss:$0 sm:$0xff]  ;;  %vm9766_vm3 = vcmp.le.s32.totalorder %v8695_v20, 14 }
0x298b   :  { %v5230_v10 = vpack.c.bf16 %v5227_v3, %v5226_v57  ;;  %v7972_v58 = vunpack.i.h.bf16 %v7970_v49  ;;  %v7971_v0 = vunpack.i.l.bf16 %v7970_v49  ;;  %v5345_v35 = vsel %vm9760_vm15, %v5341_v43, %v7967_v24 }
0x298c   :  { %v8359_v29 = vpop.eup %8358 }
0x298d   :  { %7773 = vmatprep.mubr.msk.bf16.mxu0 %vm9755_vm7, %v5230_v10  ;;  %v5229_v5 = vmul.f32 %v8359_v29, %v8351_v62  ;;  %v5346_v1 = vsel %vm9758_vm0, %v5342_v30, %v7971_v0  ;;  %v5347_v26 = vsel %vm9759_vm10, %v5343_v27, %v7972_v58  ;;  %vm9763_vm7 = vmmov %vm9762_vm6  ;;  %v8072_v30 = vld [vmem:[%s8995_s5 + $0x18] sm:$0xff]  }
0x298f   :  { %v5231_v7 = vpack.c.bf16 %v5229_v5, %v5228_v13 }
0x2991   :  { %7774 = vmatmul.mubr.msk.bf16.vlgmr.msra.gmra.mxu0 %vm9756_vm8, %v5231_v7  ;;  %vm9764_vm8 = vmmov %vm9762_vm6 }
0x2992   :  { %7778 = vmatpush3.bf16.msra.mxu0 %v8070_v8 }
0x2993   :  { %7779 = vmatprep.subr.bf16.mxu0 %v8071_v17 }
0x2996   :  { %7780 = vmatpush3.bf16.msra.mxu0 %v8071_v17 }
0x2997   :  { %7793 = vmatprep.subr.bf16.mxu0 %v8072_v30 }
0x2a51   :  { %v7775_v39 = vpop.f32.mrf.mxu0 }
0x2a53   :  { %v5277_v23 = vpop.f32.mrf.mxu0 }
0x2a55   :  { %v7776_v6 = vpop.f32.mrf.mxu0 }
0x2a56   :  { %v7978_v9 = vpack.i.bf16 %v7776_v6, %v7775_v39 }
0x2a57   :  { %v5280_v52 = vpop.f32.mrf.mxu0 }
0x2a58   :  { %v7973_v19 = vpack.i.bf16 %v5280_v52, %v5277_v23  ;;  %7979 = vrot.lane.b32.xlu1 %v7978_v9, %s9757_s3 }
0x2a5a   :  { %7974 = vrot.lane.b32.xlu0 %v7973_v19, %s9757_s3 }
0x2aca   :  { %v7980_v38 = vpop.permute.xlu1 %7979 }
0x2acb   :  { %v7982_v61 = vunpack.i.h.bf16 %v7980_v38  ;;  %v7981_v54 = vunpack.i.l.bf16 %v7980_v38 }
0x2acc   :  { %v7975_v62 = vpop.permute.xlu0 %7974 }
0x2acd   :  { %v7977_v45 = vunpack.i.h.bf16 %v7975_v62  ;;  %v7976_v31 = vunpack.i.l.bf16 %v7975_v62  ;;  %v5350_v63 = vsel %vm9762_vm6, %v5346_v1, %v7981_v54  ;;  %v5351_v32 = vsel %vm9763_vm7, %v5347_v26, %v7982_v61  ;;  %v8073_v62 = vld [vmem:[%s9000_s16 + $0x18] sm:$0xff]   ;;  %v8074_v1 = vld [vmem:[%s8995_s5 + $0x10] sm:$0xff]  }
0x2ace   :  { %v5360_v57 = vpack.c.bf16 %v5351_v32, %v5350_v63  ;;  %v8075_v26 = vld [vmem:[%s9000_s16 + $0x10] sm:$0xff]   ;;  %7785 = vmatprep.subr.bf16.mxu1 %v8073_v62  ;;  %s8485_s16 = smov 34  }
0x2acf   :  { %v5348_v42 = vsel %vm9764_vm8, %v5344_v47, %v7976_v31  ;;  %v5349_v41 = vsel %vm9765_vm14, %v5345_v35, %v7977_v45  ;;  %7786 = vmatpush3.bf16.msra.mxu1 %v8073_v62 }
0x2ad0   :  { %v5359_v48 = vpack.c.bf16 %v5349_v41, %v5348_v42  ;;  %7787 = vmatprep.subr.bf16.mxu1 %v8075_v26 }
0x2ad2   :  { %7781 = vmatprep.mubr.msk.bf16.mxu0 %vm323_vm1, %v5359_v48 }
0x2ad3   :  { %7782 = vmatmul.mubr.msk.bf16.vlgmr.msra.gmra.mxu0 %vm323_vm1, %v5360_v57  ;;  %7788 = vmatpush3.bf16.msra.mxu1 %v8075_v26 }
0x2ad4   :  { %7794 = vmatpush3.bf16.msra.mxu0 %v8072_v30 }
0x2ad5   :  { %7795 = vmatprep.subr.bf16.mxu0 %v8074_v1 }
0x2ad8   :  { %7796 = vmatpush3.bf16.msra.mxu0 %v8074_v1 }
0x2b93   :  { %v7783_v3 = vpop.f32.mrf.mxu0 }
0x2b94   :  { %v5428_v29 = vadd.f32 %v7783_v3, %v6963_v34 }
0x2b95   :  { %v5419_v10 = vpop.f32.mrf.mxu0 }
0x2b96   :  { %v5420_v13 = vadd.f32 %v6963_v34, %v5419_v10  ;;  %v9532_v17 = vadd.f32 %v5428_v29, %v9237_v53 }
0x2b97   :  { %v7784_v5 = vpop.f32.mrf.mxu0 }
0x2b98   :  { %v9529_v7 = vadd.f32 %v5420_v13, %v9234_v37  ;;  %v5431_v39 = vadd.f32 %v7784_v5, %v6963_v34  ;;  %v5444_v19 = vsel %vm323_vm1, %v9532_v17, 0.0  ;;  %v9561_v13 = vld [vmem:[%s8536_s21 + $0x8] sm:$0x1f]  ;;  %s8481_s21 = smov 31  }
0x2b99   :  { %v5422_v8 = vpop.f32.mrf.mxu0  ;;  %v5493_v5 = vrot.slane %v9561_v13, %v9007_v44  ;;  %s6585_s7 = sld [smem:[%s9698_s0 + %s8481_s21]]  }
0x2b9a   :  { %v5423_v23 = vadd.f32 %v6963_v34, %v5422_v8  ;;  %v5438_v6 = vsel %vm323_vm1, %v9529_v7, 0.0  ;;  %v9540_v52 = vadd.f32 %v5431_v39, %v9245_v40 }
0x2b9b   :  { %5439 = vadd.xlane.f32.xlu0 %v5438_v6 }
0x2b9c   :  { %v9537_v9 = vadd.f32 %v5423_v23, %v9242_v50  ;;  %v5447_v53 = vsel %vm333_vm2, %v9540_v52, 0.0 }
0x2b9e   :  { %v5441_v37 = vsel %vm323_vm1, %v9537_v9, 0.0 }
0x2b9f   :  { %5442 = vadd.xlane.f32.xlu1 %v5441_v37  ;;  %5445 = vadd.xlane.f32.xlu0 %v5444_v19  ;;  %v9566_v37 = vld [vmem:[%s8544_s25 + $0x8] sm:$0x1f] }
0x2ba0   :  { %v5501_v19 = vrot.slane %v9566_v37, %v9007_v44 }
0x2ba3   :  { %5448 = vadd.xlane.f32.xlu0 %v5447_v53 }
0x2c24   :  { %v5440_v28 = vpop.xlane.xlu0 %5439 }
0x2c25   :  { %v5450_v25 = vmul.f32 0.03125, %v5440_v28 }
0x2c27   :  { %v5454_v50 = vsub.f32 %v9529_v7, %v5450_v25 }
0x2c28   :  { %v5443_v46 = vpop.xlane.xlu1 %5442  ;;  %v5446_v49 = vpop.xlane.xlu0 %5445 }
0x2c29   :  { %v5451_v40 = vmul.f32 0.03125, %v5443_v46  ;;  %v5452_v22 = vmul.f32 0.03125, %v5446_v49  ;;  %v5458_v56 = vmul.f32 %v5454_v50, %v5454_v50 }
0x2c2b   :  { %v5455_v33 = vsub.f32 %v9537_v9, %v5451_v40  ;;  %v5456_v15 = vsub.f32 %v9532_v17, %v5452_v22  ;;  %v5462_v58 = vsel %vm323_vm1, %v5458_v56, 0.0 }
0x2c2c   :  { %5463 = vadd.xlane.f32.xlu0 %v5462_v58  ;;  %v5449_v0 = vpop.xlane.xlu0 %5448 }
0x2c2d   :  { %v5453_v24 = vmul.f32 0.03125, %v5449_v0  ;;  %v5459_v12 = vmul.f32 %v5455_v33, %v5455_v33  ;;  %v5460_v38 = vmul.f32 %v5456_v15, %v5456_v15 }
0x2c2f   :  { %v5457_v61 = vsub.f32 %v9540_v52, %v5453_v24  ;;  %v5465_v54 = vsel %vm323_vm1, %v5459_v12, 0.0  ;;  %v5468_v43 = vsel %vm323_vm1, %v5460_v38, 0.0  ;;  %v8077_v24 = vld [vmem:[%s8928_s14 + $0x10] sm:$0xff]   ;;  %v6983_v12 = vld [vmem:[%s9028_s24 + $0x1] ss:$0 sm:$0xff] }
0x2c30   :  { %5466 = vadd.xlane.f32.xlu1 %v5465_v54  ;;  %5469 = vadd.xlane.f32.xlu0 %v5468_v43 }
0x2c31   :  { %v5461_v16 = vmul.f32 %v5457_v61, %v5457_v61 }
0x2c33   :  { %v5471_v27 = vsel %vm333_vm2, %v5461_v16, 0.0 }
0x2c34   :  { %5472 = vadd.xlane.f32.xlu1 %v5471_v27 }
0x2cb5   :  { %v5464_v45 = vpop.xlane.xlu0 %5463 }
0x2cb6   :  { %v5474_v31 = vmul.f32 0.03125, %v5464_v45 }
0x2cb8   :  { %v5478_v35 = vadd.f32 1e-05, %v5474_v31 }
0x2cb9   :  { %v5467_v47 = vpop.xlane.xlu1 %5466  ;;  %v5470_v63 = vpop.xlane.xlu0 %5469 }
0x2cba   :  { %8360 = vrsqrt.f32 %v5478_v35  ;;  %v5475_v32 = vmul.f32 0.03125, %v5467_v47  ;;  %v5476_v42 = vmul.f32 0.03125, %v5470_v63 }
0x2cbc   :  { %v5479_v41 = vadd.f32 1e-05, %v5475_v32  ;;  %v5480_v48 = vadd.f32 1e-05, %v5476_v42 }
0x2cbd   :  { %v5473_v57 = vpop.xlane.xlu1 %5472 }
0x2cbe   :  { %8362 = vrsqrt.f32 %v5479_v41  ;;  %v5477_v3 = vmul.f32 0.03125, %v5473_v57 }
0x2cbf   :  { %8364 = vrsqrt.f32 %v5480_v48 }
0x2cc0   :  { %v5481_v34 = vadd.f32 1e-05, %v5477_v3 }
0x2cc2   :  { %8366 = vrsqrt.f32 %v5481_v34 }
0x2cc7   :  { %v8361_v10 = vpop.eup %8360 }
0x2cc8   :  { %v5486_v29 = vmul.f32 %v8361_v10, %v5454_v50 }
0x2cca   :  { %v5494_v6 = vmul.f32 %v5493_v5, %v5486_v29  ;;  %v6973_v29 = vld [vmem:[%s9034_s6 + $0x1] ss:$0 sm:$0xff] }
0x2ccb   :  { %v8363_v8 = vpop.eup %8362 }
0x2ccc   :  { %v8365_v39 = vpop.eup %8364  ;;  %v5487_v23 = vmul.f32 %v8363_v8, %v5455_v33  ;;  %v5502_v46 = vadd.f32 %v5501_v19, %v5494_v6 }
0x2ccd   :  { %v5488_v53 = vmul.f32 %v8365_v39, %v5456_v15  ;;  %v8076_v15 = vld [vmem:[%s8928_s14 + $0x18] sm:$0xff]   ;;  %s8484_s14 = smov 32  }
0x2cce   :  { %v5495_v28 = vmul.f32 %v5493_v5, %v5487_v23  ;;  %7801 = vmatprep.subr.bf16.mxu1 %v8076_v15  ;;  %s6586_s5 = sld [smem:[%s9698_s0 + %s8484_s14]]  }
0x2ccf   :  { %v8367_v25 = vpop.eup %8366  ;;  %v5496_v40 = vmul.f32 %v5493_v5, %v5488_v53 }
0x2cd0   :  { %v5489_v50 = vmul.f32 %v8367_v25, %v5457_v61  ;;  %v5503_v49 = vadd.f32 %v5501_v19, %v5495_v28  ;;  %v6992_v28 = vld [vmem:[%s9039_s19 + $0x4] sm:$0x7]  ;;  %s6588_s19 = sld [smem:[%s9698_s0 + %s8485_s16]]  }
0x2cd1   :  { %v5504_v33 = vadd.f32 %v5501_v19, %v5496_v40 }
0x2cd2   :  { %v5513_v22 = vpack.c.bf16 %v5503_v49, %v5502_v46  ;;  %v5497_v56 = vmul.f32 %v5493_v5, %v5489_v50 }
0x2cd4   :  { %7789 = vmatprep.mubr.msk.bf16.mxu1 %vm323_vm1, %v5513_v22  ;;  %7797 = vmatprep.mubr.msk.bf16.mxu0 %vm323_vm1, %v5513_v22  ;;  %v5505_v58 = vadd.f32 %v5501_v19, %v5497_v56  ;;  %v5715_v22 = vrot.slane %v6992_v28, %v8547_v60 }
0x2cd6   :  { %v5514_v0 = vpack.c.bf16 %v5505_v58, %v5504_v33  ;;  %v5723_v33 = vrot.slane %v6992_v28, %v8634_v4  ;;  %v5751_v58 = vrot.slane %v6992_v28, %v9007_v44 }
0x2cd8   :  { %7790 = vmatmul.mubr.msk.bf16.vlgmr.msra.gmra.mxu1 %vm323_vm1, %v5514_v0  ;;  %7798 = vmatmul.mubr.msk.bf16.vlgmr.msra.gmra.mxu0 %vm323_vm1, %v5514_v0 }
0x2cd9   :  { %7802 = vmatpush3.bf16.msra.mxu1 %v8076_v15 }
0x2cda   :  { %7803 = vmatprep.subr.bf16.mxu1 %v8077_v24 }
0x2cdd   :  { %7804 = vmatpush3.bf16.msra.mxu1 %v8077_v24 }
0x2d98   :  { %v7799_v38 = vpop.f32.mrf.mxu0  ;;  %v7791_v57 = vpop.f32.mrf.mxu1 }
0x2d99   :  { %v5656_v61 = vadd.f32 %v7799_v38, %v6983_v12  ;;  %v5582_v23 = vadd.f32 %v7791_v57, %v6973_v29 }
0x2d9a   :  { %v5647_v54 = vpop.f32.mrf.mxu0  ;;  %v5573_v34 = vpop.f32.mrf.mxu1 }
0x2d9b   :  { %v6990_v43 = vmul.f32 -1.442695, %v5656_v61  ;;  %v5648_v16 = vadd.f32 %v6983_v12, %v5647_v54  ;;  %v5574_v8 = vadd.f32 %v6973_v29, %v5573_v34 }
0x2d9c   :  { %v7800_v27 = vpop.f32.mrf.mxu0  ;;  %v7792_v10 = vpop.f32.mrf.mxu1 }
0x2d9d   :  { %8368 = vpow2.f32 %v6990_v43  ;;  %v6988_v30 = vmul.f32 -1.442695, %v5648_v16  ;;  %v5659_v62 = vadd.f32 %v7800_v27, %v6983_v12  ;;  %v5585_v53 = vadd.f32 %v7792_v10, %v6973_v29 }
0x2d9e   :  { %v5650_v1 = vpop.f32.mrf.mxu0  ;;  %v5576_v6 = vpop.f32.mrf.mxu1 }
0x2d9f   :  { %8370 = vpow2.f32 %v6988_v30  ;;  %v6991_v26 = vmul.f32 -1.442695, %v5659_v62  ;;  %v5651_v45 = vadd.f32 %v6983_v12, %v5650_v1  ;;  %v5577_v49 = vadd.f32 %v6973_v29, %v5576_v6 }
0x2da1   :  { %8372 = vpow2.f32 %v6991_v26  ;;  %v6989_v31 = vmul.f32 -1.442695, %v5651_v45 }
0x2da3   :  { %8374 = vpow2.f32 %v6989_v31 }
0x2daa   :  { %v8369_v35 = vpop.eup %8368 }
0x2dab   :  { %v5676_v47 = vadd.f32 1.0, %v8369_v35 }
0x2dac   :  { %v8371_v63 = vpop.eup %8370 }
0x2dad   :  { %v5674_v32 = vadd.f32 1.0, %v8371_v63  ;;  %8376 = vrcp.f32 %v5676_v47 }
0x2dae   :  { %v8373_v42 = vpop.eup %8372 }
0x2daf   :  { %8378 = vrcp.f32 %v5674_v32  ;;  %v5677_v41 = vadd.f32 1.0, %v8373_v42 }
0x2db0   :  { %v8375_v48 = vpop.eup %8374 }
0x2db1   :  { %8380 = vrcp.f32 %v5677_v41  ;;  %v5675_v3 = vadd.f32 1.0, %v8375_v48  ;;  %v6994_v48 = vld [vmem:[%s9050_s2 + $0x1] ss:$0 sm:$0xff] }
0x2db3   :  { %8382 = vrcp.f32 %v5675_v3 }
0x2dba   :  { %v8377_v5 = vpop.eup %8376 }
0x2dbb   :  { %v5688_v50 = vmul.f32 %v8377_v5, %v5582_v23 }
0x2dbc   :  { %v8379_v39 = vpop.eup %8378 }
0x2dbd   :  { %v5686_v19 = vmul.f32 %v8379_v39, %v5574_v8  ;;  %v5699_v38 = vrot.slane %v5688_v50, 7  ;;  %v5735_v43 = vrot.slane %v5688_v50, 1  ;;  %v5726_v62 = vmul.f32 %v5723_v33, %v5688_v50 }
0x2dbe   :  { %v8381_v25 = vpop.eup %8380 }
0x2dbf   :  { %v5689_v46 = vmul.f32 %v8381_v25, %v5585_v53  ;;  %v5696_v40 = vrot.slane %v5686_v19, 7  ;;  %v5724_v54 = vmul.f32 %v5723_v33, %v5686_v19  ;;  %v5732_v30 = vrot.slane %v5686_v19, 1 }
0x2dc0   :  { %v8383_v56 = vpop.eup %8382 }
0x2dc1   :  { %v5701_v0 = vrot.slane %v5689_v46, 7  ;;  %v5737_v15 = vrot.slane %v5689_v46, 1  ;;  %v5687_v24 = vmul.f32 %v8383_v56, %v5577_v49  ;;  %v5707_v12 = vsel %vm2708_vm11, 0.0, %v5696_v40 }
0x2dc2   :  { %v5708_v61 = vsel %vm192_vm12, %v5707_v12, 0.0  ;;  %v5727_v29 = vmul.f32 %v5723_v33, %v5689_v46 }
0x2dc3   :  { %v5697_v16 = vrot.slane %v5687_v24, 7  ;;  %v5716_v27 = vmul.f32 %v5715_v22, %v5708_v61  ;;  %v5733_v60 = vrot.slane %v5687_v24, 1  ;;  %v5702_v4 = vsel %vm2708_vm11, %v5699_v38, %v5701_v0 }
0x2dc4   :  { %v5738_v44 = vsel %vm1054_vm4, %v5735_v43, %v5737_v15  ;;  %v5743_v1 = vsel %vm2764_vm13, %v5737_v15, 0.0  ;;  %v5725_v41 = vmul.f32 %v5723_v33, %v5687_v24  ;;  %vm9767_vm13 = vcmp.le.s32.totalorder %v8707_v55, 29 }
0x2dc5   :  { %v5698_v26 = vsel %vm2708_vm11, %v5696_v40, %v5697_v16  ;;  %v5728_v45 = vadd.f32 %v5724_v54, %v5716_v27  ;;  %v5734_v59 = vsel %vm1054_vm4, %v5732_v30, %v5733_v60  ;;  %v5736_v31 = vsel %vm1054_vm4, %v5733_v60, %v5735_v43 }
0x2dc6   :  { %v5709_v35 = vsel %vm9766_vm3, %v5698_v26, 0.0  ;;  %v5745_v47 = vsel %vm9068_vm9, %v5736_v31, 0.0  ;;  %v5752_v63 = vmul.f32 %v5751_v58, %v5734_v59  ;;  %v5700_v32 = vsel %vm2708_vm11, %v5697_v16, %v5699_v38 }
0x2dc7   :  { %v5717_v42 = vmul.f32 %v5715_v22, %v5709_v35  ;;  %v5711_v57 = vsel %vm9767_vm13, %v5702_v4, 0.0  ;;  %v5718_v3 = vmul.f32 %v5715_v22, %v5700_v32  ;;  %vm9768_vm4 = vcmp.le.s32.totalorder %v8707_v55, 28 }
0x2dc8   :  { %v5756_v34 = vadd.f32 %v5752_v63, %v5728_v45  ;;  %v5719_v10 = vmul.f32 %v5715_v22, %v5711_v57  ;;  %v5747_v20 = vsel %vm9768_vm4, %v5743_v1, 0.0  ;;  %v5753_v8 = vmul.f32 %v5751_v58, %v5745_v47  ;;  %v7006_v63 = vld [vmem:[%s9094_s13 + $0x1] ss:$0 sm:$0xff] }
0x2dc9   :  { %v5729_v5 = vadd.f32 %v5725_v41, %v5717_v42  ;;  %v5730_v39 = vadd.f32 %v5726_v62, %v5718_v3  ;;  %v5754_v23 = vmul.f32 %v5751_v58, %v5738_v44  ;;  %v5755_v53 = vmul.f32 %v5751_v58, %v5747_v20 }
0x2dca   :  { %v5768_v6 = vmul.f32 %v6994_v48, %v5756_v34  ;;  %v5731_v19 = vadd.f32 %v5727_v29, %v5719_v10  ;;  %vm6491_vm9 = vcmask 523264  }
0x2dcb   :  { %v5757_v28 = vadd.f32 %v5753_v8, %v5729_v5  ;;  %v5758_v25 = vadd.f32 %v5754_v23, %v5730_v39 }
0x2dcc   :  { %v5780_v50 = vadd.f32 %v6996_v36, %v5768_v6  ;;  %v5759_v49 = vadd.f32 %v5755_v53, %v5731_v19 }
0x2dcd   :  { %v5769_v40 = vmul.f32 %v6994_v48, %v5757_v28  ;;  %v5770_v56 = vmul.f32 %v6994_v48, %v5758_v25 }
0x2dce   :  { %v6997_v0 = vmul.f32 -1.442695, %v5780_v50  ;;  %v5771_v22 = vmul.f32 %v6994_v48, %v5759_v49 }
0x2dcf   :  { %v5781_v46 = vadd.f32 %v6996_v36, %v5769_v40  ;;  %v5782_v33 = vadd.f32 %v6996_v36, %v5770_v56 }
0x2dd0   :  { %8384 = vpow2.f32 %v6997_v0  ;;  %v5783_v55 = vadd.f32 %v6996_v36, %v5771_v22 }
0x2dd1   :  { %v6998_v15 = vmul.f32 -1.442695, %v5781_v46  ;;  %v6999_v24 = vmul.f32 -1.442695, %v5782_v33 }
0x2dd2   :  { %v7000_v12 = vmul.f32 -1.442695, %v5783_v55 }
0x2dd3   :  { %8386 = vpow2.f32 %v6998_v15 }
0x2dd4   :  { %8388 = vpow2.f32 %v6999_v24 }
0x2dd5   :  { %8390 = vpow2.f32 %v7000_v12  ;;  %v8078_v12 = vld [vmem:[%s9128_s12 + $0x18] sm:$0xff]  }
0x2dd6   :  { %7809 = vmatprep.subr.bf16.mxu0 %v8078_v12 }
0x2dd7   :  { %7810 = vmatpush3.bf16.msra.mxu0 %v8078_v12 }
0x2ddd   :  { %v8385_v38 = vpop.eup %8384 }
0x2dde   :  { %v5796_v58 = vadd.f32 1.0, %v8385_v38  ;;  %v8079_v38 = vld [vmem:[%s9128_s12 + $0x10] sm:$0xff]  }
0x2ddf   :  { %7811 = vmatprep.subr.bf16.mxu0 %v8079_v38 }
0x2de0   :  { %v8387_v61 = vpop.eup %8386  ;;  %8392 = vrcp.f32 %v5796_v58  ;;  %7812 = vmatpush3.bf16.msra.mxu0 %v8079_v38 }
0x2de1   :  { %v8389_v54 = vpop.eup %8388  ;;  %v5797_v43 = vadd.f32 1.0, %v8387_v61 }
0x2de2   :  { %v8391_v16 = vpop.eup %8390  ;;  %v5798_v27 = vadd.f32 1.0, %v8389_v54 }
0x2de3   :  { %8394 = vrcp.f32 %v5797_v43  ;;  %v5799_v30 = vadd.f32 1.0, %v8391_v16 }
0x2de4   :  { %8396 = vrcp.f32 %v5798_v27 }
0x2de5   :  { %8398 = vrcp.f32 %v5799_v30 }
0x2ded   :  { %v8393_v60 = vpop.eup %8392 }
0x2dee   :  { %v5808_v44 = vmul.f32 %v8393_v60, %v5780_v50 }
0x2df0   :  { %v8395_v4 = vpop.eup %8394 }
0x2df1   :  { %v8397_v62 = vpop.eup %8396  ;;  %v5809_v1 = vmul.f32 %v8395_v4, %v5781_v46 }
0x2df2   :  { %v8399_v26 = vpop.eup %8398  ;;  %v5810_v45 = vmul.f32 %v8397_v62, %v5782_v33 }
0x2df3   :  { %v5819_v59 = vpack.c.bf16 %v5809_v1, %v5808_v44  ;;  %v5811_v31 = vmul.f32 %v8399_v26, %v5783_v55 }
0x2df5   :  { %7805 = vmatprep.mubr.msk.bf16.mxu1 %vm323_vm1, %v5819_v59  ;;  %v5820_v35 = vpack.c.bf16 %v5811_v31, %v5810_v45  ;;  %v5953_v45 = vrot.slane %v9561_v13, %v9133_v2 }
0x2df7   :  { %7806 = vmatmul.mubr.msk.bf16.vlgmr.msra.gmra.mxu1 %vm323_vm1, %v5820_v35 }
0x2eb7   :  { %v7807_v47 = vpop.f32.mrf.mxu1 }
0x2eb8   :  { %v5888_v42 = vadd.f32 %v7807_v47, %v7006_v63 }
0x2eb9   :  { %v5879_v32 = vpop.f32.mrf.mxu1 }
0x2eba   :  { %v5880_v41 = vadd.f32 %v7006_v63, %v5879_v32  ;;  %v9609_v34 = vadd.f32 %v5888_v42, %v9532_v17  ;;  %v5961_v32 = vrot.slane %v9566_v37, %v9133_v2  ;;  %v8080_v2 = vld [vmem:[%s9144_s10 + $0x78] sm:$0xff]  }
0x2ebb   :  { %v7808_v48 = vpop.f32.mrf.mxu1  ;;  %7817 = vmatprep.subr.bf16.mxu1 %v8080_v2 }
0x2ebc   :  { %v9606_v57 = vadd.f32 %v5880_v41, %v9529_v7  ;;  %v5891_v10 = vadd.f32 %v7808_v48, %v7006_v63  ;;  %v5904_v36 = vsel %vm323_vm1, %v9609_v34, 0.0  ;;  %7818 = vmatpush3.bf16.msra.mxu1 %v8080_v2 }
0x2ebd   :  { %v5882_v3 = vpop.f32.mrf.mxu1 }
0x2ebe   :  { %v5883_v29 = vadd.f32 %v7006_v63, %v5882_v3  ;;  %v5898_v20 = vsel %vm323_vm1, %v9606_v57, 0.0  ;;  %v9617_v8 = vadd.f32 %v5891_v10, %v9540_v52 }
0x2ebf   :  { %5899 = vadd.xlane.f32.xlu0 %v5898_v20 }
0x2ec0   :  { %v9614_v5 = vadd.f32 %v5883_v29, %v9537_v9  ;;  %v5907_v17 = vsel %vm333_vm2, %v9617_v8, 0.0 }
0x2ec2   :  { %v5901_v7 = vsel %vm323_vm1, %v9614_v5, 0.0 }
0x2ec3   :  { %5902 = vadd.xlane.f32.xlu1 %v5901_v7  ;;  %5905 = vadd.xlane.f32.xlu0 %v5904_v36 }
0x2ec7   :  { %5908 = vadd.xlane.f32.xlu1 %v5907_v17 }
0x2f48   :  { %v5900_v39 = vpop.xlane.xlu0 %5899 }
0x2f49   :  { %v5910_v23 = vmul.f32 0.03125, %v5900_v39 }
0x2f4b   :  { %v5914_v9 = vsub.f32 %v9606_v57, %v5910_v23 }
0x2f4c   :  { %v5903_v6 = vpop.xlane.xlu1 %5902  ;;  %v5906_v19 = vpop.xlane.xlu0 %5905 }
0x2f4d   :  { %v5911_v52 = vmul.f32 0.03125, %v5903_v6  ;;  %v5912_v53 = vmul.f32 0.03125, %v5906_v19  ;;  %v5918_v28 = vmul.f32 %v5914_v9, %v5914_v9  ;;  %v8082_v6 = vld [vmem:[%s9144_s10 + $0x68] sm:$0xff]   ;;  %v8083_v19 = vld [vmem:[%s9144_s10 + $0x60] sm:$0xff]  }
0x2f4f   :  { %v5915_v25 = vsub.f32 %v9614_v5, %v5911_v52  ;;  %v5916_v50 = vsub.f32 %v9609_v34, %v5912_v53  ;;  %v5922_v49 = vsel %vm323_vm1, %v5918_v28, 0.0  ;;  %v8084_v52 = vld [vmem:[%s9144_s10 + $0x58] sm:$0xff]   ;;  %v8085_v53 = vld [vmem:[%s9144_s10 + $0x50] sm:$0xff]   ;;  %v8086_v28 = vld [vmem:[%s9144_s10 + $0x48] sm:$0xff]  }
0x2f50   :  { %v5909_v40 = vpop.xlane.xlu1 %5908  ;;  %5923 = vadd.xlane.f32.xlu0 %v5922_v49 }
0x2f51   :  { %v5913_v56 = vmul.f32 0.03125, %v5909_v40  ;;  %v5919_v0 = vmul.f32 %v5915_v25, %v5915_v25  ;;  %v5920_v22 = vmul.f32 %v5916_v50, %v5916_v50 }
0x2f53   :  { %v5917_v46 = vsub.f32 %v9617_v8, %v5913_v56  ;;  %v5925_v33 = vsel %vm323_vm1, %v5919_v0, 0.0  ;;  %v5928_v55 = vsel %vm323_vm1, %v5920_v22, 0.0 }
0x2f54   :  { %5926 = vadd.xlane.f32.xlu1 %v5925_v33  ;;  %5929 = vadd.xlane.f32.xlu0 %v5928_v55 }
0x2f55   :  { %v5921_v15 = vmul.f32 %v5917_v46, %v5917_v46 }
0x2f57   :  { %v5931_v24 = vsel %vm333_vm2, %v5921_v15, 0.0 }
0x2f58   :  { %5932 = vadd.xlane.f32.xlu1 %v5931_v24 }
0x2fd9   :  { %v5924_v58 = vpop.xlane.xlu0 %5923 }
0x2fda   :  { %v5934_v61 = vmul.f32 0.03125, %v5924_v58 }
0x2fdc   :  { %v5938_v54 = vadd.f32 1e-05, %v5934_v61 }
0x2fdd   :  { %v5927_v43 = vpop.xlane.xlu1 %5926  ;;  %v5930_v16 = vpop.xlane.xlu0 %5929 }
0x2fde   :  { %8400 = vrsqrt.f32 %v5938_v54  ;;  %v5935_v27 = vmul.f32 0.03125, %v5927_v43  ;;  %v5936_v30 = vmul.f32 0.03125, %v5930_v16 }
0x2fe0   :  { %v5939_v60 = vadd.f32 1e-05, %v5935_v27  ;;  %v5940_v4 = vadd.f32 1e-05, %v5936_v30 }
0x2fe1   :  { %v5933_v62 = vpop.xlane.xlu1 %5932 }
0x2fe2   :  { %8402 = vrsqrt.f32 %v5939_v60  ;;  %v5937_v44 = vmul.f32 0.03125, %v5933_v62 }
0x2fe3   :  { %8404 = vrsqrt.f32 %v5940_v4 }
0x2fe4   :  { %v5941_v1 = vadd.f32 1e-05, %v5937_v44 }
0x2fe6   :  { %8406 = vrsqrt.f32 %v5941_v1 }
0x2feb   :  { %v8401_v26 = vpop.eup %8400 }
0x2fec   :  { %v5946_v59 = vmul.f32 %v8401_v26, %v5914_v9  ;;  %v8081_v9 = vld [vmem:[%s9144_s10 + $0x70] sm:$0xff]  }
0x2fed   :  { %7819 = vmatprep.subr.bf16.mxu1 %v8081_v9 }
0x2fee   :  { %v5954_v63 = vmul.f32 %v5953_v45, %v5946_v59  ;;  %7820 = vmatpush3.bf16.msra.mxu1 %v8081_v9 }
0x2fef   :  { %v8403_v31 = vpop.eup %8402  ;;  %7821 = vmatprep.subr.bf16.mxu1 %v8082_v6 }
0x2ff0   :  { %v8405_v35 = vpop.eup %8404  ;;  %v5947_v47 = vmul.f32 %v8403_v31, %v5915_v25  ;;  %v5962_v29 = vadd.f32 %v5961_v32, %v5954_v63  ;;  %v8087_v25 = vld [vmem:[%s9144_s10 + $0x40] sm:$0xff]   ;;  %s6587_s10 = sld [smem:[%s9698_s0 + %s8483_s1]]  }
0x2ff1   :  { %v5948_v42 = vmul.f32 %v8405_v35, %v5916_v50  ;;  %v7016_v50 = vld [vmem:[%s9157_s9 + $0x1] ss:$0 sm:$0xff] }
0x2ff2   :  { %v5955_v41 = vmul.f32 %v5953_v45, %v5947_v47  ;;  %7822 = vmatpush3.bf16.msra.mxu1 %v8082_v6  ;;  %v7042_v63 = vld [vmem:[%s9163_s4 + $0x1] ss:$0 sm:$0xff] }
0x2ff3   :  { %v8407_v48 = vpop.eup %8406  ;;  %v5956_v3 = vmul.f32 %v5953_v45, %v5948_v42  ;;  %7823 = vmatprep.subr.bf16.mxu1 %v8083_v19 }
0x2ff4   :  { %v5949_v10 = vmul.f32 %v8407_v48, %v5917_v46  ;;  %v5963_v20 = vadd.f32 %v5961_v32, %v5955_v41 }
0x2ff5   :  { %v5964_v17 = vadd.f32 %v5961_v32, %v5956_v3 }
0x2ff6   :  { %v5957_v7 = vmul.f32 %v5953_v45, %v5949_v10  ;;  %v5973_v36 = vpack.c.bf16 %v5963_v20, %v5962_v29  ;;  %7824 = vmatpush3.bf16.msra.mxu1 %v8083_v19 }
0x2ff7   :  { %7825 = vmatprep.subr.bf16.mxu1 %v8084_v52 }
0x2ff8   :  { %7813 = vmatprep.mubr.msk.bf16.mxu0 %vm323_vm1, %v5973_v36  ;;  %v5965_v39 = vadd.f32 %v5961_v32, %v5957_v7 }
0x2ffa   :  { %v5974_v23 = vpack.c.bf16 %v5965_v39, %v5964_v17  ;;  %7826 = vmatpush3.bf16.msra.mxu1 %v8084_v52 }
0x2ffb   :  { %7827 = vmatprep.subr.bf16.mxu1 %v8085_v53 }
0x2ffc   :  { %7814 = vmatmul.mubr.msk.bf16.vlgmr.msra.gmra.mxu0 %vm323_vm1, %v5974_v23 }
0x2ffe   :  { %7828 = vmatpush3.bf16.msra.mxu1 %v8085_v53 }
0x2fff   :  { %7829 = vmatprep.subr.bf16.mxu1 %v8086_v28 }
0x3002   :  { %7830 = vmatpush3.bf16.msra.mxu1 %v8086_v28 }
0x3003   :  { %7831 = vmatprep.subr.bf16.mxu1 %v8087_v25 }
0x3006   :  { %7832 = vmatpush3.bf16.msra.mxu1 %v8087_v25 }
0x30bc   :  { %v7815_v49 = vpop.f32.mrf.mxu0 }
0x30bd   :  { %v6042_v40 = vadd.f32 %v7815_v49, %v7016_v50 }
0x30be   :  { %v6033_v56 = vpop.f32.mrf.mxu0 }
0x30bf   :  { %v7023_v0 = vmul.f32 -1.442695, %v6042_v40  ;;  %v6034_v22 = vadd.f32 %v7016_v50, %v6033_v56 }
0x30c0   :  { %v7816_v46 = vpop.f32.mrf.mxu0 }
0x30c1   :  { %v7021_v33 = vmul.f32 -1.442695, %v6034_v22  ;;  %v6045_v55 = vadd.f32 %v7816_v46, %v7016_v50  ;;  %8408 = vpow2.f32 %v7023_v0 }
0x30c2   :  { %v6036_v15 = vpop.f32.mrf.mxu0 }
0x30c3   :  { %8410 = vpow2.f32 %v7021_v33  ;;  %v7024_v24 = vmul.f32 -1.442695, %v6045_v55  ;;  %v6037_v12 = vadd.f32 %v7016_v50, %v6036_v15 }
0x30c5   :  { %8412 = vpow2.f32 %v7024_v24  ;;  %v7022_v38 = vmul.f32 -1.442695, %v6037_v12 }
0x30c7   :  { %8414 = vpow2.f32 %v7022_v38 }
0x30ce   :  { %v8409_v58 = vpop.eup %8408 }
0x30cf   :  { %v6062_v16 = vadd.f32 1.0, %v8409_v58 }
0x30d0   :  { %v8411_v61 = vpop.eup %8410 }
0x30d1   :  { %v6060_v54 = vadd.f32 1.0, %v8411_v61 }
0x30d2   :  { %v8413_v43 = vpop.eup %8412 }
0x30d3   :  { %v6063_v27 = vadd.f32 1.0, %v8413_v43  ;;  %8416 = vrcp.f32 %v6060_v54  ;;  %v8088_v54 = vld [vmem:[%s6585_s7 + $0x8] sm:$0xff]   ;;  %v8089_v43 = vld [vmem:[%s6585_s7] sm:$0xff]  }
0x30d4   :  { %v8415_v30 = vpop.eup %8414  ;;  %7837 = vmatprep.subr.bf16.mxu0 %v8088_v54 }
0x30d5   :  { %8418 = vrcp.f32 %v6063_v27  ;;  %v6061_v60 = vadd.f32 1.0, %v8415_v30  ;;  %7838 = vmatpush3.bf16.msra.mxu0 %v8088_v54 }
0x30d6   :  { %8420 = vrcp.f32 %v6062_v16  ;;  %7839 = vmatprep.subr.bf16.mxu0 %v8089_v43  ;;  %v8090_v16 = vld [vmem:[%s9669_s26 + $0x8] sm:$0xff]  }
0x30d7   :  { %8422 = vrcp.f32 %v6061_v60 }
0x30d9   :  { %7840 = vmatpush3.bf16.msra.mxu0 %v8089_v43 }
0x30da   :  { %7845 = vmatprep.subr.bf16.mxu0 %v8090_v16 }
0x30e0   :  { %v8417_v4 = vpop.eup %8416 }
0x30e1   :  { %v6072_v45 = vmul.f32 %v8417_v4, %v6034_v22 }
0x30e2   :  { %v8419_v62 = vpop.eup %8418 }
0x30e3   :  { %v8421_v44 = vpop.eup %8420  ;;  %v6075_v26 = vmul.f32 %v8419_v62, %v6045_v55 }
0x30e4   :  { %v8423_v1 = vpop.eup %8422  ;;  %v6074_v31 = vmul.f32 %v8421_v44, %v6042_v40 }
0x30e5   :  { %v6073_v59 = vmul.f32 %v8423_v1, %v6037_v12 }
0x30e6   :  { %v6096_v47 = vpack.c.bf16 %v6075_v26, %v6074_v31 }
0x30e7   :  { %v6095_v35 = vpack.c.bf16 %v6073_v59, %v6072_v45 }
0x30e9   :  { %7833 = vmatprep.mubr.bf16.mxu1 %v6095_v35 }
0x30ea   :  { %7834 = vmatmul.mubr.bf16.vlgmr.msra.gmra.mxu1 %v6096_v47 }
0x31aa   :  { %v7835_v32 = vpop.f32.mrf.mxu1 }
0x31ab   :  { %v6194_v42 = vadd.f32 %v7835_v32, %v7042_v63 }
0x31ac   :  { %v6185_v41 = vpop.f32.mrf.mxu1 }
0x31ad   :  { %v6186_v48 = vadd.f32 %v7042_v63, %v6185_v41  ;;  %v6202_v10 = vmul.f32 0.5, %v6194_v42 }
0x31ae   :  { %v7836_v3 = vpop.f32.mrf.mxu1 }
0x31af   :  { %v6200_v29 = vmul.f32 0.5, %v6186_v48  ;;  %v6197_v20 = vadd.f32 %v7836_v3, %v7042_v63  ;;  %v6206_v39 = vadd.f32 %v6202_v10, %v9609_v34  ;;  %v6271_v10 = vrot.slane %v9566_v37, %v9179_v51  ;;  %v8092_v37 = vld [vmem:[%s6587_s10 + $0x18] sm:$0xff]  }
0x31b0   :  { %v6188_v7 = vpop.f32.mrf.mxu1 }
0x31b1   :  { %v6204_v36 = vadd.f32 %v6200_v29, %v9606_v57  ;;  %v6189_v17 = vadd.f32 %v7042_v63, %v6188_v7  ;;  %v6203_v23 = vmul.f32 0.5, %v6197_v20  ;;  %v6214_v53 = vsel %vm323_vm1, %v6206_v39, 0.0 }
0x31b2   :  { %v6263_v63 = vrot.slane %v9561_v13, %v9179_v51  ;;  %v6361_v51 = vpack.c.bf16 %v8508_v18, %v8502_v11  ;;  %v7051_v11 = vld [vmem:[%s6586_s5] ss:$0 sm:$0xff] }
0x31b3   :  { %v6201_v2 = vmul.f32 0.5, %v6189_v17  ;;  %v6208_v9 = vsel %vm323_vm1, %v6204_v36, 0.0  ;;  %v6207_v19 = vadd.f32 %v6203_v23, %v9617_v8 }
0x31b4   :  { %6209 = vadd.xlane.f32.xlu0 %v6208_v9 }
0x31b5   :  { %v6205_v6 = vadd.f32 %v6201_v2, %v9614_v5  ;;  %v6217_v57 = vsel %vm333_vm2, %v6207_v19, 0.0 }
0x31b7   :  { %v6211_v52 = vsel %vm323_vm1, %v6205_v6, 0.0 }
0x31b8   :  { %6212 = vadd.xlane.f32.xlu1 %v6211_v52  ;;  %6215 = vadd.xlane.f32.xlu0 %v6214_v53  ;;  %v8091_v52 = vld [vmem:[%s9669_s26] sm:$0xff]   ;;  %v6360_v53 = vpack.c.bf16 %v8512_v21, %v8504_v14  ;;  %v8093_v14 = vld [vmem:[%s6587_s10 + $0x10] sm:$0xff]   ;;  %v8094_v21 = vld [vmem:[%s6587_s10 + $0x8] sm:$0xff]  }
0x31bc   :  { %6218 = vadd.xlane.f32.xlu1 %v6217_v57  ;;  %v8095_v57 = vld [vmem:[%s6587_s10] sm:$0xff]  }
0x323d   :  { %v6210_v28 = vpop.xlane.xlu0 %6209 }
0x323e   :  { %v6220_v34 = vmul.f32 0.03125, %v6210_v28 }
0x3240   :  { %v6224_v25 = vsub.f32 %v6204_v36, %v6220_v34 }
0x3241   :  { %v6213_v50 = vpop.xlane.xlu1 %6212  ;;  %v6216_v49 = vpop.xlane.xlu0 %6215 }
0x3242   :  { %v6221_v40 = vmul.f32 0.03125, %v6213_v50  ;;  %v6222_v56 = vmul.f32 0.03125, %v6216_v49  ;;  %v6228_v0 = vmul.f32 %v6224_v25, %v6224_v25 }
0x3244   :  { %v6225_v5 = vsub.f32 %v6205_v6, %v6221_v40  ;;  %v6226_v22 = vsub.f32 %v6206_v39, %v6222_v56  ;;  %v6232_v8 = vsel %vm323_vm1, %v6228_v0, 0.0 }
0x3245   :  { %v6219_v46 = vpop.xlane.xlu1 %6218  ;;  %6233 = vadd.xlane.f32.xlu0 %v6232_v8 }
0x3246   :  { %v6223_v33 = vmul.f32 0.03125, %v6219_v46  ;;  %v6229_v55 = vmul.f32 %v6225_v5, %v6225_v5  ;;  %v6230_v15 = vmul.f32 %v6226_v22, %v6226_v22 }
0x3248   :  { %v6227_v24 = vsub.f32 %v6207_v19, %v6223_v33  ;;  %v6235_v12 = vsel %vm323_vm1, %v6229_v55, 0.0  ;;  %v6238_v38 = vsel %vm323_vm1, %v6230_v15, 0.0 }
0x3249   :  { %6236 = vadd.xlane.f32.xlu1 %v6235_v12  ;;  %6239 = vadd.xlane.f32.xlu0 %v6238_v38 }
0x324a   :  { %v6231_v58 = vmul.f32 %v6227_v24, %v6227_v24 }
0x324c   :  { %v6241_v61 = vsel %vm333_vm2, %v6231_v58, 0.0 }
0x324d   :  { %6242 = vadd.xlane.f32.xlu1 %v6241_v61 }
0x32ce   :  { %v6234_v27 = vpop.xlane.xlu0 %6233 }
0x32cf   :  { %v6244_v30 = vmul.f32 0.03125, %v6234_v27 }
0x32d1   :  { %v6248_v60 = vadd.f32 1e-05, %v6244_v30 }
0x32d2   :  { %v6237_v4 = vpop.xlane.xlu1 %6236  ;;  %v6240_v62 = vpop.xlane.xlu0 %6239 }
0x32d3   :  { %8424 = vrsqrt.f32 %v6248_v60  ;;  %v6245_v44 = vmul.f32 0.03125, %v6237_v4  ;;  %v6246_v1 = vmul.f32 0.03125, %v6240_v62 }
0x32d5   :  { %v6249_v26 = vadd.f32 1e-05, %v6245_v44  ;;  %v6250_v45 = vadd.f32 1e-05, %v6246_v1 }
0x32d6   :  { %v6243_v59 = vpop.xlane.xlu1 %6242 }
0x32d7   :  { %8426 = vrsqrt.f32 %v6249_v26  ;;  %v6247_v31 = vmul.f32 0.03125, %v6243_v59 }
0x32d8   :  { %8428 = vrsqrt.f32 %v6250_v45 }
0x32d9   :  { %v6251_v35 = vadd.f32 1e-05, %v6247_v31 }
0x32db   :  { %8430 = vrsqrt.f32 %v6251_v35 }
0x32e0   :  { %v8425_v47 = vpop.eup %8424 }
0x32e1   :  { %v6256_v32 = vmul.f32 %v8425_v47, %v6224_v25 }
0x32e3   :  { %v6264_v3 = vmul.f32 %v6263_v63, %v6256_v32 }
0x32e4   :  { %v8427_v42 = vpop.eup %8426 }
0x32e5   :  { %v8429_v41 = vpop.eup %8428  ;;  %v6257_v48 = vmul.f32 %v8427_v42, %v6225_v5  ;;  %v6272_v39 = vadd.f32 %v6271_v10, %v6264_v3 }
0x32e6   :  { %v6258_v29 = vmul.f32 %v8429_v41, %v6226_v22 }
0x32e7   :  { %v6265_v20 = vmul.f32 %v6263_v63, %v6257_v48 }
0x32e8   :  { %v8431_v7 = vpop.eup %8430  ;;  %v6266_v36 = vmul.f32 %v6263_v63, %v6258_v29 }
0x32e9   :  { %v6259_v17 = vmul.f32 %v8431_v7, %v6227_v24  ;;  %v6273_v23 = vadd.f32 %v6271_v10, %v6265_v20 }
0x32ea   :  { %v6274_v13 = vadd.f32 %v6271_v10, %v6266_v36 }
0x32eb   :  { %v6267_v2 = vmul.f32 %v6263_v63, %v6259_v17  ;;  %v6281_v9 = vpack.c.bf16 %v6273_v23, %v6272_v39 }
0x32ed   :  { %7841 = vmatprep.mubr.msk.bf16.mxu0 %vm323_vm1, %v6281_v9  ;;  %v6275_v6 = vadd.f32 %v6271_v10, %v6267_v2 }
0x32ef   :  { %v6282_v19 = vpack.c.bf16 %v6275_v6, %v6274_v13 }
0x32f1   :  { %7842 = vmatmul.mubr.msk.bf16.vlgmr.msra.gmra.mxu0 %vm323_vm1, %v6282_v19 }
0x32f2   :  { %7846 = vmatpush3.bf16.msra.mxu0 %v8090_v16  ;;  %7849 = vmatprep.mubr.msk.bf16.mxu0 %vm323_vm1, %v6360_v53 }
0x32f3   :  { %7847 = vmatprep.subr.bf16.mxu0 %v8091_v52 }
0x32f6   :  { %7848 = vmatpush3.bf16.msra.mxu0 %v8091_v52 }
0x32f7   :  { %7853 = vmatprep.subr.bf16.mxu0 %v8092_v37 }
0x32f9   :  { %7850 = vmatmul.mubr.msk.bf16.vlgmr.msra.gmra.mxu0 %vm323_vm1, %v6361_v51 }
0x32fa   :  { %7854 = vmatpush3.bf16.msra.mxu0 %v8092_v37 }
0x32fb   :  { %7855 = vmatprep.subr.bf16.mxu0 %v8093_v14 }
0x32fe   :  { %7856 = vmatpush3.bf16.msra.mxu0 %v8093_v14 }
0x32ff   :  { %7857 = vmatprep.subr.bf16.mxu0 %v8094_v21 }
0x3302   :  { %7858 = vmatpush3.bf16.msra.mxu0 %v8094_v21 }
0x3303   :  { %7859 = vmatprep.subr.bf16.mxu0 %v8095_v57 }
0x3306   :  { %7860 = vmatpush3.bf16.msra.mxu0 %v8095_v57 }
0x33b1   :  { %v7843_v18 = vpop.f32.mrf.mxu0 }
0x33b2   :  { %v6350_v28 = vadd.f32 %v7843_v18, %v7051_v11 }
0x33b3   :  { %v6341_v34 = vpop.f32.mrf.mxu0 }
0x33b4   :  { %v7062_v25 = vmul.f32 -1.442695, %v6350_v28  ;;  %v6342_v50 = vadd.f32 %v7051_v11, %v6341_v34 }
0x33b5   :  { %v7844_v49 = vpop.f32.mrf.mxu0 }
0x33b6   :  { %v7060_v40 = vmul.f32 -1.442695, %v6342_v50  ;;  %v6353_v56 = vadd.f32 %v7844_v49, %v7051_v11  ;;  %8432 = vpow2.f32 %v7062_v25 }
0x33b7   :  { %v6344_v0 = vpop.f32.mrf.mxu0 }
0x33b8   :  { %8434 = vpow2.f32 %v7060_v40  ;;  %v7063_v5 = vmul.f32 -1.442695, %v6353_v56  ;;  %v6345_v22 = vadd.f32 %v7051_v11, %v6344_v0 }
0x33b9   :  { %v7851_v61 = vpop.f32.mrf.mxu0 }
0x33ba   :  { %8436 = vpow2.f32 %v7063_v5  ;;  %v7061_v8 = vmul.f32 -1.442695, %v6345_v22 }
0x33bb   :  { %v6414_v54 = vpop.f32.mrf.mxu0 }
0x33bc   :  { %8438 = vpow2.f32 %v7061_v8 }
0x33bd   :  { %v7852_v43 = vpop.f32.mrf.mxu0 }
0x33bf   :  { %v6417_v62 = vpop.f32.mrf.mxu0 }
0x33c3   :  { %v8433_v46 = vpop.eup %8432 }
0x33c4   :  { %v6443_v24 = vadd.f32 1.0, %v8433_v46 }
0x33c5   :  { %v8435_v33 = vpop.eup %8434 }
0x33c6   :  { %v6441_v55 = vadd.f32 1.0, %v8435_v33 }
0x33c7   :  { %v8437_v15 = vpop.eup %8436 }
0x33c8   :  { %v6444_v12 = vadd.f32 1.0, %v8437_v15  ;;  %8440 = vrcp.f32 %v6441_v55 }
0x33c9   :  { %v8439_v38 = vpop.eup %8438 }
0x33ca   :  { %8442 = vrcp.f32 %v6444_v12  ;;  %v6442_v58 = vadd.f32 1.0, %v8439_v38 }
0x33cb   :  { %8444 = vrcp.f32 %v6443_v24 }
0x33cc   :  { %8446 = vrcp.f32 %v6442_v58 }
0x33d5   :  { %v8441_v16 = vpop.eup %8440 }
0x33d6   :  { %v6453_v44 = vmul.f32 %v8441_v16, %v6414_v54 }
0x33d7   :  { %v8443_v27 = vpop.eup %8442 }
0x33d8   :  { %v8445_v30 = vpop.eup %8444  ;;  %v6456_v4 = vmul.f32 %v8443_v27, %v7852_v43 }
0x33d9   :  { %v8447_v60 = vpop.eup %8446  ;;  %v6455_v26 = vmul.f32 %v8445_v30, %v7851_v61 }
0x33da   :  { %v6454_v1 = vmul.f32 %v8447_v60, %v6417_v62 }
0x33db   :  { %v6466_v59 = vpack.c.bf16 %v6456_v4, %v6455_v26 }
0x33dc   :  { %v6465_v45 = vpack.c.bf16 %v6454_v1, %v6453_v44 }
0x33de   :  { %7861 = vmatprep.mubr.msk.bf16.mxu0 %vm6491_vm9, %v6465_v45 }
0x33df   :  { %7862 = vmatmul.mubr.msk.bf16.vlgmr.msra.gmra.mxu0 %vm6491_vm9, %v6466_v59 }
0x349f   :  { %v7863_v31 = vpop.f32.mrf.mxu0 }
0x34a0   :  { %6549 = vst.msk [vmem:[%s6588_s19 + $0x10] sm:$0xff] %vm323_vm1, %v7863_v31 }
0x34a1   :  { %v6532_v35 = vpop.f32.mrf.mxu0 }
0x34a2   :  { %6547 = vst.msk [vmem:[%s6588_s19] sm:$0xff] %vm323_vm1, %v6532_v35 }
0x34a3   :  { %v7864_v47 = vpop.f32.mrf.mxu0 }
0x34a4   :  { %6550 = vst.msk [vmem:[%s6588_s19 + $0x18] sm:$0x3f] %vm333_vm2, %v7864_v47 }
0x34a5   :  { %v6535_v63 = vpop.f32.mrf.mxu0 }
0x34a6   :  { %6548 = vst.msk [vmem:[%s6588_s19 + $0x8] sm:$0xff] %vm323_vm1, %v6535_v63 }

</bundles_post_ra>
